<compile_context>
chip_gen: v6e
topology: v6e:2x2x1
jax: 0.10.0
libtpu: 0.0.40
codegen_flags: <defaults>
</compile_context>

<pallas_src>
import jax
import jax.numpy as jnp
from jax.experimental import pallas as pl
from jax.experimental.pallas import tpu as pltpu


# ----------------------------- in-kernel helpers -----------------------------

def _conv_ln_relu(x, v, w_ref, b_ref, g_ref, bt_ref, k, B, T, mask_input):
    """ConvBlock1D on batch-stacked rows.  x: (B*T, H) batch-major, v: (B*T, 1).
    Conv1d('same') as ONE im2col matmul over all batches -> mask -> LayerNorm(channel)
    -> mask -> ReLU -> mask.  w_ref: (k*H, H) bf16."""
    H = x.shape[-1]
    if mask_input:
        x = x * v                                   # AdvSeqDiscriminator masks before each block
    pad = (k - 1) // 2                              # matches PyTorch 'same' for odd k only
    x3 = x.reshape(B, T, H)
    if pad > 0:
        zp = jnp.zeros((B, pad, H), jnp.float32)
        xp = jnp.concatenate([zp, x3, zp], axis=1)  # (B, T+2*pad, H) — per-batch zero pad
    else:
        xp = x3
    if k > 1:
        slab = jnp.concatenate([xp[:, j:j + T, :] for j in range(k)], axis=-1)  # (B,T,k*H)
    else:
        slab = xp
    slab2 = slab.reshape(B * T, k * H).astype(jnp.bfloat16)
    acc = (jnp.dot(slab2, w_ref[...], preferred_element_type=jnp.float32)
           + b_ref[...]) * v                        # conv + bias, masked_fill
    # TransposeLayerNorm == LayerNorm over channels; one-pass mean / E[x^2], var clamped.
    mean = jnp.mean(acc, axis=-1, keepdims=True)
    var = jnp.maximum(jnp.mean(acc * acc, axis=-1, keepdims=True) - mean * mean, 0.0)
    scale = g_ref[...] * jax.lax.rsqrt(var + 1e-5)
    normed = ((acc - mean) * scale + bt_ref[...]) * v
    return jnp.maximum(normed, 0.0) * v             # ReLU, masked_fill (dropout = identity)


def _attpool_fc(x, v, wa_ref, ba_ref, wf_ref, bf_ref):
    """AttentionPooling (masked softmax over time) then fc: Linear(H, 1).  x: (T, H)."""
    scores = jnp.sum(x * wa_ref[...], axis=-1, keepdims=True) + ba_ref[...]   # (T, 1)
    scores = jnp.where(v > 0.5, scores, jnp.float32(-1e30))
    m = jnp.max(scores, axis=0, keepdims=True)
    e = jnp.exp(scores - m) * v
    s = jnp.maximum(jnp.sum(e, axis=0, keepdims=True), 1e-20)   # guard fully-masked rows
    w = e * pl.reciprocal(s, approx=True)                       # divide on the EUP slot
    pooled = jnp.sum(w * x, axis=0, keepdims=True)              # (1, H)
    return jnp.sum(pooled * wf_ref[...], axis=-1, keepdims=True) + bf_ref[...]  # (1, 1)


# ----------------------------- fused kernel -----------------------------

def make_fused_kernel(B, T, H, G, pre_k, ksizes_all):
    G3 = 3 * G

    def kernel(lens_ref, *refs):
        (x_ref, txt_ref, em_ref,
         wp_ref, bp_ref, wt_ref, btx_ref, we_ref, be_ref,
         wi_ref, bi_ref, wh_ref, bh_ref, wg_ref, bg_ref) = refs[:15]
        idx = 15
        pre_refs = refs[idx:idx + 4]; idx += 4
        disc_blocks, disc_att = [], []
        for ks in ksizes_all:
            blocks = []
            for _ in ks:
                blocks.append(refs[idx:idx + 4]); idx += 4
            disc_blocks.append(blocks)
            disc_att.append(refs[idx:idx + 4]); idx += 4
        o_ref = refs[idx]
        gxf_ref, gxb_ref, outf_ref, outb_ref, v_ref = refs[idx + 1: idx + 6]

        # ---- valid mask from seq_lens (SMEM scalar prefetch) ----
        t_iota = jax.lax.broadcasted_iota(jnp.int32, (T, 1), 0)
        cols = [(t_iota < lens_ref[b]).astype(jnp.float32) for b in range(B)]   # each (T,1)
        v_ref[...] = jnp.concatenate(cols, axis=1)[:, :, None]                  # (T,B,1)

        # ---- fused front projection: proj(x) + text_compress(text) + relu(em_proj(em)) ----
        h0 = x_ref[...] * wp_ref[...] + bp_ref[...]                             # (T*B,1)*(1,H)
        h0 = h0 + jnp.dot(txt_ref[...], wt_ref[...],
                          preferred_element_type=jnp.float32) + btx_ref[...]
        em_h = jnp.maximum(
            jnp.dot(em_ref[...], we_ref[...], preferred_element_type=jnp.float32)
            + be_ref[...], 0.0)                                                  # (B, H)
        h0 = (h0.reshape(T, B, H) + em_h[None, :, :]).reshape(T * B, H)

        # ---- one fused GRU input projection for both directions (gates packed r|z|n) ----
        gx_all = (jnp.dot(h0.astype(jnp.bfloat16), wi_ref[...],
                          preferred_element_type=jnp.float32) + bi_ref[...])     # (T*B, 6G)
        gxf_ref[...] = gx_all[:, :G3].reshape(T, B, G3)
        gxb_ref[...] = gx_all[:, G3:].reshape(T, B, G3)

        zeros_bg = jnp.zeros((B, G), jnp.float32)

        def step(i, carry):
            hf, hb = carry                                                       # (B, G) each
            tb = T - 1 - i
            vf = v_ref[i]                                                        # (B, 1)
            vb = v_ref[tb]
            # one matmul for both directions: block-diag LHS @ vstack(whf, whb)
            lhs = jnp.concatenate(
                [jnp.concatenate([hf, zeros_bg], axis=1),
                 jnp.concatenate([zeros_bg, hb], axis=1)], axis=0)               # (2B, 2G)
            gh = jnp.dot(lhs, wh_ref[...], preferred_element_type=jnp.float32) + bh_ref[...]
            gx = jnp.concatenate([gxf_ref[i], gxb_ref[tb]], axis=0)              # (2B, 3G)
            hprev = jnp.concatenate([hf, hb], axis=0)                            # (2B, G)
            r = jax.nn.sigmoid(gx[:, :G] + gh[:, :G])
            z = jax.nn.sigmoid(gx[:, G:2 * G] + gh[:, G:2 * G])
            n = jnp.tanh(gx[:, 2 * G:] + r * gh[:, 2 * G:])
            h_new = (1.0 - z) * n + z * hprev
            v2 = jnp.concatenate([vf, vb], axis=0)                               # (2B, 1)
            h_out = jnp.where(v2 > 0.5, h_new, 0.0)                              # padded -> 0
            outf_ref[i] = h_out[:B]
            outb_ref[tb] = h_out[B:]
            h_carry = jnp.where(v2 > 0.5, h_new, hprev)                          # freeze past len
            return (h_carry[:B], h_carry[B:])

        h_init = jnp.zeros((B, G), jnp.float32)
        jax.lax.fori_loop(0, T, step, (h_init, h_init), unroll=True)   # T small -> full unroll

        # ---- gru_proj(cat(fwd, bwd)) + residual: ONE (T*B,2G)@(2G,H) matmul ----
        out2 = jnp.concatenate([outf_ref[...].reshape(T * B, G),
                                outb_ref[...].reshape(T * B, G)], axis=1)
        h = h0 + (jnp.dot(out2.astype(jnp.bfloat16), wg_ref[...],
                          preferred_element_type=jnp.float32) + bg_ref[...])      # (T*B, H)

        # ---- layout switch (VMEM-resident, no HBM trip): time-major -> batch-major ----
        h3 = h.reshape(T, B, H)
        X = jnp.concatenate([h3[:, b, :] for b in range(B)], axis=0)              # (B*T, H)
        V = jnp.concatenate(cols, axis=0)                                         # (B*T, 1)

        # ---- pre ConvBlock1D(kernel 5) + residual (input NOT pre-masked, per reference) ----
        wpr, bpr, gpr, btpr = pre_refs
        X = X + _conv_ln_relu(X, V, wpr, bpr, gpr, btpr, pre_k, B, T, mask_input=False)

        # ---- all discriminators ----
        row_logits = [[] for _ in range(B)]
        for di, ks in enumerate(ksizes_all):
            y = X
            for k, blk in zip(ks, disc_blocks[di]):
                w_r, b_r, g_r, bt_r = blk
                y = _conv_ln_relu(y, V, w_r, b_r, g_r, bt_r, k, B, T, mask_input=True)
            wa, ba, wf, bf = disc_att[di]
            for b in range(B):
                yb = y[b * T:(b + 1) * T, :]                                      # (T, H)
                row_logits[b].append(_attpool_fc(yb, cols[b], wa, ba, wf, bf))    # (1, 1)
        result = jnp.concatenate(
            [jnp.concatenate(row_logits[b], axis=-1) for b in range(B)], axis=0)  # (B, n_disc)
        o_ref[...] = result.astype(o_ref.dtype)

    return kernel


# ----------------------------- wrapper -----------------------------

def multi_length_discriminator_forward(params, x, seq_lens, text_hidden, em_hidden):
    """x: (B, T), seq_lens: (B,), text_hidden: (B, T, TH), em_hidden: (B, EH) -> (B, n_disc)."""
    B, T = x.shape
    H = params['w_proj'].shape[1]
    TH = text_hidden.shape[-1]
    EH = em_hidden.shape[-1]
    gp = params['gru']
    G = gp['whf'].shape[0]
    discs = params['discs']
    n_disc = len(discs)
    pre_k = params['pre']['w'].shape[0]
    ksizes_all = [[bp['w'].shape[0] for bp in d['blocks']] for d in discs]

    lens = jnp.asarray(seq_lens, jnp.int32)
    x_flat = jnp.transpose(x, (1, 0)).reshape(T * B, 1).astype(jnp.float32)       # time-major
    txt_flat = jnp.transpose(text_hidden, (1, 0, 2)).reshape(T * B, TH).astype(jnp.bfloat16)
    em = em_hidden.astype(jnp.bfloat16)

    # ---- fuse GRU weights in the wrapper (fwd|bwd packed) ----
    wi = jnp.concatenate([gp['wif'], gp['wib']], axis=1).astype(jnp.bfloat16)     # (H, 6G)
    bi = jnp.concatenate([gp['bif'], gp['bib']], axis=1)                          # (1, 6G)
    wh = jnp.concatenate([gp['whf'], gp['whb']], axis=0)                          # (2G, 3G) f32
    bh = jnp.concatenate([jnp.broadcast_to(gp['bhf'], (B, 3 * G)),
                          jnp.broadcast_to(gp['bhb'], (B, 3 * G))], axis=0)       # (2B, 3G)
    wg = jnp.concatenate([gp['wgf'], gp['wgb']], axis=0).astype(jnp.bfloat16)     # (2G, H)

    def fs(*shape):
        zeros = (0,) * len(shape)
        return pl.BlockSpec(shape, lambda i, lens_ref, _z=zeros: _z)

    args = [x_flat, txt_flat, em,
            params['w_proj'], params['b_proj'],
            params['w_text'].astype(jnp.bfloat16), params['b_text'],
            params['w_em'].astype(jnp.bfloat16), params['b_em'],
            wi, bi, wh, bh, wg, gp['bg']]
    in_specs = [fs(T * B, 1), fs(T * B, TH), fs(B, EH),
                fs(1, H), fs(1, H), fs(TH, H), fs(1, H), fs(EH, H), fs(1, H),
                fs(H, 6 * G), fs(1, 6 * G), fs(2 * G, 3 * G), fs(2 * B, 3 * G),
                fs(2 * G, H), fs(1, H)]

    def add_block(bp):
        k = bp['w'].shape[0]
        args.extend([bp['w'].reshape(k * H, H).astype(jnp.bfloat16),
                     bp['b'], bp['gamma'], bp['beta']])
        in_specs.extend([fs(k * H, H), fs(1, H), fs(1, H), fs(1, H)])

    add_block(params['pre'])
    for d in discs:
        for bp in d['blocks']:
            add_block(bp)
        args.extend([d['att_w'], d['att_b'], d['fc_w'], d['fc_b']])
        in_specs.extend([fs(1, H), fs(1, 1), fs(1, H), fs(1, 1)])

    kernel = make_fused_kernel(B, T, H, G, pre_k, ksizes_all)
    return pl.pallas_call(
        kernel,
        out_shape=jax.ShapeDtypeStruct((B, n_disc), jnp.float32),
        grid_spec=pltpu.PrefetchScalarGridSpec(
            num_scalar_prefetch=1,
            grid=(1,),
            in_specs=in_specs,
            out_specs=fs(B, n_disc),
            scratch_shapes=[pltpu.VMEM((T, B, 3 * G), jnp.float32),
                            pltpu.VMEM((T, B, 3 * G), jnp.float32),
                            pltpu.VMEM((T, B, G), jnp.float32),
                            pltpu.VMEM((T, B, G), jnp.float32),
                            pltpu.VMEM((T, B, 1), jnp.float32)]),
        compiler_params=pltpu.CompilerParams(dimension_semantics=("arbitrary",)),
    )(lens, *args)


# ----------------------------- params -----------------------------

def init_params(key, H, TH, EH, G, disc_kernel_sizes, pre_kernel=5):
    keys = iter(jax.random.split(key, 64))

    def nrm(shape, scale=0.1):
        return scale * jax.random.normal(next(keys), shape, jnp.float32)

    def conv_block_params(k):
        return dict(w=nrm((k, H, H)), b=nrm((1, H), 0.01),
                    gamma=jnp.ones((1, H), jnp.float32),
                    beta=jnp.zeros((1, H), jnp.float32))

    gru = dict(
        wif=nrm((H, 3 * G)), bif=nrm((1, 3 * G), 0.01),
        whf=nrm((G, 3 * G)), bhf=nrm((1, 3 * G), 0.01),
        wib=nrm((H, 3 * G)), bib=nrm((1, 3 * G), 0.01),
        whb=nrm((G, 3 * G)), bhb=nrm((1, 3 * G), 0.01),
        wgf=nrm((G, H)), wgb=nrm((G, H)), bg=nrm((1, H), 0.01))

    p = dict(
        w_proj=nrm((1, H)), b_proj=nrm((1, H), 0.01),
        w_text=nrm((TH, H)), b_text=nrm((1, H), 0.01),
        w_em=nrm((EH, H)), b_em=nrm((1, H), 0.01),
        pre=conv_block_params(pre_kernel),
        gru=gru,
        discs=[])
    for ks in disc_kernel_sizes:
        p['discs'].append(dict(
            blocks=[conv_block_params(k) for k in ks],
            att_w=nrm((1, H)), att_b=jnp.zeros((1, 1), jnp.float32),
            fc_w=nrm((1, H)), fc_b=jnp.zeros((1, 1), jnp.float32)))
    return p


# ----------------------------- main -----------------------------

if __name__ == "__main__":
    # H padded to a full 128-lane vreg so activation math / stores are lane-dense.
    B, T, H, TH, EH, G = 2, 16, 128, 64, 64, 32
    disc_kernel_sizes = [[3, 3], [7, 9]]

    key = jax.random.PRNGKey(0)
    k1, k2, k3, k4 = jax.random.split(key, 4)
    x = jax.random.normal(k1, (B, T), jnp.float32)
    text_hidden = jax.random.normal(k2, (B, T, TH), jnp.float32)
    em_hidden = jax.random.normal(k3, (B, EH), jnp.float32)
    seq_lens = jnp.array([T, T - 5], jnp.int32)

    params = init_params(k4, H, TH, EH, G, disc_kernel_sizes)

    out = multi_length_discriminator_forward(params, x, seq_lens, text_hidden, em_hidden)
    out = jax.block_until_ready(out)
    assert out.shape == (B, len(disc_kernel_sizes)), out.shape
    assert bool(jnp.all(jnp.isfinite(out)))
    print("KERNEL_OK")
</pallas_src>

<mosaic_0001>
module attributes {stable_mosaic.version = 11 : i64} {
  func.func @kernel(%arg0: i32, %arg1: memref<2xi32, #tpu.memory_space<smem>>, %arg2: memref<32x1xf32, #tpu.memory_space<vmem>>, %arg3: memref<32x64xbf16, #tpu.memory_space<vmem>>, %arg4: memref<2x64xbf16, #tpu.memory_space<vmem>>, %arg5: memref<1x128xf32, #tpu.memory_space<vmem>>, %arg6: memref<1x128xf32, #tpu.memory_space<vmem>>, %arg7: memref<64x128xbf16, #tpu.memory_space<vmem>>, %arg8: memref<1x128xf32, #tpu.memory_space<vmem>>, %arg9: memref<64x128xbf16, #tpu.memory_space<vmem>>, %arg10: memref<1x128xf32, #tpu.memory_space<vmem>>, %arg11: memref<128x192xbf16, #tpu.memory_space<vmem>>, %arg12: memref<1x192xf32, #tpu.memory_space<vmem>>, %arg13: memref<64x96xf32, #tpu.memory_space<vmem>>, %arg14: memref<4x96xf32, #tpu.memory_space<vmem>>, %arg15: memref<64x128xbf16, #tpu.memory_space<vmem>>, %arg16: memref<1x128xf32, #tpu.memory_space<vmem>>, %arg17: memref<640x128xbf16, #tpu.memory_space<vmem>>, %arg18: memref<1x128xf32, #tpu.memory_space<vmem>>, %arg19: memref<1x128xf32, #tpu.memory_space<vmem>>, %arg20: memref<1x128xf32, #tpu.memory_space<vmem>>, %arg21: memref<384x128xbf16, #tpu.memory_space<vmem>>, %arg22: memref<1x128xf32, #tpu.memory_space<vmem>>, %arg23: memref<1x128xf32, #tpu.memory_space<vmem>>, %arg24: memref<1x128xf32, #tpu.memory_space<vmem>>, %arg25: memref<384x128xbf16, #tpu.memory_space<vmem>>, %arg26: memref<1x128xf32, #tpu.memory_space<vmem>>, %arg27: memref<1x128xf32, #tpu.memory_space<vmem>>, %arg28: memref<1x128xf32, #tpu.memory_space<vmem>>, %arg29: memref<1x128xf32, #tpu.memory_space<vmem>>, %arg30: memref<1x1xf32, #tpu.memory_space<vmem>>, %arg31: memref<1x128xf32, #tpu.memory_space<vmem>>, %arg32: memref<1x1xf32, #tpu.memory_space<vmem>>, %arg33: memref<896x128xbf16, #tpu.memory_space<vmem>>, %arg34: memref<1x128xf32, #tpu.memory_space<vmem>>, %arg35: memref<1x128xf32, #tpu.memory_space<vmem>>, %arg36: memref<1x128xf32, #tpu.memory_space<vmem>>, %arg37: memref<1152x128xbf16, #tpu.memory_space<vmem>>, %arg38: memref<1x128xf32, #tpu.memory_space<vmem>>, %arg39: memref<1x128xf32, #tpu.memory_space<vmem>>, %arg40: memref<1x128xf32, #tpu.memory_space<vmem>>, %arg41: memref<1x128xf32, #tpu.memory_space<vmem>>, %arg42: memref<1x1xf32, #tpu.memory_space<vmem>>, %arg43: memref<1x128xf32, #tpu.memory_space<vmem>>, %arg44: memref<1x1xf32, #tpu.memory_space<vmem>>, %arg45: memref<2x2xf32, #tpu.memory_space<vmem>>, %arg46: memref<16x2x96xf32, #tpu.memory_space<vmem>>, %arg47: memref<16x2x96xf32, #tpu.memory_space<vmem>>, %arg48: memref<16x2x32xf32, #tpu.memory_space<vmem>>, %arg49: memref<16x2x32xf32, #tpu.memory_space<vmem>>, %arg50: memref<16x2x1xf32, #tpu.memory_space<vmem>>) attributes {dimension_semantics = [#tpu.dimension_semantics<arbitrary>], iteration_bounds = array<i64: 1>, scalar_prefetch = 1 : i64, scratch_operands = 5 : i64, tpu.core_type = #tpu.core_type<tc>, window_params = [{pipeline_mode = #tpu.pipeline_mode<synchronous>, transform_indices = @transform_0, window_bounds = array<i64: 32, 1>}, {pipeline_mode = #tpu.pipeline_mode<synchronous>, transform_indices = @transform_1, window_bounds = array<i64: 32, 64>}, {pipeline_mode = #tpu.pipeline_mode<synchronous>, transform_indices = @transform_2, window_bounds = array<i64: 2, 64>}, {pipeline_mode = #tpu.pipeline_mode<synchronous>, transform_indices = @transform_3, window_bounds = array<i64: 1, 128>}, {pipeline_mode = #tpu.pipeline_mode<synchronous>, transform_indices = @transform_4, window_bounds = array<i64: 1, 128>}, {pipeline_mode = #tpu.pipeline_mode<synchronous>, transform_indices = @transform_5, window_bounds = array<i64: 64, 128>}, {pipeline_mode = #tpu.pipeline_mode<synchronous>, transform_indices = @transform_6, window_bounds = array<i64: 1, 128>}, {pipeline_mode = #tpu.pipeline_mode<synchronous>, transform_indices = @transform_7, window_bounds = array<i64: 64, 128>}, {pipeline_mode = #tpu.pipeline_mode<synchronous>, transform_indices = @transform_8, window_bounds = array<i64: 1, 128>}, {pipeline_mode = #tpu.pipeline_mode<synchronous>, transform_indices = @transform_9, window_bounds = array<i64: 128, 192>}, {pipeline_mode = #tpu.pipeline_mode<synchronous>, transform_indices = @transform_10, window_bounds = array<i64: 1, 192>}, {pipeline_mode = #tpu.pipeline_mode<synchronous>, transform_indices = @transform_11, window_bounds = array<i64: 64, 96>}, {pipeline_mode = #tpu.pipeline_mode<synchronous>, transform_indices = @transform_12, window_bounds = array<i64: 4, 96>}, {pipeline_mode = #tpu.pipeline_mode<synchronous>, transform_indices = @transform_13, window_bounds = array<i64: 64, 128>}, {pipeline_mode = #tpu.pipeline_mode<synchronous>, transform_indices = @transform_14, window_bounds = array<i64: 1, 128>}, {pipeline_mode = #tpu.pipeline_mode<synchronous>, transform_indices = @transform_15, window_bounds = array<i64: 640, 128>}, {pipeline_mode = #tpu.pipeline_mode<synchronous>, transform_indices = @transform_16, window_bounds = array<i64: 1, 128>}, {pipeline_mode = #tpu.pipeline_mode<synchronous>, transform_indices = @transform_17, window_bounds = array<i64: 1, 128>}, {pipeline_mode = #tpu.pipeline_mode<synchronous>, transform_indices = @transform_18, window_bounds = array<i64: 1, 128>}, {pipeline_mode = #tpu.pipeline_mode<synchronous>, transform_indices = @transform_19, window_bounds = array<i64: 384, 128>}, {pipeline_mode = #tpu.pipeline_mode<synchronous>, transform_indices = @transform_20, window_bounds = array<i64: 1, 128>}, {pipeline_mode = #tpu.pipeline_mode<synchronous>, transform_indices = @transform_21, window_bounds = array<i64: 1, 128>}, {pipeline_mode = #tpu.pipeline_mode<synchronous>, transform_indices = @transform_22, window_bounds = array<i64: 1, 128>}, {pipeline_mode = #tpu.pipeline_mode<synchronous>, transform_indices = @transform_23, window_bounds = array<i64: 384, 128>}, {pipeline_mode = #tpu.pipeline_mode<synchronous>, transform_indices = @transform_24, window_bounds = array<i64: 1, 128>}, {pipeline_mode = #tpu.pipeline_mode<synchronous>, transform_indices = @transform_25, window_bounds = array<i64: 1, 128>}, {pipeline_mode = #tpu.pipeline_mode<synchronous>, transform_indices = @transform_26, window_bounds = array<i64: 1, 128>}, {pipeline_mode = #tpu.pipeline_mode<synchronous>, transform_indices = @transform_27, window_bounds = array<i64: 1, 128>}, {pipeline_mode = #tpu.pipeline_mode<synchronous>, transform_indices = @transform_28, window_bounds = array<i64: 1, 1>}, {pipeline_mode = #tpu.pipeline_mode<synchronous>, transform_indices = @transform_29, window_bounds = array<i64: 1, 128>}, {pipeline_mode = #tpu.pipeline_mode<synchronous>, transform_indices = @transform_30, window_bounds = array<i64: 1, 1>}, {pipeline_mode = #tpu.pipeline_mode<synchronous>, transform_indices = @transform_31, window_bounds = array<i64: 896, 128>}, {pipeline_mode = #tpu.pipeline_mode<synchronous>, transform_indices = @transform_32, window_bounds = array<i64: 1, 128>}, {pipeline_mode = #tpu.pipeline_mode<synchronous>, transform_indices = @transform_33, window_bounds = array<i64: 1, 128>}, {pipeline_mode = #tpu.pipeline_mode<synchronous>, transform_indices = @transform_34, window_bounds = array<i64: 1, 128>}, {pipeline_mode = #tpu.pipeline_mode<synchronous>, transform_indices = @transform_35, window_bounds = array<i64: 1152, 128>}, {pipeline_mode = #tpu.pipeline_mode<synchronous>, transform_indices = @transform_36, window_bounds = array<i64: 1, 128>}, {pipeline_mode = #tpu.pipeline_mode<synchronous>, transform_indices = @transform_37, window_bounds = array<i64: 1, 128>}, {pipeline_mode = #tpu.pipeline_mode<synchronous>, transform_indices = @transform_38, window_bounds = array<i64: 1, 128>}, {pipeline_mode = #tpu.pipeline_mode<synchronous>, transform_indices = @transform_39, window_bounds = array<i64: 1, 128>}, {pipeline_mode = #tpu.pipeline_mode<synchronous>, transform_indices = @transform_40, window_bounds = array<i64: 1, 1>}, {pipeline_mode = #tpu.pipeline_mode<synchronous>, transform_indices = @transform_41, window_bounds = array<i64: 1, 128>}, {pipeline_mode = #tpu.pipeline_mode<synchronous>, transform_indices = @transform_42, window_bounds = array<i64: 1, 1>}, {pipeline_mode = #tpu.pipeline_mode<synchronous>, transform_indices = @transform_43, window_bounds = array<i64: 2, 2>}]} {
    %0 = tpu.iota {dimensions = array<i32: 0>} : vector<16x1xi32>
    %c0 = arith.constant 0 : index
    %1 = memref.load %arg1[%c0] : memref<2xi32, #tpu.memory_space<smem>>
    %2 = vector.broadcast %1 : i32 to vector<16x1xi32>
    %3 = arith.cmpi slt, %0, %2 : vector<16x1xi32>
    %4 = arith.extui %3 : vector<16x1xi1> to vector<16x1xi32>
    %5 = arith.sitofp %4 : vector<16x1xi32> to vector<16x1xf32>
    %c1 = arith.constant 1 : index
    %6 = memref.load %arg1[%c1] : memref<2xi32, #tpu.memory_space<smem>>
    %7 = vector.broadcast %6 : i32 to vector<16x1xi32>
    %8 = arith.cmpi slt, %0, %7 : vector<16x1xi32>
    %9 = arith.extui %8 : vector<16x1xi1> to vector<16x1xi32>
    %10 = arith.sitofp %9 : vector<16x1xi32> to vector<16x1xf32>
    %11 = tpu.concatenate %5, %10 in 1 : vector<16x1xf32>, vector<16x1xf32> -> vector<16x2xf32>
    %12 = vector.shape_cast %11 : vector<16x2xf32> to vector<16x2x1xf32>
    %c0_0 = arith.constant 0 : index
    %c0_1 = arith.constant 0 : index
    %c0_2 = arith.constant 0 : index
    %13 = vector.load %arg50[%c0_0, %c0_1, %c0_2] : memref<16x2x1xf32, #tpu.memory_space<vmem>>, vector<16x2x1xf32>
    tpu.vector_store %arg50[%c0_0, %c0_1, %c0_2], %12 {strides = array<i32>} : memref<16x2x1xf32, #tpu.memory_space<vmem>>, vector<16x2x1xf32>,
    %c0_3 = arith.constant 0 : index
    %c0_4 = arith.constant 0 : index
    %14 = vector.load %arg2[%c0_3, %c0_4] : memref<32x1xf32, #tpu.memory_space<vmem>>, vector<32x1xf32>
    %c0_5 = arith.constant 0 : index
    %c0_6 = arith.constant 0 : index
    %15 = vector.load %arg5[%c0_5, %c0_6] : memref<1x128xf32, #tpu.memory_space<vmem>>, vector<1x128xf32>
    %16 = vector.broadcast %14 : vector<32x1xf32> to vector<32x128xf32>
    %17 = vector.broadcast %15 : vector<1x128xf32> to vector<32x128xf32>
    %18 = arith.mulf %16, %17 : vector<32x128xf32>
    %c0_7 = arith.constant 0 : index
    %c0_8 = arith.constant 0 : index
    %19 = vector.load %arg6[%c0_7, %c0_8] : memref<1x128xf32, #tpu.memory_space<vmem>>, vector<1x128xf32>
    %20 = vector.broadcast %19 : vector<1x128xf32> to vector<32x128xf32>
    %21 = arith.addf %18, %20 : vector<32x128xf32>
    %c0_9 = arith.constant 0 : index
    %c0_10 = arith.constant 0 : index
    %22 = vector.load %arg3[%c0_9, %c0_10] : memref<32x64xbf16, #tpu.memory_space<vmem>>, vector<32x64xbf16>
    %c0_11 = arith.constant 0 : index
    %c0_12 = arith.constant 0 : index
    %23 = vector.load %arg7[%c0_11, %c0_12] : memref<64x128xbf16, #tpu.memory_space<vmem>>, vector<64x128xbf16>
    %cst = arith.constant dense<0.000000e+00> : vector<32x128xf32>
    %24 = tpu.matmul %22, %23, %cst {dimension_numbers = #tpu.dot_dimension_numbers<[1], [0], [0], [1], [0, 0, 1, 1], [], []>} : vector<32x64xbf16>, vector<64x128xbf16>, vector<32x128xf32> -> vector<32x128xf32>
    %25 = arith.addf %21, %24 : vector<32x128xf32>
    %c0_13 = arith.constant 0 : index
    %c0_14 = arith.constant 0 : index
    %26 = vector.load %arg8[%c0_13, %c0_14] : memref<1x128xf32, #tpu.memory_space<vmem>>, vector<1x128xf32>
    %27 = vector.broadcast %26 : vector<1x128xf32> to vector<32x128xf32>
    %28 = arith.addf %25, %27 : vector<32x128xf32>
    %c0_15 = arith.constant 0 : index
    %c0_16 = arith.constant 0 : index
    %29 = vector.load %arg4[%c0_15, %c0_16] : memref<2x64xbf16, #tpu.memory_space<vmem>>, vector<2x64xbf16>
    %c0_17 = arith.constant 0 : index
    %c0_18 = arith.constant 0 : index
    %30 = vector.load %arg9[%c0_17, %c0_18] : memref<64x128xbf16, #tpu.memory_space<vmem>>, vector<64x128xbf16>
    %cst_19 = arith.constant dense<0.000000e+00> : vector<2x128xf32>
    %31 = tpu.matmul %29, %30, %cst_19 {dimension_numbers = #tpu.dot_dimension_numbers<[1], [0], [0], [1], [0, 0, 1, 1], [], []>} : vector<2x64xbf16>, vector<64x128xbf16>, vector<2x128xf32> -> vector<2x128xf32>
    %c0_20 = arith.constant 0 : index
    %c0_21 = arith.constant 0 : index
    %32 = vector.load %arg10[%c0_20, %c0_21] : memref<1x128xf32, #tpu.memory_space<vmem>>, vector<1x128xf32>
    %33 = vector.broadcast %32 : vector<1x128xf32> to vector<2x128xf32>
    %34 = arith.addf %31, %33 : vector<2x128xf32>
    %cst_22 = arith.constant 0.000000e+00 : f32
    %35 = vector.broadcast %cst_22 : f32 to vector<2x128xf32>
    %36 = arith.maximumf %34, %35 : vector<2x128xf32>
    %37 = vector.shape_cast %28 : vector<32x128xf32> to vector<16x2x128xf32>
    %38 = vector.shape_cast %36 : vector<2x128xf32> to vector<1x2x128xf32>
    %39 = vector.broadcast %38 : vector<1x2x128xf32> to vector<16x2x128xf32>
    %40 = arith.addf %37, %39 : vector<16x2x128xf32>
    %41 = vector.shape_cast %40 : vector<16x2x128xf32> to vector<32x128xf32>
    %42 = arith.truncf %41 : vector<32x128xf32> to vector<32x128xbf16>
    %c0_23 = arith.constant 0 : index
    %c0_24 = arith.constant 0 : index
    %43 = vector.load %arg11[%c0_23, %c0_24] : memref<128x192xbf16, #tpu.memory_space<vmem>>, vector<128x192xbf16>
    %cst_25 = arith.constant dense<0.000000e+00> : vector<32x192xf32>
    %44 = tpu.matmul %42, %43, %cst_25 {dimension_numbers = #tpu.dot_dimension_numbers<[1], [0], [0], [1], [0, 0, 1, 1], [], []>} : vector<32x128xbf16>, vector<128x192xbf16>, vector<32x192xf32> -> vector<32x192xf32>
    %c0_26 = arith.constant 0 : index
    %c0_27 = arith.constant 0 : index
    %45 = vector.load %arg12[%c0_26, %c0_27] : memref<1x192xf32, #tpu.memory_space<vmem>>, vector<1x192xf32>
    %46 = vector.broadcast %45 : vector<1x192xf32> to vector<32x192xf32>
    %47 = arith.addf %44, %46 : vector<32x192xf32>
    %48 = vector.extract_strided_slice %47 {offsets = [0, 0], sizes = [32, 96], strides = [1, 1]} : vector<32x192xf32> to vector<32x96xf32>
    %49 = vector.shape_cast %48 : vector<32x96xf32> to vector<16x2x96xf32>
    %c0_28 = arith.constant 0 : index
    %c0_29 = arith.constant 0 : index
    %c0_30 = arith.constant 0 : index
    %50 = vector.load %arg46[%c0_28, %c0_29, %c0_30] : memref<16x2x96xf32, #tpu.memory_space<vmem>>, vector<16x2x96xf32>
    tpu.vector_store %arg46[%c0_28, %c0_29, %c0_30], %49 {strides = array<i32>} : memref<16x2x96xf32, #tpu.memory_space<vmem>>, vector<16x2x96xf32>,
    %51 = vector.extract_strided_slice %47 {offsets = [0, 96], sizes = [32, 96], strides = [1, 1]} : vector<32x192xf32> to vector<32x96xf32>
    %52 = vector.shape_cast %51 : vector<32x96xf32> to vector<16x2x96xf32>
    %c0_31 = arith.constant 0 : index
    %c0_32 = arith.constant 0 : index
    %c0_33 = arith.constant 0 : index
    %53 = vector.load %arg47[%c0_31, %c0_32, %c0_33] : memref<16x2x96xf32, #tpu.memory_space<vmem>>, vector<16x2x96xf32>
    tpu.vector_store %arg47[%c0_31, %c0_32, %c0_33], %52 {strides = array<i32>} : memref<16x2x96xf32, #tpu.memory_space<vmem>>, vector<16x2x96xf32>,
    %cst_34 = arith.constant 0.000000e+00 : f32
    %54 = vector.broadcast %cst_34 : f32 to vector<2x32xf32>
    %cst_35 = arith.constant 0.000000e+00 : f32
    %55 = vector.broadcast %cst_35 : f32 to vector<2x32xf32>
    %c0_i32 = arith.constant 0 : i32
    %c15_i32 = arith.constant 15 : i32
    %56 = arith.subi %c15_i32, %c0_i32 : i32
    %57 = arith.index_cast %c0_i32 : i32 to index
    %c0_36 = arith.constant 0 : index
    %c0_37 = arith.constant 0 : index
    %58 = vector.load %arg50[%57, %c0_36, %c0_37] : memref<16x2x1xf32, #tpu.memory_space<vmem>>, vector<1x2x1xf32>
    %59 = vector.shape_cast %58 : vector<1x2x1xf32> to vector<2x1xf32>
    %60 = arith.index_cast %56 : i32 to index
    %c0_38 = arith.constant 0 : index
    %c0_39 = arith.constant 0 : index
    %61 = vector.load %arg50[%60, %c0_38, %c0_39] : memref<16x2x1xf32, #tpu.memory_space<vmem>>, vector<1x2x1xf32>
    %62 = vector.shape_cast %61 : vector<1x2x1xf32> to vector<2x1xf32>
    %63 = tpu.concatenate %55, %54 in 1 : vector<2x32xf32>, vector<2x32xf32> -> vector<2x64xf32>
    %64 = tpu.concatenate %54, %55 in 1 : vector<2x32xf32>, vector<2x32xf32> -> vector<2x64xf32>
    %65 = tpu.concatenate %63, %64 in 0 : vector<2x64xf32>, vector<2x64xf32> -> vector<4x64xf32>
    %c0_40 = arith.constant 0 : index
    %c0_41 = arith.constant 0 : index
    %66 = vector.load %arg13[%c0_40, %c0_41] : memref<64x96xf32, #tpu.memory_space<vmem>>, vector<64x96xf32>
    %cst_42 = arith.constant dense<0.000000e+00> : vector<4x96xf32>
    %67 = tpu.matmul %65, %66, %cst_42 {dimension_numbers = #tpu.dot_dimension_numbers<[1], [0], [0], [1], [0, 0, 1, 1], [], []>} : vector<4x64xf32>, vector<64x96xf32>, vector<4x96xf32> -> vector<4x96xf32>
    %c0_43 = arith.constant 0 : index
    %c0_44 = arith.constant 0 : index
    %68 = vector.load %arg14[%c0_43, %c0_44] : memref<4x96xf32, #tpu.memory_space<vmem>>, vector<4x96xf32>
    %69 = arith.addf %67, %68 : vector<4x96xf32>
    %70 = arith.index_cast %c0_i32 : i32 to index
    %c0_45 = arith.constant 0 : index
    %c0_46 = arith.constant 0 : index
    %71 = vector.load %arg46[%70, %c0_45, %c0_46] : memref<16x2x96xf32, #tpu.memory_space<vmem>>, vector<1x2x96xf32>
    %72 = vector.shape_cast %71 : vector<1x2x96xf32> to vector<2x96xf32>
    %73 = arith.index_cast %56 : i32 to index
    %c0_47 = arith.constant 0 : index
    %c0_48 = arith.constant 0 : index
    %74 = vector.load %arg47[%73, %c0_47, %c0_48] : memref<16x2x96xf32, #tpu.memory_space<vmem>>, vector<1x2x96xf32>
    %75 = vector.shape_cast %74 : vector<1x2x96xf32> to vector<2x96xf32>
    %76 = tpu.concatenate %72, %75 in 0 : vector<2x96xf32>, vector<2x96xf32> -> vector<4x96xf32>
    %77 = tpu.concatenate %55, %55 in 0 : vector<2x32xf32>, vector<2x32xf32> -> vector<4x32xf32>
    %78 = vector.extract_strided_slice %76 {offsets = [0, 0], sizes = [4, 32], strides = [1, 1]} : vector<4x96xf32> to vector<4x32xf32>
    %79 = vector.extract_strided_slice %69 {offsets = [0, 0], sizes = [4, 32], strides = [1, 1]} : vector<4x96xf32> to vector<4x32xf32>
    %80 = arith.addf %78, %79 : vector<4x32xf32>
    %81 = arith.negf %80 : vector<4x32xf32>
    %82 = math.exp %81 : vector<4x32xf32>
    %cst_49 = arith.constant 1.000000e+00 : f32
    %83 = vector.broadcast %cst_49 : f32 to vector<4x32xf32>
    %84 = arith.addf %83, %82 : vector<4x32xf32>
    %85 = arith.divf %83, %84 : vector<4x32xf32>
    %86 = vector.extract_strided_slice %76 {offsets = [0, 32], sizes = [4, 32], strides = [1, 1]} : vector<4x96xf32> to vector<4x32xf32>
    %87 = vector.extract_strided_slice %69 {offsets = [0, 32], sizes = [4, 32], strides = [1, 1]} : vector<4x96xf32> to vector<4x32xf32>
    %88 = arith.addf %86, %87 : vector<4x32xf32>
    %89 = arith.negf %88 : vector<4x32xf32>
    %90 = math.exp %89 : vector<4x32xf32>
    %cst_50 = arith.constant 1.000000e+00 : f32
    %91 = vector.broadcast %cst_50 : f32 to vector<4x32xf32>
    %92 = arith.addf %91, %90 : vector<4x32xf32>
    %93 = arith.divf %91, %92 : vector<4x32xf32>
    %94 = vector.extract_strided_slice %76 {offsets = [0, 64], sizes = [4, 32], strides = [1, 1]} : vector<4x96xf32> to vector<4x32xf32>
    %95 = vector.extract_strided_slice %69 {offsets = [0, 64], sizes = [4, 32], strides = [1, 1]} : vector<4x96xf32> to vector<4x32xf32>
    %96 = arith.mulf %85, %95 : vector<4x32xf32>
    %97 = arith.addf %94, %96 : vector<4x32xf32>
    %98 = math.tanh %97 : vector<4x32xf32>
    %cst_51 = arith.constant 1.000000e+00 : f32
    %99 = vector.broadcast %cst_51 : f32 to vector<4x32xf32>
    %100 = arith.subf %99, %93 : vector<4x32xf32>
    %101 = arith.mulf %100, %98 : vector<4x32xf32>
    %102 = arith.mulf %93, %77 : vector<4x32xf32>
    %103 = arith.addf %101, %102 : vector<4x32xf32>
    %104 = tpu.concatenate %59, %62 in 0 : vector<2x1xf32>, vector<2x1xf32> -> vector<4x1xf32>
    %cst_52 = arith.constant 5.000000e-01 : f32
    %105 = vector.broadcast %cst_52 : f32 to vector<4x1xf32>
    %106 = arith.cmpf ogt, %104, %105 : vector<4x1xf32>
    %cst_53 = arith.constant 0.000000e+00 : f32
    %107 = vector.shape_cast %106 : vector<4x1xi1> to vector<4x1xi1>
    %108 = vector.broadcast %107 : vector<4x1xi1> to vector<4x32xi1>
    %109 = vector.broadcast %cst_53 : f32 to vector<4x32xf32>
    %110 = arith.select %108, %103, %109 : vector<4x32xi1>, vector<4x32xf32>
    %111 = vector.extract_strided_slice %110 {offsets = [0, 0], sizes = [2, 32], strides = [1, 1]} : vector<4x32xf32> to vector<2x32xf32>
    %112 = arith.index_cast %c0_i32 : i32 to index
    %c0_54 = arith.constant 0 : index
    %c0_55 = arith.constant 0 : index
    %113 = vector.load %arg48[%112, %c0_54, %c0_55] : memref<16x2x32xf32, #tpu.memory_space<vmem>>, vector<1x2x32xf32>
    %114 = vector.shape_cast %113 : vector<1x2x32xf32> to vector<2x32xf32>
    %115 = vector.shape_cast %111 : vector<2x32xf32> to vector<1x2x32xf32>
    tpu.vector_store %arg48[%112, %c0_54, %c0_55], %115 {strides = array<i32>} : memref<16x2x32xf32, #tpu.memory_space<vmem>>, vector<1x2x32xf32>,
    %116 = vector.extract_strided_slice %110 {offsets = [2, 0], sizes = [2, 32], strides = [1, 1]} : vector<4x32xf32> to vector<2x32xf32>
    %117 = arith.index_cast %56 : i32 to index
    %c0_56 = arith.constant 0 : index
    %c0_57 = arith.constant 0 : index
    %118 = vector.load %arg49[%117, %c0_56, %c0_57] : memref<16x2x32xf32, #tpu.memory_space<vmem>>, vector<1x2x32xf32>
    %119 = vector.shape_cast %118 : vector<1x2x32xf32> to vector<2x32xf32>
    %120 = vector.shape_cast %116 : vector<2x32xf32> to vector<1x2x32xf32>
    tpu.vector_store %arg49[%117, %c0_56, %c0_57], %120 {strides = array<i32>} : memref<16x2x32xf32, #tpu.memory_space<vmem>>, vector<1x2x32xf32>,
    %cst_58 = arith.constant 5.000000e-01 : f32
    %121 = vector.broadcast %cst_58 : f32 to vector<4x1xf32>
    %122 = arith.cmpf ogt, %104, %121 : vector<4x1xf32>
    %123 = vector.shape_cast %122 : vector<4x1xi1> to vector<4x1xi1>
    %124 = vector.broadcast %123 : vector<4x1xi1> to vector<4x32xi1>
    %125 = arith.select %124, %103, %77 : vector<4x32xi1>, vector<4x32xf32>
    %126 = vector.extract_strided_slice %125 {offsets = [0, 0], sizes = [2, 32], strides = [1, 1]} : vector<4x32xf32> to vector<2x32xf32>
    %127 = vector.extract_strided_slice %125 {offsets = [2, 0], sizes = [2, 32], strides = [1, 1]} : vector<4x32xf32> to vector<2x32xf32>
    %c1_i32 = arith.constant 1 : i32
    %c15_i32_59 = arith.constant 15 : i32
    %128 = arith.subi %c15_i32_59, %c1_i32 : i32
    %129 = arith.index_cast %c1_i32 : i32 to index
    %c0_60 = arith.constant 0 : index
    %c0_61 = arith.constant 0 : index
    %130 = vector.load %arg50[%129, %c0_60, %c0_61] : memref<16x2x1xf32, #tpu.memory_space<vmem>>, vector<1x2x1xf32>
    %131 = vector.shape_cast %130 : vector<1x2x1xf32> to vector<2x1xf32>
    %132 = arith.index_cast %128 : i32 to index
    %c0_62 = arith.constant 0 : index
    %c0_63 = arith.constant 0 : index
    %133 = vector.load %arg50[%132, %c0_62, %c0_63] : memref<16x2x1xf32, #tpu.memory_space<vmem>>, vector<1x2x1xf32>
    %134 = vector.shape_cast %133 : vector<1x2x1xf32> to vector<2x1xf32>
    %135 = tpu.concatenate %126, %54 in 1 : vector<2x32xf32>, vector<2x32xf32> -> vector<2x64xf32>
    %136 = tpu.concatenate %54, %127 in 1 : vector<2x32xf32>, vector<2x32xf32> -> vector<2x64xf32>
    %137 = tpu.concatenate %135, %136 in 0 : vector<2x64xf32>, vector<2x64xf32> -> vector<4x64xf32>
    %c0_64 = arith.constant 0 : index
    %c0_65 = arith.constant 0 : index
    %138 = vector.load %arg13[%c0_64, %c0_65] : memref<64x96xf32, #tpu.memory_space<vmem>>, vector<64x96xf32>
    %cst_66 = arith.constant dense<0.000000e+00> : vector<4x96xf32>
    %139 = tpu.matmul %137, %138, %cst_66 {dimension_numbers = #tpu.dot_dimension_numbers<[1], [0], [0], [1], [0, 0, 1, 1], [], []>} : vector<4x64xf32>, vector<64x96xf32>, vector<4x96xf32> -> vector<4x96xf32>
    %c0_67 = arith.constant 0 : index
    %c0_68 = arith.constant 0 : index
    %140 = vector.load %arg14[%c0_67, %c0_68] : memref<4x96xf32, #tpu.memory_space<vmem>>, vector<4x96xf32>
    %141 = arith.addf %139, %140 : vector<4x96xf32>
    %142 = arith.index_cast %c1_i32 : i32 to index
    %c0_69 = arith.constant 0 : index
    %c0_70 = arith.constant 0 : index
    %143 = vector.load %arg46[%142, %c0_69, %c0_70] : memref<16x2x96xf32, #tpu.memory_space<vmem>>, vector<1x2x96xf32>
    %144 = vector.shape_cast %143 : vector<1x2x96xf32> to vector<2x96xf32>
    %145 = arith.index_cast %128 : i32 to index
    %c0_71 = arith.constant 0 : index
    %c0_72 = arith.constant 0 : index
    %146 = vector.load %arg47[%145, %c0_71, %c0_72] : memref<16x2x96xf32, #tpu.memory_space<vmem>>, vector<1x2x96xf32>
    %147 = vector.shape_cast %146 : vector<1x2x96xf32> to vector<2x96xf32>
    %148 = tpu.concatenate %144, %147 in 0 : vector<2x96xf32>, vector<2x96xf32> -> vector<4x96xf32>
    %149 = tpu.concatenate %126, %127 in 0 : vector<2x32xf32>, vector<2x32xf32> -> vector<4x32xf32>
    %150 = vector.extract_strided_slice %148 {offsets = [0, 0], sizes = [4, 32], strides = [1, 1]} : vector<4x96xf32> to vector<4x32xf32>
    %151 = vector.extract_strided_slice %141 {offsets = [0, 0], sizes = [4, 32], strides = [1, 1]} : vector<4x96xf32> to vector<4x32xf32>
    %152 = arith.addf %150, %151 : vector<4x32xf32>
    %153 = arith.negf %152 : vector<4x32xf32>
    %154 = math.exp %153 : vector<4x32xf32>
    %cst_73 = arith.constant 1.000000e+00 : f32
    %155 = vector.broadcast %cst_73 : f32 to vector<4x32xf32>
    %156 = arith.addf %155, %154 : vector<4x32xf32>
    %157 = arith.divf %155, %156 : vector<4x32xf32>
    %158 = vector.extract_strided_slice %148 {offsets = [0, 32], sizes = [4, 32], strides = [1, 1]} : vector<4x96xf32> to vector<4x32xf32>
    %159 = vector.extract_strided_slice %141 {offsets = [0, 32], sizes = [4, 32], strides = [1, 1]} : vector<4x96xf32> to vector<4x32xf32>
    %160 = arith.addf %158, %159 : vector<4x32xf32>
    %161 = arith.negf %160 : vector<4x32xf32>
    %162 = math.exp %161 : vector<4x32xf32>
    %cst_74 = arith.constant 1.000000e+00 : f32
    %163 = vector.broadcast %cst_74 : f32 to vector<4x32xf32>
    %164 = arith.addf %163, %162 : vector<4x32xf32>
    %165 = arith.divf %163, %164 : vector<4x32xf32>
    %166 = vector.extract_strided_slice %148 {offsets = [0, 64], sizes = [4, 32], strides = [1, 1]} : vector<4x96xf32> to vector<4x32xf32>
    %167 = vector.extract_strided_slice %141 {offsets = [0, 64], sizes = [4, 32], strides = [1, 1]} : vector<4x96xf32> to vector<4x32xf32>
    %168 = arith.mulf %157, %167 : vector<4x32xf32>
    %169 = arith.addf %166, %168 : vector<4x32xf32>
    %170 = math.tanh %169 : vector<4x32xf32>
    %cst_75 = arith.constant 1.000000e+00 : f32
    %171 = vector.broadcast %cst_75 : f32 to vector<4x32xf32>
    %172 = arith.subf %171, %165 : vector<4x32xf32>
    %173 = arith.mulf %172, %170 : vector<4x32xf32>
    %174 = arith.mulf %165, %149 : vector<4x32xf32>
    %175 = arith.addf %173, %174 : vector<4x32xf32>
    %176 = tpu.concatenate %131, %134 in 0 : vector<2x1xf32>, vector<2x1xf32> -> vector<4x1xf32>
    %cst_76 = arith.constant 5.000000e-01 : f32
    %177 = vector.broadcast %cst_76 : f32 to vector<4x1xf32>
    %178 = arith.cmpf ogt, %176, %177 : vector<4x1xf32>
    %cst_77 = arith.constant 0.000000e+00 : f32
    %179 = vector.shape_cast %178 : vector<4x1xi1> to vector<4x1xi1>
    %180 = vector.broadcast %179 : vector<4x1xi1> to vector<4x32xi1>
    %181 = vector.broadcast %cst_77 : f32 to vector<4x32xf32>
    %182 = arith.select %180, %175, %181 : vector<4x32xi1>, vector<4x32xf32>
    %183 = vector.extract_strided_slice %182 {offsets = [0, 0], sizes = [2, 32], strides = [1, 1]} : vector<4x32xf32> to vector<2x32xf32>
    %184 = arith.index_cast %c1_i32 : i32 to index
    %c0_78 = arith.constant 0 : index
    %c0_79 = arith.constant 0 : index
    %185 = vector.load %arg48[%184, %c0_78, %c0_79] : memref<16x2x32xf32, #tpu.memory_space<vmem>>, vector<1x2x32xf32>
    %186 = vector.shape_cast %185 : vector<1x2x32xf32> to vector<2x32xf32>
    %187 = vector.shape_cast %183 : vector<2x32xf32> to vector<1x2x32xf32>
    tpu.vector_store %arg48[%184, %c0_78, %c0_79], %187 {strides = array<i32>} : memref<16x2x32xf32, #tpu.memory_space<vmem>>, vector<1x2x32xf32>,
    %188 = vector.extract_strided_slice %182 {offsets = [2, 0], sizes = [2, 32], strides = [1, 1]} : vector<4x32xf32> to vector<2x32xf32>
    %189 = arith.index_cast %128 : i32 to index
    %c0_80 = arith.constant 0 : index
    %c0_81 = arith.constant 0 : index
    %190 = vector.load %arg49[%189, %c0_80, %c0_81] : memref<16x2x32xf32, #tpu.memory_space<vmem>>, vector<1x2x32xf32>
    %191 = vector.shape_cast %190 : vector<1x2x32xf32> to vector<2x32xf32>
    %192 = vector.shape_cast %188 : vector<2x32xf32> to vector<1x2x32xf32>
    tpu.vector_store %arg49[%189, %c0_80, %c0_81], %192 {strides = array<i32>} : memref<16x2x32xf32, #tpu.memory_space<vmem>>, vector<1x2x32xf32>,
    %cst_82 = arith.constant 5.000000e-01 : f32
    %193 = vector.broadcast %cst_82 : f32 to vector<4x1xf32>
    %194 = arith.cmpf ogt, %176, %193 : vector<4x1xf32>
    %195 = vector.shape_cast %194 : vector<4x1xi1> to vector<4x1xi1>
    %196 = vector.broadcast %195 : vector<4x1xi1> to vector<4x32xi1>
    %197 = arith.select %196, %175, %149 : vector<4x32xi1>, vector<4x32xf32>
    %198 = vector.extract_strided_slice %197 {offsets = [0, 0], sizes = [2, 32], strides = [1, 1]} : vector<4x32xf32> to vector<2x32xf32>
    %199 = vector.extract_strided_slice %197 {offsets = [2, 0], sizes = [2, 32], strides = [1, 1]} : vector<4x32xf32> to vector<2x32xf32>
    %c2_i32 = arith.constant 2 : i32
    %c15_i32_83 = arith.constant 15 : i32
    %200 = arith.subi %c15_i32_83, %c2_i32 : i32
    %201 = arith.index_cast %c2_i32 : i32 to index
    %c0_84 = arith.constant 0 : index
    %c0_85 = arith.constant 0 : index
    %202 = vector.load %arg50[%201, %c0_84, %c0_85] : memref<16x2x1xf32, #tpu.memory_space<vmem>>, vector<1x2x1xf32>
    %203 = vector.shape_cast %202 : vector<1x2x1xf32> to vector<2x1xf32>
    %204 = arith.index_cast %200 : i32 to index
    %c0_86 = arith.constant 0 : index
    %c0_87 = arith.constant 0 : index
    %205 = vector.load %arg50[%204, %c0_86, %c0_87] : memref<16x2x1xf32, #tpu.memory_space<vmem>>, vector<1x2x1xf32>
    %206 = vector.shape_cast %205 : vector<1x2x1xf32> to vector<2x1xf32>
    %207 = tpu.concatenate %198, %54 in 1 : vector<2x32xf32>, vector<2x32xf32> -> vector<2x64xf32>
    %208 = tpu.concatenate %54, %199 in 1 : vector<2x32xf32>, vector<2x32xf32> -> vector<2x64xf32>
    %209 = tpu.concatenate %207, %208 in 0 : vector<2x64xf32>, vector<2x64xf32> -> vector<4x64xf32>
    %c0_88 = arith.constant 0 : index
    %c0_89 = arith.constant 0 : index
    %210 = vector.load %arg13[%c0_88, %c0_89] : memref<64x96xf32, #tpu.memory_space<vmem>>, vector<64x96xf32>
    %cst_90 = arith.constant dense<0.000000e+00> : vector<4x96xf32>
    %211 = tpu.matmul %209, %210, %cst_90 {dimension_numbers = #tpu.dot_dimension_numbers<[1], [0], [0], [1], [0, 0, 1, 1], [], []>} : vector<4x64xf32>, vector<64x96xf32>, vector<4x96xf32> -> vector<4x96xf32>
    %c0_91 = arith.constant 0 : index
    %c0_92 = arith.constant 0 : index
    %212 = vector.load %arg14[%c0_91, %c0_92] : memref<4x96xf32, #tpu.memory_space<vmem>>, vector<4x96xf32>
    %213 = arith.addf %211, %212 : vector<4x96xf32>
    %214 = arith.index_cast %c2_i32 : i32 to index
    %c0_93 = arith.constant 0 : index
    %c0_94 = arith.constant 0 : index
    %215 = vector.load %arg46[%214, %c0_93, %c0_94] : memref<16x2x96xf32, #tpu.memory_space<vmem>>, vector<1x2x96xf32>
    %216 = vector.shape_cast %215 : vector<1x2x96xf32> to vector<2x96xf32>
    %217 = arith.index_cast %200 : i32 to index
    %c0_95 = arith.constant 0 : index
    %c0_96 = arith.constant 0 : index
    %218 = vector.load %arg47[%217, %c0_95, %c0_96] : memref<16x2x96xf32, #tpu.memory_space<vmem>>, vector<1x2x96xf32>
    %219 = vector.shape_cast %218 : vector<1x2x96xf32> to vector<2x96xf32>
    %220 = tpu.concatenate %216, %219 in 0 : vector<2x96xf32>, vector<2x96xf32> -> vector<4x96xf32>
    %221 = tpu.concatenate %198, %199 in 0 : vector<2x32xf32>, vector<2x32xf32> -> vector<4x32xf32>
    %222 = vector.extract_strided_slice %220 {offsets = [0, 0], sizes = [4, 32], strides = [1, 1]} : vector<4x96xf32> to vector<4x32xf32>
    %223 = vector.extract_strided_slice %213 {offsets = [0, 0], sizes = [4, 32], strides = [1, 1]} : vector<4x96xf32> to vector<4x32xf32>
    %224 = arith.addf %222, %223 : vector<4x32xf32>
    %225 = arith.negf %224 : vector<4x32xf32>
    %226 = math.exp %225 : vector<4x32xf32>
    %cst_97 = arith.constant 1.000000e+00 : f32
    %227 = vector.broadcast %cst_97 : f32 to vector<4x32xf32>
    %228 = arith.addf %227, %226 : vector<4x32xf32>
    %229 = arith.divf %227, %228 : vector<4x32xf32>
    %230 = vector.extract_strided_slice %220 {offsets = [0, 32], sizes = [4, 32], strides = [1, 1]} : vector<4x96xf32> to vector<4x32xf32>
    %231 = vector.extract_strided_slice %213 {offsets = [0, 32], sizes = [4, 32], strides = [1, 1]} : vector<4x96xf32> to vector<4x32xf32>
    %232 = arith.addf %230, %231 : vector<4x32xf32>
    %233 = arith.negf %232 : vector<4x32xf32>
    %234 = math.exp %233 : vector<4x32xf32>
    %cst_98 = arith.constant 1.000000e+00 : f32
    %235 = vector.broadcast %cst_98 : f32 to vector<4x32xf32>
    %236 = arith.addf %235, %234 : vector<4x32xf32>
    %237 = arith.divf %235, %236 : vector<4x32xf32>
    %238 = vector.extract_strided_slice %220 {offsets = [0, 64], sizes = [4, 32], strides = [1, 1]} : vector<4x96xf32> to vector<4x32xf32>
    %239 = vector.extract_strided_slice %213 {offsets = [0, 64], sizes = [4, 32], strides = [1, 1]} : vector<4x96xf32> to vector<4x32xf32>
    %240 = arith.mulf %229, %239 : vector<4x32xf32>
    %241 = arith.addf %238, %240 : vector<4x32xf32>
    %242 = math.tanh %241 : vector<4x32xf32>
    %cst_99 = arith.constant 1.000000e+00 : f32
    %243 = vector.broadcast %cst_99 : f32 to vector<4x32xf32>
    %244 = arith.subf %243, %237 : vector<4x32xf32>
    %245 = arith.mulf %244, %242 : vector<4x32xf32>
    %246 = arith.mulf %237, %221 : vector<4x32xf32>
    %247 = arith.addf %245, %246 : vector<4x32xf32>
    %248 = tpu.concatenate %203, %206 in 0 : vector<2x1xf32>, vector<2x1xf32> -> vector<4x1xf32>
    %cst_100 = arith.constant 5.000000e-01 : f32
    %249 = vector.broadcast %cst_100 : f32 to vector<4x1xf32>
    %250 = arith.cmpf ogt, %248, %249 : vector<4x1xf32>
    %cst_101 = arith.constant 0.000000e+00 : f32
    %251 = vector.shape_cast %250 : vector<4x1xi1> to vector<4x1xi1>
    %252 = vector.broadcast %251 : vector<4x1xi1> to vector<4x32xi1>
    %253 = vector.broadcast %cst_101 : f32 to vector<4x32xf32>
    %254 = arith.select %252, %247, %253 : vector<4x32xi1>, vector<4x32xf32>
    %255 = vector.extract_strided_slice %254 {offsets = [0, 0], sizes = [2, 32], strides = [1, 1]} : vector<4x32xf32> to vector<2x32xf32>
    %256 = arith.index_cast %c2_i32 : i32 to index
    %c0_102 = arith.constant 0 : index
    %c0_103 = arith.constant 0 : index
    %257 = vector.load %arg48[%256, %c0_102, %c0_103] : memref<16x2x32xf32, #tpu.memory_space<vmem>>, vector<1x2x32xf32>
    %258 = vector.shape_cast %257 : vector<1x2x32xf32> to vector<2x32xf32>
    %259 = vector.shape_cast %255 : vector<2x32xf32> to vector<1x2x32xf32>
    tpu.vector_store %arg48[%256, %c0_102, %c0_103], %259 {strides = array<i32>} : memref<16x2x32xf32, #tpu.memory_space<vmem>>, vector<1x2x32xf32>,
    %260 = vector.extract_strided_slice %254 {offsets = [2, 0], sizes = [2, 32], strides = [1, 1]} : vector<4x32xf32> to vector<2x32xf32>
    %261 = arith.index_cast %200 : i32 to index
    %c0_104 = arith.constant 0 : index
    %c0_105 = arith.constant 0 : index
    %262 = vector.load %arg49[%261, %c0_104, %c0_105] : memref<16x2x32xf32, #tpu.memory_space<vmem>>, vector<1x2x32xf32>
    %263 = vector.shape_cast %262 : vector<1x2x32xf32> to vector<2x32xf32>
    %264 = vector.shape_cast %260 : vector<2x32xf32> to vector<1x2x32xf32>
    tpu.vector_store %arg49[%261, %c0_104, %c0_105], %264 {strides = array<i32>} : memref<16x2x32xf32, #tpu.memory_space<vmem>>, vector<1x2x32xf32>,
    %cst_106 = arith.constant 5.000000e-01 : f32
    %265 = vector.broadcast %cst_106 : f32 to vector<4x1xf32>
    %266 = arith.cmpf ogt, %248, %265 : vector<4x1xf32>
    %267 = vector.shape_cast %266 : vector<4x1xi1> to vector<4x1xi1>
    %268 = vector.broadcast %267 : vector<4x1xi1> to vector<4x32xi1>
    %269 = arith.select %268, %247, %221 : vector<4x32xi1>, vector<4x32xf32>
    %270 = vector.extract_strided_slice %269 {offsets = [0, 0], sizes = [2, 32], strides = [1, 1]} : vector<4x32xf32> to vector<2x32xf32>
    %271 = vector.extract_strided_slice %269 {offsets = [2, 0], sizes = [2, 32], strides = [1, 1]} : vector<4x32xf32> to vector<2x32xf32>
    %c3_i32 = arith.constant 3 : i32
    %c15_i32_107 = arith.constant 15 : i32
    %272 = arith.subi %c15_i32_107, %c3_i32 : i32
    %273 = arith.index_cast %c3_i32 : i32 to index
    %c0_108 = arith.constant 0 : index
    %c0_109 = arith.constant 0 : index
    %274 = vector.load %arg50[%273, %c0_108, %c0_109] : memref<16x2x1xf32, #tpu.memory_space<vmem>>, vector<1x2x1xf32>
    %275 = vector.shape_cast %274 : vector<1x2x1xf32> to vector<2x1xf32>
    %276 = arith.index_cast %272 : i32 to index
    %c0_110 = arith.constant 0 : index
    %c0_111 = arith.constant 0 : index
    %277 = vector.load %arg50[%276, %c0_110, %c0_111] : memref<16x2x1xf32, #tpu.memory_space<vmem>>, vector<1x2x1xf32>
    %278 = vector.shape_cast %277 : vector<1x2x1xf32> to vector<2x1xf32>
    %279 = tpu.concatenate %270, %54 in 1 : vector<2x32xf32>, vector<2x32xf32> -> vector<2x64xf32>
    %280 = tpu.concatenate %54, %271 in 1 : vector<2x32xf32>, vector<2x32xf32> -> vector<2x64xf32>
    %281 = tpu.concatenate %279, %280 in 0 : vector<2x64xf32>, vector<2x64xf32> -> vector<4x64xf32>
    %c0_112 = arith.constant 0 : index
    %c0_113 = arith.constant 0 : index
    %282 = vector.load %arg13[%c0_112, %c0_113] : memref<64x96xf32, #tpu.memory_space<vmem>>, vector<64x96xf32>
    %cst_114 = arith.constant dense<0.000000e+00> : vector<4x96xf32>
    %283 = tpu.matmul %281, %282, %cst_114 {dimension_numbers = #tpu.dot_dimension_numbers<[1], [0], [0], [1], [0, 0, 1, 1], [], []>} : vector<4x64xf32>, vector<64x96xf32>, vector<4x96xf32> -> vector<4x96xf32>
    %c0_115 = arith.constant 0 : index
    %c0_116 = arith.constant 0 : index
    %284 = vector.load %arg14[%c0_115, %c0_116] : memref<4x96xf32, #tpu.memory_space<vmem>>, vector<4x96xf32>
    %285 = arith.addf %283, %284 : vector<4x96xf32>
    %286 = arith.index_cast %c3_i32 : i32 to index
    %c0_117 = arith.constant 0 : index
    %c0_118 = arith.constant 0 : index
    %287 = vector.load %arg46[%286, %c0_117, %c0_118] : memref<16x2x96xf32, #tpu.memory_space<vmem>>, vector<1x2x96xf32>
    %288 = vector.shape_cast %287 : vector<1x2x96xf32> to vector<2x96xf32>
    %289 = arith.index_cast %272 : i32 to index
    %c0_119 = arith.constant 0 : index
    %c0_120 = arith.constant 0 : index
    %290 = vector.load %arg47[%289, %c0_119, %c0_120] : memref<16x2x96xf32, #tpu.memory_space<vmem>>, vector<1x2x96xf32>
    %291 = vector.shape_cast %290 : vector<1x2x96xf32> to vector<2x96xf32>
    %292 = tpu.concatenate %288, %291 in 0 : vector<2x96xf32>, vector<2x96xf32> -> vector<4x96xf32>
    %293 = tpu.concatenate %270, %271 in 0 : vector<2x32xf32>, vector<2x32xf32> -> vector<4x32xf32>
    %294 = vector.extract_strided_slice %292 {offsets = [0, 0], sizes = [4, 32], strides = [1, 1]} : vector<4x96xf32> to vector<4x32xf32>
    %295 = vector.extract_strided_slice %285 {offsets = [0, 0], sizes = [4, 32], strides = [1, 1]} : vector<4x96xf32> to vector<4x32xf32>
    %296 = arith.addf %294, %295 : vector<4x32xf32>
    %297 = arith.negf %296 : vector<4x32xf32>
    %298 = math.exp %297 : vector<4x32xf32>
    %cst_121 = arith.constant 1.000000e+00 : f32
    %299 = vector.broadcast %cst_121 : f32 to vector<4x32xf32>
    %300 = arith.addf %299, %298 : vector<4x32xf32>
    %301 = arith.divf %299, %300 : vector<4x32xf32>
    %302 = vector.extract_strided_slice %292 {offsets = [0, 32], sizes = [4, 32], strides = [1, 1]} : vector<4x96xf32> to vector<4x32xf32>
    %303 = vector.extract_strided_slice %285 {offsets = [0, 32], sizes = [4, 32], strides = [1, 1]} : vector<4x96xf32> to vector<4x32xf32>
    %304 = arith.addf %302, %303 : vector<4x32xf32>
    %305 = arith.negf %304 : vector<4x32xf32>
    %306 = math.exp %305 : vector<4x32xf32>
    %cst_122 = arith.constant 1.000000e+00 : f32
    %307 = vector.broadcast %cst_122 : f32 to vector<4x32xf32>
    %308 = arith.addf %307, %306 : vector<4x32xf32>
    %309 = arith.divf %307, %308 : vector<4x32xf32>
    %310 = vector.extract_strided_slice %292 {offsets = [0, 64], sizes = [4, 32], strides = [1, 1]} : vector<4x96xf32> to vector<4x32xf32>
    %311 = vector.extract_strided_slice %285 {offsets = [0, 64], sizes = [4, 32], strides = [1, 1]} : vector<4x96xf32> to vector<4x32xf32>
    %312 = arith.mulf %301, %311 : vector<4x32xf32>
    %313 = arith.addf %310, %312 : vector<4x32xf32>
    %314 = math.tanh %313 : vector<4x32xf32>
    %cst_123 = arith.constant 1.000000e+00 : f32
    %315 = vector.broadcast %cst_123 : f32 to vector<4x32xf32>
    %316 = arith.subf %315, %309 : vector<4x32xf32>
    %317 = arith.mulf %316, %314 : vector<4x32xf32>
    %318 = arith.mulf %309, %293 : vector<4x32xf32>
    %319 = arith.addf %317, %318 : vector<4x32xf32>
    %320 = tpu.concatenate %275, %278 in 0 : vector<2x1xf32>, vector<2x1xf32> -> vector<4x1xf32>
    %cst_124 = arith.constant 5.000000e-01 : f32
    %321 = vector.broadcast %cst_124 : f32 to vector<4x1xf32>
    %322 = arith.cmpf ogt, %320, %321 : vector<4x1xf32>
    %cst_125 = arith.constant 0.000000e+00 : f32
    %323 = vector.shape_cast %322 : vector<4x1xi1> to vector<4x1xi1>
    %324 = vector.broadcast %323 : vector<4x1xi1> to vector<4x32xi1>
    %325 = vector.broadcast %cst_125 : f32 to vector<4x32xf32>
    %326 = arith.select %324, %319, %325 : vector<4x32xi1>, vector<4x32xf32>
    %327 = vector.extract_strided_slice %326 {offsets = [0, 0], sizes = [2, 32], strides = [1, 1]} : vector<4x32xf32> to vector<2x32xf32>
    %328 = arith.index_cast %c3_i32 : i32 to index
    %c0_126 = arith.constant 0 : index
    %c0_127 = arith.constant 0 : index
    %329 = vector.load %arg48[%328, %c0_126, %c0_127] : memref<16x2x32xf32, #tpu.memory_space<vmem>>, vector<1x2x32xf32>
    %330 = vector.shape_cast %329 : vector<1x2x32xf32> to vector<2x32xf32>
    %331 = vector.shape_cast %327 : vector<2x32xf32> to vector<1x2x32xf32>
    tpu.vector_store %arg48[%328, %c0_126, %c0_127], %331 {strides = array<i32>} : memref<16x2x32xf32, #tpu.memory_space<vmem>>, vector<1x2x32xf32>,
    %332 = vector.extract_strided_slice %326 {offsets = [2, 0], sizes = [2, 32], strides = [1, 1]} : vector<4x32xf32> to vector<2x32xf32>
    %333 = arith.index_cast %272 : i32 to index
    %c0_128 = arith.constant 0 : index
    %c0_129 = arith.constant 0 : index
    %334 = vector.load %arg49[%333, %c0_128, %c0_129] : memref<16x2x32xf32, #tpu.memory_space<vmem>>, vector<1x2x32xf32>
    %335 = vector.shape_cast %334 : vector<1x2x32xf32> to vector<2x32xf32>
    %336 = vector.shape_cast %332 : vector<2x32xf32> to vector<1x2x32xf32>
    tpu.vector_store %arg49[%333, %c0_128, %c0_129], %336 {strides = array<i32>} : memref<16x2x32xf32, #tpu.memory_space<vmem>>, vector<1x2x32xf32>,
    %cst_130 = arith.constant 5.000000e-01 : f32
    %337 = vector.broadcast %cst_130 : f32 to vector<4x1xf32>
    %338 = arith.cmpf ogt, %320, %337 : vector<4x1xf32>
    %339 = vector.shape_cast %338 : vector<4x1xi1> to vector<4x1xi1>
    %340 = vector.broadcast %339 : vector<4x1xi1> to vector<4x32xi1>
    %341 = arith.select %340, %319, %293 : vector<4x32xi1>, vector<4x32xf32>
    %342 = vector.extract_strided_slice %341 {offsets = [0, 0], sizes = [2, 32], strides = [1, 1]} : vector<4x32xf32> to vector<2x32xf32>
    %343 = vector.extract_strided_slice %341 {offsets = [2, 0], sizes = [2, 32], strides = [1, 1]} : vector<4x32xf32> to vector<2x32xf32>
    %c4_i32 = arith.constant 4 : i32
    %c15_i32_131 = arith.constant 15 : i32
    %344 = arith.subi %c15_i32_131, %c4_i32 : i32
    %345 = arith.index_cast %c4_i32 : i32 to index
    %c0_132 = arith.constant 0 : index
    %c0_133 = arith.constant 0 : index
    %346 = vector.load %arg50[%345, %c0_132, %c0_133] : memref<16x2x1xf32, #tpu.memory_space<vmem>>, vector<1x2x1xf32>
    %347 = vector.shape_cast %346 : vector<1x2x1xf32> to vector<2x1xf32>
    %348 = arith.index_cast %344 : i32 to index
    %c0_134 = arith.constant 0 : index
    %c0_135 = arith.constant 0 : index
    %349 = vector.load %arg50[%348, %c0_134, %c0_135] : memref<16x2x1xf32, #tpu.memory_space<vmem>>, vector<1x2x1xf32>
    %350 = vector.shape_cast %349 : vector<1x2x1xf32> to vector<2x1xf32>
    %351 = tpu.concatenate %342, %54 in 1 : vector<2x32xf32>, vector<2x32xf32> -> vector<2x64xf32>
    %352 = tpu.concatenate %54, %343 in 1 : vector<2x32xf32>, vector<2x32xf32> -> vector<2x64xf32>
    %353 = tpu.concatenate %351, %352 in 0 : vector<2x64xf32>, vector<2x64xf32> -> vector<4x64xf32>
    %c0_136 = arith.constant 0 : index
    %c0_137 = arith.constant 0 : index
    %354 = vector.load %arg13[%c0_136, %c0_137] : memref<64x96xf32, #tpu.memory_space<vmem>>, vector<64x96xf32>
    %cst_138 = arith.constant dense<0.000000e+00> : vector<4x96xf32>
    %355 = tpu.matmul %353, %354, %cst_138 {dimension_numbers = #tpu.dot_dimension_numbers<[1], [0], [0], [1], [0, 0, 1, 1], [], []>} : vector<4x64xf32>, vector<64x96xf32>, vector<4x96xf32> -> vector<4x96xf32>
    %c0_139 = arith.constant 0 : index
    %c0_140 = arith.constant 0 : index
    %356 = vector.load %arg14[%c0_139, %c0_140] : memref<4x96xf32, #tpu.memory_space<vmem>>, vector<4x96xf32>
    %357 = arith.addf %355, %356 : vector<4x96xf32>
    %358 = arith.index_cast %c4_i32 : i32 to index
    %c0_141 = arith.constant 0 : index
    %c0_142 = arith.constant 0 : index
    %359 = vector.load %arg46[%358, %c0_141, %c0_142] : memref<16x2x96xf32, #tpu.memory_space<vmem>>, vector<1x2x96xf32>
    %360 = vector.shape_cast %359 : vector<1x2x96xf32> to vector<2x96xf32>
    %361 = arith.index_cast %344 : i32 to index
    %c0_143 = arith.constant 0 : index
    %c0_144 = arith.constant 0 : index
    %362 = vector.load %arg47[%361, %c0_143, %c0_144] : memref<16x2x96xf32, #tpu.memory_space<vmem>>, vector<1x2x96xf32>
    %363 = vector.shape_cast %362 : vector<1x2x96xf32> to vector<2x96xf32>
    %364 = tpu.concatenate %360, %363 in 0 : vector<2x96xf32>, vector<2x96xf32> -> vector<4x96xf32>
    %365 = tpu.concatenate %342, %343 in 0 : vector<2x32xf32>, vector<2x32xf32> -> vector<4x32xf32>
    %366 = vector.extract_strided_slice %364 {offsets = [0, 0], sizes = [4, 32], strides = [1, 1]} : vector<4x96xf32> to vector<4x32xf32>
    %367 = vector.extract_strided_slice %357 {offsets = [0, 0], sizes = [4, 32], strides = [1, 1]} : vector<4x96xf32> to vector<4x32xf32>
    %368 = arith.addf %366, %367 : vector<4x32xf32>
    %369 = arith.negf %368 : vector<4x32xf32>
    %370 = math.exp %369 : vector<4x32xf32>
    %cst_145 = arith.constant 1.000000e+00 : f32
    %371 = vector.broadcast %cst_145 : f32 to vector<4x32xf32>
    %372 = arith.addf %371, %370 : vector<4x32xf32>
    %373 = arith.divf %371, %372 : vector<4x32xf32>
    %374 = vector.extract_strided_slice %364 {offsets = [0, 32], sizes = [4, 32], strides = [1, 1]} : vector<4x96xf32> to vector<4x32xf32>
    %375 = vector.extract_strided_slice %357 {offsets = [0, 32], sizes = [4, 32], strides = [1, 1]} : vector<4x96xf32> to vector<4x32xf32>
    %376 = arith.addf %374, %375 : vector<4x32xf32>
    %377 = arith.negf %376 : vector<4x32xf32>
    %378 = math.exp %377 : vector<4x32xf32>
    %cst_146 = arith.constant 1.000000e+00 : f32
    %379 = vector.broadcast %cst_146 : f32 to vector<4x32xf32>
    %380 = arith.addf %379, %378 : vector<4x32xf32>
    %381 = arith.divf %379, %380 : vector<4x32xf32>
    %382 = vector.extract_strided_slice %364 {offsets = [0, 64], sizes = [4, 32], strides = [1, 1]} : vector<4x96xf32> to vector<4x32xf32>
    %383 = vector.extract_strided_slice %357 {offsets = [0, 64], sizes = [4, 32], strides = [1, 1]} : vector<4x96xf32> to vector<4x32xf32>
    %384 = arith.mulf %373, %383 : vector<4x32xf32>
    %385 = arith.addf %382, %384 : vector<4x32xf32>
    %386 = math.tanh %385 : vector<4x32xf32>
    %cst_147 = arith.constant 1.000000e+00 : f32
    %387 = vector.broadcast %cst_147 : f32 to vector<4x32xf32>
    %388 = arith.subf %387, %381 : vector<4x32xf32>
    %389 = arith.mulf %388, %386 : vector<4x32xf32>
    %390 = arith.mulf %381, %365 : vector<4x32xf32>
    %391 = arith.addf %389, %390 : vector<4x32xf32>
    %392 = tpu.concatenate %347, %350 in 0 : vector<2x1xf32>, vector<2x1xf32> -> vector<4x1xf32>
    %cst_148 = arith.constant 5.000000e-01 : f32
    %393 = vector.broadcast %cst_148 : f32 to vector<4x1xf32>
    %394 = arith.cmpf ogt, %392, %393 : vector<4x1xf32>
    %cst_149 = arith.constant 0.000000e+00 : f32
    %395 = vector.shape_cast %394 : vector<4x1xi1> to vector<4x1xi1>
    %396 = vector.broadcast %395 : vector<4x1xi1> to vector<4x32xi1>
    %397 = vector.broadcast %cst_149 : f32 to vector<4x32xf32>
    %398 = arith.select %396, %391, %397 : vector<4x32xi1>, vector<4x32xf32>
    %399 = vector.extract_strided_slice %398 {offsets = [0, 0], sizes = [2, 32], strides = [1, 1]} : vector<4x32xf32> to vector<2x32xf32>
    %400 = arith.index_cast %c4_i32 : i32 to index
    %c0_150 = arith.constant 0 : index
    %c0_151 = arith.constant 0 : index
    %401 = vector.load %arg48[%400, %c0_150, %c0_151] : memref<16x2x32xf32, #tpu.memory_space<vmem>>, vector<1x2x32xf32>
    %402 = vector.shape_cast %401 : vector<1x2x32xf32> to vector<2x32xf32>
    %403 = vector.shape_cast %399 : vector<2x32xf32> to vector<1x2x32xf32>
    tpu.vector_store %arg48[%400, %c0_150, %c0_151], %403 {strides = array<i32>} : memref<16x2x32xf32, #tpu.memory_space<vmem>>, vector<1x2x32xf32>,
    %404 = vector.extract_strided_slice %398 {offsets = [2, 0], sizes = [2, 32], strides = [1, 1]} : vector<4x32xf32> to vector<2x32xf32>
    %405 = arith.index_cast %344 : i32 to index
    %c0_152 = arith.constant 0 : index
    %c0_153 = arith.constant 0 : index
    %406 = vector.load %arg49[%405, %c0_152, %c0_153] : memref<16x2x32xf32, #tpu.memory_space<vmem>>, vector<1x2x32xf32>
    %407 = vector.shape_cast %406 : vector<1x2x32xf32> to vector<2x32xf32>
    %408 = vector.shape_cast %404 : vector<2x32xf32> to vector<1x2x32xf32>
    tpu.vector_store %arg49[%405, %c0_152, %c0_153], %408 {strides = array<i32>} : memref<16x2x32xf32, #tpu.memory_space<vmem>>, vector<1x2x32xf32>,
    %cst_154 = arith.constant 5.000000e-01 : f32
    %409 = vector.broadcast %cst_154 : f32 to vector<4x1xf32>
    %410 = arith.cmpf ogt, %392, %409 : vector<4x1xf32>
    %411 = vector.shape_cast %410 : vector<4x1xi1> to vector<4x1xi1>
    %412 = vector.broadcast %411 : vector<4x1xi1> to vector<4x32xi1>
    %413 = arith.select %412, %391, %365 : vector<4x32xi1>, vector<4x32xf32>
    %414 = vector.extract_strided_slice %413 {offsets = [0, 0], sizes = [2, 32], strides = [1, 1]} : vector<4x32xf32> to vector<2x32xf32>
    %415 = vector.extract_strided_slice %413 {offsets = [2, 0], sizes = [2, 32], strides = [1, 1]} : vector<4x32xf32> to vector<2x32xf32>
    %c5_i32 = arith.constant 5 : i32
    %c15_i32_155 = arith.constant 15 : i32
    %416 = arith.subi %c15_i32_155, %c5_i32 : i32
    %417 = arith.index_cast %c5_i32 : i32 to index
    %c0_156 = arith.constant 0 : index
    %c0_157 = arith.constant 0 : index
    %418 = vector.load %arg50[%417, %c0_156, %c0_157] : memref<16x2x1xf32, #tpu.memory_space<vmem>>, vector<1x2x1xf32>
    %419 = vector.shape_cast %418 : vector<1x2x1xf32> to vector<2x1xf32>
    %420 = arith.index_cast %416 : i32 to index
    %c0_158 = arith.constant 0 : index
    %c0_159 = arith.constant 0 : index
    %421 = vector.load %arg50[%420, %c0_158, %c0_159] : memref<16x2x1xf32, #tpu.memory_space<vmem>>, vector<1x2x1xf32>
    %422 = vector.shape_cast %421 : vector<1x2x1xf32> to vector<2x1xf32>
    %423 = tpu.concatenate %414, %54 in 1 : vector<2x32xf32>, vector<2x32xf32> -> vector<2x64xf32>
    %424 = tpu.concatenate %54, %415 in 1 : vector<2x32xf32>, vector<2x32xf32> -> vector<2x64xf32>
    %425 = tpu.concatenate %423, %424 in 0 : vector<2x64xf32>, vector<2x64xf32> -> vector<4x64xf32>
    %c0_160 = arith.constant 0 : index
    %c0_161 = arith.constant 0 : index
    %426 = vector.load %arg13[%c0_160, %c0_161] : memref<64x96xf32, #tpu.memory_space<vmem>>, vector<64x96xf32>
    %cst_162 = arith.constant dense<0.000000e+00> : vector<4x96xf32>
    %427 = tpu.matmul %425, %426, %cst_162 {dimension_numbers = #tpu.dot_dimension_numbers<[1], [0], [0], [1], [0, 0, 1, 1], [], []>} : vector<4x64xf32>, vector<64x96xf32>, vector<4x96xf32> -> vector<4x96xf32>
    %c0_163 = arith.constant 0 : index
    %c0_164 = arith.constant 0 : index
    %428 = vector.load %arg14[%c0_163, %c0_164] : memref<4x96xf32, #tpu.memory_space<vmem>>, vector<4x96xf32>
    %429 = arith.addf %427, %428 : vector<4x96xf32>
    %430 = arith.index_cast %c5_i32 : i32 to index
    %c0_165 = arith.constant 0 : index
    %c0_166 = arith.constant 0 : index
    %431 = vector.load %arg46[%430, %c0_165, %c0_166] : memref<16x2x96xf32, #tpu.memory_space<vmem>>, vector<1x2x96xf32>
    %432 = vector.shape_cast %431 : vector<1x2x96xf32> to vector<2x96xf32>
    %433 = arith.index_cast %416 : i32 to index
    %c0_167 = arith.constant 0 : index
    %c0_168 = arith.constant 0 : index
    %434 = vector.load %arg47[%433, %c0_167, %c0_168] : memref<16x2x96xf32, #tpu.memory_space<vmem>>, vector<1x2x96xf32>
    %435 = vector.shape_cast %434 : vector<1x2x96xf32> to vector<2x96xf32>
    %436 = tpu.concatenate %432, %435 in 0 : vector<2x96xf32>, vector<2x96xf32> -> vector<4x96xf32>
    %437 = tpu.concatenate %414, %415 in 0 : vector<2x32xf32>, vector<2x32xf32> -> vector<4x32xf32>
    %438 = vector.extract_strided_slice %436 {offsets = [0, 0], sizes = [4, 32], strides = [1, 1]} : vector<4x96xf32> to vector<4x32xf32>
    %439 = vector.extract_strided_slice %429 {offsets = [0, 0], sizes = [4, 32], strides = [1, 1]} : vector<4x96xf32> to vector<4x32xf32>
    %440 = arith.addf %438, %439 : vector<4x32xf32>
    %441 = arith.negf %440 : vector<4x32xf32>
    %442 = math.exp %441 : vector<4x32xf32>
    %cst_169 = arith.constant 1.000000e+00 : f32
    %443 = vector.broadcast %cst_169 : f32 to vector<4x32xf32>
    %444 = arith.addf %443, %442 : vector<4x32xf32>
    %445 = arith.divf %443, %444 : vector<4x32xf32>
    %446 = vector.extract_strided_slice %436 {offsets = [0, 32], sizes = [4, 32], strides = [1, 1]} : vector<4x96xf32> to vector<4x32xf32>
    %447 = vector.extract_strided_slice %429 {offsets = [0, 32], sizes = [4, 32], strides = [1, 1]} : vector<4x96xf32> to vector<4x32xf32>
    %448 = arith.addf %446, %447 : vector<4x32xf32>
    %449 = arith.negf %448 : vector<4x32xf32>
    %450 = math.exp %449 : vector<4x32xf32>
    %cst_170 = arith.constant 1.000000e+00 : f32
    %451 = vector.broadcast %cst_170 : f32 to vector<4x32xf32>
    %452 = arith.addf %451, %450 : vector<4x32xf32>
    %453 = arith.divf %451, %452 : vector<4x32xf32>
    %454 = vector.extract_strided_slice %436 {offsets = [0, 64], sizes = [4, 32], strides = [1, 1]} : vector<4x96xf32> to vector<4x32xf32>
    %455 = vector.extract_strided_slice %429 {offsets = [0, 64], sizes = [4, 32], strides = [1, 1]} : vector<4x96xf32> to vector<4x32xf32>
    %456 = arith.mulf %445, %455 : vector<4x32xf32>
    %457 = arith.addf %454, %456 : vector<4x32xf32>
    %458 = math.tanh %457 : vector<4x32xf32>
    %cst_171 = arith.constant 1.000000e+00 : f32
    %459 = vector.broadcast %cst_171 : f32 to vector<4x32xf32>
    %460 = arith.subf %459, %453 : vector<4x32xf32>
    %461 = arith.mulf %460, %458 : vector<4x32xf32>
    %462 = arith.mulf %453, %437 : vector<4x32xf32>
    %463 = arith.addf %461, %462 : vector<4x32xf32>
    %464 = tpu.concatenate %419, %422 in 0 : vector<2x1xf32>, vector<2x1xf32> -> vector<4x1xf32>
    %cst_172 = arith.constant 5.000000e-01 : f32
    %465 = vector.broadcast %cst_172 : f32 to vector<4x1xf32>
    %466 = arith.cmpf ogt, %464, %465 : vector<4x1xf32>
    %cst_173 = arith.constant 0.000000e+00 : f32
    %467 = vector.shape_cast %466 : vector<4x1xi1> to vector<4x1xi1>
    %468 = vector.broadcast %467 : vector<4x1xi1> to vector<4x32xi1>
    %469 = vector.broadcast %cst_173 : f32 to vector<4x32xf32>
    %470 = arith.select %468, %463, %469 : vector<4x32xi1>, vector<4x32xf32>
    %471 = vector.extract_strided_slice %470 {offsets = [0, 0], sizes = [2, 32], strides = [1, 1]} : vector<4x32xf32> to vector<2x32xf32>
    %472 = arith.index_cast %c5_i32 : i32 to index
    %c0_174 = arith.constant 0 : index
    %c0_175 = arith.constant 0 : index
    %473 = vector.load %arg48[%472, %c0_174, %c0_175] : memref<16x2x32xf32, #tpu.memory_space<vmem>>, vector<1x2x32xf32>
    %474 = vector.shape_cast %473 : vector<1x2x32xf32> to vector<2x32xf32>
    %475 = vector.shape_cast %471 : vector<2x32xf32> to vector<1x2x32xf32>
    tpu.vector_store %arg48[%472, %c0_174, %c0_175], %475 {strides = array<i32>} : memref<16x2x32xf32, #tpu.memory_space<vmem>>, vector<1x2x32xf32>,
    %476 = vector.extract_strided_slice %470 {offsets = [2, 0], sizes = [2, 32], strides = [1, 1]} : vector<4x32xf32> to vector<2x32xf32>
    %477 = arith.index_cast %416 : i32 to index
    %c0_176 = arith.constant 0 : index
    %c0_177 = arith.constant 0 : index
    %478 = vector.load %arg49[%477, %c0_176, %c0_177] : memref<16x2x32xf32, #tpu.memory_space<vmem>>, vector<1x2x32xf32>
    %479 = vector.shape_cast %478 : vector<1x2x32xf32> to vector<2x32xf32>
    %480 = vector.shape_cast %476 : vector<2x32xf32> to vector<1x2x32xf32>
    tpu.vector_store %arg49[%477, %c0_176, %c0_177], %480 {strides = array<i32>} : memref<16x2x32xf32, #tpu.memory_space<vmem>>, vector<1x2x32xf32>,
    %cst_178 = arith.constant 5.000000e-01 : f32
    %481 = vector.broadcast %cst_178 : f32 to vector<4x1xf32>
    %482 = arith.cmpf ogt, %464, %481 : vector<4x1xf32>
    %483 = vector.shape_cast %482 : vector<4x1xi1> to vector<4x1xi1>
    %484 = vector.broadcast %483 : vector<4x1xi1> to vector<4x32xi1>
    %485 = arith.select %484, %463, %437 : vector<4x32xi1>, vector<4x32xf32>
    %486 = vector.extract_strided_slice %485 {offsets = [0, 0], sizes = [2, 32], strides = [1, 1]} : vector<4x32xf32> to vector<2x32xf32>
    %487 = vector.extract_strided_slice %485 {offsets = [2, 0], sizes = [2, 32], strides = [1, 1]} : vector<4x32xf32> to vector<2x32xf32>
    %c6_i32 = arith.constant 6 : i32
    %c15_i32_179 = arith.constant 15 : i32
    %488 = arith.subi %c15_i32_179, %c6_i32 : i32
    %489 = arith.index_cast %c6_i32 : i32 to index
    %c0_180 = arith.constant 0 : index
    %c0_181 = arith.constant 0 : index
    %490 = vector.load %arg50[%489, %c0_180, %c0_181] : memref<16x2x1xf32, #tpu.memory_space<vmem>>, vector<1x2x1xf32>
    %491 = vector.shape_cast %490 : vector<1x2x1xf32> to vector<2x1xf32>
    %492 = arith.index_cast %488 : i32 to index
    %c0_182 = arith.constant 0 : index
    %c0_183 = arith.constant 0 : index
    %493 = vector.load %arg50[%492, %c0_182, %c0_183] : memref<16x2x1xf32, #tpu.memory_space<vmem>>, vector<1x2x1xf32>
    %494 = vector.shape_cast %493 : vector<1x2x1xf32> to vector<2x1xf32>
    %495 = tpu.concatenate %486, %54 in 1 : vector<2x32xf32>, vector<2x32xf32> -> vector<2x64xf32>
    %496 = tpu.concatenate %54, %487 in 1 : vector<2x32xf32>, vector<2x32xf32> -> vector<2x64xf32>
    %497 = tpu.concatenate %495, %496 in 0 : vector<2x64xf32>, vector<2x64xf32> -> vector<4x64xf32>
    %c0_184 = arith.constant 0 : index
    %c0_185 = arith.constant 0 : index
    %498 = vector.load %arg13[%c0_184, %c0_185] : memref<64x96xf32, #tpu.memory_space<vmem>>, vector<64x96xf32>
    %cst_186 = arith.constant dense<0.000000e+00> : vector<4x96xf32>
    %499 = tpu.matmul %497, %498, %cst_186 {dimension_numbers = #tpu.dot_dimension_numbers<[1], [0], [0], [1], [0, 0, 1, 1], [], []>} : vector<4x64xf32>, vector<64x96xf32>, vector<4x96xf32> -> vector<4x96xf32>
    %c0_187 = arith.constant 0 : index
    %c0_188 = arith.constant 0 : index
    %500 = vector.load %arg14[%c0_187, %c0_188] : memref<4x96xf32, #tpu.memory_space<vmem>>, vector<4x96xf32>
    %501 = arith.addf %499, %500 : vector<4x96xf32>
    %502 = arith.index_cast %c6_i32 : i32 to index
    %c0_189 = arith.constant 0 : index
    %c0_190 = arith.constant 0 : index
    %503 = vector.load %arg46[%502, %c0_189, %c0_190] : memref<16x2x96xf32, #tpu.memory_space<vmem>>, vector<1x2x96xf32>
    %504 = vector.shape_cast %503 : vector<1x2x96xf32> to vector<2x96xf32>
    %505 = arith.index_cast %488 : i32 to index
    %c0_191 = arith.constant 0 : index
    %c0_192 = arith.constant 0 : index
    %506 = vector.load %arg47[%505, %c0_191, %c0_192] : memref<16x2x96xf32, #tpu.memory_space<vmem>>, vector<1x2x96xf32>
    %507 = vector.shape_cast %506 : vector<1x2x96xf32> to vector<2x96xf32>
    %508 = tpu.concatenate %504, %507 in 0 : vector<2x96xf32>, vector<2x96xf32> -> vector<4x96xf32>
    %509 = tpu.concatenate %486, %487 in 0 : vector<2x32xf32>, vector<2x32xf32> -> vector<4x32xf32>
    %510 = vector.extract_strided_slice %508 {offsets = [0, 0], sizes = [4, 32], strides = [1, 1]} : vector<4x96xf32> to vector<4x32xf32>
    %511 = vector.extract_strided_slice %501 {offsets = [0, 0], sizes = [4, 32], strides = [1, 1]} : vector<4x96xf32> to vector<4x32xf32>
    %512 = arith.addf %510, %511 : vector<4x32xf32>
    %513 = arith.negf %512 : vector<4x32xf32>
    %514 = math.exp %513 : vector<4x32xf32>
    %cst_193 = arith.constant 1.000000e+00 : f32
    %515 = vector.broadcast %cst_193 : f32 to vector<4x32xf32>
    %516 = arith.addf %515, %514 : vector<4x32xf32>
    %517 = arith.divf %515, %516 : vector<4x32xf32>
    %518 = vector.extract_strided_slice %508 {offsets = [0, 32], sizes = [4, 32], strides = [1, 1]} : vector<4x96xf32> to vector<4x32xf32>
    %519 = vector.extract_strided_slice %501 {offsets = [0, 32], sizes = [4, 32], strides = [1, 1]} : vector<4x96xf32> to vector<4x32xf32>
    %520 = arith.addf %518, %519 : vector<4x32xf32>
    %521 = arith.negf %520 : vector<4x32xf32>
    %522 = math.exp %521 : vector<4x32xf32>
    %cst_194 = arith.constant 1.000000e+00 : f32
    %523 = vector.broadcast %cst_194 : f32 to vector<4x32xf32>
    %524 = arith.addf %523, %522 : vector<4x32xf32>
    %525 = arith.divf %523, %524 : vector<4x32xf32>
    %526 = vector.extract_strided_slice %508 {offsets = [0, 64], sizes = [4, 32], strides = [1, 1]} : vector<4x96xf32> to vector<4x32xf32>
    %527 = vector.extract_strided_slice %501 {offsets = [0, 64], sizes = [4, 32], strides = [1, 1]} : vector<4x96xf32> to vector<4x32xf32>
    %528 = arith.mulf %517, %527 : vector<4x32xf32>
    %529 = arith.addf %526, %528 : vector<4x32xf32>
    %530 = math.tanh %529 : vector<4x32xf32>
    %cst_195 = arith.constant 1.000000e+00 : f32
    %531 = vector.broadcast %cst_195 : f32 to vector<4x32xf32>
    %532 = arith.subf %531, %525 : vector<4x32xf32>
    %533 = arith.mulf %532, %530 : vector<4x32xf32>
    %534 = arith.mulf %525, %509 : vector<4x32xf32>
    %535 = arith.addf %533, %534 : vector<4x32xf32>
    %536 = tpu.concatenate %491, %494 in 0 : vector<2x1xf32>, vector<2x1xf32> -> vector<4x1xf32>
    %cst_196 = arith.constant 5.000000e-01 : f32
    %537 = vector.broadcast %cst_196 : f32 to vector<4x1xf32>
    %538 = arith.cmpf ogt, %536, %537 : vector<4x1xf32>
    %cst_197 = arith.constant 0.000000e+00 : f32
    %539 = vector.shape_cast %538 : vector<4x1xi1> to vector<4x1xi1>
    %540 = vector.broadcast %539 : vector<4x1xi1> to vector<4x32xi1>
    %541 = vector.broadcast %cst_197 : f32 to vector<4x32xf32>
    %542 = arith.select %540, %535, %541 : vector<4x32xi1>, vector<4x32xf32>
    %543 = vector.extract_strided_slice %542 {offsets = [0, 0], sizes = [2, 32], strides = [1, 1]} : vector<4x32xf32> to vector<2x32xf32>
    %544 = arith.index_cast %c6_i32 : i32 to index
    %c0_198 = arith.constant 0 : index
    %c0_199 = arith.constant 0 : index
    %545 = vector.load %arg48[%544, %c0_198, %c0_199] : memref<16x2x32xf32, #tpu.memory_space<vmem>>, vector<1x2x32xf32>
    %546 = vector.shape_cast %545 : vector<1x2x32xf32> to vector<2x32xf32>
    %547 = vector.shape_cast %543 : vector<2x32xf32> to vector<1x2x32xf32>
    tpu.vector_store %arg48[%544, %c0_198, %c0_199], %547 {strides = array<i32>} : memref<16x2x32xf32, #tpu.memory_space<vmem>>, vector<1x2x32xf32>,
    %548 = vector.extract_strided_slice %542 {offsets = [2, 0], sizes = [2, 32], strides = [1, 1]} : vector<4x32xf32> to vector<2x32xf32>
    %549 = arith.index_cast %488 : i32 to index
    %c0_200 = arith.constant 0 : index
    %c0_201 = arith.constant 0 : index
    %550 = vector.load %arg49[%549, %c0_200, %c0_201] : memref<16x2x32xf32, #tpu.memory_space<vmem>>, vector<1x2x32xf32>
    %551 = vector.shape_cast %550 : vector<1x2x32xf32> to vector<2x32xf32>
    %552 = vector.shape_cast %548 : vector<2x32xf32> to vector<1x2x32xf32>
    tpu.vector_store %arg49[%549, %c0_200, %c0_201], %552 {strides = array<i32>} : memref<16x2x32xf32, #tpu.memory_space<vmem>>, vector<1x2x32xf32>,
    %cst_202 = arith.constant 5.000000e-01 : f32
    %553 = vector.broadcast %cst_202 : f32 to vector<4x1xf32>
    %554 = arith.cmpf ogt, %536, %553 : vector<4x1xf32>
    %555 = vector.shape_cast %554 : vector<4x1xi1> to vector<4x1xi1>
    %556 = vector.broadcast %555 : vector<4x1xi1> to vector<4x32xi1>
    %557 = arith.select %556, %535, %509 : vector<4x32xi1>, vector<4x32xf32>
    %558 = vector.extract_strided_slice %557 {offsets = [0, 0], sizes = [2, 32], strides = [1, 1]} : vector<4x32xf32> to vector<2x32xf32>
    %559 = vector.extract_strided_slice %557 {offsets = [2, 0], sizes = [2, 32], strides = [1, 1]} : vector<4x32xf32> to vector<2x32xf32>
    %c7_i32 = arith.constant 7 : i32
    %c15_i32_203 = arith.constant 15 : i32
    %560 = arith.subi %c15_i32_203, %c7_i32 : i32
    %561 = arith.index_cast %c7_i32 : i32 to index
    %c0_204 = arith.constant 0 : index
    %c0_205 = arith.constant 0 : index
    %562 = vector.load %arg50[%561, %c0_204, %c0_205] : memref<16x2x1xf32, #tpu.memory_space<vmem>>, vector<1x2x1xf32>
    %563 = vector.shape_cast %562 : vector<1x2x1xf32> to vector<2x1xf32>
    %564 = arith.index_cast %560 : i32 to index
    %c0_206 = arith.constant 0 : index
    %c0_207 = arith.constant 0 : index
    %565 = vector.load %arg50[%564, %c0_206, %c0_207] : memref<16x2x1xf32, #tpu.memory_space<vmem>>, vector<1x2x1xf32>
    %566 = vector.shape_cast %565 : vector<1x2x1xf32> to vector<2x1xf32>
    %567 = tpu.concatenate %558, %54 in 1 : vector<2x32xf32>, vector<2x32xf32> -> vector<2x64xf32>
    %568 = tpu.concatenate %54, %559 in 1 : vector<2x32xf32>, vector<2x32xf32> -> vector<2x64xf32>
    %569 = tpu.concatenate %567, %568 in 0 : vector<2x64xf32>, vector<2x64xf32> -> vector<4x64xf32>
    %c0_208 = arith.constant 0 : index
    %c0_209 = arith.constant 0 : index
    %570 = vector.load %arg13[%c0_208, %c0_209] : memref<64x96xf32, #tpu.memory_space<vmem>>, vector<64x96xf32>
    %cst_210 = arith.constant dense<0.000000e+00> : vector<4x96xf32>
    %571 = tpu.matmul %569, %570, %cst_210 {dimension_numbers = #tpu.dot_dimension_numbers<[1], [0], [0], [1], [0, 0, 1, 1], [], []>} : vector<4x64xf32>, vector<64x96xf32>, vector<4x96xf32> -> vector<4x96xf32>
    %c0_211 = arith.constant 0 : index
    %c0_212 = arith.constant 0 : index
    %572 = vector.load %arg14[%c0_211, %c0_212] : memref<4x96xf32, #tpu.memory_space<vmem>>, vector<4x96xf32>
    %573 = arith.addf %571, %572 : vector<4x96xf32>
    %574 = arith.index_cast %c7_i32 : i32 to index
    %c0_213 = arith.constant 0 : index
    %c0_214 = arith.constant 0 : index
    %575 = vector.load %arg46[%574, %c0_213, %c0_214] : memref<16x2x96xf32, #tpu.memory_space<vmem>>, vector<1x2x96xf32>
    %576 = vector.shape_cast %575 : vector<1x2x96xf32> to vector<2x96xf32>
    %577 = arith.index_cast %560 : i32 to index
    %c0_215 = arith.constant 0 : index
    %c0_216 = arith.constant 0 : index
    %578 = vector.load %arg47[%577, %c0_215, %c0_216] : memref<16x2x96xf32, #tpu.memory_space<vmem>>, vector<1x2x96xf32>
    %579 = vector.shape_cast %578 : vector<1x2x96xf32> to vector<2x96xf32>
    %580 = tpu.concatenate %576, %579 in 0 : vector<2x96xf32>, vector<2x96xf32> -> vector<4x96xf32>
    %581 = tpu.concatenate %558, %559 in 0 : vector<2x32xf32>, vector<2x32xf32> -> vector<4x32xf32>
    %582 = vector.extract_strided_slice %580 {offsets = [0, 0], sizes = [4, 32], strides = [1, 1]} : vector<4x96xf32> to vector<4x32xf32>
    %583 = vector.extract_strided_slice %573 {offsets = [0, 0], sizes = [4, 32], strides = [1, 1]} : vector<4x96xf32> to vector<4x32xf32>
    %584 = arith.addf %582, %583 : vector<4x32xf32>
    %585 = arith.negf %584 : vector<4x32xf32>
    %586 = math.exp %585 : vector<4x32xf32>
    %cst_217 = arith.constant 1.000000e+00 : f32
    %587 = vector.broadcast %cst_217 : f32 to vector<4x32xf32>
    %588 = arith.addf %587, %586 : vector<4x32xf32>
    %589 = arith.divf %587, %588 : vector<4x32xf32>
    %590 = vector.extract_strided_slice %580 {offsets = [0, 32], sizes = [4, 32], strides = [1, 1]} : vector<4x96xf32> to vector<4x32xf32>
    %591 = vector.extract_strided_slice %573 {offsets = [0, 32], sizes = [4, 32], strides = [1, 1]} : vector<4x96xf32> to vector<4x32xf32>
    %592 = arith.addf %590, %591 : vector<4x32xf32>
    %593 = arith.negf %592 : vector<4x32xf32>
    %594 = math.exp %593 : vector<4x32xf32>
    %cst_218 = arith.constant 1.000000e+00 : f32
    %595 = vector.broadcast %cst_218 : f32 to vector<4x32xf32>
    %596 = arith.addf %595, %594 : vector<4x32xf32>
    %597 = arith.divf %595, %596 : vector<4x32xf32>
    %598 = vector.extract_strided_slice %580 {offsets = [0, 64], sizes = [4, 32], strides = [1, 1]} : vector<4x96xf32> to vector<4x32xf32>
    %599 = vector.extract_strided_slice %573 {offsets = [0, 64], sizes = [4, 32], strides = [1, 1]} : vector<4x96xf32> to vector<4x32xf32>
    %600 = arith.mulf %589, %599 : vector<4x32xf32>
    %601 = arith.addf %598, %600 : vector<4x32xf32>
    %602 = math.tanh %601 : vector<4x32xf32>
    %cst_219 = arith.constant 1.000000e+00 : f32
    %603 = vector.broadcast %cst_219 : f32 to vector<4x32xf32>
    %604 = arith.subf %603, %597 : vector<4x32xf32>
    %605 = arith.mulf %604, %602 : vector<4x32xf32>
    %606 = arith.mulf %597, %581 : vector<4x32xf32>
    %607 = arith.addf %605, %606 : vector<4x32xf32>
    %608 = tpu.concatenate %563, %566 in 0 : vector<2x1xf32>, vector<2x1xf32> -> vector<4x1xf32>
    %cst_220 = arith.constant 5.000000e-01 : f32
    %609 = vector.broadcast %cst_220 : f32 to vector<4x1xf32>
    %610 = arith.cmpf ogt, %608, %609 : vector<4x1xf32>
    %cst_221 = arith.constant 0.000000e+00 : f32
    %611 = vector.shape_cast %610 : vector<4x1xi1> to vector<4x1xi1>
    %612 = vector.broadcast %611 : vector<4x1xi1> to vector<4x32xi1>
    %613 = vector.broadcast %cst_221 : f32 to vector<4x32xf32>
    %614 = arith.select %612, %607, %613 : vector<4x32xi1>, vector<4x32xf32>
    %615 = vector.extract_strided_slice %614 {offsets = [0, 0], sizes = [2, 32], strides = [1, 1]} : vector<4x32xf32> to vector<2x32xf32>
    %616 = arith.index_cast %c7_i32 : i32 to index
    %c0_222 = arith.constant 0 : index
    %c0_223 = arith.constant 0 : index
    %617 = vector.load %arg48[%616, %c0_222, %c0_223] : memref<16x2x32xf32, #tpu.memory_space<vmem>>, vector<1x2x32xf32>
    %618 = vector.shape_cast %617 : vector<1x2x32xf32> to vector<2x32xf32>
    %619 = vector.shape_cast %615 : vector<2x32xf32> to vector<1x2x32xf32>
    tpu.vector_store %arg48[%616, %c0_222, %c0_223], %619 {strides = array<i32>} : memref<16x2x32xf32, #tpu.memory_space<vmem>>, vector<1x2x32xf32>,
    %620 = vector.extract_strided_slice %614 {offsets = [2, 0], sizes = [2, 32], strides = [1, 1]} : vector<4x32xf32> to vector<2x32xf32>
    %621 = arith.index_cast %560 : i32 to index
    %c0_224 = arith.constant 0 : index
    %c0_225 = arith.constant 0 : index
    %622 = vector.load %arg49[%621, %c0_224, %c0_225] : memref<16x2x32xf32, #tpu.memory_space<vmem>>, vector<1x2x32xf32>
    %623 = vector.shape_cast %622 : vector<1x2x32xf32> to vector<2x32xf32>
    %624 = vector.shape_cast %620 : vector<2x32xf32> to vector<1x2x32xf32>
    tpu.vector_store %arg49[%621, %c0_224, %c0_225], %624 {strides = array<i32>} : memref<16x2x32xf32, #tpu.memory_space<vmem>>, vector<1x2x32xf32>,
    %cst_226 = arith.constant 5.000000e-01 : f32
    %625 = vector.broadcast %cst_226 : f32 to vector<4x1xf32>
    %626 = arith.cmpf ogt, %608, %625 : vector<4x1xf32>
    %627 = vector.shape_cast %626 : vector<4x1xi1> to vector<4x1xi1>
    %628 = vector.broadcast %627 : vector<4x1xi1> to vector<4x32xi1>
    %629 = arith.select %628, %607, %581 : vector<4x32xi1>, vector<4x32xf32>
    %630 = vector.extract_strided_slice %629 {offsets = [0, 0], sizes = [2, 32], strides = [1, 1]} : vector<4x32xf32> to vector<2x32xf32>
    %631 = vector.extract_strided_slice %629 {offsets = [2, 0], sizes = [2, 32], strides = [1, 1]} : vector<4x32xf32> to vector<2x32xf32>
    %c8_i32 = arith.constant 8 : i32
    %c15_i32_227 = arith.constant 15 : i32
    %632 = arith.subi %c15_i32_227, %c8_i32 : i32
    %633 = arith.index_cast %c8_i32 : i32 to index
    %c0_228 = arith.constant 0 : index
    %c0_229 = arith.constant 0 : index
    %634 = vector.load %arg50[%633, %c0_228, %c0_229] : memref<16x2x1xf32, #tpu.memory_space<vmem>>, vector<1x2x1xf32>
    %635 = vector.shape_cast %634 : vector<1x2x1xf32> to vector<2x1xf32>
    %636 = arith.index_cast %632 : i32 to index
    %c0_230 = arith.constant 0 : index
    %c0_231 = arith.constant 0 : index
    %637 = vector.load %arg50[%636, %c0_230, %c0_231] : memref<16x2x1xf32, #tpu.memory_space<vmem>>, vector<1x2x1xf32>
    %638 = vector.shape_cast %637 : vector<1x2x1xf32> to vector<2x1xf32>
    %639 = tpu.concatenate %630, %54 in 1 : vector<2x32xf32>, vector<2x32xf32> -> vector<2x64xf32>
    %640 = tpu.concatenate %54, %631 in 1 : vector<2x32xf32>, vector<2x32xf32> -> vector<2x64xf32>
    %641 = tpu.concatenate %639, %640 in 0 : vector<2x64xf32>, vector<2x64xf32> -> vector<4x64xf32>
    %c0_232 = arith.constant 0 : index
    %c0_233 = arith.constant 0 : index
    %642 = vector.load %arg13[%c0_232, %c0_233] : memref<64x96xf32, #tpu.memory_space<vmem>>, vector<64x96xf32>
    %cst_234 = arith.constant dense<0.000000e+00> : vector<4x96xf32>
    %643 = tpu.matmul %641, %642, %cst_234 {dimension_numbers = #tpu.dot_dimension_numbers<[1], [0], [0], [1], [0, 0, 1, 1], [], []>} : vector<4x64xf32>, vector<64x96xf32>, vector<4x96xf32> -> vector<4x96xf32>
    %c0_235 = arith.constant 0 : index
    %c0_236 = arith.constant 0 : index
    %644 = vector.load %arg14[%c0_235, %c0_236] : memref<4x96xf32, #tpu.memory_space<vmem>>, vector<4x96xf32>
    %645 = arith.addf %643, %644 : vector<4x96xf32>
    %646 = arith.index_cast %c8_i32 : i32 to index
    %c0_237 = arith.constant 0 : index
    %c0_238 = arith.constant 0 : index
    %647 = vector.load %arg46[%646, %c0_237, %c0_238] : memref<16x2x96xf32, #tpu.memory_space<vmem>>, vector<1x2x96xf32>
    %648 = vector.shape_cast %647 : vector<1x2x96xf32> to vector<2x96xf32>
    %649 = arith.index_cast %632 : i32 to index
    %c0_239 = arith.constant 0 : index
    %c0_240 = arith.constant 0 : index
    %650 = vector.load %arg47[%649, %c0_239, %c0_240] : memref<16x2x96xf32, #tpu.memory_space<vmem>>, vector<1x2x96xf32>
    %651 = vector.shape_cast %650 : vector<1x2x96xf32> to vector<2x96xf32>
    %652 = tpu.concatenate %648, %651 in 0 : vector<2x96xf32>, vector<2x96xf32> -> vector<4x96xf32>
    %653 = tpu.concatenate %630, %631 in 0 : vector<2x32xf32>, vector<2x32xf32> -> vector<4x32xf32>
    %654 = vector.extract_strided_slice %652 {offsets = [0, 0], sizes = [4, 32], strides = [1, 1]} : vector<4x96xf32> to vector<4x32xf32>
    %655 = vector.extract_strided_slice %645 {offsets = [0, 0], sizes = [4, 32], strides = [1, 1]} : vector<4x96xf32> to vector<4x32xf32>
    %656 = arith.addf %654, %655 : vector<4x32xf32>
    %657 = arith.negf %656 : vector<4x32xf32>
    %658 = math.exp %657 : vector<4x32xf32>
    %cst_241 = arith.constant 1.000000e+00 : f32
    %659 = vector.broadcast %cst_241 : f32 to vector<4x32xf32>
    %660 = arith.addf %659, %658 : vector<4x32xf32>
    %661 = arith.divf %659, %660 : vector<4x32xf32>
    %662 = vector.extract_strided_slice %652 {offsets = [0, 32], sizes = [4, 32], strides = [1, 1]} : vector<4x96xf32> to vector<4x32xf32>
    %663 = vector.extract_strided_slice %645 {offsets = [0, 32], sizes = [4, 32], strides = [1, 1]} : vector<4x96xf32> to vector<4x32xf32>
    %664 = arith.addf %662, %663 : vector<4x32xf32>
    %665 = arith.negf %664 : vector<4x32xf32>
    %666 = math.exp %665 : vector<4x32xf32>
    %cst_242 = arith.constant 1.000000e+00 : f32
    %667 = vector.broadcast %cst_242 : f32 to vector<4x32xf32>
    %668 = arith.addf %667, %666 : vector<4x32xf32>
    %669 = arith.divf %667, %668 : vector<4x32xf32>
    %670 = vector.extract_strided_slice %652 {offsets = [0, 64], sizes = [4, 32], strides = [1, 1]} : vector<4x96xf32> to vector<4x32xf32>
    %671 = vector.extract_strided_slice %645 {offsets = [0, 64], sizes = [4, 32], strides = [1, 1]} : vector<4x96xf32> to vector<4x32xf32>
    %672 = arith.mulf %661, %671 : vector<4x32xf32>
    %673 = arith.addf %670, %672 : vector<4x32xf32>
    %674 = math.tanh %673 : vector<4x32xf32>
    %cst_243 = arith.constant 1.000000e+00 : f32
    %675 = vector.broadcast %cst_243 : f32 to vector<4x32xf32>
    %676 = arith.subf %675, %669 : vector<4x32xf32>
    %677 = arith.mulf %676, %674 : vector<4x32xf32>
    %678 = arith.mulf %669, %653 : vector<4x32xf32>
    %679 = arith.addf %677, %678 : vector<4x32xf32>
    %680 = tpu.concatenate %635, %638 in 0 : vector<2x1xf32>, vector<2x1xf32> -> vector<4x1xf32>
    %cst_244 = arith.constant 5.000000e-01 : f32
    %681 = vector.broadcast %cst_244 : f32 to vector<4x1xf32>
    %682 = arith.cmpf ogt, %680, %681 : vector<4x1xf32>
    %cst_245 = arith.constant 0.000000e+00 : f32
    %683 = vector.shape_cast %682 : vector<4x1xi1> to vector<4x1xi1>
    %684 = vector.broadcast %683 : vector<4x1xi1> to vector<4x32xi1>
    %685 = vector.broadcast %cst_245 : f32 to vector<4x32xf32>
    %686 = arith.select %684, %679, %685 : vector<4x32xi1>, vector<4x32xf32>
    %687 = vector.extract_strided_slice %686 {offsets = [0, 0], sizes = [2, 32], strides = [1, 1]} : vector<4x32xf32> to vector<2x32xf32>
    %688 = arith.index_cast %c8_i32 : i32 to index
    %c0_246 = arith.constant 0 : index
    %c0_247 = arith.constant 0 : index
    %689 = vector.load %arg48[%688, %c0_246, %c0_247] : memref<16x2x32xf32, #tpu.memory_space<vmem>>, vector<1x2x32xf32>
    %690 = vector.shape_cast %689 : vector<1x2x32xf32> to vector<2x32xf32>
    %691 = vector.shape_cast %687 : vector<2x32xf32> to vector<1x2x32xf32>
    tpu.vector_store %arg48[%688, %c0_246, %c0_247], %691 {strides = array<i32>} : memref<16x2x32xf32, #tpu.memory_space<vmem>>, vector<1x2x32xf32>,
    %692 = vector.extract_strided_slice %686 {offsets = [2, 0], sizes = [2, 32], strides = [1, 1]} : vector<4x32xf32> to vector<2x32xf32>
    %693 = arith.index_cast %632 : i32 to index
    %c0_248 = arith.constant 0 : index
    %c0_249 = arith.constant 0 : index
    %694 = vector.load %arg49[%693, %c0_248, %c0_249] : memref<16x2x32xf32, #tpu.memory_space<vmem>>, vector<1x2x32xf32>
    %695 = vector.shape_cast %694 : vector<1x2x32xf32> to vector<2x32xf32>
    %696 = vector.shape_cast %692 : vector<2x32xf32> to vector<1x2x32xf32>
    tpu.vector_store %arg49[%693, %c0_248, %c0_249], %696 {strides = array<i32>} : memref<16x2x32xf32, #tpu.memory_space<vmem>>, vector<1x2x32xf32>,
    %cst_250 = arith.constant 5.000000e-01 : f32
    %697 = vector.broadcast %cst_250 : f32 to vector<4x1xf32>
    %698 = arith.cmpf ogt, %680, %697 : vector<4x1xf32>
    %699 = vector.shape_cast %698 : vector<4x1xi1> to vector<4x1xi1>
    %700 = vector.broadcast %699 : vector<4x1xi1> to vector<4x32xi1>
    %701 = arith.select %700, %679, %653 : vector<4x32xi1>, vector<4x32xf32>
    %702 = vector.extract_strided_slice %701 {offsets = [0, 0], sizes = [2, 32], strides = [1, 1]} : vector<4x32xf32> to vector<2x32xf32>
    %703 = vector.extract_strided_slice %701 {offsets = [2, 0], sizes = [2, 32], strides = [1, 1]} : vector<4x32xf32> to vector<2x32xf32>
    %c9_i32 = arith.constant 9 : i32
    %c15_i32_251 = arith.constant 15 : i32
    %704 = arith.subi %c15_i32_251, %c9_i32 : i32
    %705 = arith.index_cast %c9_i32 : i32 to index
    %c0_252 = arith.constant 0 : index
    %c0_253 = arith.constant 0 : index
    %706 = vector.load %arg50[%705, %c0_252, %c0_253] : memref<16x2x1xf32, #tpu.memory_space<vmem>>, vector<1x2x1xf32>
    %707 = vector.shape_cast %706 : vector<1x2x1xf32> to vector<2x1xf32>
    %708 = arith.index_cast %704 : i32 to index
    %c0_254 = arith.constant 0 : index
    %c0_255 = arith.constant 0 : index
    %709 = vector.load %arg50[%708, %c0_254, %c0_255] : memref<16x2x1xf32, #tpu.memory_space<vmem>>, vector<1x2x1xf32>
    %710 = vector.shape_cast %709 : vector<1x2x1xf32> to vector<2x1xf32>
    %711 = tpu.concatenate %702, %54 in 1 : vector<2x32xf32>, vector<2x32xf32> -> vector<2x64xf32>
    %712 = tpu.concatenate %54, %703 in 1 : vector<2x32xf32>, vector<2x32xf32> -> vector<2x64xf32>
    %713 = tpu.concatenate %711, %712 in 0 : vector<2x64xf32>, vector<2x64xf32> -> vector<4x64xf32>
    %c0_256 = arith.constant 0 : index
    %c0_257 = arith.constant 0 : index
    %714 = vector.load %arg13[%c0_256, %c0_257] : memref<64x96xf32, #tpu.memory_space<vmem>>, vector<64x96xf32>
    %cst_258 = arith.constant dense<0.000000e+00> : vector<4x96xf32>
    %715 = tpu.matmul %713, %714, %cst_258 {dimension_numbers = #tpu.dot_dimension_numbers<[1], [0], [0], [1], [0, 0, 1, 1], [], []>} : vector<4x64xf32>, vector<64x96xf32>, vector<4x96xf32> -> vector<4x96xf32>
    %c0_259 = arith.constant 0 : index
    %c0_260 = arith.constant 0 : index
    %716 = vector.load %arg14[%c0_259, %c0_260] : memref<4x96xf32, #tpu.memory_space<vmem>>, vector<4x96xf32>
    %717 = arith.addf %715, %716 : vector<4x96xf32>
    %718 = arith.index_cast %c9_i32 : i32 to index
    %c0_261 = arith.constant 0 : index
    %c0_262 = arith.constant 0 : index
    %719 = vector.load %arg46[%718, %c0_261, %c0_262] : memref<16x2x96xf32, #tpu.memory_space<vmem>>, vector<1x2x96xf32>
    %720 = vector.shape_cast %719 : vector<1x2x96xf32> to vector<2x96xf32>
    %721 = arith.index_cast %704 : i32 to index
    %c0_263 = arith.constant 0 : index
    %c0_264 = arith.constant 0 : index
    %722 = vector.load %arg47[%721, %c0_263, %c0_264] : memref<16x2x96xf32, #tpu.memory_space<vmem>>, vector<1x2x96xf32>
    %723 = vector.shape_cast %722 : vector<1x2x96xf32> to vector<2x96xf32>
    %724 = tpu.concatenate %720, %723 in 0 : vector<2x96xf32>, vector<2x96xf32> -> vector<4x96xf32>
    %725 = tpu.concatenate %702, %703 in 0 : vector<2x32xf32>, vector<2x32xf32> -> vector<4x32xf32>
    %726 = vector.extract_strided_slice %724 {offsets = [0, 0], sizes = [4, 32], strides = [1, 1]} : vector<4x96xf32> to vector<4x32xf32>
    %727 = vector.extract_strided_slice %717 {offsets = [0, 0], sizes = [4, 32], strides = [1, 1]} : vector<4x96xf32> to vector<4x32xf32>
    %728 = arith.addf %726, %727 : vector<4x32xf32>
    %729 = arith.negf %728 : vector<4x32xf32>
    %730 = math.exp %729 : vector<4x32xf32>
    %cst_265 = arith.constant 1.000000e+00 : f32
    %731 = vector.broadcast %cst_265 : f32 to vector<4x32xf32>
    %732 = arith.addf %731, %730 : vector<4x32xf32>
    %733 = arith.divf %731, %732 : vector<4x32xf32>
    %734 = vector.extract_strided_slice %724 {offsets = [0, 32], sizes = [4, 32], strides = [1, 1]} : vector<4x96xf32> to vector<4x32xf32>
    %735 = vector.extract_strided_slice %717 {offsets = [0, 32], sizes = [4, 32], strides = [1, 1]} : vector<4x96xf32> to vector<4x32xf32>
    %736 = arith.addf %734, %735 : vector<4x32xf32>
    %737 = arith.negf %736 : vector<4x32xf32>
    %738 = math.exp %737 : vector<4x32xf32>
    %cst_266 = arith.constant 1.000000e+00 : f32
    %739 = vector.broadcast %cst_266 : f32 to vector<4x32xf32>
    %740 = arith.addf %739, %738 : vector<4x32xf32>
    %741 = arith.divf %739, %740 : vector<4x32xf32>
    %742 = vector.extract_strided_slice %724 {offsets = [0, 64], sizes = [4, 32], strides = [1, 1]} : vector<4x96xf32> to vector<4x32xf32>
    %743 = vector.extract_strided_slice %717 {offsets = [0, 64], sizes = [4, 32], strides = [1, 1]} : vector<4x96xf32> to vector<4x32xf32>
    %744 = arith.mulf %733, %743 : vector<4x32xf32>
    %745 = arith.addf %742, %744 : vector<4x32xf32>
    %746 = math.tanh %745 : vector<4x32xf32>
    %cst_267 = arith.constant 1.000000e+00 : f32
    %747 = vector.broadcast %cst_267 : f32 to vector<4x32xf32>
    %748 = arith.subf %747, %741 : vector<4x32xf32>
    %749 = arith.mulf %748, %746 : vector<4x32xf32>
    %750 = arith.mulf %741, %725 : vector<4x32xf32>
    %751 = arith.addf %749, %750 : vector<4x32xf32>
    %752 = tpu.concatenate %707, %710 in 0 : vector<2x1xf32>, vector<2x1xf32> -> vector<4x1xf32>
    %cst_268 = arith.constant 5.000000e-01 : f32
    %753 = vector.broadcast %cst_268 : f32 to vector<4x1xf32>
    %754 = arith.cmpf ogt, %752, %753 : vector<4x1xf32>
    %cst_269 = arith.constant 0.000000e+00 : f32
    %755 = vector.shape_cast %754 : vector<4x1xi1> to vector<4x1xi1>
    %756 = vector.broadcast %755 : vector<4x1xi1> to vector<4x32xi1>
    %757 = vector.broadcast %cst_269 : f32 to vector<4x32xf32>
    %758 = arith.select %756, %751, %757 : vector<4x32xi1>, vector<4x32xf32>
    %759 = vector.extract_strided_slice %758 {offsets = [0, 0], sizes = [2, 32], strides = [1, 1]} : vector<4x32xf32> to vector<2x32xf32>
    %760 = arith.index_cast %c9_i32 : i32 to index
    %c0_270 = arith.constant 0 : index
    %c0_271 = arith.constant 0 : index
    %761 = vector.load %arg48[%760, %c0_270, %c0_271] : memref<16x2x32xf32, #tpu.memory_space<vmem>>, vector<1x2x32xf32>
    %762 = vector.shape_cast %761 : vector<1x2x32xf32> to vector<2x32xf32>
    %763 = vector.shape_cast %759 : vector<2x32xf32> to vector<1x2x32xf32>
    tpu.vector_store %arg48[%760, %c0_270, %c0_271], %763 {strides = array<i32>} : memref<16x2x32xf32, #tpu.memory_space<vmem>>, vector<1x2x32xf32>,
    %764 = vector.extract_strided_slice %758 {offsets = [2, 0], sizes = [2, 32], strides = [1, 1]} : vector<4x32xf32> to vector<2x32xf32>
    %765 = arith.index_cast %704 : i32 to index
    %c0_272 = arith.constant 0 : index
    %c0_273 = arith.constant 0 : index
    %766 = vector.load %arg49[%765, %c0_272, %c0_273] : memref<16x2x32xf32, #tpu.memory_space<vmem>>, vector<1x2x32xf32>
    %767 = vector.shape_cast %766 : vector<1x2x32xf32> to vector<2x32xf32>
    %768 = vector.shape_cast %764 : vector<2x32xf32> to vector<1x2x32xf32>
    tpu.vector_store %arg49[%765, %c0_272, %c0_273], %768 {strides = array<i32>} : memref<16x2x32xf32, #tpu.memory_space<vmem>>, vector<1x2x32xf32>,
    %cst_274 = arith.constant 5.000000e-01 : f32
    %769 = vector.broadcast %cst_274 : f32 to vector<4x1xf32>
    %770 = arith.cmpf ogt, %752, %769 : vector<4x1xf32>
    %771 = vector.shape_cast %770 : vector<4x1xi1> to vector<4x1xi1>
    %772 = vector.broadcast %771 : vector<4x1xi1> to vector<4x32xi1>
    %773 = arith.select %772, %751, %725 : vector<4x32xi1>, vector<4x32xf32>
    %774 = vector.extract_strided_slice %773 {offsets = [0, 0], sizes = [2, 32], strides = [1, 1]} : vector<4x32xf32> to vector<2x32xf32>
    %775 = vector.extract_strided_slice %773 {offsets = [2, 0], sizes = [2, 32], strides = [1, 1]} : vector<4x32xf32> to vector<2x32xf32>
    %c10_i32 = arith.constant 10 : i32
    %c15_i32_275 = arith.constant 15 : i32
    %776 = arith.subi %c15_i32_275, %c10_i32 : i32
    %777 = arith.index_cast %c10_i32 : i32 to index
    %c0_276 = arith.constant 0 : index
    %c0_277 = arith.constant 0 : index
    %778 = vector.load %arg50[%777, %c0_276, %c0_277] : memref<16x2x1xf32, #tpu.memory_space<vmem>>, vector<1x2x1xf32>
    %779 = vector.shape_cast %778 : vector<1x2x1xf32> to vector<2x1xf32>
    %780 = arith.index_cast %776 : i32 to index
    %c0_278 = arith.constant 0 : index
    %c0_279 = arith.constant 0 : index
    %781 = vector.load %arg50[%780, %c0_278, %c0_279] : memref<16x2x1xf32, #tpu.memory_space<vmem>>, vector<1x2x1xf32>
    %782 = vector.shape_cast %781 : vector<1x2x1xf32> to vector<2x1xf32>
    %783 = tpu.concatenate %774, %54 in 1 : vector<2x32xf32>, vector<2x32xf32> -> vector<2x64xf32>
    %784 = tpu.concatenate %54, %775 in 1 : vector<2x32xf32>, vector<2x32xf32> -> vector<2x64xf32>
    %785 = tpu.concatenate %783, %784 in 0 : vector<2x64xf32>, vector<2x64xf32> -> vector<4x64xf32>
    %c0_280 = arith.constant 0 : index
    %c0_281 = arith.constant 0 : index
    %786 = vector.load %arg13[%c0_280, %c0_281] : memref<64x96xf32, #tpu.memory_space<vmem>>, vector<64x96xf32>
    %cst_282 = arith.constant dense<0.000000e+00> : vector<4x96xf32>
    %787 = tpu.matmul %785, %786, %cst_282 {dimension_numbers = #tpu.dot_dimension_numbers<[1], [0], [0], [1], [0, 0, 1, 1], [], []>} : vector<4x64xf32>, vector<64x96xf32>, vector<4x96xf32> -> vector<4x96xf32>
    %c0_283 = arith.constant 0 : index
    %c0_284 = arith.constant 0 : index
    %788 = vector.load %arg14[%c0_283, %c0_284] : memref<4x96xf32, #tpu.memory_space<vmem>>, vector<4x96xf32>
    %789 = arith.addf %787, %788 : vector<4x96xf32>
    %790 = arith.index_cast %c10_i32 : i32 to index
    %c0_285 = arith.constant 0 : index
    %c0_286 = arith.constant 0 : index
    %791 = vector.load %arg46[%790, %c0_285, %c0_286] : memref<16x2x96xf32, #tpu.memory_space<vmem>>, vector<1x2x96xf32>
    %792 = vector.shape_cast %791 : vector<1x2x96xf32> to vector<2x96xf32>
    %793 = arith.index_cast %776 : i32 to index
    %c0_287 = arith.constant 0 : index
    %c0_288 = arith.constant 0 : index
    %794 = vector.load %arg47[%793, %c0_287, %c0_288] : memref<16x2x96xf32, #tpu.memory_space<vmem>>, vector<1x2x96xf32>
    %795 = vector.shape_cast %794 : vector<1x2x96xf32> to vector<2x96xf32>
    %796 = tpu.concatenate %792, %795 in 0 : vector<2x96xf32>, vector<2x96xf32> -> vector<4x96xf32>
    %797 = tpu.concatenate %774, %775 in 0 : vector<2x32xf32>, vector<2x32xf32> -> vector<4x32xf32>
    %798 = vector.extract_strided_slice %796 {offsets = [0, 0], sizes = [4, 32], strides = [1, 1]} : vector<4x96xf32> to vector<4x32xf32>
    %799 = vector.extract_strided_slice %789 {offsets = [0, 0], sizes = [4, 32], strides = [1, 1]} : vector<4x96xf32> to vector<4x32xf32>
    %800 = arith.addf %798, %799 : vector<4x32xf32>
    %801 = arith.negf %800 : vector<4x32xf32>
    %802 = math.exp %801 : vector<4x32xf32>
    %cst_289 = arith.constant 1.000000e+00 : f32
    %803 = vector.broadcast %cst_289 : f32 to vector<4x32xf32>
    %804 = arith.addf %803, %802 : vector<4x32xf32>
    %805 = arith.divf %803, %804 : vector<4x32xf32>
    %806 = vector.extract_strided_slice %796 {offsets = [0, 32], sizes = [4, 32], strides = [1, 1]} : vector<4x96xf32> to vector<4x32xf32>
    %807 = vector.extract_strided_slice %789 {offsets = [0, 32], sizes = [4, 32], strides = [1, 1]} : vector<4x96xf32> to vector<4x32xf32>
    %808 = arith.addf %806, %807 : vector<4x32xf32>
    %809 = arith.negf %808 : vector<4x32xf32>
    %810 = math.exp %809 : vector<4x32xf32>
    %cst_290 = arith.constant 1.000000e+00 : f32
    %811 = vector.broadcast %cst_290 : f32 to vector<4x32xf32>
    %812 = arith.addf %811, %810 : vector<4x32xf32>
    %813 = arith.divf %811, %812 : vector<4x32xf32>
    %814 = vector.extract_strided_slice %796 {offsets = [0, 64], sizes = [4, 32], strides = [1, 1]} : vector<4x96xf32> to vector<4x32xf32>
    %815 = vector.extract_strided_slice %789 {offsets = [0, 64], sizes = [4, 32], strides = [1, 1]} : vector<4x96xf32> to vector<4x32xf32>
    %816 = arith.mulf %805, %815 : vector<4x32xf32>
    %817 = arith.addf %814, %816 : vector<4x32xf32>
    %818 = math.tanh %817 : vector<4x32xf32>
    %cst_291 = arith.constant 1.000000e+00 : f32
    %819 = vector.broadcast %cst_291 : f32 to vector<4x32xf32>
    %820 = arith.subf %819, %813 : vector<4x32xf32>
    %821 = arith.mulf %820, %818 : vector<4x32xf32>
    %822 = arith.mulf %813, %797 : vector<4x32xf32>
    %823 = arith.addf %821, %822 : vector<4x32xf32>
    %824 = tpu.concatenate %779, %782 in 0 : vector<2x1xf32>, vector<2x1xf32> -> vector<4x1xf32>
    %cst_292 = arith.constant 5.000000e-01 : f32
    %825 = vector.broadcast %cst_292 : f32 to vector<4x1xf32>
    %826 = arith.cmpf ogt, %824, %825 : vector<4x1xf32>
    %cst_293 = arith.constant 0.000000e+00 : f32
    %827 = vector.shape_cast %826 : vector<4x1xi1> to vector<4x1xi1>
    %828 = vector.broadcast %827 : vector<4x1xi1> to vector<4x32xi1>
    %829 = vector.broadcast %cst_293 : f32 to vector<4x32xf32>
    %830 = arith.select %828, %823, %829 : vector<4x32xi1>, vector<4x32xf32>
    %831 = vector.extract_strided_slice %830 {offsets = [0, 0], sizes = [2, 32], strides = [1, 1]} : vector<4x32xf32> to vector<2x32xf32>
    %832 = arith.index_cast %c10_i32 : i32 to index
    %c0_294 = arith.constant 0 : index
    %c0_295 = arith.constant 0 : index
    %833 = vector.load %arg48[%832, %c0_294, %c0_295] : memref<16x2x32xf32, #tpu.memory_space<vmem>>, vector<1x2x32xf32>
    %834 = vector.shape_cast %833 : vector<1x2x32xf32> to vector<2x32xf32>
    %835 = vector.shape_cast %831 : vector<2x32xf32> to vector<1x2x32xf32>
    tpu.vector_store %arg48[%832, %c0_294, %c0_295], %835 {strides = array<i32>} : memref<16x2x32xf32, #tpu.memory_space<vmem>>, vector<1x2x32xf32>,
    %836 = vector.extract_strided_slice %830 {offsets = [2, 0], sizes = [2, 32], strides = [1, 1]} : vector<4x32xf32> to vector<2x32xf32>
    %837 = arith.index_cast %776 : i32 to index
    %c0_296 = arith.constant 0 : index
    %c0_297 = arith.constant 0 : index
    %838 = vector.load %arg49[%837, %c0_296, %c0_297] : memref<16x2x32xf32, #tpu.memory_space<vmem>>, vector<1x2x32xf32>
    %839 = vector.shape_cast %838 : vector<1x2x32xf32> to vector<2x32xf32>
    %840 = vector.shape_cast %836 : vector<2x32xf32> to vector<1x2x32xf32>
    tpu.vector_store %arg49[%837, %c0_296, %c0_297], %840 {strides = array<i32>} : memref<16x2x32xf32, #tpu.memory_space<vmem>>, vector<1x2x32xf32>,
    %cst_298 = arith.constant 5.000000e-01 : f32
    %841 = vector.broadcast %cst_298 : f32 to vector<4x1xf32>
    %842 = arith.cmpf ogt, %824, %841 : vector<4x1xf32>
    %843 = vector.shape_cast %842 : vector<4x1xi1> to vector<4x1xi1>
    %844 = vector.broadcast %843 : vector<4x1xi1> to vector<4x32xi1>
    %845 = arith.select %844, %823, %797 : vector<4x32xi1>, vector<4x32xf32>
    %846 = vector.extract_strided_slice %845 {offsets = [0, 0], sizes = [2, 32], strides = [1, 1]} : vector<4x32xf32> to vector<2x32xf32>
    %847 = vector.extract_strided_slice %845 {offsets = [2, 0], sizes = [2, 32], strides = [1, 1]} : vector<4x32xf32> to vector<2x32xf32>
    %c11_i32 = arith.constant 11 : i32
    %c15_i32_299 = arith.constant 15 : i32
    %848 = arith.subi %c15_i32_299, %c11_i32 : i32
    %849 = arith.index_cast %c11_i32 : i32 to index
    %c0_300 = arith.constant 0 : index
    %c0_301 = arith.constant 0 : index
    %850 = vector.load %arg50[%849, %c0_300, %c0_301] : memref<16x2x1xf32, #tpu.memory_space<vmem>>, vector<1x2x1xf32>
    %851 = vector.shape_cast %850 : vector<1x2x1xf32> to vector<2x1xf32>
    %852 = arith.index_cast %848 : i32 to index
    %c0_302 = arith.constant 0 : index
    %c0_303 = arith.constant 0 : index
    %853 = vector.load %arg50[%852, %c0_302, %c0_303] : memref<16x2x1xf32, #tpu.memory_space<vmem>>, vector<1x2x1xf32>
    %854 = vector.shape_cast %853 : vector<1x2x1xf32> to vector<2x1xf32>
    %855 = tpu.concatenate %846, %54 in 1 : vector<2x32xf32>, vector<2x32xf32> -> vector<2x64xf32>
    %856 = tpu.concatenate %54, %847 in 1 : vector<2x32xf32>, vector<2x32xf32> -> vector<2x64xf32>
    %857 = tpu.concatenate %855, %856 in 0 : vector<2x64xf32>, vector<2x64xf32> -> vector<4x64xf32>
    %c0_304 = arith.constant 0 : index
    %c0_305 = arith.constant 0 : index
    %858 = vector.load %arg13[%c0_304, %c0_305] : memref<64x96xf32, #tpu.memory_space<vmem>>, vector<64x96xf32>
    %cst_306 = arith.constant dense<0.000000e+00> : vector<4x96xf32>
    %859 = tpu.matmul %857, %858, %cst_306 {dimension_numbers = #tpu.dot_dimension_numbers<[1], [0], [0], [1], [0, 0, 1, 1], [], []>} : vector<4x64xf32>, vector<64x96xf32>, vector<4x96xf32> -> vector<4x96xf32>
    %c0_307 = arith.constant 0 : index
    %c0_308 = arith.constant 0 : index
    %860 = vector.load %arg14[%c0_307, %c0_308] : memref<4x96xf32, #tpu.memory_space<vmem>>, vector<4x96xf32>
    %861 = arith.addf %859, %860 : vector<4x96xf32>
    %862 = arith.index_cast %c11_i32 : i32 to index
    %c0_309 = arith.constant 0 : index
    %c0_310 = arith.constant 0 : index
    %863 = vector.load %arg46[%862, %c0_309, %c0_310] : memref<16x2x96xf32, #tpu.memory_space<vmem>>, vector<1x2x96xf32>
    %864 = vector.shape_cast %863 : vector<1x2x96xf32> to vector<2x96xf32>
    %865 = arith.index_cast %848 : i32 to index
    %c0_311 = arith.constant 0 : index
    %c0_312 = arith.constant 0 : index
    %866 = vector.load %arg47[%865, %c0_311, %c0_312] : memref<16x2x96xf32, #tpu.memory_space<vmem>>, vector<1x2x96xf32>
    %867 = vector.shape_cast %866 : vector<1x2x96xf32> to vector<2x96xf32>
    %868 = tpu.concatenate %864, %867 in 0 : vector<2x96xf32>, vector<2x96xf32> -> vector<4x96xf32>
    %869 = tpu.concatenate %846, %847 in 0 : vector<2x32xf32>, vector<2x32xf32> -> vector<4x32xf32>
    %870 = vector.extract_strided_slice %868 {offsets = [0, 0], sizes = [4, 32], strides = [1, 1]} : vector<4x96xf32> to vector<4x32xf32>
    %871 = vector.extract_strided_slice %861 {offsets = [0, 0], sizes = [4, 32], strides = [1, 1]} : vector<4x96xf32> to vector<4x32xf32>
    %872 = arith.addf %870, %871 : vector<4x32xf32>
    %873 = arith.negf %872 : vector<4x32xf32>
    %874 = math.exp %873 : vector<4x32xf32>
    %cst_313 = arith.constant 1.000000e+00 : f32
    %875 = vector.broadcast %cst_313 : f32 to vector<4x32xf32>
    %876 = arith.addf %875, %874 : vector<4x32xf32>
    %877 = arith.divf %875, %876 : vector<4x32xf32>
    %878 = vector.extract_strided_slice %868 {offsets = [0, 32], sizes = [4, 32], strides = [1, 1]} : vector<4x96xf32> to vector<4x32xf32>
    %879 = vector.extract_strided_slice %861 {offsets = [0, 32], sizes = [4, 32], strides = [1, 1]} : vector<4x96xf32> to vector<4x32xf32>
    %880 = arith.addf %878, %879 : vector<4x32xf32>
    %881 = arith.negf %880 : vector<4x32xf32>
    %882 = math.exp %881 : vector<4x32xf32>
    %cst_314 = arith.constant 1.000000e+00 : f32
    %883 = vector.broadcast %cst_314 : f32 to vector<4x32xf32>
    %884 = arith.addf %883, %882 : vector<4x32xf32>
    %885 = arith.divf %883, %884 : vector<4x32xf32>
    %886 = vector.extract_strided_slice %868 {offsets = [0, 64], sizes = [4, 32], strides = [1, 1]} : vector<4x96xf32> to vector<4x32xf32>
    %887 = vector.extract_strided_slice %861 {offsets = [0, 64], sizes = [4, 32], strides = [1, 1]} : vector<4x96xf32> to vector<4x32xf32>
    %888 = arith.mulf %877, %887 : vector<4x32xf32>
    %889 = arith.addf %886, %888 : vector<4x32xf32>
    %890 = math.tanh %889 : vector<4x32xf32>
    %cst_315 = arith.constant 1.000000e+00 : f32
    %891 = vector.broadcast %cst_315 : f32 to vector<4x32xf32>
    %892 = arith.subf %891, %885 : vector<4x32xf32>
    %893 = arith.mulf %892, %890 : vector<4x32xf32>
    %894 = arith.mulf %885, %869 : vector<4x32xf32>
    %895 = arith.addf %893, %894 : vector<4x32xf32>
    %896 = tpu.concatenate %851, %854 in 0 : vector<2x1xf32>, vector<2x1xf32> -> vector<4x1xf32>
    %cst_316 = arith.constant 5.000000e-01 : f32
    %897 = vector.broadcast %cst_316 : f32 to vector<4x1xf32>
    %898 = arith.cmpf ogt, %896, %897 : vector<4x1xf32>
    %cst_317 = arith.constant 0.000000e+00 : f32
    %899 = vector.shape_cast %898 : vector<4x1xi1> to vector<4x1xi1>
    %900 = vector.broadcast %899 : vector<4x1xi1> to vector<4x32xi1>
    %901 = vector.broadcast %cst_317 : f32 to vector<4x32xf32>
    %902 = arith.select %900, %895, %901 : vector<4x32xi1>, vector<4x32xf32>
    %903 = vector.extract_strided_slice %902 {offsets = [0, 0], sizes = [2, 32], strides = [1, 1]} : vector<4x32xf32> to vector<2x32xf32>
    %904 = arith.index_cast %c11_i32 : i32 to index
    %c0_318 = arith.constant 0 : index
    %c0_319 = arith.constant 0 : index
    %905 = vector.load %arg48[%904, %c0_318, %c0_319] : memref<16x2x32xf32, #tpu.memory_space<vmem>>, vector<1x2x32xf32>
    %906 = vector.shape_cast %905 : vector<1x2x32xf32> to vector<2x32xf32>
    %907 = vector.shape_cast %903 : vector<2x32xf32> to vector<1x2x32xf32>
    tpu.vector_store %arg48[%904, %c0_318, %c0_319], %907 {strides = array<i32>} : memref<16x2x32xf32, #tpu.memory_space<vmem>>, vector<1x2x32xf32>,
    %908 = vector.extract_strided_slice %902 {offsets = [2, 0], sizes = [2, 32], strides = [1, 1]} : vector<4x32xf32> to vector<2x32xf32>
    %909 = arith.index_cast %848 : i32 to index
    %c0_320 = arith.constant 0 : index
    %c0_321 = arith.constant 0 : index
    %910 = vector.load %arg49[%909, %c0_320, %c0_321] : memref<16x2x32xf32, #tpu.memory_space<vmem>>, vector<1x2x32xf32>
    %911 = vector.shape_cast %910 : vector<1x2x32xf32> to vector<2x32xf32>
    %912 = vector.shape_cast %908 : vector<2x32xf32> to vector<1x2x32xf32>
    tpu.vector_store %arg49[%909, %c0_320, %c0_321], %912 {strides = array<i32>} : memref<16x2x32xf32, #tpu.memory_space<vmem>>, vector<1x2x32xf32>,
    %cst_322 = arith.constant 5.000000e-01 : f32
    %913 = vector.broadcast %cst_322 : f32 to vector<4x1xf32>
    %914 = arith.cmpf ogt, %896, %913 : vector<4x1xf32>
    %915 = vector.shape_cast %914 : vector<4x1xi1> to vector<4x1xi1>
    %916 = vector.broadcast %915 : vector<4x1xi1> to vector<4x32xi1>
    %917 = arith.select %916, %895, %869 : vector<4x32xi1>, vector<4x32xf32>
    %918 = vector.extract_strided_slice %917 {offsets = [0, 0], sizes = [2, 32], strides = [1, 1]} : vector<4x32xf32> to vector<2x32xf32>
    %919 = vector.extract_strided_slice %917 {offsets = [2, 0], sizes = [2, 32], strides = [1, 1]} : vector<4x32xf32> to vector<2x32xf32>
    %c12_i32 = arith.constant 12 : i32
    %c15_i32_323 = arith.constant 15 : i32
    %920 = arith.subi %c15_i32_323, %c12_i32 : i32
    %921 = arith.index_cast %c12_i32 : i32 to index
    %c0_324 = arith.constant 0 : index
    %c0_325 = arith.constant 0 : index
    %922 = vector.load %arg50[%921, %c0_324, %c0_325] : memref<16x2x1xf32, #tpu.memory_space<vmem>>, vector<1x2x1xf32>
    %923 = vector.shape_cast %922 : vector<1x2x1xf32> to vector<2x1xf32>
    %924 = arith.index_cast %920 : i32 to index
    %c0_326 = arith.constant 0 : index
    %c0_327 = arith.constant 0 : index
    %925 = vector.load %arg50[%924, %c0_326, %c0_327] : memref<16x2x1xf32, #tpu.memory_space<vmem>>, vector<1x2x1xf32>
    %926 = vector.shape_cast %925 : vector<1x2x1xf32> to vector<2x1xf32>
    %927 = tpu.concatenate %918, %54 in 1 : vector<2x32xf32>, vector<2x32xf32> -> vector<2x64xf32>
    %928 = tpu.concatenate %54, %919 in 1 : vector<2x32xf32>, vector<2x32xf32> -> vector<2x64xf32>
    %929 = tpu.concatenate %927, %928 in 0 : vector<2x64xf32>, vector<2x64xf32> -> vector<4x64xf32>
    %c0_328 = arith.constant 0 : index
    %c0_329 = arith.constant 0 : index
    %930 = vector.load %arg13[%c0_328, %c0_329] : memref<64x96xf32, #tpu.memory_space<vmem>>, vector<64x96xf32>
    %cst_330 = arith.constant dense<0.000000e+00> : vector<4x96xf32>
    %931 = tpu.matmul %929, %930, %cst_330 {dimension_numbers = #tpu.dot_dimension_numbers<[1], [0], [0], [1], [0, 0, 1, 1], [], []>} : vector<4x64xf32>, vector<64x96xf32>, vector<4x96xf32> -> vector<4x96xf32>
    %c0_331 = arith.constant 0 : index
    %c0_332 = arith.constant 0 : index
    %932 = vector.load %arg14[%c0_331, %c0_332] : memref<4x96xf32, #tpu.memory_space<vmem>>, vector<4x96xf32>
    %933 = arith.addf %931, %932 : vector<4x96xf32>
    %934 = arith.index_cast %c12_i32 : i32 to index
    %c0_333 = arith.constant 0 : index
    %c0_334 = arith.constant 0 : index
    %935 = vector.load %arg46[%934, %c0_333, %c0_334] : memref<16x2x96xf32, #tpu.memory_space<vmem>>, vector<1x2x96xf32>
    %936 = vector.shape_cast %935 : vector<1x2x96xf32> to vector<2x96xf32>
    %937 = arith.index_cast %920 : i32 to index
    %c0_335 = arith.constant 0 : index
    %c0_336 = arith.constant 0 : index
    %938 = vector.load %arg47[%937, %c0_335, %c0_336] : memref<16x2x96xf32, #tpu.memory_space<vmem>>, vector<1x2x96xf32>
    %939 = vector.shape_cast %938 : vector<1x2x96xf32> to vector<2x96xf32>
    %940 = tpu.concatenate %936, %939 in 0 : vector<2x96xf32>, vector<2x96xf32> -> vector<4x96xf32>
    %941 = tpu.concatenate %918, %919 in 0 : vector<2x32xf32>, vector<2x32xf32> -> vector<4x32xf32>
    %942 = vector.extract_strided_slice %940 {offsets = [0, 0], sizes = [4, 32], strides = [1, 1]} : vector<4x96xf32> to vector<4x32xf32>
    %943 = vector.extract_strided_slice %933 {offsets = [0, 0], sizes = [4, 32], strides = [1, 1]} : vector<4x96xf32> to vector<4x32xf32>
    %944 = arith.addf %942, %943 : vector<4x32xf32>
    %945 = arith.negf %944 : vector<4x32xf32>
    %946 = math.exp %945 : vector<4x32xf32>
    %cst_337 = arith.constant 1.000000e+00 : f32
    %947 = vector.broadcast %cst_337 : f32 to vector<4x32xf32>
    %948 = arith.addf %947, %946 : vector<4x32xf32>
    %949 = arith.divf %947, %948 : vector<4x32xf32>
    %950 = vector.extract_strided_slice %940 {offsets = [0, 32], sizes = [4, 32], strides = [1, 1]} : vector<4x96xf32> to vector<4x32xf32>
    %951 = vector.extract_strided_slice %933 {offsets = [0, 32], sizes = [4, 32], strides = [1, 1]} : vector<4x96xf32> to vector<4x32xf32>
    %952 = arith.addf %950, %951 : vector<4x32xf32>
    %953 = arith.negf %952 : vector<4x32xf32>
    %954 = math.exp %953 : vector<4x32xf32>
    %cst_338 = arith.constant 1.000000e+00 : f32
    %955 = vector.broadcast %cst_338 : f32 to vector<4x32xf32>
    %956 = arith.addf %955, %954 : vector<4x32xf32>
    %957 = arith.divf %955, %956 : vector<4x32xf32>
    %958 = vector.extract_strided_slice %940 {offsets = [0, 64], sizes = [4, 32], strides = [1, 1]} : vector<4x96xf32> to vector<4x32xf32>
    %959 = vector.extract_strided_slice %933 {offsets = [0, 64], sizes = [4, 32], strides = [1, 1]} : vector<4x96xf32> to vector<4x32xf32>
    %960 = arith.mulf %949, %959 : vector<4x32xf32>
    %961 = arith.addf %958, %960 : vector<4x32xf32>
    %962 = math.tanh %961 : vector<4x32xf32>
    %cst_339 = arith.constant 1.000000e+00 : f32
    %963 = vector.broadcast %cst_339 : f32 to vector<4x32xf32>
    %964 = arith.subf %963, %957 : vector<4x32xf32>
    %965 = arith.mulf %964, %962 : vector<4x32xf32>
    %966 = arith.mulf %957, %941 : vector<4x32xf32>
    %967 = arith.addf %965, %966 : vector<4x32xf32>
    %968 = tpu.concatenate %923, %926 in 0 : vector<2x1xf32>, vector<2x1xf32> -> vector<4x1xf32>
    %cst_340 = arith.constant 5.000000e-01 : f32
    %969 = vector.broadcast %cst_340 : f32 to vector<4x1xf32>
    %970 = arith.cmpf ogt, %968, %969 : vector<4x1xf32>
    %cst_341 = arith.constant 0.000000e+00 : f32
    %971 = vector.shape_cast %970 : vector<4x1xi1> to vector<4x1xi1>
    %972 = vector.broadcast %971 : vector<4x1xi1> to vector<4x32xi1>
    %973 = vector.broadcast %cst_341 : f32 to vector<4x32xf32>
    %974 = arith.select %972, %967, %973 : vector<4x32xi1>, vector<4x32xf32>
    %975 = vector.extract_strided_slice %974 {offsets = [0, 0], sizes = [2, 32], strides = [1, 1]} : vector<4x32xf32> to vector<2x32xf32>
    %976 = arith.index_cast %c12_i32 : i32 to index
    %c0_342 = arith.constant 0 : index
    %c0_343 = arith.constant 0 : index
    %977 = vector.load %arg48[%976, %c0_342, %c0_343] : memref<16x2x32xf32, #tpu.memory_space<vmem>>, vector<1x2x32xf32>
    %978 = vector.shape_cast %977 : vector<1x2x32xf32> to vector<2x32xf32>
    %979 = vector.shape_cast %975 : vector<2x32xf32> to vector<1x2x32xf32>
    tpu.vector_store %arg48[%976, %c0_342, %c0_343], %979 {strides = array<i32>} : memref<16x2x32xf32, #tpu.memory_space<vmem>>, vector<1x2x32xf32>,
    %980 = vector.extract_strided_slice %974 {offsets = [2, 0], sizes = [2, 32], strides = [1, 1]} : vector<4x32xf32> to vector<2x32xf32>
    %981 = arith.index_cast %920 : i32 to index
    %c0_344 = arith.constant 0 : index
    %c0_345 = arith.constant 0 : index
    %982 = vector.load %arg49[%981, %c0_344, %c0_345] : memref<16x2x32xf32, #tpu.memory_space<vmem>>, vector<1x2x32xf32>
    %983 = vector.shape_cast %982 : vector<1x2x32xf32> to vector<2x32xf32>
    %984 = vector.shape_cast %980 : vector<2x32xf32> to vector<1x2x32xf32>
    tpu.vector_store %arg49[%981, %c0_344, %c0_345], %984 {strides = array<i32>} : memref<16x2x32xf32, #tpu.memory_space<vmem>>, vector<1x2x32xf32>,
    %cst_346 = arith.constant 5.000000e-01 : f32
    %985 = vector.broadcast %cst_346 : f32 to vector<4x1xf32>
    %986 = arith.cmpf ogt, %968, %985 : vector<4x1xf32>
    %987 = vector.shape_cast %986 : vector<4x1xi1> to vector<4x1xi1>
    %988 = vector.broadcast %987 : vector<4x1xi1> to vector<4x32xi1>
    %989 = arith.select %988, %967, %941 : vector<4x32xi1>, vector<4x32xf32>
    %990 = vector.extract_strided_slice %989 {offsets = [0, 0], sizes = [2, 32], strides = [1, 1]} : vector<4x32xf32> to vector<2x32xf32>
    %991 = vector.extract_strided_slice %989 {offsets = [2, 0], sizes = [2, 32], strides = [1, 1]} : vector<4x32xf32> to vector<2x32xf32>
    %c13_i32 = arith.constant 13 : i32
    %c15_i32_347 = arith.constant 15 : i32
    %992 = arith.subi %c15_i32_347, %c13_i32 : i32
    %993 = arith.index_cast %c13_i32 : i32 to index
    %c0_348 = arith.constant 0 : index
    %c0_349 = arith.constant 0 : index
    %994 = vector.load %arg50[%993, %c0_348, %c0_349] : memref<16x2x1xf32, #tpu.memory_space<vmem>>, vector<1x2x1xf32>
    %995 = vector.shape_cast %994 : vector<1x2x1xf32> to vector<2x1xf32>
    %996 = arith.index_cast %992 : i32 to index
    %c0_350 = arith.constant 0 : index
    %c0_351 = arith.constant 0 : index
    %997 = vector.load %arg50[%996, %c0_350, %c0_351] : memref<16x2x1xf32, #tpu.memory_space<vmem>>, vector<1x2x1xf32>
    %998 = vector.shape_cast %997 : vector<1x2x1xf32> to vector<2x1xf32>
    %999 = tpu.concatenate %990, %54 in 1 : vector<2x32xf32>, vector<2x32xf32> -> vector<2x64xf32>
    %1000 = tpu.concatenate %54, %991 in 1 : vector<2x32xf32>, vector<2x32xf32> -> vector<2x64xf32>
    %1001 = tpu.concatenate %999, %1000 in 0 : vector<2x64xf32>, vector<2x64xf32> -> vector<4x64xf32>
    %c0_352 = arith.constant 0 : index
    %c0_353 = arith.constant 0 : index
    %1002 = vector.load %arg13[%c0_352, %c0_353] : memref<64x96xf32, #tpu.memory_space<vmem>>, vector<64x96xf32>
    %cst_354 = arith.constant dense<0.000000e+00> : vector<4x96xf32>
    %1003 = tpu.matmul %1001, %1002, %cst_354 {dimension_numbers = #tpu.dot_dimension_numbers<[1], [0], [0], [1], [0, 0, 1, 1], [], []>} : vector<4x64xf32>, vector<64x96xf32>, vector<4x96xf32> -> vector<4x96xf32>
    %c0_355 = arith.constant 0 : index
    %c0_356 = arith.constant 0 : index
    %1004 = vector.load %arg14[%c0_355, %c0_356] : memref<4x96xf32, #tpu.memory_space<vmem>>, vector<4x96xf32>
    %1005 = arith.addf %1003, %1004 : vector<4x96xf32>
    %1006 = arith.index_cast %c13_i32 : i32 to index
    %c0_357 = arith.constant 0 : index
    %c0_358 = arith.constant 0 : index
    %1007 = vector.load %arg46[%1006, %c0_357, %c0_358] : memref<16x2x96xf32, #tpu.memory_space<vmem>>, vector<1x2x96xf32>
    %1008 = vector.shape_cast %1007 : vector<1x2x96xf32> to vector<2x96xf32>
    %1009 = arith.index_cast %992 : i32 to index
    %c0_359 = arith.constant 0 : index
    %c0_360 = arith.constant 0 : index
    %1010 = vector.load %arg47[%1009, %c0_359, %c0_360] : memref<16x2x96xf32, #tpu.memory_space<vmem>>, vector<1x2x96xf32>
    %1011 = vector.shape_cast %1010 : vector<1x2x96xf32> to vector<2x96xf32>
    %1012 = tpu.concatenate %1008, %1011 in 0 : vector<2x96xf32>, vector<2x96xf32> -> vector<4x96xf32>
    %1013 = tpu.concatenate %990, %991 in 0 : vector<2x32xf32>, vector<2x32xf32> -> vector<4x32xf32>
    %1014 = vector.extract_strided_slice %1012 {offsets = [0, 0], sizes = [4, 32], strides = [1, 1]} : vector<4x96xf32> to vector<4x32xf32>
    %1015 = vector.extract_strided_slice %1005 {offsets = [0, 0], sizes = [4, 32], strides = [1, 1]} : vector<4x96xf32> to vector<4x32xf32>
    %1016 = arith.addf %1014, %1015 : vector<4x32xf32>
    %1017 = arith.negf %1016 : vector<4x32xf32>
    %1018 = math.exp %1017 : vector<4x32xf32>
    %cst_361 = arith.constant 1.000000e+00 : f32
    %1019 = vector.broadcast %cst_361 : f32 to vector<4x32xf32>
    %1020 = arith.addf %1019, %1018 : vector<4x32xf32>
    %1021 = arith.divf %1019, %1020 : vector<4x32xf32>
    %1022 = vector.extract_strided_slice %1012 {offsets = [0, 32], sizes = [4, 32], strides = [1, 1]} : vector<4x96xf32> to vector<4x32xf32>
    %1023 = vector.extract_strided_slice %1005 {offsets = [0, 32], sizes = [4, 32], strides = [1, 1]} : vector<4x96xf32> to vector<4x32xf32>
    %1024 = arith.addf %1022, %1023 : vector<4x32xf32>
    %1025 = arith.negf %1024 : vector<4x32xf32>
    %1026 = math.exp %1025 : vector<4x32xf32>
    %cst_362 = arith.constant 1.000000e+00 : f32
    %1027 = vector.broadcast %cst_362 : f32 to vector<4x32xf32>
    %1028 = arith.addf %1027, %1026 : vector<4x32xf32>
    %1029 = arith.divf %1027, %1028 : vector<4x32xf32>
    %1030 = vector.extract_strided_slice %1012 {offsets = [0, 64], sizes = [4, 32], strides = [1, 1]} : vector<4x96xf32> to vector<4x32xf32>
    %1031 = vector.extract_strided_slice %1005 {offsets = [0, 64], sizes = [4, 32], strides = [1, 1]} : vector<4x96xf32> to vector<4x32xf32>
    %1032 = arith.mulf %1021, %1031 : vector<4x32xf32>
    %1033 = arith.addf %1030, %1032 : vector<4x32xf32>
    %1034 = math.tanh %1033 : vector<4x32xf32>
    %cst_363 = arith.constant 1.000000e+00 : f32
    %1035 = vector.broadcast %cst_363 : f32 to vector<4x32xf32>
    %1036 = arith.subf %1035, %1029 : vector<4x32xf32>
    %1037 = arith.mulf %1036, %1034 : vector<4x32xf32>
    %1038 = arith.mulf %1029, %1013 : vector<4x32xf32>
    %1039 = arith.addf %1037, %1038 : vector<4x32xf32>
    %1040 = tpu.concatenate %995, %998 in 0 : vector<2x1xf32>, vector<2x1xf32> -> vector<4x1xf32>
    %cst_364 = arith.constant 5.000000e-01 : f32
    %1041 = vector.broadcast %cst_364 : f32 to vector<4x1xf32>
    %1042 = arith.cmpf ogt, %1040, %1041 : vector<4x1xf32>
    %cst_365 = arith.constant 0.000000e+00 : f32
    %1043 = vector.shape_cast %1042 : vector<4x1xi1> to vector<4x1xi1>
    %1044 = vector.broadcast %1043 : vector<4x1xi1> to vector<4x32xi1>
    %1045 = vector.broadcast %cst_365 : f32 to vector<4x32xf32>
    %1046 = arith.select %1044, %1039, %1045 : vector<4x32xi1>, vector<4x32xf32>
    %1047 = vector.extract_strided_slice %1046 {offsets = [0, 0], sizes = [2, 32], strides = [1, 1]} : vector<4x32xf32> to vector<2x32xf32>
    %1048 = arith.index_cast %c13_i32 : i32 to index
    %c0_366 = arith.constant 0 : index
    %c0_367 = arith.constant 0 : index
    %1049 = vector.load %arg48[%1048, %c0_366, %c0_367] : memref<16x2x32xf32, #tpu.memory_space<vmem>>, vector<1x2x32xf32>
    %1050 = vector.shape_cast %1049 : vector<1x2x32xf32> to vector<2x32xf32>
    %1051 = vector.shape_cast %1047 : vector<2x32xf32> to vector<1x2x32xf32>
    tpu.vector_store %arg48[%1048, %c0_366, %c0_367], %1051 {strides = array<i32>} : memref<16x2x32xf32, #tpu.memory_space<vmem>>, vector<1x2x32xf32>,
    %1052 = vector.extract_strided_slice %1046 {offsets = [2, 0], sizes = [2, 32], strides = [1, 1]} : vector<4x32xf32> to vector<2x32xf32>
    %1053 = arith.index_cast %992 : i32 to index
    %c0_368 = arith.constant 0 : index
    %c0_369 = arith.constant 0 : index
    %1054 = vector.load %arg49[%1053, %c0_368, %c0_369] : memref<16x2x32xf32, #tpu.memory_space<vmem>>, vector<1x2x32xf32>
    %1055 = vector.shape_cast %1054 : vector<1x2x32xf32> to vector<2x32xf32>
    %1056 = vector.shape_cast %1052 : vector<2x32xf32> to vector<1x2x32xf32>
    tpu.vector_store %arg49[%1053, %c0_368, %c0_369], %1056 {strides = array<i32>} : memref<16x2x32xf32, #tpu.memory_space<vmem>>, vector<1x2x32xf32>,
    %cst_370 = arith.constant 5.000000e-01 : f32
    %1057 = vector.broadcast %cst_370 : f32 to vector<4x1xf32>
    %1058 = arith.cmpf ogt, %1040, %1057 : vector<4x1xf32>
    %1059 = vector.shape_cast %1058 : vector<4x1xi1> to vector<4x1xi1>
    %1060 = vector.broadcast %1059 : vector<4x1xi1> to vector<4x32xi1>
    %1061 = arith.select %1060, %1039, %1013 : vector<4x32xi1>, vector<4x32xf32>
    %1062 = vector.extract_strided_slice %1061 {offsets = [0, 0], sizes = [2, 32], strides = [1, 1]} : vector<4x32xf32> to vector<2x32xf32>
    %1063 = vector.extract_strided_slice %1061 {offsets = [2, 0], sizes = [2, 32], strides = [1, 1]} : vector<4x32xf32> to vector<2x32xf32>
    %c14_i32 = arith.constant 14 : i32
    %c15_i32_371 = arith.constant 15 : i32
    %1064 = arith.subi %c15_i32_371, %c14_i32 : i32
    %1065 = arith.index_cast %c14_i32 : i32 to index
    %c0_372 = arith.constant 0 : index
    %c0_373 = arith.constant 0 : index
    %1066 = vector.load %arg50[%1065, %c0_372, %c0_373] : memref<16x2x1xf32, #tpu.memory_space<vmem>>, vector<1x2x1xf32>
    %1067 = vector.shape_cast %1066 : vector<1x2x1xf32> to vector<2x1xf32>
    %1068 = arith.index_cast %1064 : i32 to index
    %c0_374 = arith.constant 0 : index
    %c0_375 = arith.constant 0 : index
    %1069 = vector.load %arg50[%1068, %c0_374, %c0_375] : memref<16x2x1xf32, #tpu.memory_space<vmem>>, vector<1x2x1xf32>
    %1070 = vector.shape_cast %1069 : vector<1x2x1xf32> to vector<2x1xf32>
    %1071 = tpu.concatenate %1062, %54 in 1 : vector<2x32xf32>, vector<2x32xf32> -> vector<2x64xf32>
    %1072 = tpu.concatenate %54, %1063 in 1 : vector<2x32xf32>, vector<2x32xf32> -> vector<2x64xf32>
    %1073 = tpu.concatenate %1071, %1072 in 0 : vector<2x64xf32>, vector<2x64xf32> -> vector<4x64xf32>
    %c0_376 = arith.constant 0 : index
    %c0_377 = arith.constant 0 : index
    %1074 = vector.load %arg13[%c0_376, %c0_377] : memref<64x96xf32, #tpu.memory_space<vmem>>, vector<64x96xf32>
    %cst_378 = arith.constant dense<0.000000e+00> : vector<4x96xf32>
    %1075 = tpu.matmul %1073, %1074, %cst_378 {dimension_numbers = #tpu.dot_dimension_numbers<[1], [0], [0], [1], [0, 0, 1, 1], [], []>} : vector<4x64xf32>, vector<64x96xf32>, vector<4x96xf32> -> vector<4x96xf32>
    %c0_379 = arith.constant 0 : index
    %c0_380 = arith.constant 0 : index
    %1076 = vector.load %arg14[%c0_379, %c0_380] : memref<4x96xf32, #tpu.memory_space<vmem>>, vector<4x96xf32>
    %1077 = arith.addf %1075, %1076 : vector<4x96xf32>
    %1078 = arith.index_cast %c14_i32 : i32 to index
    %c0_381 = arith.constant 0 : index
    %c0_382 = arith.constant 0 : index
    %1079 = vector.load %arg46[%1078, %c0_381, %c0_382] : memref<16x2x96xf32, #tpu.memory_space<vmem>>, vector<1x2x96xf32>
    %1080 = vector.shape_cast %1079 : vector<1x2x96xf32> to vector<2x96xf32>
    %1081 = arith.index_cast %1064 : i32 to index
    %c0_383 = arith.constant 0 : index
    %c0_384 = arith.constant 0 : index
    %1082 = vector.load %arg47[%1081, %c0_383, %c0_384] : memref<16x2x96xf32, #tpu.memory_space<vmem>>, vector<1x2x96xf32>
    %1083 = vector.shape_cast %1082 : vector<1x2x96xf32> to vector<2x96xf32>
    %1084 = tpu.concatenate %1080, %1083 in 0 : vector<2x96xf32>, vector<2x96xf32> -> vector<4x96xf32>
    %1085 = tpu.concatenate %1062, %1063 in 0 : vector<2x32xf32>, vector<2x32xf32> -> vector<4x32xf32>
    %1086 = vector.extract_strided_slice %1084 {offsets = [0, 0], sizes = [4, 32], strides = [1, 1]} : vector<4x96xf32> to vector<4x32xf32>
    %1087 = vector.extract_strided_slice %1077 {offsets = [0, 0], sizes = [4, 32], strides = [1, 1]} : vector<4x96xf32> to vector<4x32xf32>
    %1088 = arith.addf %1086, %1087 : vector<4x32xf32>
    %1089 = arith.negf %1088 : vector<4x32xf32>
    %1090 = math.exp %1089 : vector<4x32xf32>
    %cst_385 = arith.constant 1.000000e+00 : f32
    %1091 = vector.broadcast %cst_385 : f32 to vector<4x32xf32>
    %1092 = arith.addf %1091, %1090 : vector<4x32xf32>
    %1093 = arith.divf %1091, %1092 : vector<4x32xf32>
    %1094 = vector.extract_strided_slice %1084 {offsets = [0, 32], sizes = [4, 32], strides = [1, 1]} : vector<4x96xf32> to vector<4x32xf32>
    %1095 = vector.extract_strided_slice %1077 {offsets = [0, 32], sizes = [4, 32], strides = [1, 1]} : vector<4x96xf32> to vector<4x32xf32>
    %1096 = arith.addf %1094, %1095 : vector<4x32xf32>
    %1097 = arith.negf %1096 : vector<4x32xf32>
    %1098 = math.exp %1097 : vector<4x32xf32>
    %cst_386 = arith.constant 1.000000e+00 : f32
    %1099 = vector.broadcast %cst_386 : f32 to vector<4x32xf32>
    %1100 = arith.addf %1099, %1098 : vector<4x32xf32>
    %1101 = arith.divf %1099, %1100 : vector<4x32xf32>
    %1102 = vector.extract_strided_slice %1084 {offsets = [0, 64], sizes = [4, 32], strides = [1, 1]} : vector<4x96xf32> to vector<4x32xf32>
    %1103 = vector.extract_strided_slice %1077 {offsets = [0, 64], sizes = [4, 32], strides = [1, 1]} : vector<4x96xf32> to vector<4x32xf32>
    %1104 = arith.mulf %1093, %1103 : vector<4x32xf32>
    %1105 = arith.addf %1102, %1104 : vector<4x32xf32>
    %1106 = math.tanh %1105 : vector<4x32xf32>
    %cst_387 = arith.constant 1.000000e+00 : f32
    %1107 = vector.broadcast %cst_387 : f32 to vector<4x32xf32>
    %1108 = arith.subf %1107, %1101 : vector<4x32xf32>
    %1109 = arith.mulf %1108, %1106 : vector<4x32xf32>
    %1110 = arith.mulf %1101, %1085 : vector<4x32xf32>
    %1111 = arith.addf %1109, %1110 : vector<4x32xf32>
    %1112 = tpu.concatenate %1067, %1070 in 0 : vector<2x1xf32>, vector<2x1xf32> -> vector<4x1xf32>
    %cst_388 = arith.constant 5.000000e-01 : f32
    %1113 = vector.broadcast %cst_388 : f32 to vector<4x1xf32>
    %1114 = arith.cmpf ogt, %1112, %1113 : vector<4x1xf32>
    %cst_389 = arith.constant 0.000000e+00 : f32
    %1115 = vector.shape_cast %1114 : vector<4x1xi1> to vector<4x1xi1>
    %1116 = vector.broadcast %1115 : vector<4x1xi1> to vector<4x32xi1>
    %1117 = vector.broadcast %cst_389 : f32 to vector<4x32xf32>
    %1118 = arith.select %1116, %1111, %1117 : vector<4x32xi1>, vector<4x32xf32>
    %1119 = vector.extract_strided_slice %1118 {offsets = [0, 0], sizes = [2, 32], strides = [1, 1]} : vector<4x32xf32> to vector<2x32xf32>
    %1120 = arith.index_cast %c14_i32 : i32 to index
    %c0_390 = arith.constant 0 : index
    %c0_391 = arith.constant 0 : index
    %1121 = vector.load %arg48[%1120, %c0_390, %c0_391] : memref<16x2x32xf32, #tpu.memory_space<vmem>>, vector<1x2x32xf32>
    %1122 = vector.shape_cast %1121 : vector<1x2x32xf32> to vector<2x32xf32>
    %1123 = vector.shape_cast %1119 : vector<2x32xf32> to vector<1x2x32xf32>
    tpu.vector_store %arg48[%1120, %c0_390, %c0_391], %1123 {strides = array<i32>} : memref<16x2x32xf32, #tpu.memory_space<vmem>>, vector<1x2x32xf32>,
    %1124 = vector.extract_strided_slice %1118 {offsets = [2, 0], sizes = [2, 32], strides = [1, 1]} : vector<4x32xf32> to vector<2x32xf32>
    %1125 = arith.index_cast %1064 : i32 to index
    %c0_392 = arith.constant 0 : index
    %c0_393 = arith.constant 0 : index
    %1126 = vector.load %arg49[%1125, %c0_392, %c0_393] : memref<16x2x32xf32, #tpu.memory_space<vmem>>, vector<1x2x32xf32>
    %1127 = vector.shape_cast %1126 : vector<1x2x32xf32> to vector<2x32xf32>
    %1128 = vector.shape_cast %1124 : vector<2x32xf32> to vector<1x2x32xf32>
    tpu.vector_store %arg49[%1125, %c0_392, %c0_393], %1128 {strides = array<i32>} : memref<16x2x32xf32, #tpu.memory_space<vmem>>, vector<1x2x32xf32>,
    %cst_394 = arith.constant 5.000000e-01 : f32
    %1129 = vector.broadcast %cst_394 : f32 to vector<4x1xf32>
    %1130 = arith.cmpf ogt, %1112, %1129 : vector<4x1xf32>
    %1131 = vector.shape_cast %1130 : vector<4x1xi1> to vector<4x1xi1>
    %1132 = vector.broadcast %1131 : vector<4x1xi1> to vector<4x32xi1>
    %1133 = arith.select %1132, %1111, %1085 : vector<4x32xi1>, vector<4x32xf32>
    %1134 = vector.extract_strided_slice %1133 {offsets = [0, 0], sizes = [2, 32], strides = [1, 1]} : vector<4x32xf32> to vector<2x32xf32>
    %1135 = vector.extract_strided_slice %1133 {offsets = [2, 0], sizes = [2, 32], strides = [1, 1]} : vector<4x32xf32> to vector<2x32xf32>
    %c15_i32_395 = arith.constant 15 : i32
    %c15_i32_396 = arith.constant 15 : i32
    %1136 = arith.subi %c15_i32_396, %c15_i32_395 : i32
    %1137 = arith.index_cast %c15_i32_395 : i32 to index
    %c0_397 = arith.constant 0 : index
    %c0_398 = arith.constant 0 : index
    %1138 = vector.load %arg50[%1137, %c0_397, %c0_398] : memref<16x2x1xf32, #tpu.memory_space<vmem>>, vector<1x2x1xf32>
    %1139 = vector.shape_cast %1138 : vector<1x2x1xf32> to vector<2x1xf32>
    %1140 = arith.index_cast %1136 : i32 to index
    %c0_399 = arith.constant 0 : index
    %c0_400 = arith.constant 0 : index
    %1141 = vector.load %arg50[%1140, %c0_399, %c0_400] : memref<16x2x1xf32, #tpu.memory_space<vmem>>, vector<1x2x1xf32>
    %1142 = vector.shape_cast %1141 : vector<1x2x1xf32> to vector<2x1xf32>
    %1143 = tpu.concatenate %1134, %54 in 1 : vector<2x32xf32>, vector<2x32xf32> -> vector<2x64xf32>
    %1144 = tpu.concatenate %54, %1135 in 1 : vector<2x32xf32>, vector<2x32xf32> -> vector<2x64xf32>
    %1145 = tpu.concatenate %1143, %1144 in 0 : vector<2x64xf32>, vector<2x64xf32> -> vector<4x64xf32>
    %c0_401 = arith.constant 0 : index
    %c0_402 = arith.constant 0 : index
    %1146 = vector.load %arg13[%c0_401, %c0_402] : memref<64x96xf32, #tpu.memory_space<vmem>>, vector<64x96xf32>
    %cst_403 = arith.constant dense<0.000000e+00> : vector<4x96xf32>
    %1147 = tpu.matmul %1145, %1146, %cst_403 {dimension_numbers = #tpu.dot_dimension_numbers<[1], [0], [0], [1], [0, 0, 1, 1], [], []>} : vector<4x64xf32>, vector<64x96xf32>, vector<4x96xf32> -> vector<4x96xf32>
    %c0_404 = arith.constant 0 : index
    %c0_405 = arith.constant 0 : index
    %1148 = vector.load %arg14[%c0_404, %c0_405] : memref<4x96xf32, #tpu.memory_space<vmem>>, vector<4x96xf32>
    %1149 = arith.addf %1147, %1148 : vector<4x96xf32>
    %1150 = arith.index_cast %c15_i32_395 : i32 to index
    %c0_406 = arith.constant 0 : index
    %c0_407 = arith.constant 0 : index
    %1151 = vector.load %arg46[%1150, %c0_406, %c0_407] : memref<16x2x96xf32, #tpu.memory_space<vmem>>, vector<1x2x96xf32>
    %1152 = vector.shape_cast %1151 : vector<1x2x96xf32> to vector<2x96xf32>
    %1153 = arith.index_cast %1136 : i32 to index
    %c0_408 = arith.constant 0 : index
    %c0_409 = arith.constant 0 : index
    %1154 = vector.load %arg47[%1153, %c0_408, %c0_409] : memref<16x2x96xf32, #tpu.memory_space<vmem>>, vector<1x2x96xf32>
    %1155 = vector.shape_cast %1154 : vector<1x2x96xf32> to vector<2x96xf32>
    %1156 = tpu.concatenate %1152, %1155 in 0 : vector<2x96xf32>, vector<2x96xf32> -> vector<4x96xf32>
    %1157 = tpu.concatenate %1134, %1135 in 0 : vector<2x32xf32>, vector<2x32xf32> -> vector<4x32xf32>
    %1158 = vector.extract_strided_slice %1156 {offsets = [0, 0], sizes = [4, 32], strides = [1, 1]} : vector<4x96xf32> to vector<4x32xf32>
    %1159 = vector.extract_strided_slice %1149 {offsets = [0, 0], sizes = [4, 32], strides = [1, 1]} : vector<4x96xf32> to vector<4x32xf32>
    %1160 = arith.addf %1158, %1159 : vector<4x32xf32>
    %1161 = arith.negf %1160 : vector<4x32xf32>
    %1162 = math.exp %1161 : vector<4x32xf32>
    %cst_410 = arith.constant 1.000000e+00 : f32
    %1163 = vector.broadcast %cst_410 : f32 to vector<4x32xf32>
    %1164 = arith.addf %1163, %1162 : vector<4x32xf32>
    %1165 = arith.divf %1163, %1164 : vector<4x32xf32>
    %1166 = vector.extract_strided_slice %1156 {offsets = [0, 32], sizes = [4, 32], strides = [1, 1]} : vector<4x96xf32> to vector<4x32xf32>
    %1167 = vector.extract_strided_slice %1149 {offsets = [0, 32], sizes = [4, 32], strides = [1, 1]} : vector<4x96xf32> to vector<4x32xf32>
    %1168 = arith.addf %1166, %1167 : vector<4x32xf32>
    %1169 = arith.negf %1168 : vector<4x32xf32>
    %1170 = math.exp %1169 : vector<4x32xf32>
    %cst_411 = arith.constant 1.000000e+00 : f32
    %1171 = vector.broadcast %cst_411 : f32 to vector<4x32xf32>
    %1172 = arith.addf %1171, %1170 : vector<4x32xf32>
    %1173 = arith.divf %1171, %1172 : vector<4x32xf32>
    %1174 = vector.extract_strided_slice %1156 {offsets = [0, 64], sizes = [4, 32], strides = [1, 1]} : vector<4x96xf32> to vector<4x32xf32>
    %1175 = vector.extract_strided_slice %1149 {offsets = [0, 64], sizes = [4, 32], strides = [1, 1]} : vector<4x96xf32> to vector<4x32xf32>
    %1176 = arith.mulf %1165, %1175 : vector<4x32xf32>
    %1177 = arith.addf %1174, %1176 : vector<4x32xf32>
    %1178 = math.tanh %1177 : vector<4x32xf32>
    %cst_412 = arith.constant 1.000000e+00 : f32
    %1179 = vector.broadcast %cst_412 : f32 to vector<4x32xf32>
    %1180 = arith.subf %1179, %1173 : vector<4x32xf32>
    %1181 = arith.mulf %1180, %1178 : vector<4x32xf32>
    %1182 = arith.mulf %1173, %1157 : vector<4x32xf32>
    %1183 = arith.addf %1181, %1182 : vector<4x32xf32>
    %1184 = tpu.concatenate %1139, %1142 in 0 : vector<2x1xf32>, vector<2x1xf32> -> vector<4x1xf32>
    %cst_413 = arith.constant 5.000000e-01 : f32
    %1185 = vector.broadcast %cst_413 : f32 to vector<4x1xf32>
    %1186 = arith.cmpf ogt, %1184, %1185 : vector<4x1xf32>
    %cst_414 = arith.constant 0.000000e+00 : f32
    %1187 = vector.shape_cast %1186 : vector<4x1xi1> to vector<4x1xi1>
    %1188 = vector.broadcast %1187 : vector<4x1xi1> to vector<4x32xi1>
    %1189 = vector.broadcast %cst_414 : f32 to vector<4x32xf32>
    %1190 = arith.select %1188, %1183, %1189 : vector<4x32xi1>, vector<4x32xf32>
    %1191 = vector.extract_strided_slice %1190 {offsets = [0, 0], sizes = [2, 32], strides = [1, 1]} : vector<4x32xf32> to vector<2x32xf32>
    %1192 = arith.index_cast %c15_i32_395 : i32 to index
    %c0_415 = arith.constant 0 : index
    %c0_416 = arith.constant 0 : index
    %1193 = vector.load %arg48[%1192, %c0_415, %c0_416] : memref<16x2x32xf32, #tpu.memory_space<vmem>>, vector<1x2x32xf32>
    %1194 = vector.shape_cast %1193 : vector<1x2x32xf32> to vector<2x32xf32>
    %1195 = vector.shape_cast %1191 : vector<2x32xf32> to vector<1x2x32xf32>
    tpu.vector_store %arg48[%1192, %c0_415, %c0_416], %1195 {strides = array<i32>} : memref<16x2x32xf32, #tpu.memory_space<vmem>>, vector<1x2x32xf32>,
    %1196 = vector.extract_strided_slice %1190 {offsets = [2, 0], sizes = [2, 32], strides = [1, 1]} : vector<4x32xf32> to vector<2x32xf32>
    %1197 = arith.index_cast %1136 : i32 to index
    %c0_417 = arith.constant 0 : index
    %c0_418 = arith.constant 0 : index
    %1198 = vector.load %arg49[%1197, %c0_417, %c0_418] : memref<16x2x32xf32, #tpu.memory_space<vmem>>, vector<1x2x32xf32>
    %1199 = vector.shape_cast %1198 : vector<1x2x32xf32> to vector<2x32xf32>
    %1200 = vector.shape_cast %1196 : vector<2x32xf32> to vector<1x2x32xf32>
    tpu.vector_store %arg49[%1197, %c0_417, %c0_418], %1200 {strides = array<i32>} : memref<16x2x32xf32, #tpu.memory_space<vmem>>, vector<1x2x32xf32>,
    %cst_419 = arith.constant 5.000000e-01 : f32
    %1201 = vector.broadcast %cst_419 : f32 to vector<4x1xf32>
    %1202 = arith.cmpf ogt, %1184, %1201 : vector<4x1xf32>
    %1203 = vector.shape_cast %1202 : vector<4x1xi1> to vector<4x1xi1>
    %1204 = vector.broadcast %1203 : vector<4x1xi1> to vector<4x32xi1>
    %1205 = arith.select %1204, %1183, %1157 : vector<4x32xi1>, vector<4x32xf32>
    %1206 = vector.extract_strided_slice %1205 {offsets = [0, 0], sizes = [2, 32], strides = [1, 1]} : vector<4x32xf32> to vector<2x32xf32>
    %1207 = vector.extract_strided_slice %1205 {offsets = [2, 0], sizes = [2, 32], strides = [1, 1]} : vector<4x32xf32> to vector<2x32xf32>
    %c16_i32 = arith.constant 16 : i32
    %c0_420 = arith.constant 0 : index
    %c0_421 = arith.constant 0 : index
    %c0_422 = arith.constant 0 : index
    %1208 = vector.load %arg48[%c0_420, %c0_421, %c0_422] : memref<16x2x32xf32, #tpu.memory_space<vmem>>, vector<16x2x32xf32>
    %1209 = vector.shape_cast %1208 : vector<16x2x32xf32> to vector<32x32xf32>
    %c0_423 = arith.constant 0 : index
    %c0_424 = arith.constant 0 : index
    %c0_425 = arith.constant 0 : index
    %1210 = vector.load %arg49[%c0_423, %c0_424, %c0_425] : memref<16x2x32xf32, #tpu.memory_space<vmem>>, vector<16x2x32xf32>
    %1211 = vector.shape_cast %1210 : vector<16x2x32xf32> to vector<32x32xf32>
    %1212 = tpu.concatenate %1209, %1211 in 1 : vector<32x32xf32>, vector<32x32xf32> -> vector<32x64xf32>
    %1213 = arith.truncf %1212 : vector<32x64xf32> to vector<32x64xbf16>
    %c0_426 = arith.constant 0 : index
    %c0_427 = arith.constant 0 : index
    %1214 = vector.load %arg15[%c0_426, %c0_427] : memref<64x128xbf16, #tpu.memory_space<vmem>>, vector<64x128xbf16>
    %cst_428 = arith.constant dense<0.000000e+00> : vector<32x128xf32>
    %1215 = tpu.matmul %1213, %1214, %cst_428 {dimension_numbers = #tpu.dot_dimension_numbers<[1], [0], [0], [1], [0, 0, 1, 1], [], []>} : vector<32x64xbf16>, vector<64x128xbf16>, vector<32x128xf32> -> vector<32x128xf32>
    %c0_429 = arith.constant 0 : index
    %c0_430 = arith.constant 0 : index
    %1216 = vector.load %arg16[%c0_429, %c0_430] : memref<1x128xf32, #tpu.memory_space<vmem>>, vector<1x128xf32>
    %1217 = vector.broadcast %1216 : vector<1x128xf32> to vector<32x128xf32>
    %1218 = arith.addf %1215, %1217 : vector<32x128xf32>
    %1219 = arith.addf %41, %1218 : vector<32x128xf32>
    %1220 = vector.shape_cast %1219 : vector<32x128xf32> to vector<16x2x128xf32>
    %1221 = vector.extract_strided_slice %1220 {offsets = [0, 0, 0], sizes = [16, 1, 128], strides = [1, 1, 1]} : vector<16x2x128xf32> to vector<16x1x128xf32>
    %1222 = vector.shape_cast %1221 : vector<16x1x128xf32> to vector<16x128xf32>
    %1223 = vector.extract_strided_slice %1220 {offsets = [0, 1, 0], sizes = [16, 1, 128], strides = [1, 1, 1]} : vector<16x2x128xf32> to vector<16x1x128xf32>
    %1224 = vector.shape_cast %1223 : vector<16x1x128xf32> to vector<16x128xf32>
    %1225 = tpu.concatenate %1222, %1224 in 0 : vector<16x128xf32>, vector<16x128xf32> -> vector<32x128xf32>
    %1226 = tpu.concatenate %5, %10 in 0 : vector<16x1xf32>, vector<16x1xf32> -> vector<32x1xf32>
    %1227 = vector.shape_cast %1225 : vector<32x128xf32> to vector<2x16x128xf32>
    %cst_431 = arith.constant 0.000000e+00 : f32
    %1228 = vector.broadcast %cst_431 : f32 to vector<2x2x128xf32>
    %1229 = tpu.concatenate %1228, %1227, %1228 in 1 : vector<2x2x128xf32>, vector<2x16x128xf32>, vector<2x2x128xf32> -> vector<2x20x128xf32>
    %1230 = vector.extract_strided_slice %1229 {offsets = [0, 0, 0], sizes = [2, 16, 128], strides = [1, 1, 1]} : vector<2x20x128xf32> to vector<2x16x128xf32>
    %1231 = vector.extract_strided_slice %1229 {offsets = [0, 1, 0], sizes = [2, 16, 128], strides = [1, 1, 1]} : vector<2x20x128xf32> to vector<2x16x128xf32>
    %1232 = vector.extract_strided_slice %1229 {offsets = [0, 2, 0], sizes = [2, 16, 128], strides = [1, 1, 1]} : vector<2x20x128xf32> to vector<2x16x128xf32>
    %1233 = vector.extract_strided_slice %1229 {offsets = [0, 3, 0], sizes = [2, 16, 128], strides = [1, 1, 1]} : vector<2x20x128xf32> to vector<2x16x128xf32>
    %1234 = vector.extract_strided_slice %1229 {offsets = [0, 4, 0], sizes = [2, 16, 128], strides = [1, 1, 1]} : vector<2x20x128xf32> to vector<2x16x128xf32>
    %1235 = tpu.concatenate %1230, %1231, %1232, %1233, %1234 in 2 : vector<2x16x128xf32>, vector<2x16x128xf32>, vector<2x16x128xf32>, vector<2x16x128xf32>, vector<2x16x128xf32> -> vector<2x16x640xf32>
    %1236 = vector.shape_cast %1235 : vector<2x16x640xf32> to vector<32x640xf32>
    %1237 = arith.truncf %1236 : vector<32x640xf32> to vector<32x640xbf16>
    %c0_432 = arith.constant 0 : index
    %c0_433 = arith.constant 0 : index
    %1238 = vector.load %arg17[%c0_432, %c0_433] : memref<640x128xbf16, #tpu.memory_space<vmem>>, vector<640x128xbf16>
    %cst_434 = arith.constant dense<0.000000e+00> : vector<32x128xf32>
    %1239 = tpu.matmul %1237, %1238, %cst_434 {dimension_numbers = #tpu.dot_dimension_numbers<[1], [0], [0], [1], [0, 0, 1, 1], [], []>} : vector<32x640xbf16>, vector<640x128xbf16>, vector<32x128xf32> -> vector<32x128xf32>
    %c0_435 = arith.constant 0 : index
    %c0_436 = arith.constant 0 : index
    %1240 = vector.load %arg18[%c0_435, %c0_436] : memref<1x128xf32, #tpu.memory_space<vmem>>, vector<1x128xf32>
    %1241 = vector.broadcast %1240 : vector<1x128xf32> to vector<32x128xf32>
    %1242 = arith.addf %1239, %1241 : vector<32x128xf32>
    %1243 = vector.broadcast %1226 : vector<32x1xf32> to vector<32x128xf32>
    %1244 = arith.mulf %1242, %1243 : vector<32x128xf32>
    %cst_437 = arith.constant dense<0.000000e+00> : vector<32xf32>
    %1245 = vector.multi_reduction <add>, %1244, %cst_437 [1] : vector<32x128xf32> to vector<32xf32>
    %1246 = vector.shape_cast %1245 : vector<32xf32> to vector<32x1xf32>
    %cst_438 = arith.constant 1.280000e+02 : f32
    %1247 = vector.broadcast %cst_438 : f32 to vector<32x1xf32>
    %1248 = arith.divf %1246, %1247 : vector<32x1xf32>
    %1249 = arith.mulf %1244, %1244 : vector<32x128xf32>
    %cst_439 = arith.constant dense<0.000000e+00> : vector<32xf32>
    %1250 = vector.multi_reduction <add>, %1249, %cst_439 [1] : vector<32x128xf32> to vector<32xf32>
    %1251 = vector.shape_cast %1250 : vector<32xf32> to vector<32x1xf32>
    %cst_440 = arith.constant 1.280000e+02 : f32
    %1252 = vector.broadcast %cst_440 : f32 to vector<32x1xf32>
    %1253 = arith.divf %1251, %1252 : vector<32x1xf32>
    %1254 = arith.mulf %1248, %1248 : vector<32x1xf32>
    %1255 = arith.subf %1253, %1254 : vector<32x1xf32>
    %cst_441 = arith.constant 0.000000e+00 : f32
    %1256 = vector.broadcast %cst_441 : f32 to vector<32x1xf32>
    %1257 = arith.maximumf %1255, %1256 : vector<32x1xf32>
    %c0_442 = arith.constant 0 : index
    %c0_443 = arith.constant 0 : index
    %1258 = vector.load %arg19[%c0_442, %c0_443] : memref<1x128xf32, #tpu.memory_space<vmem>>, vector<1x128xf32>
    %cst_444 = arith.constant 9.99999974E-6 : f32
    %1259 = vector.broadcast %cst_444 : f32 to vector<32x1xf32>
    %1260 = arith.addf %1257, %1259 : vector<32x1xf32>
    %1261 = math.rsqrt %1260 : vector<32x1xf32>
    %1262 = vector.broadcast %1258 : vector<1x128xf32> to vector<32x128xf32>
    %1263 = vector.broadcast %1261 : vector<32x1xf32> to vector<32x128xf32>
    %1264 = arith.mulf %1262, %1263 : vector<32x128xf32>
    %1265 = vector.broadcast %1248 : vector<32x1xf32> to vector<32x128xf32>
    %1266 = arith.subf %1244, %1265 : vector<32x128xf32>
    %1267 = arith.mulf %1266, %1264 : vector<32x128xf32>
    %c0_445 = arith.constant 0 : index
    %c0_446 = arith.constant 0 : index
    %1268 = vector.load %arg20[%c0_445, %c0_446] : memref<1x128xf32, #tpu.memory_space<vmem>>, vector<1x128xf32>
    %1269 = vector.broadcast %1268 : vector<1x128xf32> to vector<32x128xf32>
    %1270 = arith.addf %1267, %1269 : vector<32x128xf32>
    %1271 = vector.broadcast %1226 : vector<32x1xf32> to vector<32x128xf32>
    %1272 = arith.mulf %1270, %1271 : vector<32x128xf32>
    %cst_447 = arith.constant 0.000000e+00 : f32
    %1273 = vector.broadcast %cst_447 : f32 to vector<32x128xf32>
    %1274 = arith.maximumf %1272, %1273 : vector<32x128xf32>
    %1275 = vector.broadcast %1226 : vector<32x1xf32> to vector<32x128xf32>
    %1276 = arith.mulf %1274, %1275 : vector<32x128xf32>
    %1277 = arith.addf %1225, %1276 : vector<32x128xf32>
    %1278 = vector.broadcast %1226 : vector<32x1xf32> to vector<32x128xf32>
    %1279 = arith.mulf %1277, %1278 : vector<32x128xf32>
    %1280 = vector.shape_cast %1279 : vector<32x128xf32> to vector<2x16x128xf32>
    %cst_448 = arith.constant 0.000000e+00 : f32
    %1281 = vector.broadcast %cst_448 : f32 to vector<2x1x128xf32>
    %1282 = tpu.concatenate %1281, %1280, %1281 in 1 : vector<2x1x128xf32>, vector<2x16x128xf32>, vector<2x1x128xf32> -> vector<2x18x128xf32>
    %1283 = vector.extract_strided_slice %1282 {offsets = [0, 0, 0], sizes = [2, 16, 128], strides = [1, 1, 1]} : vector<2x18x128xf32> to vector<2x16x128xf32>
    %1284 = vector.extract_strided_slice %1282 {offsets = [0, 1, 0], sizes = [2, 16, 128], strides = [1, 1, 1]} : vector<2x18x128xf32> to vector<2x16x128xf32>
    %1285 = vector.extract_strided_slice %1282 {offsets = [0, 2, 0], sizes = [2, 16, 128], strides = [1, 1, 1]} : vector<2x18x128xf32> to vector<2x16x128xf32>
    %1286 = tpu.concatenate %1283, %1284, %1285 in 2 : vector<2x16x128xf32>, vector<2x16x128xf32>, vector<2x16x128xf32> -> vector<2x16x384xf32>
    %1287 = vector.shape_cast %1286 : vector<2x16x384xf32> to vector<32x384xf32>
    %1288 = arith.truncf %1287 : vector<32x384xf32> to vector<32x384xbf16>
    %c0_449 = arith.constant 0 : index
    %c0_450 = arith.constant 0 : index
    %1289 = vector.load %arg21[%c0_449, %c0_450] : memref<384x128xbf16, #tpu.memory_space<vmem>>, vector<384x128xbf16>
    %cst_451 = arith.constant dense<0.000000e+00> : vector<32x128xf32>
    %1290 = tpu.matmul %1288, %1289, %cst_451 {dimension_numbers = #tpu.dot_dimension_numbers<[1], [0], [0], [1], [0, 0, 1, 1], [], []>} : vector<32x384xbf16>, vector<384x128xbf16>, vector<32x128xf32> -> vector<32x128xf32>
    %c0_452 = arith.constant 0 : index
    %c0_453 = arith.constant 0 : index
    %1291 = vector.load %arg22[%c0_452, %c0_453] : memref<1x128xf32, #tpu.memory_space<vmem>>, vector<1x128xf32>
    %1292 = vector.broadcast %1291 : vector<1x128xf32> to vector<32x128xf32>
    %1293 = arith.addf %1290, %1292 : vector<32x128xf32>
    %1294 = vector.broadcast %1226 : vector<32x1xf32> to vector<32x128xf32>
    %1295 = arith.mulf %1293, %1294 : vector<32x128xf32>
    %cst_454 = arith.constant dense<0.000000e+00> : vector<32xf32>
    %1296 = vector.multi_reduction <add>, %1295, %cst_454 [1] : vector<32x128xf32> to vector<32xf32>
    %1297 = vector.shape_cast %1296 : vector<32xf32> to vector<32x1xf32>
    %cst_455 = arith.constant 1.280000e+02 : f32
    %1298 = vector.broadcast %cst_455 : f32 to vector<32x1xf32>
    %1299 = arith.divf %1297, %1298 : vector<32x1xf32>
    %1300 = arith.mulf %1295, %1295 : vector<32x128xf32>
    %cst_456 = arith.constant dense<0.000000e+00> : vector<32xf32>
    %1301 = vector.multi_reduction <add>, %1300, %cst_456 [1] : vector<32x128xf32> to vector<32xf32>
    %1302 = vector.shape_cast %1301 : vector<32xf32> to vector<32x1xf32>
    %cst_457 = arith.constant 1.280000e+02 : f32
    %1303 = vector.broadcast %cst_457 : f32 to vector<32x1xf32>
    %1304 = arith.divf %1302, %1303 : vector<32x1xf32>
    %1305 = arith.mulf %1299, %1299 : vector<32x1xf32>
    %1306 = arith.subf %1304, %1305 : vector<32x1xf32>
    %cst_458 = arith.constant 0.000000e+00 : f32
    %1307 = vector.broadcast %cst_458 : f32 to vector<32x1xf32>
    %1308 = arith.maximumf %1306, %1307 : vector<32x1xf32>
    %c0_459 = arith.constant 0 : index
    %c0_460 = arith.constant 0 : index
    %1309 = vector.load %arg23[%c0_459, %c0_460] : memref<1x128xf32, #tpu.memory_space<vmem>>, vector<1x128xf32>
    %cst_461 = arith.constant 9.99999974E-6 : f32
    %1310 = vector.broadcast %cst_461 : f32 to vector<32x1xf32>
    %1311 = arith.addf %1308, %1310 : vector<32x1xf32>
    %1312 = math.rsqrt %1311 : vector<32x1xf32>
    %1313 = vector.broadcast %1309 : vector<1x128xf32> to vector<32x128xf32>
    %1314 = vector.broadcast %1312 : vector<32x1xf32> to vector<32x128xf32>
    %1315 = arith.mulf %1313, %1314 : vector<32x128xf32>
    %1316 = vector.broadcast %1299 : vector<32x1xf32> to vector<32x128xf32>
    %1317 = arith.subf %1295, %1316 : vector<32x128xf32>
    %1318 = arith.mulf %1317, %1315 : vector<32x128xf32>
    %c0_462 = arith.constant 0 : index
    %c0_463 = arith.constant 0 : index
    %1319 = vector.load %arg24[%c0_462, %c0_463] : memref<1x128xf32, #tpu.memory_space<vmem>>, vector<1x128xf32>
    %1320 = vector.broadcast %1319 : vector<1x128xf32> to vector<32x128xf32>
    %1321 = arith.addf %1318, %1320 : vector<32x128xf32>
    %1322 = vector.broadcast %1226 : vector<32x1xf32> to vector<32x128xf32>
    %1323 = arith.mulf %1321, %1322 : vector<32x128xf32>
    %cst_464 = arith.constant 0.000000e+00 : f32
    %1324 = vector.broadcast %cst_464 : f32 to vector<32x128xf32>
    %1325 = arith.maximumf %1323, %1324 : vector<32x128xf32>
    %1326 = vector.broadcast %1226 : vector<32x1xf32> to vector<32x128xf32>
    %1327 = arith.mulf %1325, %1326 : vector<32x128xf32>
    %1328 = vector.broadcast %1226 : vector<32x1xf32> to vector<32x128xf32>
    %1329 = arith.mulf %1327, %1328 : vector<32x128xf32>
    %1330 = vector.shape_cast %1329 : vector<32x128xf32> to vector<2x16x128xf32>
    %cst_465 = arith.constant 0.000000e+00 : f32
    %1331 = vector.broadcast %cst_465 : f32 to vector<2x1x128xf32>
    %1332 = tpu.concatenate %1331, %1330, %1331 in 1 : vector<2x1x128xf32>, vector<2x16x128xf32>, vector<2x1x128xf32> -> vector<2x18x128xf32>
    %1333 = vector.extract_strided_slice %1332 {offsets = [0, 0, 0], sizes = [2, 16, 128], strides = [1, 1, 1]} : vector<2x18x128xf32> to vector<2x16x128xf32>
    %1334 = vector.extract_strided_slice %1332 {offsets = [0, 1, 0], sizes = [2, 16, 128], strides = [1, 1, 1]} : vector<2x18x128xf32> to vector<2x16x128xf32>
    %1335 = vector.extract_strided_slice %1332 {offsets = [0, 2, 0], sizes = [2, 16, 128], strides = [1, 1, 1]} : vector<2x18x128xf32> to vector<2x16x128xf32>
    %1336 = tpu.concatenate %1333, %1334, %1335 in 2 : vector<2x16x128xf32>, vector<2x16x128xf32>, vector<2x16x128xf32> -> vector<2x16x384xf32>
    %1337 = vector.shape_cast %1336 : vector<2x16x384xf32> to vector<32x384xf32>
    %1338 = arith.truncf %1337 : vector<32x384xf32> to vector<32x384xbf16>
    %c0_466 = arith.constant 0 : index
    %c0_467 = arith.constant 0 : index
    %1339 = vector.load %arg25[%c0_466, %c0_467] : memref<384x128xbf16, #tpu.memory_space<vmem>>, vector<384x128xbf16>
    %cst_468 = arith.constant dense<0.000000e+00> : vector<32x128xf32>
    %1340 = tpu.matmul %1338, %1339, %cst_468 {dimension_numbers = #tpu.dot_dimension_numbers<[1], [0], [0], [1], [0, 0, 1, 1], [], []>} : vector<32x384xbf16>, vector<384x128xbf16>, vector<32x128xf32> -> vector<32x128xf32>
    %c0_469 = arith.constant 0 : index
    %c0_470 = arith.constant 0 : index
    %1341 = vector.load %arg26[%c0_469, %c0_470] : memref<1x128xf32, #tpu.memory_space<vmem>>, vector<1x128xf32>
    %1342 = vector.broadcast %1341 : vector<1x128xf32> to vector<32x128xf32>
    %1343 = arith.addf %1340, %1342 : vector<32x128xf32>
    %1344 = vector.broadcast %1226 : vector<32x1xf32> to vector<32x128xf32>
    %1345 = arith.mulf %1343, %1344 : vector<32x128xf32>
    %cst_471 = arith.constant dense<0.000000e+00> : vector<32xf32>
    %1346 = vector.multi_reduction <add>, %1345, %cst_471 [1] : vector<32x128xf32> to vector<32xf32>
    %1347 = vector.shape_cast %1346 : vector<32xf32> to vector<32x1xf32>
    %cst_472 = arith.constant 1.280000e+02 : f32
    %1348 = vector.broadcast %cst_472 : f32 to vector<32x1xf32>
    %1349 = arith.divf %1347, %1348 : vector<32x1xf32>
    %1350 = arith.mulf %1345, %1345 : vector<32x128xf32>
    %cst_473 = arith.constant dense<0.000000e+00> : vector<32xf32>
    %1351 = vector.multi_reduction <add>, %1350, %cst_473 [1] : vector<32x128xf32> to vector<32xf32>
    %1352 = vector.shape_cast %1351 : vector<32xf32> to vector<32x1xf32>
    %cst_474 = arith.constant 1.280000e+02 : f32
    %1353 = vector.broadcast %cst_474 : f32 to vector<32x1xf32>
    %1354 = arith.divf %1352, %1353 : vector<32x1xf32>
    %1355 = arith.mulf %1349, %1349 : vector<32x1xf32>
    %1356 = arith.subf %1354, %1355 : vector<32x1xf32>
    %cst_475 = arith.constant 0.000000e+00 : f32
    %1357 = vector.broadcast %cst_475 : f32 to vector<32x1xf32>
    %1358 = arith.maximumf %1356, %1357 : vector<32x1xf32>
    %c0_476 = arith.constant 0 : index
    %c0_477 = arith.constant 0 : index
    %1359 = vector.load %arg27[%c0_476, %c0_477] : memref<1x128xf32, #tpu.memory_space<vmem>>, vector<1x128xf32>
    %cst_478 = arith.constant 9.99999974E-6 : f32
    %1360 = vector.broadcast %cst_478 : f32 to vector<32x1xf32>
    %1361 = arith.addf %1358, %1360 : vector<32x1xf32>
    %1362 = math.rsqrt %1361 : vector<32x1xf32>
    %1363 = vector.broadcast %1359 : vector<1x128xf32> to vector<32x128xf32>
    %1364 = vector.broadcast %1362 : vector<32x1xf32> to vector<32x128xf32>
    %1365 = arith.mulf %1363, %1364 : vector<32x128xf32>
    %1366 = vector.broadcast %1349 : vector<32x1xf32> to vector<32x128xf32>
    %1367 = arith.subf %1345, %1366 : vector<32x128xf32>
    %1368 = arith.mulf %1367, %1365 : vector<32x128xf32>
    %c0_479 = arith.constant 0 : index
    %c0_480 = arith.constant 0 : index
    %1369 = vector.load %arg28[%c0_479, %c0_480] : memref<1x128xf32, #tpu.memory_space<vmem>>, vector<1x128xf32>
    %1370 = vector.broadcast %1369 : vector<1x128xf32> to vector<32x128xf32>
    %1371 = arith.addf %1368, %1370 : vector<32x128xf32>
    %1372 = vector.broadcast %1226 : vector<32x1xf32> to vector<32x128xf32>
    %1373 = arith.mulf %1371, %1372 : vector<32x128xf32>
    %cst_481 = arith.constant 0.000000e+00 : f32
    %1374 = vector.broadcast %cst_481 : f32 to vector<32x128xf32>
    %1375 = arith.maximumf %1373, %1374 : vector<32x128xf32>
    %1376 = vector.broadcast %1226 : vector<32x1xf32> to vector<32x128xf32>
    %1377 = arith.mulf %1375, %1376 : vector<32x128xf32>
    %1378 = vector.extract_strided_slice %1377 {offsets = [0, 0], sizes = [16, 128], strides = [1, 1]} : vector<32x128xf32> to vector<16x128xf32>
    %c0_482 = arith.constant 0 : index
    %c0_483 = arith.constant 0 : index
    %1379 = vector.load %arg29[%c0_482, %c0_483] : memref<1x128xf32, #tpu.memory_space<vmem>>, vector<1x128xf32>
    %1380 = vector.broadcast %1379 : vector<1x128xf32> to vector<16x128xf32>
    %1381 = arith.mulf %1378, %1380 : vector<16x128xf32>
    %cst_484 = arith.constant dense<0.000000e+00> : vector<16xf32>
    %1382 = vector.multi_reduction <add>, %1381, %cst_484 [1] : vector<16x128xf32> to vector<16xf32>
    %1383 = vector.shape_cast %1382 : vector<16xf32> to vector<16x1xf32>
    %c0_485 = arith.constant 0 : index
    %c0_486 = arith.constant 0 : index
    %1384 = vector.load %arg30[%c0_485, %c0_486] : memref<1x1xf32, #tpu.memory_space<vmem>>, vector<1x1xf32>
    %1385 = vector.broadcast %1384 : vector<1x1xf32> to vector<16x1xf32>
    %1386 = arith.addf %1383, %1385 : vector<16x1xf32>
    %cst_487 = arith.constant 5.000000e-01 : f32
    %1387 = vector.broadcast %cst_487 : f32 to vector<16x1xf32>
    %1388 = arith.cmpf ogt, %5, %1387 : vector<16x1xf32>
    %cst_488 = arith.constant -1.000000e+30 : f32
    %1389 = vector.broadcast %cst_488 : f32 to vector<16x1xf32>
    %1390 = arith.select %1388, %1386, %1389 : vector<16x1xi1>, vector<16x1xf32>
    %cst_489 = arith.constant dense<0xFF800000> : vector<1xf32>
    %1391 = vector.multi_reduction <maximumf>, %1390, %cst_489 [0] : vector<16x1xf32> to vector<1xf32>
    %1392 = vector.shape_cast %1391 : vector<1xf32> to vector<1x1xf32>
    %1393 = vector.broadcast %1392 : vector<1x1xf32> to vector<16x1xf32>
    %1394 = arith.subf %1390, %1393 : vector<16x1xf32>
    %1395 = math.exp %1394 : vector<16x1xf32>
    %1396 = arith.mulf %1395, %5 : vector<16x1xf32>
    %cst_490 = arith.constant dense<0.000000e+00> : vector<1xf32>
    %1397 = vector.multi_reduction <add>, %1396, %cst_490 [0] : vector<16x1xf32> to vector<1xf32>
    %1398 = vector.shape_cast %1397 : vector<1xf32> to vector<1x1xf32>
    %cst_491 = arith.constant 9.99999968E-21 : f32
    %1399 = vector.broadcast %cst_491 : f32 to vector<1x1xf32>
    %1400 = arith.maximumf %1398, %1399 : vector<1x1xf32>
    %1401 = tpu.reciprocal %1400 {approx = true} : vector<1x1xf32> -> vector<1x1xf32>
    %1402 = vector.broadcast %1401 : vector<1x1xf32> to vector<16x1xf32>
    %1403 = arith.mulf %1396, %1402 : vector<16x1xf32>
    %1404 = vector.broadcast %1403 : vector<16x1xf32> to vector<16x128xf32>
    %1405 = arith.mulf %1404, %1378 : vector<16x128xf32>
    %cst_492 = arith.constant dense<0.000000e+00> : vector<128xf32>
    %1406 = vector.multi_reduction <add>, %1405, %cst_492 [0] : vector<16x128xf32> to vector<128xf32>
    %1407 = vector.shape_cast %1406 : vector<128xf32> to vector<1x128xf32>
    %c0_493 = arith.constant 0 : index
    %c0_494 = arith.constant 0 : index
    %1408 = vector.load %arg31[%c0_493, %c0_494] : memref<1x128xf32, #tpu.memory_space<vmem>>, vector<1x128xf32>
    %1409 = arith.mulf %1407, %1408 : vector<1x128xf32>
    %cst_495 = arith.constant dense<0.000000e+00> : vector<1xf32>
    %1410 = vector.multi_reduction <add>, %1409, %cst_495 [1] : vector<1x128xf32> to vector<1xf32>
    %1411 = vector.shape_cast %1410 : vector<1xf32> to vector<1x1xf32>
    %c0_496 = arith.constant 0 : index
    %c0_497 = arith.constant 0 : index
    %1412 = vector.load %arg32[%c0_496, %c0_497] : memref<1x1xf32, #tpu.memory_space<vmem>>, vector<1x1xf32>
    %1413 = arith.addf %1411, %1412 : vector<1x1xf32>
    %1414 = vector.extract_strided_slice %1377 {offsets = [16, 0], sizes = [16, 128], strides = [1, 1]} : vector<32x128xf32> to vector<16x128xf32>
    %c0_498 = arith.constant 0 : index
    %c0_499 = arith.constant 0 : index
    %1415 = vector.load %arg29[%c0_498, %c0_499] : memref<1x128xf32, #tpu.memory_space<vmem>>, vector<1x128xf32>
    %1416 = vector.broadcast %1415 : vector<1x128xf32> to vector<16x128xf32>
    %1417 = arith.mulf %1414, %1416 : vector<16x128xf32>
    %cst_500 = arith.constant dense<0.000000e+00> : vector<16xf32>
    %1418 = vector.multi_reduction <add>, %1417, %cst_500 [1] : vector<16x128xf32> to vector<16xf32>
    %1419 = vector.shape_cast %1418 : vector<16xf32> to vector<16x1xf32>
    %c0_501 = arith.constant 0 : index
    %c0_502 = arith.constant 0 : index
    %1420 = vector.load %arg30[%c0_501, %c0_502] : memref<1x1xf32, #tpu.memory_space<vmem>>, vector<1x1xf32>
    %1421 = vector.broadcast %1420 : vector<1x1xf32> to vector<16x1xf32>
    %1422 = arith.addf %1419, %1421 : vector<16x1xf32>
    %cst_503 = arith.constant 5.000000e-01 : f32
    %1423 = vector.broadcast %cst_503 : f32 to vector<16x1xf32>
    %1424 = arith.cmpf ogt, %10, %1423 : vector<16x1xf32>
    %cst_504 = arith.constant -1.000000e+30 : f32
    %1425 = vector.broadcast %cst_504 : f32 to vector<16x1xf32>
    %1426 = arith.select %1424, %1422, %1425 : vector<16x1xi1>, vector<16x1xf32>
    %cst_505 = arith.constant dense<0xFF800000> : vector<1xf32>
    %1427 = vector.multi_reduction <maximumf>, %1426, %cst_505 [0] : vector<16x1xf32> to vector<1xf32>
    %1428 = vector.shape_cast %1427 : vector<1xf32> to vector<1x1xf32>
    %1429 = vector.broadcast %1428 : vector<1x1xf32> to vector<16x1xf32>
    %1430 = arith.subf %1426, %1429 : vector<16x1xf32>
    %1431 = math.exp %1430 : vector<16x1xf32>
    %1432 = arith.mulf %1431, %10 : vector<16x1xf32>
    %cst_506 = arith.constant dense<0.000000e+00> : vector<1xf32>
    %1433 = vector.multi_reduction <add>, %1432, %cst_506 [0] : vector<16x1xf32> to vector<1xf32>
    %1434 = vector.shape_cast %1433 : vector<1xf32> to vector<1x1xf32>
    %cst_507 = arith.constant 9.99999968E-21 : f32
    %1435 = vector.broadcast %cst_507 : f32 to vector<1x1xf32>
    %1436 = arith.maximumf %1434, %1435 : vector<1x1xf32>
    %1437 = tpu.reciprocal %1436 {approx = true} : vector<1x1xf32> -> vector<1x1xf32>
    %1438 = vector.broadcast %1437 : vector<1x1xf32> to vector<16x1xf32>
    %1439 = arith.mulf %1432, %1438 : vector<16x1xf32>
    %1440 = vector.broadcast %1439 : vector<16x1xf32> to vector<16x128xf32>
    %1441 = arith.mulf %1440, %1414 : vector<16x128xf32>
    %cst_508 = arith.constant dense<0.000000e+00> : vector<128xf32>
    %1442 = vector.multi_reduction <add>, %1441, %cst_508 [0] : vector<16x128xf32> to vector<128xf32>
    %1443 = vector.shape_cast %1442 : vector<128xf32> to vector<1x128xf32>
    %c0_509 = arith.constant 0 : index
    %c0_510 = arith.constant 0 : index
    %1444 = vector.load %arg31[%c0_509, %c0_510] : memref<1x128xf32, #tpu.memory_space<vmem>>, vector<1x128xf32>
    %1445 = arith.mulf %1443, %1444 : vector<1x128xf32>
    %cst_511 = arith.constant dense<0.000000e+00> : vector<1xf32>
    %1446 = vector.multi_reduction <add>, %1445, %cst_511 [1] : vector<1x128xf32> to vector<1xf32>
    %1447 = vector.shape_cast %1446 : vector<1xf32> to vector<1x1xf32>
    %c0_512 = arith.constant 0 : index
    %c0_513 = arith.constant 0 : index
    %1448 = vector.load %arg32[%c0_512, %c0_513] : memref<1x1xf32, #tpu.memory_space<vmem>>, vector<1x1xf32>
    %1449 = arith.addf %1447, %1448 : vector<1x1xf32>
    %1450 = vector.broadcast %1226 : vector<32x1xf32> to vector<32x128xf32>
    %1451 = arith.mulf %1277, %1450 : vector<32x128xf32>
    %1452 = vector.shape_cast %1451 : vector<32x128xf32> to vector<2x16x128xf32>
    %cst_514 = arith.constant 0.000000e+00 : f32
    %1453 = vector.broadcast %cst_514 : f32 to vector<2x3x128xf32>
    %1454 = tpu.concatenate %1453, %1452, %1453 in 1 : vector<2x3x128xf32>, vector<2x16x128xf32>, vector<2x3x128xf32> -> vector<2x22x128xf32>
    %1455 = vector.extract_strided_slice %1454 {offsets = [0, 0, 0], sizes = [2, 16, 128], strides = [1, 1, 1]} : vector<2x22x128xf32> to vector<2x16x128xf32>
    %1456 = vector.extract_strided_slice %1454 {offsets = [0, 1, 0], sizes = [2, 16, 128], strides = [1, 1, 1]} : vector<2x22x128xf32> to vector<2x16x128xf32>
    %1457 = vector.extract_strided_slice %1454 {offsets = [0, 2, 0], sizes = [2, 16, 128], strides = [1, 1, 1]} : vector<2x22x128xf32> to vector<2x16x128xf32>
    %1458 = vector.extract_strided_slice %1454 {offsets = [0, 3, 0], sizes = [2, 16, 128], strides = [1, 1, 1]} : vector<2x22x128xf32> to vector<2x16x128xf32>
    %1459 = vector.extract_strided_slice %1454 {offsets = [0, 4, 0], sizes = [2, 16, 128], strides = [1, 1, 1]} : vector<2x22x128xf32> to vector<2x16x128xf32>
    %1460 = vector.extract_strided_slice %1454 {offsets = [0, 5, 0], sizes = [2, 16, 128], strides = [1, 1, 1]} : vector<2x22x128xf32> to vector<2x16x128xf32>
    %1461 = vector.extract_strided_slice %1454 {offsets = [0, 6, 0], sizes = [2, 16, 128], strides = [1, 1, 1]} : vector<2x22x128xf32> to vector<2x16x128xf32>
    %1462 = tpu.concatenate %1455, %1456, %1457, %1458, %1459, %1460, %1461 in 2 : vector<2x16x128xf32>, vector<2x16x128xf32>, vector<2x16x128xf32>, vector<2x16x128xf32>, vector<2x16x128xf32>, vector<2x16x128xf32>, vector<2x16x128xf32> -> vector<2x16x896xf32>
    %1463 = vector.shape_cast %1462 : vector<2x16x896xf32> to vector<32x896xf32>
    %1464 = arith.truncf %1463 : vector<32x896xf32> to vector<32x896xbf16>
    %c0_515 = arith.constant 0 : index
    %c0_516 = arith.constant 0 : index
    %1465 = vector.load %arg33[%c0_515, %c0_516] : memref<896x128xbf16, #tpu.memory_space<vmem>>, vector<896x128xbf16>
    %cst_517 = arith.constant dense<0.000000e+00> : vector<32x128xf32>
    %1466 = tpu.matmul %1464, %1465, %cst_517 {dimension_numbers = #tpu.dot_dimension_numbers<[1], [0], [0], [1], [0, 0, 1, 1], [], []>} : vector<32x896xbf16>, vector<896x128xbf16>, vector<32x128xf32> -> vector<32x128xf32>
    %c0_518 = arith.constant 0 : index
    %c0_519 = arith.constant 0 : index
    %1467 = vector.load %arg34[%c0_518, %c0_519] : memref<1x128xf32, #tpu.memory_space<vmem>>, vector<1x128xf32>
    %1468 = vector.broadcast %1467 : vector<1x128xf32> to vector<32x128xf32>
    %1469 = arith.addf %1466, %1468 : vector<32x128xf32>
    %1470 = vector.broadcast %1226 : vector<32x1xf32> to vector<32x128xf32>
    %1471 = arith.mulf %1469, %1470 : vector<32x128xf32>
    %cst_520 = arith.constant dense<0.000000e+00> : vector<32xf32>
    %1472 = vector.multi_reduction <add>, %1471, %cst_520 [1] : vector<32x128xf32> to vector<32xf32>
    %1473 = vector.shape_cast %1472 : vector<32xf32> to vector<32x1xf32>
    %cst_521 = arith.constant 1.280000e+02 : f32
    %1474 = vector.broadcast %cst_521 : f32 to vector<32x1xf32>
    %1475 = arith.divf %1473, %1474 : vector<32x1xf32>
    %1476 = arith.mulf %1471, %1471 : vector<32x128xf32>
    %cst_522 = arith.constant dense<0.000000e+00> : vector<32xf32>
    %1477 = vector.multi_reduction <add>, %1476, %cst_522 [1] : vector<32x128xf32> to vector<32xf32>
    %1478 = vector.shape_cast %1477 : vector<32xf32> to vector<32x1xf32>
    %cst_523 = arith.constant 1.280000e+02 : f32
    %1479 = vector.broadcast %cst_523 : f32 to vector<32x1xf32>
    %1480 = arith.divf %1478, %1479 : vector<32x1xf32>
    %1481 = arith.mulf %1475, %1475 : vector<32x1xf32>
    %1482 = arith.subf %1480, %1481 : vector<32x1xf32>
    %cst_524 = arith.constant 0.000000e+00 : f32
    %1483 = vector.broadcast %cst_524 : f32 to vector<32x1xf32>
    %1484 = arith.maximumf %1482, %1483 : vector<32x1xf32>
    %c0_525 = arith.constant 0 : index
    %c0_526 = arith.constant 0 : index
    %1485 = vector.load %arg35[%c0_525, %c0_526] : memref<1x128xf32, #tpu.memory_space<vmem>>, vector<1x128xf32>
    %cst_527 = arith.constant 9.99999974E-6 : f32
    %1486 = vector.broadcast %cst_527 : f32 to vector<32x1xf32>
    %1487 = arith.addf %1484, %1486 : vector<32x1xf32>
    %1488 = math.rsqrt %1487 : vector<32x1xf32>
    %1489 = vector.broadcast %1485 : vector<1x128xf32> to vector<32x128xf32>
    %1490 = vector.broadcast %1488 : vector<32x1xf32> to vector<32x128xf32>
    %1491 = arith.mulf %1489, %1490 : vector<32x128xf32>
    %1492 = vector.broadcast %1475 : vector<32x1xf32> to vector<32x128xf32>
    %1493 = arith.subf %1471, %1492 : vector<32x128xf32>
    %1494 = arith.mulf %1493, %1491 : vector<32x128xf32>
    %c0_528 = arith.constant 0 : index
    %c0_529 = arith.constant 0 : index
    %1495 = vector.load %arg36[%c0_528, %c0_529] : memref<1x128xf32, #tpu.memory_space<vmem>>, vector<1x128xf32>
    %1496 = vector.broadcast %1495 : vector<1x128xf32> to vector<32x128xf32>
    %1497 = arith.addf %1494, %1496 : vector<32x128xf32>
    %1498 = vector.broadcast %1226 : vector<32x1xf32> to vector<32x128xf32>
    %1499 = arith.mulf %1497, %1498 : vector<32x128xf32>
    %cst_530 = arith.constant 0.000000e+00 : f32
    %1500 = vector.broadcast %cst_530 : f32 to vector<32x128xf32>
    %1501 = arith.maximumf %1499, %1500 : vector<32x128xf32>
    %1502 = vector.broadcast %1226 : vector<32x1xf32> to vector<32x128xf32>
    %1503 = arith.mulf %1501, %1502 : vector<32x128xf32>
    %1504 = vector.broadcast %1226 : vector<32x1xf32> to vector<32x128xf32>
    %1505 = arith.mulf %1503, %1504 : vector<32x128xf32>
    %1506 = vector.shape_cast %1505 : vector<32x128xf32> to vector<2x16x128xf32>
    %cst_531 = arith.constant 0.000000e+00 : f32
    %1507 = vector.broadcast %cst_531 : f32 to vector<2x4x128xf32>
    %1508 = tpu.concatenate %1507, %1506, %1507 in 1 : vector<2x4x128xf32>, vector<2x16x128xf32>, vector<2x4x128xf32> -> vector<2x24x128xf32>
    %1509 = vector.extract_strided_slice %1508 {offsets = [0, 0, 0], sizes = [2, 16, 128], strides = [1, 1, 1]} : vector<2x24x128xf32> to vector<2x16x128xf32>
    %1510 = vector.extract_strided_slice %1508 {offsets = [0, 1, 0], sizes = [2, 16, 128], strides = [1, 1, 1]} : vector<2x24x128xf32> to vector<2x16x128xf32>
    %1511 = vector.extract_strided_slice %1508 {offsets = [0, 2, 0], sizes = [2, 16, 128], strides = [1, 1, 1]} : vector<2x24x128xf32> to vector<2x16x128xf32>
    %1512 = vector.extract_strided_slice %1508 {offsets = [0, 3, 0], sizes = [2, 16, 128], strides = [1, 1, 1]} : vector<2x24x128xf32> to vector<2x16x128xf32>
    %1513 = vector.extract_strided_slice %1508 {offsets = [0, 4, 0], sizes = [2, 16, 128], strides = [1, 1, 1]} : vector<2x24x128xf32> to vector<2x16x128xf32>
    %1514 = vector.extract_strided_slice %1508 {offsets = [0, 5, 0], sizes = [2, 16, 128], strides = [1, 1, 1]} : vector<2x24x128xf32> to vector<2x16x128xf32>
    %1515 = vector.extract_strided_slice %1508 {offsets = [0, 6, 0], sizes = [2, 16, 128], strides = [1, 1, 1]} : vector<2x24x128xf32> to vector<2x16x128xf32>
    %1516 = vector.extract_strided_slice %1508 {offsets = [0, 7, 0], sizes = [2, 16, 128], strides = [1, 1, 1]} : vector<2x24x128xf32> to vector<2x16x128xf32>
    %1517 = vector.extract_strided_slice %1508 {offsets = [0, 8, 0], sizes = [2, 16, 128], strides = [1, 1, 1]} : vector<2x24x128xf32> to vector<2x16x128xf32>
    %1518 = tpu.concatenate %1509, %1510, %1511, %1512, %1513, %1514, %1515, %1516, %1517 in 2 : vector<2x16x128xf32>, vector<2x16x128xf32>, vector<2x16x128xf32>, vector<2x16x128xf32>, vector<2x16x128xf32>, vector<2x16x128xf32>, vector<2x16x128xf32>, vector<2x16x128xf32>, vector<2x16x128xf32> -> vector<2x16x1152xf32>
    %1519 = vector.shape_cast %1518 : vector<2x16x1152xf32> to vector<32x1152xf32>
    %1520 = arith.truncf %1519 : vector<32x1152xf32> to vector<32x1152xbf16>
    %c0_532 = arith.constant 0 : index
    %c0_533 = arith.constant 0 : index
    %1521 = vector.load %arg37[%c0_532, %c0_533] : memref<1152x128xbf16, #tpu.memory_space<vmem>>, vector<1152x128xbf16>
    %cst_534 = arith.constant dense<0.000000e+00> : vector<32x128xf32>
    %1522 = tpu.matmul %1520, %1521, %cst_534 {dimension_numbers = #tpu.dot_dimension_numbers<[1], [0], [0], [1], [0, 0, 1, 1], [], []>} : vector<32x1152xbf16>, vector<1152x128xbf16>, vector<32x128xf32> -> vector<32x128xf32>
    %c0_535 = arith.constant 0 : index
    %c0_536 = arith.constant 0 : index
    %1523 = vector.load %arg38[%c0_535, %c0_536] : memref<1x128xf32, #tpu.memory_space<vmem>>, vector<1x128xf32>
    %1524 = vector.broadcast %1523 : vector<1x128xf32> to vector<32x128xf32>
    %1525 = arith.addf %1522, %1524 : vector<32x128xf32>
    %1526 = vector.broadcast %1226 : vector<32x1xf32> to vector<32x128xf32>
    %1527 = arith.mulf %1525, %1526 : vector<32x128xf32>
    %cst_537 = arith.constant dense<0.000000e+00> : vector<32xf32>
    %1528 = vector.multi_reduction <add>, %1527, %cst_537 [1] : vector<32x128xf32> to vector<32xf32>
    %1529 = vector.shape_cast %1528 : vector<32xf32> to vector<32x1xf32>
    %cst_538 = arith.constant 1.280000e+02 : f32
    %1530 = vector.broadcast %cst_538 : f32 to vector<32x1xf32>
    %1531 = arith.divf %1529, %1530 : vector<32x1xf32>
    %1532 = arith.mulf %1527, %1527 : vector<32x128xf32>
    %cst_539 = arith.constant dense<0.000000e+00> : vector<32xf32>
    %1533 = vector.multi_reduction <add>, %1532, %cst_539 [1] : vector<32x128xf32> to vector<32xf32>
    %1534 = vector.shape_cast %1533 : vector<32xf32> to vector<32x1xf32>
    %cst_540 = arith.constant 1.280000e+02 : f32
    %1535 = vector.broadcast %cst_540 : f32 to vector<32x1xf32>
    %1536 = arith.divf %1534, %1535 : vector<32x1xf32>
    %1537 = arith.mulf %1531, %1531 : vector<32x1xf32>
    %1538 = arith.subf %1536, %1537 : vector<32x1xf32>
    %cst_541 = arith.constant 0.000000e+00 : f32
    %1539 = vector.broadcast %cst_541 : f32 to vector<32x1xf32>
    %1540 = arith.maximumf %1538, %1539 : vector<32x1xf32>
    %c0_542 = arith.constant 0 : index
    %c0_543 = arith.constant 0 : index
    %1541 = vector.load %arg39[%c0_542, %c0_543] : memref<1x128xf32, #tpu.memory_space<vmem>>, vector<1x128xf32>
    %cst_544 = arith.constant 9.99999974E-6 : f32
    %1542 = vector.broadcast %cst_544 : f32 to vector<32x1xf32>
    %1543 = arith.addf %1540, %1542 : vector<32x1xf32>
    %1544 = math.rsqrt %1543 : vector<32x1xf32>
    %1545 = vector.broadcast %1541 : vector<1x128xf32> to vector<32x128xf32>
    %1546 = vector.broadcast %1544 : vector<32x1xf32> to vector<32x128xf32>
    %1547 = arith.mulf %1545, %1546 : vector<32x128xf32>
    %1548 = vector.broadcast %1531 : vector<32x1xf32> to vector<32x128xf32>
    %1549 = arith.subf %1527, %1548 : vector<32x128xf32>
    %1550 = arith.mulf %1549, %1547 : vector<32x128xf32>
    %c0_545 = arith.constant 0 : index
    %c0_546 = arith.constant 0 : index
    %1551 = vector.load %arg40[%c0_545, %c0_546] : memref<1x128xf32, #tpu.memory_space<vmem>>, vector<1x128xf32>
    %1552 = vector.broadcast %1551 : vector<1x128xf32> to vector<32x128xf32>
    %1553 = arith.addf %1550, %1552 : vector<32x128xf32>
    %1554 = vector.broadcast %1226 : vector<32x1xf32> to vector<32x128xf32>
    %1555 = arith.mulf %1553, %1554 : vector<32x128xf32>
    %cst_547 = arith.constant 0.000000e+00 : f32
    %1556 = vector.broadcast %cst_547 : f32 to vector<32x128xf32>
    %1557 = arith.maximumf %1555, %1556 : vector<32x128xf32>
    %1558 = vector.broadcast %1226 : vector<32x1xf32> to vector<32x128xf32>
    %1559 = arith.mulf %1557, %1558 : vector<32x128xf32>
    %1560 = vector.extract_strided_slice %1559 {offsets = [0, 0], sizes = [16, 128], strides = [1, 1]} : vector<32x128xf32> to vector<16x128xf32>
    %c0_548 = arith.constant 0 : index
    %c0_549 = arith.constant 0 : index
    %1561 = vector.load %arg41[%c0_548, %c0_549] : memref<1x128xf32, #tpu.memory_space<vmem>>, vector<1x128xf32>
    %1562 = vector.broadcast %1561 : vector<1x128xf32> to vector<16x128xf32>
    %1563 = arith.mulf %1560, %1562 : vector<16x128xf32>
    %cst_550 = arith.constant dense<0.000000e+00> : vector<16xf32>
    %1564 = vector.multi_reduction <add>, %1563, %cst_550 [1] : vector<16x128xf32> to vector<16xf32>
    %1565 = vector.shape_cast %1564 : vector<16xf32> to vector<16x1xf32>
    %c0_551 = arith.constant 0 : index
    %c0_552 = arith.constant 0 : index
    %1566 = vector.load %arg42[%c0_551, %c0_552] : memref<1x1xf32, #tpu.memory_space<vmem>>, vector<1x1xf32>
    %1567 = vector.broadcast %1566 : vector<1x1xf32> to vector<16x1xf32>
    %1568 = arith.addf %1565, %1567 : vector<16x1xf32>
    %cst_553 = arith.constant 5.000000e-01 : f32
    %1569 = vector.broadcast %cst_553 : f32 to vector<16x1xf32>
    %1570 = arith.cmpf ogt, %5, %1569 : vector<16x1xf32>
    %cst_554 = arith.constant -1.000000e+30 : f32
    %1571 = vector.broadcast %cst_554 : f32 to vector<16x1xf32>
    %1572 = arith.select %1570, %1568, %1571 : vector<16x1xi1>, vector<16x1xf32>
    %cst_555 = arith.constant dense<0xFF800000> : vector<1xf32>
    %1573 = vector.multi_reduction <maximumf>, %1572, %cst_555 [0] : vector<16x1xf32> to vector<1xf32>
    %1574 = vector.shape_cast %1573 : vector<1xf32> to vector<1x1xf32>
    %1575 = vector.broadcast %1574 : vector<1x1xf32> to vector<16x1xf32>
    %1576 = arith.subf %1572, %1575 : vector<16x1xf32>
    %1577 = math.exp %1576 : vector<16x1xf32>
    %1578 = arith.mulf %1577, %5 : vector<16x1xf32>
    %cst_556 = arith.constant dense<0.000000e+00> : vector<1xf32>
    %1579 = vector.multi_reduction <add>, %1578, %cst_556 [0] : vector<16x1xf32> to vector<1xf32>
    %1580 = vector.shape_cast %1579 : vector<1xf32> to vector<1x1xf32>
    %cst_557 = arith.constant 9.99999968E-21 : f32
    %1581 = vector.broadcast %cst_557 : f32 to vector<1x1xf32>
    %1582 = arith.maximumf %1580, %1581 : vector<1x1xf32>
    %1583 = tpu.reciprocal %1582 {approx = true} : vector<1x1xf32> -> vector<1x1xf32>
    %1584 = vector.broadcast %1583 : vector<1x1xf32> to vector<16x1xf32>
    %1585 = arith.mulf %1578, %1584 : vector<16x1xf32>
    %1586 = vector.broadcast %1585 : vector<16x1xf32> to vector<16x128xf32>
    %1587 = arith.mulf %1586, %1560 : vector<16x128xf32>
    %cst_558 = arith.constant dense<0.000000e+00> : vector<128xf32>
    %1588 = vector.multi_reduction <add>, %1587, %cst_558 [0] : vector<16x128xf32> to vector<128xf32>
    %1589 = vector.shape_cast %1588 : vector<128xf32> to vector<1x128xf32>
    %c0_559 = arith.constant 0 : index
    %c0_560 = arith.constant 0 : index
    %1590 = vector.load %arg43[%c0_559, %c0_560] : memref<1x128xf32, #tpu.memory_space<vmem>>, vector<1x128xf32>
    %1591 = arith.mulf %1589, %1590 : vector<1x128xf32>
    %cst_561 = arith.constant dense<0.000000e+00> : vector<1xf32>
    %1592 = vector.multi_reduction <add>, %1591, %cst_561 [1] : vector<1x128xf32> to vector<1xf32>
    %1593 = vector.shape_cast %1592 : vector<1xf32> to vector<1x1xf32>
    %c0_562 = arith.constant 0 : index
    %c0_563 = arith.constant 0 : index
    %1594 = vector.load %arg44[%c0_562, %c0_563] : memref<1x1xf32, #tpu.memory_space<vmem>>, vector<1x1xf32>
    %1595 = arith.addf %1593, %1594 : vector<1x1xf32>
    %1596 = vector.extract_strided_slice %1559 {offsets = [16, 0], sizes = [16, 128], strides = [1, 1]} : vector<32x128xf32> to vector<16x128xf32>
    %c0_564 = arith.constant 0 : index
    %c0_565 = arith.constant 0 : index
    %1597 = vector.load %arg41[%c0_564, %c0_565] : memref<1x128xf32, #tpu.memory_space<vmem>>, vector<1x128xf32>
    %1598 = vector.broadcast %1597 : vector<1x128xf32> to vector<16x128xf32>
    %1599 = arith.mulf %1596, %1598 : vector<16x128xf32>
    %cst_566 = arith.constant dense<0.000000e+00> : vector<16xf32>
    %1600 = vector.multi_reduction <add>, %1599, %cst_566 [1] : vector<16x128xf32> to vector<16xf32>
    %1601 = vector.shape_cast %1600 : vector<16xf32> to vector<16x1xf32>
    %c0_567 = arith.constant 0 : index
    %c0_568 = arith.constant 0 : index
    %1602 = vector.load %arg42[%c0_567, %c0_568] : memref<1x1xf32, #tpu.memory_space<vmem>>, vector<1x1xf32>
    %1603 = vector.broadcast %1602 : vector<1x1xf32> to vector<16x1xf32>
    %1604 = arith.addf %1601, %1603 : vector<16x1xf32>
    %cst_569 = arith.constant 5.000000e-01 : f32
    %1605 = vector.broadcast %cst_569 : f32 to vector<16x1xf32>
    %1606 = arith.cmpf ogt, %10, %1605 : vector<16x1xf32>
    %cst_570 = arith.constant -1.000000e+30 : f32
    %1607 = vector.broadcast %cst_570 : f32 to vector<16x1xf32>
    %1608 = arith.select %1606, %1604, %1607 : vector<16x1xi1>, vector<16x1xf32>
    %cst_571 = arith.constant dense<0xFF800000> : vector<1xf32>
    %1609 = vector.multi_reduction <maximumf>, %1608, %cst_571 [0] : vector<16x1xf32> to vector<1xf32>
    %1610 = vector.shape_cast %1609 : vector<1xf32> to vector<1x1xf32>
    %1611 = vector.broadcast %1610 : vector<1x1xf32> to vector<16x1xf32>
    %1612 = arith.subf %1608, %1611 : vector<16x1xf32>
    %1613 = math.exp %1612 : vector<16x1xf32>
    %1614 = arith.mulf %1613, %10 : vector<16x1xf32>
    %cst_572 = arith.constant dense<0.000000e+00> : vector<1xf32>
    %1615 = vector.multi_reduction <add>, %1614, %cst_572 [0] : vector<16x1xf32> to vector<1xf32>
    %1616 = vector.shape_cast %1615 : vector<1xf32> to vector<1x1xf32>
    %cst_573 = arith.constant 9.99999968E-21 : f32
    %1617 = vector.broadcast %cst_573 : f32 to vector<1x1xf32>
    %1618 = arith.maximumf %1616, %1617 : vector<1x1xf32>
    %1619 = tpu.reciprocal %1618 {approx = true} : vector<1x1xf32> -> vector<1x1xf32>
    %1620 = vector.broadcast %1619 : vector<1x1xf32> to vector<16x1xf32>
    %1621 = arith.mulf %1614, %1620 : vector<16x1xf32>
    %1622 = vector.broadcast %1621 : vector<16x1xf32> to vector<16x128xf32>
    %1623 = arith.mulf %1622, %1596 : vector<16x128xf32>
    %cst_574 = arith.constant dense<0.000000e+00> : vector<128xf32>
    %1624 = vector.multi_reduction <add>, %1623, %cst_574 [0] : vector<16x128xf32> to vector<128xf32>
    %1625 = vector.shape_cast %1624 : vector<128xf32> to vector<1x128xf32>
    %c0_575 = arith.constant 0 : index
    %c0_576 = arith.constant 0 : index
    %1626 = vector.load %arg43[%c0_575, %c0_576] : memref<1x128xf32, #tpu.memory_space<vmem>>, vector<1x128xf32>
    %1627 = arith.mulf %1625, %1626 : vector<1x128xf32>
    %cst_577 = arith.constant dense<0.000000e+00> : vector<1xf32>
    %1628 = vector.multi_reduction <add>, %1627, %cst_577 [1] : vector<1x128xf32> to vector<1xf32>
    %1629 = vector.shape_cast %1628 : vector<1xf32> to vector<1x1xf32>
    %c0_578 = arith.constant 0 : index
    %c0_579 = arith.constant 0 : index
    %1630 = vector.load %arg44[%c0_578, %c0_579] : memref<1x1xf32, #tpu.memory_space<vmem>>, vector<1x1xf32>
    %1631 = arith.addf %1629, %1630 : vector<1x1xf32>
    %1632 = tpu.concatenate %1413, %1595 in 1 : vector<1x1xf32>, vector<1x1xf32> -> vector<1x2xf32>
    %1633 = tpu.concatenate %1449, %1631 in 1 : vector<1x1xf32>, vector<1x1xf32> -> vector<1x2xf32>
    %1634 = tpu.concatenate %1632, %1633 in 0 : vector<1x2xf32>, vector<1x2xf32> -> vector<2x2xf32>
    %c0_580 = arith.constant 0 : index
    %c0_581 = arith.constant 0 : index
    %1635 = vector.load %arg45[%c0_580, %c0_581] : memref<2x2xf32, #tpu.memory_space<vmem>>, vector<2x2xf32>
    tpu.vector_store %arg45[%c0_580, %c0_581], %1634 {strides = array<i32>} : memref<2x2xf32, #tpu.memory_space<vmem>>, vector<2x2xf32>,
    return
  }
  func.func @transform_0(%arg0: i32, %arg1: memref<2xi32, #tpu.memory_space<smem>>) -> (i32, i32) {
    %c0_i32 = arith.constant 0 : i32
    %c0_i32_0 = arith.constant 0 : i32
    %c0_i32_1 = arith.constant 0 : i32
    return %c0_i32, %c0_i32_0 : i32, i32
  }
  func.func @transform_1(%arg0: i32, %arg1: memref<2xi32, #tpu.memory_space<smem>>) -> (i32, i32) {
    %c0_i32 = arith.constant 0 : i32
    %c0_i32_0 = arith.constant 0 : i32
    %c0_i32_1 = arith.constant 0 : i32
    return %c0_i32, %c0_i32_0 : i32, i32
  }
  func.func @transform_2(%arg0: i32, %arg1: memref<2xi32, #tpu.memory_space<smem>>) -> (i32, i32) {
    %c0_i32 = arith.constant 0 : i32
    %c0_i32_0 = arith.constant 0 : i32
    %c0_i32_1 = arith.constant 0 : i32
    return %c0_i32, %c0_i32_0 : i32, i32
  }
  func.func @transform_3(%arg0: i32, %arg1: memref<2xi32, #tpu.memory_space<smem>>) -> (i32, i32) {
    %c0_i32 = arith.constant 0 : i32
    %c0_i32_0 = arith.constant 0 : i32
    %c0_i32_1 = arith.constant 0 : i32
    return %c0_i32, %c0_i32_0 : i32, i32
  }
  func.func @transform_4(%arg0: i32, %arg1: memref<2xi32, #tpu.memory_space<smem>>) -> (i32, i32) {
    %c0_i32 = arith.constant 0 : i32
    %c0_i32_0 = arith.constant 0 : i32
    %c0_i32_1 = arith.constant 0 : i32
    return %c0_i32, %c0_i32_0 : i32, i32
  }
  func.func @transform_5(%arg0: i32, %arg1: memref<2xi32, #tpu.memory_space<smem>>) -> (i32, i32) {
    %c0_i32 = arith.constant 0 : i32
    %c0_i32_0 = arith.constant 0 : i32
    %c0_i32_1 = arith.constant 0 : i32
    return %c0_i32, %c0_i32_0 : i32, i32
  }
  func.func @transform_6(%arg0: i32, %arg1: memref<2xi32, #tpu.memory_space<smem>>) -> (i32, i32) {
    %c0_i32 = arith.constant 0 : i32
    %c0_i32_0 = arith.constant 0 : i32
    %c0_i32_1 = arith.constant 0 : i32
    return %c0_i32, %c0_i32_0 : i32, i32
  }
  func.func @transform_7(%arg0: i32, %arg1: memref<2xi32, #tpu.memory_space<smem>>) -> (i32, i32) {
    %c0_i32 = arith.constant 0 : i32
    %c0_i32_0 = arith.constant 0 : i32
    %c0_i32_1 = arith.constant 0 : i32
    return %c0_i32, %c0_i32_0 : i32, i32
  }
  func.func @transform_8(%arg0: i32, %arg1: memref<2xi32, #tpu.memory_space<smem>>) -> (i32, i32) {
    %c0_i32 = arith.constant 0 : i32
    %c0_i32_0 = arith.constant 0 : i32
    %c0_i32_1 = arith.constant 0 : i32
    return %c0_i32, %c0_i32_0 : i32, i32
  }
  func.func @transform_9(%arg0: i32, %arg1: memref<2xi32, #tpu.memory_space<smem>>) -> (i32, i32) {
    %c0_i32 = arith.constant 0 : i32
    %c0_i32_0 = arith.constant 0 : i32
    %c0_i32_1 = arith.constant 0 : i32
    return %c0_i32, %c0_i32_0 : i32, i32
  }
  func.func @transform_10(%arg0: i32, %arg1: memref<2xi32, #tpu.memory_space<smem>>) -> (i32, i32) {
    %c0_i32 = arith.constant 0 : i32
    %c0_i32_0 = arith.constant 0 : i32
    %c0_i32_1 = arith.constant 0 : i32
    return %c0_i32, %c0_i32_0 : i32, i32
  }
  func.func @transform_11(%arg0: i32, %arg1: memref<2xi32, #tpu.memory_space<smem>>) -> (i32, i32) {
    %c0_i32 = arith.constant 0 : i32
    %c0_i32_0 = arith.constant 0 : i32
    %c0_i32_1 = arith.constant 0 : i32
    return %c0_i32, %c0_i32_0 : i32, i32
  }
  func.func @transform_12(%arg0: i32, %arg1: memref<2xi32, #tpu.memory_space<smem>>) -> (i32, i32) {
    %c0_i32 = arith.constant 0 : i32
    %c0_i32_0 = arith.constant 0 : i32
    %c0_i32_1 = arith.constant 0 : i32
    return %c0_i32, %c0_i32_0 : i32, i32
  }
  func.func @transform_13(%arg0: i32, %arg1: memref<2xi32, #tpu.memory_space<smem>>) -> (i32, i32) {
    %c0_i32 = arith.constant 0 : i32
    %c0_i32_0 = arith.constant 0 : i32
    %c0_i32_1 = arith.constant 0 : i32
    return %c0_i32, %c0_i32_0 : i32, i32
  }
  func.func @transform_14(%arg0: i32, %arg1: memref<2xi32, #tpu.memory_space<smem>>) -> (i32, i32) {
    %c0_i32 = arith.constant 0 : i32
    %c0_i32_0 = arith.constant 0 : i32
    %c0_i32_1 = arith.constant 0 : i32
    return %c0_i32, %c0_i32_0 : i32, i32
  }
  func.func @transform_15(%arg0: i32, %arg1: memref<2xi32, #tpu.memory_space<smem>>) -> (i32, i32) {
    %c0_i32 = arith.constant 0 : i32
    %c0_i32_0 = arith.constant 0 : i32
    %c0_i32_1 = arith.constant 0 : i32
    return %c0_i32, %c0_i32_0 : i32, i32
  }
  func.func @transform_16(%arg0: i32, %arg1: memref<2xi32, #tpu.memory_space<smem>>) -> (i32, i32) {
    %c0_i32 = arith.constant 0 : i32
    %c0_i32_0 = arith.constant 0 : i32
    %c0_i32_1 = arith.constant 0 : i32
    return %c0_i32, %c0_i32_0 : i32, i32
  }
  func.func @transform_17(%arg0: i32, %arg1: memref<2xi32, #tpu.memory_space<smem>>) -> (i32, i32) {
    %c0_i32 = arith.constant 0 : i32
    %c0_i32_0 = arith.constant 0 : i32
    %c0_i32_1 = arith.constant 0 : i32
    return %c0_i32, %c0_i32_0 : i32, i32
  }
  func.func @transform_18(%arg0: i32, %arg1: memref<2xi32, #tpu.memory_space<smem>>) -> (i32, i32) {
    %c0_i32 = arith.constant 0 : i32
    %c0_i32_0 = arith.constant 0 : i32
    %c0_i32_1 = arith.constant 0 : i32
    return %c0_i32, %c0_i32_0 : i32, i32
  }
  func.func @transform_19(%arg0: i32, %arg1: memref<2xi32, #tpu.memory_space<smem>>) -> (i32, i32) {
    %c0_i32 = arith.constant 0 : i32
    %c0_i32_0 = arith.constant 0 : i32
    %c0_i32_1 = arith.constant 0 : i32
    return %c0_i32, %c0_i32_0 : i32, i32
  }
  func.func @transform_20(%arg0: i32, %arg1: memref<2xi32, #tpu.memory_space<smem>>) -> (i32, i32) {
    %c0_i32 = arith.constant 0 : i32
    %c0_i32_0 = arith.constant 0 : i32
    %c0_i32_1 = arith.constant 0 : i32
    return %c0_i32, %c0_i32_0 : i32, i32
  }
  func.func @transform_21(%arg0: i32, %arg1: memref<2xi32, #tpu.memory_space<smem>>) -> (i32, i32) {
    %c0_i32 = arith.constant 0 : i32
    %c0_i32_0 = arith.constant 0 : i32
    %c0_i32_1 = arith.constant 0 : i32
    return %c0_i32, %c0_i32_0 : i32, i32
  }
  func.func @transform_22(%arg0: i32, %arg1: memref<2xi32, #tpu.memory_space<smem>>) -> (i32, i32) {
    %c0_i32 = arith.constant 0 : i32
    %c0_i32_0 = arith.constant 0 : i32
    %c0_i32_1 = arith.constant 0 : i32
    return %c0_i32, %c0_i32_0 : i32, i32
  }
  func.func @transform_23(%arg0: i32, %arg1: memref<2xi32, #tpu.memory_space<smem>>) -> (i32, i32) {
    %c0_i32 = arith.constant 0 : i32
    %c0_i32_0 = arith.constant 0 : i32
    %c0_i32_1 = arith.constant 0 : i32
    return %c0_i32, %c0_i32_0 : i32, i32
  }
  func.func @transform_24(%arg0: i32, %arg1: memref<2xi32, #tpu.memory_space<smem>>) -> (i32, i32) {
    %c0_i32 = arith.constant 0 : i32
    %c0_i32_0 = arith.constant 0 : i32
    %c0_i32_1 = arith.constant 0 : i32
    return %c0_i32, %c0_i32_0 : i32, i32
  }
  func.func @transform_25(%arg0: i32, %arg1: memref<2xi32, #tpu.memory_space<smem>>) -> (i32, i32) {
    %c0_i32 = arith.constant 0 : i32
    %c0_i32_0 = arith.constant 0 : i32
    %c0_i32_1 = arith.constant 0 : i32
    return %c0_i32, %c0_i32_0 : i32, i32
  }
  func.func @transform_26(%arg0: i32, %arg1: memref<2xi32, #tpu.memory_space<smem>>) -> (i32, i32) {
    %c0_i32 = arith.constant 0 : i32
    %c0_i32_0 = arith.constant 0 : i32
    %c0_i32_1 = arith.constant 0 : i32
    return %c0_i32, %c0_i32_0 : i32, i32
  }
  func.func @transform_27(%arg0: i32, %arg1: memref<2xi32, #tpu.memory_space<smem>>) -> (i32, i32) {
    %c0_i32 = arith.constant 0 : i32
    %c0_i32_0 = arith.constant 0 : i32
    %c0_i32_1 = arith.constant 0 : i32
    return %c0_i32, %c0_i32_0 : i32, i32
  }
  func.func @transform_28(%arg0: i32, %arg1: memref<2xi32, #tpu.memory_space<smem>>) -> (i32, i32) {
    %c0_i32 = arith.constant 0 : i32
    %c0_i32_0 = arith.constant 0 : i32
    %c0_i32_1 = arith.constant 0 : i32
    return %c0_i32, %c0_i32_0 : i32, i32
  }
  func.func @transform_29(%arg0: i32, %arg1: memref<2xi32, #tpu.memory_space<smem>>) -> (i32, i32) {
    %c0_i32 = arith.constant 0 : i32
    %c0_i32_0 = arith.constant 0 : i32
    %c0_i32_1 = arith.constant 0 : i32
    return %c0_i32, %c0_i32_0 : i32, i32
  }
  func.func @transform_30(%arg0: i32, %arg1: memref<2xi32, #tpu.memory_space<smem>>) -> (i32, i32) {
    %c0_i32 = arith.constant 0 : i32
    %c0_i32_0 = arith.constant 0 : i32
    %c0_i32_1 = arith.constant 0 : i32
    return %c0_i32, %c0_i32_0 : i32, i32
  }
  func.func @transform_31(%arg0: i32, %arg1: memref<2xi32, #tpu.memory_space<smem>>) -> (i32, i32) {
    %c0_i32 = arith.constant 0 : i32
    %c0_i32_0 = arith.constant 0 : i32
    %c0_i32_1 = arith.constant 0 : i32
    return %c0_i32, %c0_i32_0 : i32, i32
  }
  func.func @transform_32(%arg0: i32, %arg1: memref<2xi32, #tpu.memory_space<smem>>) -> (i32, i32) {
    %c0_i32 = arith.constant 0 : i32
    %c0_i32_0 = arith.constant 0 : i32
    %c0_i32_1 = arith.constant 0 : i32
    return %c0_i32, %c0_i32_0 : i32, i32
  }
  func.func @transform_33(%arg0: i32, %arg1: memref<2xi32, #tpu.memory_space<smem>>) -> (i32, i32) {
    %c0_i32 = arith.constant 0 : i32
    %c0_i32_0 = arith.constant 0 : i32
    %c0_i32_1 = arith.constant 0 : i32
    return %c0_i32, %c0_i32_0 : i32, i32
  }
  func.func @transform_34(%arg0: i32, %arg1: memref<2xi32, #tpu.memory_space<smem>>) -> (i32, i32) {
    %c0_i32 = arith.constant 0 : i32
    %c0_i32_0 = arith.constant 0 : i32
    %c0_i32_1 = arith.constant 0 : i32
    return %c0_i32, %c0_i32_0 : i32, i32
  }
  func.func @transform_35(%arg0: i32, %arg1: memref<2xi32, #tpu.memory_space<smem>>) -> (i32, i32) {
    %c0_i32 = arith.constant 0 : i32
    %c0_i32_0 = arith.constant 0 : i32
    %c0_i32_1 = arith.constant 0 : i32
    return %c0_i32, %c0_i32_0 : i32, i32
  }
  func.func @transform_36(%arg0: i32, %arg1: memref<2xi32, #tpu.memory_space<smem>>) -> (i32, i32) {
    %c0_i32 = arith.constant 0 : i32
    %c0_i32_0 = arith.constant 0 : i32
    %c0_i32_1 = arith.constant 0 : i32
    return %c0_i32, %c0_i32_0 : i32, i32
  }
  func.func @transform_37(%arg0: i32, %arg1: memref<2xi32, #tpu.memory_space<smem>>) -> (i32, i32) {
    %c0_i32 = arith.constant 0 : i32
    %c0_i32_0 = arith.constant 0 : i32
    %c0_i32_1 = arith.constant 0 : i32
    return %c0_i32, %c0_i32_0 : i32, i32
  }
  func.func @transform_38(%arg0: i32, %arg1: memref<2xi32, #tpu.memory_space<smem>>) -> (i32, i32) {
    %c0_i32 = arith.constant 0 : i32
    %c0_i32_0 = arith.constant 0 : i32
    %c0_i32_1 = arith.constant 0 : i32
    return %c0_i32, %c0_i32_0 : i32, i32
  }
  func.func @transform_39(%arg0: i32, %arg1: memref<2xi32, #tpu.memory_space<smem>>) -> (i32, i32) {
    %c0_i32 = arith.constant 0 : i32
    %c0_i32_0 = arith.constant 0 : i32
    %c0_i32_1 = arith.constant 0 : i32
    return %c0_i32, %c0_i32_0 : i32, i32
  }
  func.func @transform_40(%arg0: i32, %arg1: memref<2xi32, #tpu.memory_space<smem>>) -> (i32, i32) {
    %c0_i32 = arith.constant 0 : i32
    %c0_i32_0 = arith.constant 0 : i32
    %c0_i32_1 = arith.constant 0 : i32
    return %c0_i32, %c0_i32_0 : i32, i32
  }
  func.func @transform_41(%arg0: i32, %arg1: memref<2xi32, #tpu.memory_space<smem>>) -> (i32, i32) {
    %c0_i32 = arith.constant 0 : i32
    %c0_i32_0 = arith.constant 0 : i32
    %c0_i32_1 = arith.constant 0 : i32
    return %c0_i32, %c0_i32_0 : i32, i32
  }
  func.func @transform_42(%arg0: i32, %arg1: memref<2xi32, #tpu.memory_space<smem>>) -> (i32, i32) {
    %c0_i32 = arith.constant 0 : i32
    %c0_i32_0 = arith.constant 0 : i32
    %c0_i32_1 = arith.constant 0 : i32
    return %c0_i32, %c0_i32_0 : i32, i32
  }
  func.func @transform_43(%arg0: i32, %arg1: memref<2xi32, #tpu.memory_space<smem>>) -> (i32, i32) {
    %c0_i32 = arith.constant 0 : i32
    %c0_i32_0 = arith.constant 0 : i32
    %c0_i32_1 = arith.constant 0 : i32
    return %c0_i32, %c0_i32_0 : i32, i32
  }
}

</mosaic_0001>

<bundles_post_ra>
// kernel: tpu_custom_call.1
= control target key start
LH: loop header
LB: loop body
LE: loop exit
PB: predicated region body
PF: predicated region fallthrough
CT: control target
= control target key end

     0   :  { %s10511_s6 = smov 1   ;;  %s10512_s10 = smov 2   ;;  %s12916_s0 = inlined_call_operand.smem [shape: u32[45], index: -1, kind: input, shape index: {}] }
   0x1   :  { %s10586_s5 = sld [smem:[%s12916_s0]]   ;;  %s10513_s14 = smov 3  }
   0x2   :  { %s10591_s9 = sld [smem:[%s12916_s0 + %s10511_s6]]   ;;  %s10514_s18 = smov 4  }
   0x3   :  { %s10596_s13 = sld [smem:[%s12916_s0 + %s10512_s10]]   ;;  %s10515_s22 = smov 5  }
   0x4   :  { %s10601_s17 = sld [smem:[%s12916_s0 + %s10513_s14]]   ;;  %s10516_s26 = smov 6  }
   0x5   :  { %s10606_s21 = sld [smem:[%s12916_s0 + %s10514_s18]]   ;;  %s10517_s30 = smov 7  }
   0x6   :  { %s10611_s25 = sld [smem:[%s12916_s0 + %s10515_s22]]   ;;  %s10518_s4 = smov 8  }
   0x7   :  { %s10616_s29 = sld [smem:[%s12916_s0 + %s10516_s26]]   ;;  %s10519_s10 = smov 9  }
   0x8   :  { %s10621_s3 = sld [smem:[%s12916_s0 + %s10517_s30]]   ;;  %s10520_s15 = smov 10  }
   0x9   :  { %s10626_s8 = sld [smem:[%s12916_s0 + %s10518_s4]]   ;;  %s10521_s20 = smov 11  }
   0xa   :  { %12925 = sst [smem:[#allocation40_spill]] %s10601_s17  ;;  %s10522_s26 = smov 12  }
   0xb   :  { %12926 = sst [smem:[#allocation41_spill]] %s10606_s21  ;;  %s10523_s1 = smov 13  }
   0xc   :  { %12927 = sst [smem:[#allocation42_spill]] %s10611_s25  ;;  %s10524_s7 = smov 14  }
   0xd   :  { %s10631_s14 = sld [smem:[%s12916_s0 + %s10519_s10]]   ;;  %s10526_s22 = smov 16  }
   0xe   :  { %12928 = sst [smem:[#allocation43_spill]] %s10621_s3  ;;  %s10527_s28 = smov 17  }
   0xf   :  { %s10636_s19 = sld [smem:[%s12916_s0 + %s10520_s15]]   ;;  %s10525_s15 = smov 15  }
  0x10   :  { %s10641_s24 = sld [smem:[%s12916_s0 + %s10521_s20]]  }
  0x11   :  { %s10646_s30 = sld [smem:[%s12916_s0 + %s10522_s26]]  }
  0x12   :  { %s10651_s6 = sld [smem:[%s12916_s0 + %s10523_s1]]  }
  0x13   :  { %12929 = sst [smem:[#allocation44_spill]] %s10631_s14 }
  0x14   :  { %s10656_s12 = sld [smem:[%s12916_s0 + %s10524_s7]]   ;;  %s10528_s7 = smov 18  }
  0x15   :  { %12930 = sst [smem:[#allocation45_spill]] %s10636_s19 }
  0x16   :  { %12931 = sst [smem:[#allocation46_spill]] %s10641_s24 }
  0x17   :  { %12932 = sst [smem:[#allocation47_spill]] %s10646_s30 }
  0x18   :  { %12933 = sst [smem:[#allocation48_spill]] %s10651_s6 }
  0x19   :  { %s10661_s20 = sld [smem:[%s12916_s0 + %s10525_s15]]   ;;  %s10529_s15 = smov 19  }
  0x1a   :  { %s10666_s27 = sld [smem:[%s12916_s0 + %s10526_s22]]   ;;  %s10530_s22 = smov 20  }
  0x1b   :  { %s10671_s4 = sld [smem:[%s12916_s0 + %s10527_s28]]   ;;  %s10531_s28 = smov 21  }
  0x1c   :  { %s10676_s6 = sld [smem:[%s12916_s0 + %s10528_s7]]   ;;  %s10532_s7 = smov 22  }
  0x1d   :  { %s10686_s24 = sld [smem:[%s12916_s0 + %s10530_s22]]   ;;  %s10534_s22 = smov 24  }
  0x1e   :  { %s10691_s14 = sld [smem:[%s12916_s0 + %s10531_s28]]   ;;  %s10535_s28 = smov 25  }
  0x1f   :  { %12934 = sst [smem:[#allocation49_spill]] %s10661_s20 }
  0x20   :  { %s10681_s20 = sld [smem:[%s12916_s0 + %s10529_s15]]   ;;  %s10533_s15 = smov 23  }
  0x21   :  { %s10696_s3 = sld [smem:[%s12916_s0 + %s10532_s7]]   ;;  %s10536_s7 = smov 26  }
  0x22   :  { %s10701_s25 = sld [smem:[%s12916_s0 + %s10533_s15]]   ;;  %s10537_s15 = smov 27  }
  0x23   :  { %12935 = sst [smem:[#allocation50_spill]] %s10686_s24 }
  0x24   :  { %s10706_s24 = sld [smem:[%s12916_s0 + %s10534_s22]]   ;;  %s10538_s22 = smov 28  }
  0x25   :  { %s10711_s21 = sld [smem:[%s12916_s0 + %s10535_s28]]   ;;  %s10539_s28 = smov 30  }
  0x26   :  { %s10726_s30 = sld [smem:[%s12916_s0 + %s10538_s22]]   ;;  %s10542_s22 = smov 34  }
  0x27   :  { %12936 = sst [smem:[#allocation51_spill]] %s10696_s3 }
  0x28   :  { %12937 = sst [smem:[#allocation52_spill]] %s10701_s25 }
  0x29   :  { %s10716_s3 = sld [smem:[%s12916_s0 + %s10536_s7]]   ;;  %s10540_s7 = smov 32  }
  0x2a   :  { %s10721_s25 = sld [smem:[%s12916_s0 + %s10537_s15]]   ;;  %s10541_s15 = smov 33  }
  0x2b   :  { %12938 = sst [smem:[#allocation53_spill]] %s10711_s21 }
  0x2c   :  { %12941 = sst [smem:[#allocation56_spill]] %s10726_s30  ;;  %s10546_s30 = smov 38  }
  0x2d   :  { %s10731_s21 = sld [smem:[%s12916_s0 + %s10539_s28]]   ;;  %s10543_s28 = smov 35  }
  0x2e   :  { %s10741_s23 = sld [smem:[%s12916_s0 + %s10541_s15]]   ;;  %s10545_s15 = smov 37  }
  0x2f   :  { %12939 = sst [smem:[#allocation54_spill]] %s10716_s3 }
  0x30   :  { %12940 = sst [smem:[#allocation55_spill]] %s10721_s25  ;;  %s10548_s25 = smov 40  }
  0x31   :  { %s10736_s3 = sld [smem:[%s12916_s0 + %s10540_s7]]   ;;  %s10544_s7 = smov 36  }
  0x32   :  { %s10746_s1 = sld [smem:[%s12916_s0 + %s10542_s22]]  }
  0x33   :  { %12942 = sst [smem:[#allocation57_spill]] %s10731_s21  ;;  %s10547_s21 = smov 39  }
  0x34   :  { %12943 = sst [smem:[#allocation58_spill]] %s10741_s23  ;;  %s94_s23 = sshll.u32 %s10586_s5, 4  ;;  %s95_s23 = int_to_ptr.vmem [resolvable:$true] %s94_s23 }
  0x35   :  { %s10751_s10 = sld [smem:[%s12916_s0 + %s10543_s28]]   ;;  %s10243_s28 = scalar_lea.vmem %s95_s23, 16 }
  0x36   :  { %s10756_s16 = sld [smem:[%s12916_s0 + %s10544_s7]]   ;;  %p10244_p0 = scmp.ne.s32.totalorder %s95_s23, %s10243_s28 }
  0x37   :  { %s10761_s19 = sld [smem:[%s12916_s0 + %s10545_s15]]   ;;  %s10549_s15 = smov 42  }
  0x38   :  { %12944 = sst [smem:[#allocation59_spill]] %s10746_s1  ;;  %p10248_p1 = scmp.lt.s32.totalorder %s95_s23, %s95_s23 }
  0x39   :  { %s10766_s1 = sld [smem:[%s12916_s0 + %s10546_s30]]   ;;  %s10550_s30 = smov 44  }
  0x3a   :  { %s10776_s17 = sld [smem:[%s12916_s0 + %s10548_s25]]   ;;  %p10249_p2 = scmp.lt.s32.totalorder %s10243_s28, %s10243_s28 }
  0x3b   :  { %12945 = sst [smem:[#allocation60_spill]] %s10751_s10 }
  0x3c   :  { %s10771_s10 = sld [smem:[%s12916_s0 + %s10547_s21]]   ;;  %p10250_p3 = por %p10249_p2, %p10248_p1 }
  0x3d   :  { %12946 = sst [smem:[#allocation61_spill]] %s10761_s19 }
  0x3e   :  { %s10782_s22 = sld [smem:[%s12916_s0 + %s10549_s15]]   ;;  %p10251_p4 = pnand %p10250_p3, %p10244_p0 }
  0x3f   :  { %12947 = sst [smem:[#allocation62_spill]] %s10766_s1 }
  0x40   :  { %12949 = sst [smem:[#allocation64_spill]] %s10776_s17 }
  0x41   :  { %s10787_s21 = sld [smem:[%s12916_s0 + %s10550_s30]]  }
  0x42   :  { %12948 = sst [smem:[#allocation63_spill]] %s10771_s10 }
  0x44   :  { %12950 = sst [smem:[#allocation65_spill]] %s10782_s22 }
  0x47   :  { %12951 = sst [smem:[#allocation66_spill]] %s10787_s21 }
  0x48   :  { %10254 = shalt.err (!%p10251_p4)  }
  0x49   :  { %s10551_s5 = smov [#allocation8]   ;;  %s10552_s2 = smov 29  }
  0x4a   :  { %97 = dma.vmem_to_smem %s95_s23, 16, %s10551_s5, [#allocation7] }
  0x4b   :  { %s8399_s7 = sld [smem:[%s12916_s0 + %s10552_s2]]   ;;  %s10553_s11 = smov 31  }
  0x4c   :  { %s8401_s1 = sld [smem:[%s12916_s0 + %s10553_s11]]   ;;  %s10554_s30 = smov 41  }
  0x4d   :  { %s8411_s28 = sld [smem:[%s12916_s0 + %s10554_s30]]   ;;  %s10555_s22 = smov 43  }
  0x4e   :  { %s8413_s23 = sld [smem:[%s12916_s0 + %s10555_s22]]  }
  0x51   :  { %v98_v0 = vstv %s8399_s7 }
  0x52   :  { %99 = vst [vmem:[#allocation9] sm:$0x1] %v98_v0  ;;  %v100_v1 = vstv %s8401_s1 }
  0x53   :  { %101 = vst [vmem:[#allocation10] sm:$0x1] %v100_v1  ;;  %v102_v2 = vstv %s8411_s28 }
  0x54   :  { %103 = vst [vmem:[#allocation11] sm:$0x1] %v102_v2  ;;  %v104_v3 = vstv %s8413_s23 }
  0x55   :  { %105 = vst [vmem:[#allocation12] sm:$0x1] %v104_v3 }
  0x56   :  { %10495 = dma.done.wait [#allocation7], 16 }
  0x57   :  { %10496 = vsyncadd [#allocation7], 4294967280 }
  0x58   :  { %107 = sfence }
  0x59   :  { %108 = vsyncpa [#allocation14], 0 }
  0x5a   :  { %109 = vsyncpa [#allocation17], 0 }
  0x5b   :  { %110 = vsyncpa [#allocation20], 0 }
  0x5c   :  { %111 = vsyncpa [#allocation23], 0 }
  0x5d   :  { %112 = vsyncpa [#allocation26], 0 }
  0x5e   :  { %113 = vsyncpa [#allocation29], 0 }
  0x5f   :  { %114 = vsyncpa [#allocation15], 0  ;;  %s10556_s17 = smov [#allocation16]   ;;  %s10557_s10 = smov [#allocation19]  }
  0x60   :  { %s144_s0 = sshll.u32 %s10556_s17, 4  ;;  %s180_s22 = sshll.u32 %s10557_s10, 4  ;;  %s145_s0 = int_to_ptr.vmem [resolvable:$true] %s144_s0  ;;  %s181_s22 = int_to_ptr.vmem [resolvable:$true] %s180_s22 }
  0x61   :  { %s10263_s21 = scalar_lea.vmem %s145_s0, 512  ;;  %p10268_p6 = scmp.lt.s32.totalorder %s145_s0, %s145_s0 }
  0x62   :  { %p10264_p5 = scmp.ne.s32.totalorder %s145_s0, %s10263_s21  ;;  %p10269_p7 = scmp.lt.s32.totalorder %s10263_s21, %s10263_s21 }
  0x64   :  { %p10270_p8 = por %p10269_p7, %p10268_p6 }
  0x66   :  { %p10271_p9 = pnand %p10270_p8, %p10264_p5 }
  0x68   :  { %10274 = shalt.err (!%p10271_p9)
}
  0x69   :  { %s10558_s5 = smov 64   ;;  %s10559_s2 = smov 4  }
  0x6a   :  { %150 = dma.hbm_to_vmem [thread:$0]  %s10626_s8, 512, %s145_s0, [#allocation17], %s10558_s5, %s10558_s5, %s10559_s2  }
  0x6b   :  { %s10283_s19 = scalar_lea.vmem %s181_s22, 5120  ;;  %p10288_p11 = scmp.lt.s32.totalorder %s181_s22, %s181_s22 }
  0x6c   :  { %p10284_p10 = scmp.ne.s32.totalorder %s181_s22, %s10283_s19  ;;  %p10289_p12 = scmp.lt.s32.totalorder %s10283_s19, %s10283_s19 }
  0x6e   :  { %p10290_p13 = por %p10289_p12, %p10288_p11 }
  0x70   :  { %p10291_p0 = pnand %p10290_p13, %p10284_p10 }
  0x72   :  { %10294 = shalt.err (!%p10291_p0)
}
  0x73   :  { %186 = dma.hbm_to_vmem [thread:$0]  %s10666_s27, 5120, %s181_s22, [#allocation20], %s10558_s5, %s10558_s5, %s10559_s2  }
  0x74   :  { %s10560_s25 = smov [#allocation22]   ;;  %s10561_s11 = smov [#allocation25]  }
  0x75   :  { %s203_s7 = sshll.u32 %s10560_s25, 4  ;;  %s225_s15 = sshll.u32 %s10561_s11, 4  ;;  %s204_s7 = int_to_ptr.vmem [resolvable:$true] %s203_s7  ;;  %s226_s15 = int_to_ptr.vmem [resolvable:$true] %s225_s15 }
  0x76   :  { %s10303_s18 = scalar_lea.vmem %s204_s7, 16  ;;  %s10307_s8 = scalar_lea.vmem %s204_s7, 32 }
  0x77   :  { %p10304_p1 = scmp.ne.s32.totalorder %s204_s7, %s10303_s18  ;;  %p10308_p2 = scmp.lt.s32.totalorder %s204_s7, %s204_s7 }
  0x78   :  { %p10309_p3 = scmp.lt.s32.totalorder %s10307_s8, %s10303_s18 }
  0x7a   :  { %p10310_p4 = por %p10309_p3, %p10308_p2 }
  0x7c   :  { %p10311_p5 = pnand %p10310_p4, %p10304_p1 }
  0x7e   :  { %10314 = shalt.err (!%p10311_p5)
}
  0x7f   :  { %206 = dma.hbm_to_vmem [thread:$0]  %s10676_s6, 16, %s204_s7, [#allocation23]  }
  0x80   :  { %s10323_s1 = scalar_lea.vmem %s226_s15, 16  ;;  %s10327_s30 = scalar_lea.vmem %s226_s15, 32 }
  0x81   :  { %p10324_p6 = scmp.ne.s32.totalorder %s226_s15, %s10323_s1  ;;  %p10328_p7 = scmp.lt.s32.totalorder %s226_s15, %s226_s15 }
  0x82   :  { %p10329_p8 = scmp.lt.s32.totalorder %s10327_s30, %s10323_s1 }
  0x84   :  { %p10330_p9 = por %p10329_p8, %p10328_p7 }
  0x86   :  { %p10331_p10 = pnand %p10330_p9, %p10324_p6 }
  0x88   :  { %10334 = shalt.err (!%p10331_p10)
}
  0x89   :  { %228 = dma.hbm_to_vmem [thread:$0]  %s10691_s14, 16, %s226_s15, [#allocation26]  }
  0x8a   :  { %s10562_s27 = smov [#allocation28]   ;;  %s10563_s28 = smov [#allocation13]  }
  0x8b   :  { %s264_s26 = sshll.u32 %s10562_s27, 4  ;;  %s122_s23 = sshll.u32 %s10563_s28, 4  ;;  %s265_s26 = int_to_ptr.vmem [resolvable:$true] %s264_s26  ;;  %s123_s23 = int_to_ptr.vmem [resolvable:$true] %s122_s23 }
  0x8c   :  { %s10343_s17 = scalar_lea.vmem %s265_s26, 7168  ;;  %p10348_p12 = scmp.lt.s32.totalorder %s265_s26, %s265_s26 }
  0x8d   :  { %p10344_p11 = scmp.ne.s32.totalorder %s265_s26, %s10343_s17  ;;  %p10349_p13 = scmp.lt.s32.totalorder %s10343_s17, %s10343_s17 }
  0x8f   :  { %p10350_p0 = por %p10349_p13, %p10348_p12 }
  0x91   :  { %p10351_p1 = pnand %p10350_p0, %p10344_p11 }
  0x93   :  { %10354 = shalt.err (!%p10351_p1)
}
  0x94   :  { %270 = dma.hbm_to_vmem [thread:$0]  %s10736_s3, 7168, %s265_s26, [#allocation29], %s10558_s5, %s10558_s5, %s10559_s2  }
  0x95   :  { %s10363_s6 = scalar_lea.vmem %s123_s23, 256  ;;  %p10368_p3 = scmp.lt.s32.totalorder %s123_s23, %s123_s23 }
  0x96   :  { %p10364_p2 = scmp.ne.s32.totalorder %s123_s23, %s10363_s6  ;;  %p10369_p4 = scmp.lt.s32.totalorder %s10363_s6, %s10363_s6 }
  0x98   :  { %p10370_p5 = por %p10369_p4, %p10368_p3 }
  0x9a   :  { %p10371_p6 = pnand %p10370_p5, %p10364_p2 }
  0x9c   :  { %10374 = shalt.err (!%p10371_p6)
}
  0x9d   :  { %128 = dma.hbm_to_vmem [thread:$0]  %s10596_s13, 256, %s123_s23, [#allocation14], %s10558_s5, %s10558_s5, %s10559_s2  }
  0x9e   :  { %s10564_s14 = smov [#allocation18]   ;;  %s10565_s10 = smov [#allocation21]  }
  0x9f   :  { %s166_s0 = sshll.u32 %s10564_s14, 4  ;;  %s193_s22 = sshll.u32 %s10565_s10, 4  ;;  %s167_s0 = int_to_ptr.vmem [resolvable:$true] %s166_s0  ;;  %s194_s22 = int_to_ptr.vmem [resolvable:$true] %s193_s22 }
  0xa0   :  { %s10383_s21 = scalar_lea.vmem %s167_s0, 512  ;;  %p10388_p8 = scmp.lt.s32.totalorder %s167_s0, %s167_s0 }
  0xa1   :  { %p10384_p7 = scmp.ne.s32.totalorder %s167_s0, %s10383_s21  ;;  %p10389_p9 = scmp.lt.s32.totalorder %s10383_s21, %s10383_s21 }
  0xa3   :  { %p10390_p10 = por %p10389_p9, %p10388_p8 }
  0xa5   :  { %p10391_p11 = pnand %p10390_p10, %p10384_p7 }
  0xa7   :  { %10394 = shalt.err (!%p10391_p11)
}
  0xa8   :  { %172 = dma.hbm_to_vmem [thread:$0]  %s10656_s12, 512, %s167_s0, [#allocation17], %s10558_s5, %s10558_s5, %s10559_s2  }
  0xa9   :  { %s10403_s3 = scalar_lea.vmem %s194_s22, 16  ;;  %s10407_s13 = scalar_lea.vmem %s194_s22, 32 }
  0xaa   :  { %p10404_p12 = scmp.ne.s32.totalorder %s194_s22, %s10403_s3  ;;  %p10408_p13 = scmp.lt.s32.totalorder %s194_s22, %s194_s22 }
  0xab   :  { %p10409_p0 = scmp.lt.s32.totalorder %s10407_s13, %s10403_s3 }
  0xad   :  { %p10410_p1 = por %p10409_p0, %p10408_p13 }
  0xaf   :  { %p10411_p2 = pnand %p10410_p1, %p10404_p12 }
  0xb1   :  { %10414 = shalt.err (!%p10411_p2)
}
  0xb2   :  { %196 = dma.hbm_to_vmem [thread:$0]  %s10671_s4, 16, %s194_s22, [#allocation20]  }
  0xb3   :  { %s10566_s19 = smov [#allocation24]   ;;  %s10567_s7 = smov [#allocation27]  }
  0xb4   :  { %s213_s25 = sshll.u32 %s10566_s19, 4  ;;  %s238_s11 = sshll.u32 %s10567_s7, 4  ;;  %s214_s25 = int_to_ptr.vmem [resolvable:$true] %s213_s25  ;;  %s239_s11 = int_to_ptr.vmem [resolvable:$true] %s238_s11 }
  0xb5   :  { %s10423_s15 = scalar_lea.vmem %s214_s25, 16  ;;  %s10427_s18 = scalar_lea.vmem %s214_s25, 32 }
  0xb6   :  { %p10424_p3 = scmp.ne.s32.totalorder %s214_s25, %s10423_s15  ;;  %p10428_p4 = scmp.lt.s32.totalorder %s214_s25, %s214_s25 }
  0xb7   :  { %p10429_p5 = scmp.lt.s32.totalorder %s10427_s18, %s10423_s15 }
  0xb9   :  { %p10430_p6 = por %p10429_p5, %p10428_p4 }
  0xbb   :  { %p10431_p7 = pnand %p10430_p6, %p10424_p3 }
  0xbd   :  { %10434 = shalt.err (!%p10431_p7)
}
  0xbe   :  { %216 = dma.hbm_to_vmem [thread:$0]  %s10681_s20, 16, %s214_s25, [#allocation23]  }
  0xbf   :  { %s10443_s12 = scalar_lea.vmem %s239_s11, 3072  ;;  %p10448_p9 = scmp.lt.s32.totalorder %s239_s11, %s239_s11 }
  0xc0   :  { %p10444_p8 = scmp.ne.s32.totalorder %s239_s11, %s10443_s12  ;;  %p10449_p10 = scmp.lt.s32.totalorder %s10443_s12, %s10443_s12 }
  0xc2   :  { %p10450_p11 = por %p10449_p10, %p10448_p9 }
  0xc4   :  { %p10451_p12 = pnand %p10450_p11, %p10444_p8 }
  0xc6   :  { %10454 = shalt.err (!%p10451_p12)
}
  0xc7   :  { %244 = dma.hbm_to_vmem [thread:$0]  %s10706_s24, 3072, %s239_s11, [#allocation26], %s10558_s5, %s10558_s5, %s10559_s2  }
  0xc8   :  { %s10568_s4 = smov [#allocation30]  }
  0xc9   :  { %s282_s8 = sshll.u32 %s10568_s4, 4  ;;  %s283_s8 = int_to_ptr.vmem [resolvable:$true] %s282_s8 }
  0xca   :  { %s10463_s1 = scalar_lea.vmem %s283_s8, 9216  ;;  %p10468_p0 = scmp.lt.s32.totalorder %s283_s8, %s283_s8 }
  0xcb   :  { %p10464_p13 = scmp.ne.s32.totalorder %s283_s8, %s10463_s1  ;;  %p10469_p1 = scmp.lt.s32.totalorder %s10463_s1, %s10463_s1 }
  0xcd   :  { %p10470_p2 = por %p10469_p1, %p10468_p0 }
  0xcf   :  { %p10471_p3 = pnand %p10470_p2, %p10464_p13 }
  0xd1   :  { %10474 = shalt.err (!%p10471_p3)
}
  0xd2   :  { %288 = dma.hbm_to_vmem [thread:$0]  %s10756_s16, 9216, %s283_s8, [#allocation29], %s10558_s5, %s10558_s5, %s10559_s2  }
  0xd3   :  { %10497 = dma.done.wait [#allocation14], 256  }
  0xd4   :  { %10498 = vsyncadd [#allocation14], 4294967040 }
  0xd5   :  { %10499 = dma.done.wait [#allocation17], 1024  }
  0xd6   :  { %10500 = vsyncadd [#allocation17], 4294966272 }
  0xd7   :  { %10501 = dma.done.wait [#allocation20], 5136  }
  0xd8   :  { %10502 = vsyncadd [#allocation20], 4294962160 }
  0xd9   :  { %10503 = dma.done.wait [#allocation23], 32  }
  0xda   :  { %10504 = vsyncadd [#allocation23], 4294967264 }
  0xdb   :  { %10505 = dma.done.wait [#allocation26], 3088  }
  0xdc   :  { %10506 = vsyncadd [#allocation26], 4294964208 }
  0xdd   :  { %10507 = dma.done.wait [#allocation29], 16384  }
  0xde   :  { %10508 = vsyncadd [#allocation29], 4294950912  ;;  %v12923_v4 = vmov 0.0   ;;  %vm10570_vm0 = vmmov 0   ;;  %v10571_v5 = vmov 0   ;;  %v9821_v6 = vld [vmem:[%s10616_s29 + $0x18] sm:$0xff]   ;;  %v337_v54 = vlaneseq }
  0xdf   :  { %9304 = vmatprep.subr.bf16.mxu1 %v12923_v4  ;;  %9312 = vmatprep.mubr.msk.bf16.mxu1 %vm10570_vm0, %v12923_v4  ;;  %v9822_v7 = vld [vmem:[#allocation16 + $0x18] sm:$0xff]   ;;  %v9824_v9 = vld [vmem:[#allocation16 + $0x10] sm:$0xff]   ;;  %v9826_v11 = vld [vmem:[#allocation16 + $0x8] sm:$0xff]   ;;  %vm580_vm1 = vcmask 523264   ;;  %s12952_s24 = sld [smem:[#allocation40_spill]]  ;;  %v1516_v39 = vrot.slane %v12923_v4, 6 }
  0xe0   :  { %9799 = vset.pattern.permute.xlu0 %v10571_v5  ;;  %9800 = vset.pattern.permute.xlu1 %v10571_v5  ;;  %v9823_v8 = vld [vmem:[%s10616_s29 + $0x10] sm:$0xff]   ;;  %v9825_v10 = vld [vmem:[%s10616_s29 + $0x8] sm:$0xff]   ;;  %s12953_s20 = sld [smem:[#allocation45_spill]]  ;;  %v9827_v13 = vld [vmem:[%s10616_s29] sm:$0xff]   ;;  %vm1518_vm2 = vcmask 1041408   ;;  %v10938_v0 = vshrl.u32 %v337_v54, 7 }
  0xe1   :  { %9292 = vmatprep.subr.bf16.mxu0 %v9821_v6  ;;  %9305 = vmatpush3.bf16.msra.mxu1 %v9822_v7  ;;  %v9828_v12 = vld [vmem:[#allocation13] sm:$0xff]   ;;  %v490_v15 = vld [vmem:[%s10591_s9 + $0x10] sm:$0xff]  ;;  %v491_v21 = vld [vmem:[%s10591_s9 + $0x18] sm:$0xff]  ;;  %v1519_v42 = vsel %vm1518_vm2, 0.0, %v1516_v39  ;;  %s12955_s29 = sld [smem:[#allocation41_spill]]  ;;  %vm1178_vm3 = vcmask 779264  }
  0xe2   :  { %9293 = vmatpush3.bf16.msra.mxu0 %v9821_v6  ;;  %9306 = vmatprep.subr.bf16.mxu1 %v12923_v4  ;;  %v488_v14 = vld [vmem:[%s10591_s9] sm:$0xff]  ;;  %v9829_v16 = vld [vmem:[#allocation16] sm:$0xff]   ;;  %v9830_v17 = vld [vmem:[#allocation13 + $0x8] sm:$0xff]   ;;  %s12956_s16 = sld [smem:[#allocation42_spill]]  ;;  %v10572_v56 = vmov 1983009808  }
  0xe3   :  { %9294 = vmatprep.subr.bf16.mxu0 %v9823_v8  ;;  %9300 = vmatprep.mubr.msk.bf16.mxu0 %vm580_vm1, %v9828_v12  ;;  %v489_v18 = vld [vmem:[%s10591_s9 + $0x8] sm:$0xff]  ;;  %s12954_s9 = sld [smem:[#allocation47_spill]]  ;;  %v741_v57 = vunpack.c.l.s4 %v10572_v56  ;;  %s10573_s28 = smov 32   ;;  %vm356_vm5 = vcmask 7168   ;;  %vm1463_vm7 = vcmask 261120   ;;  %vm471_vm10 = vcmask 1024  }
  0xe4   :  { %495 = vperm.xlu0 %9799, %v488_v14   ;;  %505 = vperm.xlu1 %9800, %v490_v15   ;;  %s12957_s2 = sld [smem:[#allocation43_spill]]  ;;  %s10574_s6 = smov 96  }
  0xe5   :  { %9307 = vmatpush3.bf16.msra.mxu1 %v9824_v9  ;;  %v651_v19 = vld [vmem:[%s12952_s24] sm:$0x1]  ;;  %s12958_s30 = sld [smem:[#allocation44_spill]]  ;;  %v742_v2 = vunpack.c.0.s8 %v741_v57  ;;  %s10576_s1 = smov 1  }
  0xe6   :  { %9295 = vmatpush3.bf16.msra.mxu0 %v9823_v8  ;;  %9308 = vmatprep.subr.bf16.mxu1 %v12923_v4  ;;  %v9833_v20 = vld [vmem:[%s12953_s20 + $0x74] ss:$8 sps:$4 sm:$0xff]   ;;  %v9831_v22 = vld [vmem:[%s12953_s20 + $0x70] ss:$8 sps:$4 sm:$0xff]   ;;  %v9836_v23 = vld [vmem:[%s12953_s20 + $0x64] ss:$8 sps:$4 sm:$0xff]  }
  0xe7   :  { %9296 = vmatprep.subr.bf16.mxu0 %v9825_v10  ;;  %v9834_v24 = vld [vmem:[%s12953_s20 + $0x60] ss:$8 sps:$4 sm:$0xff]   ;;  %v9839_v25 = vld [vmem:[%s12953_s20 + $0x54] ss:$8 sps:$4 sm:$0xff]   ;;  %v9837_v26 = vld [vmem:[%s12953_s20 + $0x50] ss:$8 sps:$4 sm:$0xff]   ;;  %v10942_v14 = vsub.s32 %v742_v2, %v10938_v0 }
  0xe8   :  { %500 = vperm.xlu0 %9799, %v489_v18   ;;  %510 = vperm.xlu1 %9800, %v491_v21   ;;  %v9842_v27 = vld [vmem:[%s12953_s20 + $0x44] ss:$8 sps:$4 sm:$0xff]   ;;  %v9840_v28 = vld [vmem:[%s12953_s20 + $0x40] ss:$8 sps:$4 sm:$0xff]   ;;  %v9845_v29 = vld [vmem:[%s12953_s20 + $0x34] ss:$8 sps:$4 sm:$0xff]  }
  0xe9   :  { %9309 = vmatpush3.bf16.msra.mxu1 %v9826_v11  ;;  %v9843_v30 = vld [vmem:[%s12953_s20 + $0x30] ss:$8 sps:$4 sm:$0xff]   ;;  %v9848_v31 = vld [vmem:[%s12953_s20 + $0x24] ss:$8 sps:$4 sm:$0xff]   ;;  %v9846_v32 = vld [vmem:[%s12953_s20 + $0x20] ss:$8 sps:$4 sm:$0xff]  }
  0xea   :  { %9297 = vmatpush3.bf16.msra.mxu0 %v9825_v10  ;;  %9310 = vmatprep.subr.bf16.mxu1 %v12923_v4  ;;  %v9851_v33 = vld [vmem:[%s12953_s20 + $0x14] ss:$8 sps:$4 sm:$0xff]   ;;  %v9849_v34 = vld [vmem:[%s12953_s20 + $0x10] ss:$8 sps:$4 sm:$0xff]   ;;  %v9852_v35 = vld [vmem:[%s12953_s20] ss:$8 sps:$4 sm:$0xff]  }
  0xeb   :  { %9298 = vmatprep.subr.bf16.mxu0 %v9827_v13  ;;  %v9854_v36 = vld [vmem:[%s12953_s20 + $0x4] ss:$8 sps:$4 sm:$0xff]   ;;  %v10875_v37 = vld [vmem:[%s12954_s9 + $0x38] sm:$0xff]  ;;  %v10878_v38 = vld [vmem:[%s12954_s9 + $0x30] sm:$0xff]  ;;  %s12959_s27 = sld [smem:[#allocation46_spill]]  ;;  %s10577_s24 = smov [#allocation31]  }
  0xec   :  { %v10884_v40 = vld [vmem:[%s12954_s9 + $0x28] sm:$0xff]  ;;  %v10887_v41 = vld [vmem:[%s12954_s9 + $0x20] sm:$0xff]  ;;  %v10893_v43 = vld [vmem:[%s12954_s9 + $0x18] sm:$0xff]  ;;  %s12960_s26 = sld [smem:[#allocation48_spill]]  ;;  %s8357_s20 = sshll.u32 %s10577_s24, 4  ;;  %s8358_s20 = int_to_ptr.vmem [resolvable:$true] %s8357_s20 }
  0xed   :  { %9311 = vmatpush3.bf16.msra.mxu1 %v9829_v16  ;;  %v10898_v44 = vld [vmem:[%s12954_s9 + $0x10] sm:$0xff]  ;;  %v10903_v45 = vld [vmem:[%s12954_s9 + $0x8] sm:$0xff]  ;;  %v10908_v46 = vld [vmem:[%s12954_s9] sm:$0xff]  ;;  %s340_s23 = sld [smem:[#allocation8]]  ;;  %p10480_p5 = scmp.lt.s32.totalorder %s8358_s20, %s8358_s20 }
  0xee   :  { %9299 = vmatpush3.bf16.msra.mxu0 %v9827_v13  ;;  %9316 = vmatprep.subr.mxu1 %v12923_v4  ;;  %v8420_v48 = vld [vmem:[%s12955_s29] ss:$0 sm:$0xff]  ;;  %s8417_s17 = sld [smem:[#allocation8 + $0x1]] }
  0xef   :  { %1037 = vmatprep.subr.bf16.mxu0 %v9833_v20  ;;  %v8421_v51 = vld [vmem:[%s12956_s16] ss:$0 sm:$0xff]  ;;  %s12971_s14 = sld [smem:[#allocation50_spill]] }
  0xf0   :  { %9313 = vmatmul.mubr.msk.bf16.vlgmr.msra.gmra.mxu1 %vm580_vm1, %v651_v19  ;;  %v8430_v62 = vld [vmem:[%s12957_s2] ss:$0 sm:$0xff]  ;;  %s12974_s0 = sld [smem:[#allocation51_spill]] }
  0xf1   :  { %9301 = vmatmul.mubr.msk.bf16.vlgmr.msra.gmra.mxu0 %vm580_vm1, %v9830_v17  ;;  %9332 = vmatprep.mubr.msk.f32.mxu1 %vm10570_vm0, %v12923_v4  ;;  %v8431_v11 = vld [vmem:[%s12958_s30] ss:$0 sm:$0xff]  ;;  %s12975_s10 = sld [smem:[#allocation52_spill]] }
  0xf2   :  { %1038 = vmatpush1.bf16.msra.mxu0 %v9831_v22  ;;  %1069 = vmatprep.mubr.bf16.mxu0 %v10571_v5  ;;  %s12988_s22 = sld [smem:[#allocation53_spill]] }
  0xf3   :  { %1039 = vmatprep.subr.bf16.mxu0 %v9836_v23  ;;  %9317 = vmatpush3.msra.mxu1 %v10875_v37  ;;  %s12993_s21 = sld [smem:[#allocation58_spill]] }
  0xf4   :  { %9318 = vmatprep.subr.mxu1 %v12923_v4  ;;  %s12994_s3 = sld [smem:[#allocation59_spill]] }
  0xf5   :  { %9319 = vmatpush3.msra.mxu1 %v10878_v38  ;;  %s12995_s13 = sld [smem:[#allocation60_spill]] }
  0xf6   :  { %1040 = vmatpush1.bf16.msra.mxu0 %v9834_v24  ;;  %9320 = vmatprep.subr.mxu1 %v12923_v4  ;;  %s13000_s19 = sld [smem:[#allocation61_spill]] }
  0xf7   :  { %1041 = vmatprep.subr.bf16.mxu0 %v9839_v25  ;;  %9321 = vmatpush3.msra.mxu1 %v10884_v40  ;;  %s13001_s25 = sld [smem:[#allocation62_spill]] }
  0xf8   :  { %9322 = vmatprep.subr.mxu1 %v12923_v4  ;;  %s13002_s7 = sld [smem:[#allocation63_spill]] }
  0xf9   :  { %9323 = vmatpush3.msra.mxu1 %v10887_v41  ;;  %s13003_s11 = sld [smem:[#allocation64_spill]] }
  0xfa   :  { %1042 = vmatpush1.bf16.msra.mxu0 %v9837_v26  ;;  %9324 = vmatprep.subr.mxu1 %v12923_v4  ;;  %s13004_s15 = sld [smem:[#allocation54_spill]] }
  0xfb   :  { %1043 = vmatprep.subr.bf16.mxu0 %v9842_v27  ;;  %9325 = vmatpush3.msra.mxu1 %v10893_v43  ;;  %s13005_s18 = sld [smem:[#allocation55_spill]] }
  0xfc   :  { %9326 = vmatprep.subr.mxu1 %v12923_v4  ;;  %s13006_s12 = sld [smem:[#allocation56_spill]] }
  0xfd   :  { %9327 = vmatpush3.msra.mxu1 %v10898_v44  ;;  %s13007_s4 = sld [smem:[#allocation65_spill]] }
  0xfe   :  { %1044 = vmatpush1.bf16.msra.mxu0 %v9840_v28  ;;  %9328 = vmatprep.subr.mxu1 %v12923_v4  ;;  %s13008_s8 = sld [smem:[#allocation57_spill]] }
  0xff   :  { %1045 = vmatprep.subr.bf16.mxu0 %v9845_v29  ;;  %9329 = vmatpush3.msra.mxu1 %v10903_v45 }
 0x100   :  { %9330 = vmatprep.subr.mxu1 %v12923_v4 }
 0x101   :  { %9331 = vmatpush3.msra.mxu1 %v10908_v46 }
 0x102   :  { %1046 = vmatpush1.bf16.msra.mxu0 %v9843_v30  ;;  %9333 = vmatmul.mubr.msk.f32.vlgmr.msra.gmra.mxu1 %vm580_vm1, %v1519_v42 }
 0x103   :  { %1047 = vmatprep.subr.bf16.mxu0 %v9848_v31  ;;  %9335 = vmatprep.subr.mxu1 %v12923_v4 }
 0x104   :  { %9336 = vmatpush3.msra.mxu1 %v10875_v37  ;;  %9351 = vmatprep.mubr.msk.f32.mxu1 %vm10570_vm0, %v12923_v4 }
 0x105   :  { %9337 = vmatprep.subr.mxu1 %v12923_v4 }
 0x106   :  { %1048 = vmatpush1.bf16.msra.mxu0 %v9846_v32  ;;  %9338 = vmatpush3.msra.mxu1 %v10878_v38 }
 0x107   :  { %1049 = vmatprep.subr.bf16.mxu0 %v9851_v33  ;;  %9339 = vmatprep.subr.mxu1 %v12923_v4 }
 0x108   :  { %9340 = vmatpush3.msra.mxu1 %v10884_v40 }
 0x109   :  { %9341 = vmatprep.subr.mxu1 %v12923_v4 }
 0x10a   :  { %1050 = vmatpush1.bf16.msra.mxu0 %v9849_v34  ;;  %9342 = vmatpush3.msra.mxu1 %v10887_v41 }
 0x10b   :  { %1051 = vmatprep.subr.bf16.mxu0 %v9854_v36  ;;  %9343 = vmatprep.subr.mxu1 %v12923_v4 }
 0x10c   :  { %9344 = vmatpush3.msra.mxu1 %v10893_v43 }
 0x10d   :  { %9345 = vmatprep.subr.mxu1 %v12923_v4 }
 0x10e   :  { %1052 = vmatpush1.bf16.msra.mxu0 %v9852_v35  ;;  %9346 = vmatpush3.msra.mxu1 %v10898_v44 }
 0x10f   :  { %9354 = vmatprep.subr.mxu0 %v12923_v4  ;;  %9347 = vmatprep.subr.mxu1 %v12923_v4 }
 0x110   :  { %9348 = vmatpush3.msra.mxu1 %v10903_v45 }
 0x111   :  { %9349 = vmatprep.subr.mxu1 %v12923_v4 }
 0x112   :  { %9350 = vmatpush3.msra.mxu1 %v10908_v46 }
 0x113   :  { %9373 = vmatprep.subr.mxu1 %v12923_v4 }
 0x15f   :  { %v506_v47 = vpop.permute.xlu1 %505  ;;  %v496_v49 = vpop.permute.xlu0 %495 }
 0x160   :  { %v521_v50 = vmul.f32 %v8420_v48, %v506_v47  ;;  %v519_v53 = vmul.f32 %v8420_v48, %v496_v49 }
 0x162   :  { %v532_v55 = vadd.f32 %v8421_v51, %v521_v50  ;;  %v530_v60 = vadd.f32 %v8421_v51, %v519_v53 }
 0x163   :  { %v511_v52 = vpop.permute.xlu1 %510  ;;  %v501_v59 = vpop.permute.xlu0 %500 }
 0x164   :  { %v522_v58 = vmul.f32 %v8420_v48, %v511_v52  ;;  %v520_v6 = vmul.f32 %v8420_v48, %v501_v59 }
 0x166   :  { %v533_v3 = vadd.f32 %v8421_v51, %v522_v58  ;;  %v531_v17 = vadd.f32 %v8421_v51, %v520_v6 }
 0x1b0   :  { %v728_v63 = vpop.f32.mrf.mxu1 }
 0x1b1   :  { %v9302_v61 = vpop.f32.mrf.mxu0  ;;  %v729_v23 = vadd.f32 %v8431_v11, %v728_v63 }
 0x1b2   :  { %v638_v1 = vadd.f32 %v9302_v61, %v532_v55  ;;  %v9314_v8 = vpop.f32.mrf.mxu1 }
 0x1b3   :  { %v621_v7 = vpop.f32.mrf.mxu0  ;;  %v734_v32 = vmax.f32 %v729_v23, 0.0 }
 0x1b4   :  { %v649_v9 = vadd.f32 %v8430_v62, %v638_v1  ;;  %v636_v10 = vadd.f32 %v621_v7, %v530_v60  ;;  %v731_v13 = vpop.f32.mrf.mxu1 }
 0x1b5   :  { %v9303_v12 = vpop.f32.mrf.mxu0 }
 0x1b6   :  { %v647_v15 = vadd.f32 %v8430_v62, %v636_v10  ;;  %v639_v16 = vadd.f32 %v9303_v12, %v533_v3  ;;  %v9315_v19 = vpop.f32.mrf.mxu1  ;;  %v773_v20 = vcombine.high %v649_v9, %v649_v9  ;;  %v780_v36 = vrot.slane %v649_v9, %v10942_v14 }
 0x1b7   :  { %v624_v18 = vpop.f32.mrf.mxu0 }
 0x1b8   :  { %v739_v21 = vcombine.high %v647_v15, %v647_v15  ;;  %v746_v22 = vrot.slane %v647_v15, %v10942_v14  ;;  %v650_v24 = vadd.f32 %v8430_v62, %v639_v16  ;;  %v637_v25 = vadd.f32 %v624_v18, %v531_v17 }
 0x1b9   :  { %v787_v30 = vrot.slane %v773_v20, %v10942_v14  ;;  %v788_v57 = vcombine.high %v780_v36, %v780_v36  ;;  %v10996_v17 = vadd.f32 %v780_v36, %v734_v32 }
 0x1ba   :  { %v753_v26 = vrot.slane %v739_v21, %v10942_v14  ;;  %v754_v27 = vcombine.high %v746_v22, %v746_v22  ;;  %v790_v28 = vcombine.high %v650_v24, %v650_v24  ;;  %v648_v29 = vadd.f32 %v8430_v62, %v637_v25 }
 0x1bb   :  { %v797_v33 = vrot.slane %v650_v24, %v10942_v14  ;;  %v789_v51 = vcombine.high %v787_v30, %v787_v30  ;;  %v10958_v55 = vadd.f32 %v746_v22, %v734_v32  ;;  %v10987_v10 = vadd.f32 %v788_v57, %v734_v32 }
 0x1bc   :  { %v755_v31 = vcombine.high %v753_v26, %v753_v26  ;;  %v804_v34 = vrot.slane %v790_v28, %v10942_v14  ;;  %v756_v35 = vcombine.high %v648_v29, %v648_v29  ;;  %v763_v39 = vrot.slane %v648_v29, %v10942_v14 }
 0x1bd   :  { %v10954_v49 = vadd.f32 %v754_v27, %v734_v32  ;;  %v10956_v50 = vadd.f32 %v753_v26, %v734_v32  ;;  %v805_v53 = vcombine.high %v797_v33, %v797_v33  ;;  %v10976_v2 = vadd.f32 %v789_v51, %v734_v32 }
 0x1be   :  { %v10951_v42 = vadd.f32 %v755_v31, %v734_v32  ;;  %v806_v47 = vcombine.high %v804_v34, %v804_v34  ;;  %v770_v48 = vrot.slane %v756_v35, %v10942_v14  ;;  %v771_v52 = vcombine.high %v763_v39, %v763_v39 }
 0x1bf   :  { %v10962_v58 = vadd.f32 %v763_v39, %v734_v32  ;;  %v855_v63 = vcombine.low %v10958_v55, %v10954_v49  ;;  %v10978_v3 = vadd.f32 %v805_v53, %v734_v32  ;;  %v10980_v6 = vadd.f32 %v804_v34, %v734_v32  ;;  %v945_v34 = vld [vmem:[%s12959_s27] sm:$0x3] }
 0x1c0   :  { %v772_v54 = vcombine.high %v770_v48, %v770_v48  ;;  %v856_v56 = vcombine.low %v10956_v50, %v10951_v42  ;;  %v10964_v59 = vadd.f32 %v771_v52, %v734_v32  ;;  %v10966_v60 = vadd.f32 %v806_v47, %v734_v32 }
 0x1c1   :  { %v10968_v61 = vadd.f32 %v770_v48, %v734_v32  ;;  %v10985_v9 = vadd.f32 %v797_v33, %v734_v32  ;;  %v10989_v11 = vadd.f32 %v787_v30, %v734_v32  ;;  %v863_v13 = vrot.slane %v855_v63, %v10942_v14 }
 0x1c2   :  { %v10970_v62 = vadd.f32 %v772_v54, %v734_v32  ;;  %v872_v1 = vcombine.low %v10962_v58, %v10964_v59  ;;  %v870_v8 = vrot.slane %v856_v56, %v10942_v14  ;;  %v907_v16 = vcombine.low %v10980_v6, %v10966_v60  ;;  %v11027_v31 = vpop.f32.mrf.mxu1 }
 0x1c3   :  { %v906_v18 = vcombine.low %v10985_v9, %v10978_v3  ;;  %v890_v21 = vcombine.low %v10989_v11, %v10976_v2  ;;  %v889_v23 = vcombine.low %v10996_v17, %v10987_v10  ;;  %v11030_v33 = vsub.s32 0, %v10938_v0 }
 0x1c4   :  { %v873_v7 = vcombine.low %v10968_v61, %v10970_v62  ;;  %v880_v12 = vrot.slane %v872_v1, %v10942_v14  ;;  %v871_v19 = vcombine.low %v863_v13, %v870_v8  ;;  %v921_v24 = vrot.slane %v907_v16, %v10942_v14  ;;  %v9334_v32 = vpop.f32.mrf.mxu1 }
 0x1c5   :  { %v904_v25 = vrot.slane %v890_v21, %v10942_v14  ;;  %v914_v26 = vrot.slane %v906_v18, %v10942_v14  ;;  %v897_v27 = vrot.slane %v889_v23, %v10942_v14  ;;  %v11034_v35 = vsub.s32 1, %v10938_v0 }
 0x1c6   :  { %v887_v15 = vrot.slane %v873_v7, %v10942_v14  ;;  %v950_v36 = vrot.slane %v945_v34, %v11030_v33 }
 0x1c7   :  { %v922_v28 = vcombine.low %v914_v26, %v921_v24  ;;  %v905_v29 = vcombine.low %v897_v27, %v904_v25  ;;  %v954_v39 = vrot.slane %v945_v34, %v11034_v35 }
 0x1c8   :  { %v888_v20 = vcombine.low %v880_v12, %v887_v15 }
 0x1c9   :  { %v928_v30 = vpack.c.bf16 %v922_v28, %v905_v29 }
 0x1ca   :  { %v927_v22 = vpack.c.bf16 %v888_v20, %v871_v19 }
 0x1cc   :  { %1070 = vmatmul.mubr.bf16.vlgmr.msra.gmra.mxu0 %v927_v22 }
 0x1cd   :  { %1079 = vmatprep.mubr.bf16.mxu0 %v10571_v5  ;;  %9355 = vmatpush3.msra.mxu0 %v10875_v37 }
 0x1ce   :  { %9356 = vmatprep.subr.mxu0 %v12923_v4 }
 0x1cf   :  { %9357 = vmatpush3.msra.mxu0 %v10878_v38 }
 0x1d0   :  { %9358 = vmatprep.subr.mxu0 %v12923_v4 }
 0x1d1   :  { %9359 = vmatpush3.msra.mxu0 %v10884_v40 }
 0x1d2   :  { %9360 = vmatprep.subr.mxu0 %v12923_v4 }
 0x1d3   :  { %9361 = vmatpush3.msra.mxu0 %v10887_v41 }
 0x1d4   :  { %1080 = vmatmul.mubr.bf16.gmra.mxu0 %v928_v30  ;;  %9362 = vmatprep.subr.mxu0 %v12923_v4 }
 0x1d5   :  { %9363 = vmatpush3.msra.mxu0 %v10893_v43  ;;  %9370 = vmatprep.mubr.msk.f32.mxu0 %vm10570_vm0, %v12923_v4 }
 0x1d6   :  { %9364 = vmatprep.subr.mxu0 %v12923_v4 }
 0x1d7   :  { %9365 = vmatpush3.msra.mxu0 %v10898_v44 }
 0x1d8   :  { %9366 = vmatprep.subr.mxu0 %v12923_v4 }
 0x1d9   :  { %9367 = vmatpush3.msra.mxu0 %v10903_v45 }
 0x1da   :  { %9368 = vmatprep.subr.mxu0 %v12923_v4 }
 0x1db   :  { %9369 = vmatpush3.msra.mxu0 %v10908_v46 }
 0x1dc   :  { %9392 = vmatprep.subr.mxu0 %v12923_v4 }
 0x28c   :  { %v1071_v47 = vpop.f32.mrf.mxu0 }
 0x28d   :  { %v11038_v48 = vadd.f32 %v1071_v47, %v950_v36 }
 0x28e   :  { %v1073_v51 = vpop.f32.mrf.mxu0 }
 0x28f   :  { %v1094_v52 = vcombine.high %v11038_v48, %v11038_v48  ;;  %v1101_v53 = vrot.slane %v11038_v48, %v10942_v14  ;;  %v11044_v54 = vadd.f32 %v1073_v51, %v954_v39 }
 0x290   :  { %v1075_v56 = vpop.f32.mrf.mxu0 }
 0x291   :  { %v1108_v57 = vrot.slane %v1094_v52, %v10942_v14  ;;  %v1109_v63 = vcombine.high %v1101_v53, %v1101_v53  ;;  %1179 = vst.msk [vmem:[#allocation2] sm:$0x3] %vm1178_vm3, %v1101_v53  ;;  %v11052_v8 = vadd.f32 %v1075_v56, %v950_v36 }
 0x292   :  { %v1077_v12 = vpop.f32.mrf.mxu0 }
 0x293   :  { %v1110_v13 = vcombine.high %v1108_v57, %v1108_v57  ;;  %1180 = vst.msk [vmem:[#allocation2 + $0x2] sm:$0x3] %vm1178_vm3, %v1109_v63  ;;  %1181 = vst.msk [vmem:[#allocation2 + $0x4] sm:$0x3] %vm1178_vm3, %v1108_v57  ;;  %v11056_v15 = vadd.f32 %v1077_v12, %v954_v39  ;;  %v1111_v16 = vcombine.high %v11052_v8, %v11052_v8 }
 0x294   :  { %v1118_v18 = vrot.slane %v11052_v8, %v10942_v14  ;;  %v1081_v19 = vpop.f32.mrf.mxu0 }
 0x295   :  { %1182 = vst.msk [vmem:[#allocation2 + $0x6] sm:$0x3] %vm1178_vm3, %v1110_v13  ;;  %v1125_v20 = vrot.slane %v1111_v16, %v10942_v14  ;;  %v11069_v25 = vadd.f32 %v1081_v19, %v950_v36 }
 0x296   :  { %v1126_v21 = vcombine.high %v1118_v18, %v1118_v18  ;;  %1183 = vst.msk [vmem:[#allocation2 + $0x8] sm:$0x3] %vm1178_vm3, %v1118_v18  ;;  %v1083_v24 = vpop.f32.mrf.mxu0 }
 0x297   :  { %v11071_v26 = vadd.f32 %v1083_v24, %v954_v39  ;;  %v1127_v27 = vcombine.high %v1125_v20, %v1125_v20  ;;  %1185 = vst.msk [vmem:[#allocation2 + $0xc] sm:$0x3] %vm1178_vm3, %v1125_v20  ;;  %v1128_v29 = vcombine.high %v11069_v25, %v11069_v25  ;;  %v1135_v30 = vrot.slane %v11069_v25, %v10942_v14 }
 0x298   :  { %1184 = vst.msk [vmem:[#allocation2 + $0xa] sm:$0x3] %vm1178_vm3, %v1126_v21  ;;  %v1085_v28 = vpop.f32.mrf.mxu0  ;;  %v1528_v21 = vld [vmem:[%s12960_s26] sm:$0xf] }
 0x299   :  { %v1235_v32 = vcombine.low %v11069_v25, %v11071_v26  ;;  %v1236_v34 = vcombine.high %v11069_v25, %v11071_v26  ;;  %1186 = vst.msk [vmem:[#allocation2 + $0xe] sm:$0x3] %vm1178_vm3, %v1127_v27  ;;  %v11084_v47 = vadd.f32 %v1085_v28, %v950_v36  ;;  %v1142_v52 = vrot.slane %v1128_v29, %v10942_v14 }
 0x29a   :  { %v1087_v51 = vpop.f32.mrf.mxu0  ;;  %v1143_v53 = vcombine.high %v1135_v30, %v1135_v30  ;;  %1187 = vst.msk [vmem:[#allocation2 + $0x10] sm:$0x3] %vm1178_vm3, %v1135_v30  ;;  %v1599_v28 = vadd.f32 %v11027_v31, %v1528_v21  ;;  %v339_v29 = vadd.s32 8, %v10938_v0  ;;  %v341_v30 = vstv %s340_s23 }
 0x29b   :  { %v1145_v56 = vcombine.high %v11084_v47, %v11084_v47  ;;  %v1152_v57 = vrot.slane %v11084_v47, %v10942_v14  ;;  %v11092_v63 = vadd.f32 %v1087_v51, %v954_v39  ;;  %v1144_v12 = vcombine.high %v1142_v52, %v1142_v52  ;;  %1189 = vst.msk [vmem:[#allocation2 + $0x14] sm:$0x3] %vm1178_vm3, %v1142_v52 }
 0x29c   :  { %1188 = vst.msk [vmem:[#allocation2 + $0x12] sm:$0x3] %vm1178_vm3, %v1143_v53  ;;  %vm343_vm4 = vcmp.lt.s32.totalorder %v339_v29, %v341_v30  ;;  %v349_v51 = vstv %s8417_s17  ;;  %v12921_v52 = vsub.s32 7, %v10938_v0  ;;  %vm342_vm8 = vcmp.lt.s32.totalorder %v10938_v0, %v341_v30 }
 0x29d   :  { %v1159_v36 = vrot.slane %v1145_v56, %v10942_v14  ;;  %v1160_v13 = vcombine.high %v1152_v57, %v1152_v57  ;;  %1191 = vst.msk [vmem:[#allocation2 + $0x18] sm:$0x3] %vm1178_vm3, %v1152_v57  ;;  %v1253_v16 = vcombine.low %v11084_v47, %v11092_v63  ;;  %v1254_v18 = vcombine.high %v11084_v47, %v11092_v63 }
 0x29e   :  { %1190 = vst.msk [vmem:[#allocation2 + $0x16] sm:$0x3] %vm1178_vm3, %v1144_v12  ;;  %v11120_v53 = vsel %vm343_vm4, 1.0, %v12923_v4  ;;  %vm351_vm6 = vcmp.lt.s32.totalorder %v339_v29, %v349_v51  ;;  %vm350_vm9 = vcmp.lt.s32.totalorder %v10938_v0, %v349_v51 }
 0x29f   :  { %v1161_v39 = vcombine.high %v1159_v36, %v1159_v36  ;;  %1192 = vst.msk [vmem:[#allocation2 + $0x1a] sm:$0x3] %vm1178_vm3, %v1160_v13  ;;  %1193 = vst.msk [vmem:[#allocation2 + $0x1c] sm:$0x3] %vm1178_vm3, %v1159_v36  ;;  %v11106_v19 = vrot.slane %v1254_v18, %v10942_v14  ;;  %v11123_v31 = vsel %vm351_vm6, 1.0, %v12923_v4 }
 0x2a0   :  { %v11128_v56 = vsel %vm356_vm5, %v11120_v53, %v11123_v31 }
 0x2a1   :  { %1194 = vst.msk [vmem:[#allocation2 + $0x1e] sm:$0x3] %vm1178_vm3, %v1161_v39  ;;  %v1270_v20 = vcombine.high %v11106_v19, %v11106_v19  ;;  %v467_v57 = vrot.slane %v11128_v56, %v12921_v52 }
 0x2a3   :  { %v1397_v24 = vrot.slane %v1270_v20, %v10942_v14  ;;  %v1602_v20 = vld [vmem:[#allocation2] sm:$0x3] }
 0x2a5   :  { %1459 = vrot.lane.b32.xlu0 %v1397_v24, %s10573_s28  ;;  %v1398_v27 = vcombine.high %v1397_v24, %v1397_v24 }
 0x2a7   :  { %1461 = vrot.lane.b32.xlu1 %v1398_v27, %s10573_s28 }
 0x2a9   :  { %1617 = vrot.lane.b32.xlu0 %v1599_v28, %s10558_s5 }
 0x2ad   :  { %469 = vbcast.lane.b32.xlu0 %v467_v57, 256 }
 0x317   :  { %v1460_v12 = vpop.permute.xlu0 %1459 }
 0x319   :  { %v1462_v36 = vpop.permute.xlu1 %1461 }
 0x31a   :  { %v1479_v13 = vsel %vm1463_vm7, %v1460_v12, %v1462_v36  ;;  %v11139_v12 = vsel %vm342_vm8, 1.0, %v12923_v4  ;;  %v11142_v36 = vsel %vm350_vm9, 1.0, %v12923_v4 }
 0x31b   :  { %1511 = vst.msk [vmem:[#allocation3 + $0x1e] sm:$0x3] %vm1178_vm3, %v1479_v13  ;;  %v1618_v7 = vpop.permute.xlu0 %1617 }
 0x31f   :  { %v470_v57 = vpop.permute.xlu0 %469 }
 0x320   :  { %487 = vst.msk [vmem:[#allocation6 + $0x1e] sm:$0x3] %vm471_vm10, %v470_v57 }
 0x322   :  { %v1604_v18 = vld [vmem:[#allocation3 + $0x1e] sm:$0x3] }
 0x323   :  { %v1606_v39 = vrot.slane %v1604_v18, 6 }
 0x325   :  { %v1608_v21 = vsel %vm1518_vm2, %v1602_v20, %v1606_v39 }
 0x326   :  { %v1609_v24 = vadd.f32 %v1608_v21, %v1599_v28 }
 0x327   :  { %v1514_v20 = vld [vmem:[#allocation6 + $0x1e] sm:$0x3] }
 0x328   :  { %v8454_v27 = vmul.f32 -1.442695, %v1609_v24  ;;  %v1639_v24 = vrot.slane %v1514_v20, 6 }
 0x32a   :  { %10075 = vpow2.f32 %v8454_v27 }
 0x337   :  { %v10076_v29 = vpop.eup %10075 }
 0x338   :  { %v1613_v1 = vadd.f32 1.0, %v10076_v29 }
 0x33a   :  { %10077 = vrcp.f32 %v1613_v1  ;;  %v11148_v1 = vsel %vm356_vm5, %v11139_v12, %v11142_v36 }
 0x33b   :  { %v362_v30 = vrot.slane %v11148_v1, %v11030_v33 }
 0x347   :  { %v10078_v28 = vpop.eup %10077 }
 0x348   :  { %v1620_v13 = vmul.f32 %v10078_v28, %v1618_v7 }
 0x34a   :  { %1622 = vrot.lane.b32.xlu1 %v1620_v13, %s10558_s5 }
 0x34e   :  { %364 = vbcast.lane.b32.xlu1 %v362_v30, 256 }
 0x3bc   :  { %v1623_v51 = vpop.permute.xlu1 %1622 }
 0x3bd   :  { %v1625_v18 = vadd.f32 %v1623_v51, %v1608_v21  ;;  %v1389_v21 = vrot.slane %v11106_v19, %v10942_v14  ;;  %v1627_v51 = vsub.f32 1.0, %v10078_v28 }
 0x3bf   :  { %10079 = vtanh.f32 %v1625_v18 }
 0x3c0   :  { %v365_v39 = vpop.permute.xlu1 %364 }
 0x3c1   :  { %472 = vst.msk [vmem:[#allocation6] sm:$0x3] %vm471_vm10, %v365_v39 }
 0x3c8   :  { %v1512_v27 = vld [vmem:[#allocation6] sm:$0x3] }
 0x3c9   :  { %v1641_v29 = vsel %vm1518_vm2, %v1512_v27, %v1639_v24 }
 0x3ca   :  { %vm1642_vm11 = vcmp.gt.f32.partialorder %v1641_v29, 0.5 }
 0x3cb   :  { %v1643_v7 = vsel %vm1642_vm11, 1, %v10571_v5 }
 0x3cc   :  { %v10080_v57 = vpop.eup %10079  ;;  %1645 = vperm.xlu0 %9799, %v1643_v7   ;;  %v1390_v7 = vcombine.high %v1389_v21, %v1389_v21 }
 0x3cd   :  { %1629 = vrot.lane.b32.xlu1 %v10080_v57, %s10574_s6 }
 0x3d0   :  { %1633 = vrot.lane.b32.xlu0 %v12923_v4, %s10573_s28 }
 0x3d4   :  { %1455 = vrot.lane.b32.xlu0 %v1389_v21, %s10573_s28 }
 0x43f   :  { %v1630_v30 = vpop.permute.xlu1 %1629 }
 0x440   :  { %v1632_v39 = vmul.f32 %v1630_v30, %v1627_v51 }
 0x447   :  { %v1646_v13 = vpop.permute.xlu0 %1645 }
 0x448   :  { %vm1647_vm12 = vcmp.eq.s32.totalorder %v1646_v13, 1 }
 0x44b   :  { %v1634_v18 = vpop.permute.xlu0 %1633 }
 0x44c   :  { %v1636_v20 = vmul.f32 %v10078_v28, %v1634_v18 }
 0x44e   :  { %v1637_v24 = vadd.f32 %v1636_v20, %v1632_v39 }
 0x44f   :  { %v1456_v30 = vpop.permute.xlu0 %1455 }
 0x450   :  { %v11162_v27 = vsel %vm1647_vm12, %v1637_v24, %v1634_v18  ;;  %v11164_v29 = vsel %vm1647_vm12, %v1637_v24, 0.0 }
 0x451   :  { %1664 = vrot.lane.b32.xlu1 %v11162_v27, %s10574_s6  ;;  %v1668_v19 = vrot.slane %v11162_v27, 2 }
 0x453   :  { %v1670_v57 = vsel %vm1463_vm7, 0.0, %v1668_v19 }
 0x454   :  { %v1672_v23 = vrot.slane %v1670_v57, 6 }
 0x455   :  { %1457 = vrot.lane.b32.xlu1 %v1390_v7, %s10573_s28 }
 0x4c3   :  { %v1665_v22 = vpop.permute.xlu1 %1664 }
 0x4c4   :  { %v1667_v28 = vsel %vm1463_vm7, %v1665_v22, 0.0 }
 0x4c5   :  { %v1674_v13 = vsel %vm1518_vm2, %v1667_v28, %v1672_v23  ;;  %v1758_v23 = vld [vmem:[#allocation2 + $0x2] sm:$0x3]  ;;  %v369_v28 = vrot.slane %v11148_v1, %v11034_v35 }
 0x4c6   :  { %9352 = vmatmul.mubr.msk.f32.vlgmr.msra.gmra.mxu1 %vm580_vm1, %v1674_v13 }
 0x4c7   :  { %v1458_v51 = vpop.permute.xlu1 %1457  ;;  %9374 = vmatpush3.msra.mxu1 %v10875_v37  ;;  %9389 = vmatprep.mubr.msk.f32.mxu1 %vm10570_vm0, %v12923_v4  ;;  %v1683_v37 = vld [vmem:[%s12960_s26] sm:$0xf] }
 0x4c8   :  { %v1478_v21 = vsel %vm1463_vm7, %v1456_v30, %v1458_v51  ;;  %9375 = vmatprep.subr.mxu1 %v12923_v4 }
 0x4c9   :  { %1510 = vst.msk [vmem:[#allocation3 + $0x1c] sm:$0x3] %vm1178_vm3, %v1478_v21  ;;  %9376 = vmatpush3.msra.mxu1 %v10878_v38  ;;  %v12922_v38 = vsub.s32 6, %v10938_v0 }
 0x4ca   :  { %9377 = vmatprep.subr.mxu1 %v12923_v4 }
 0x4cb   :  { %9378 = vmatpush3.msra.mxu1 %v10884_v40 }
 0x4cc   :  { %9379 = vmatprep.subr.mxu1 %v12923_v4 }
 0x4cd   :  { %9380 = vmatpush3.msra.mxu1 %v10887_v41 }
 0x4ce   :  { %9381 = vmatprep.subr.mxu1 %v12923_v4 }
 0x4cf   :  { %9382 = vmatpush3.msra.mxu1 %v10893_v43 }
 0x4d0   :  { %9383 = vmatprep.subr.mxu1 %v12923_v4 }
 0x4d1   :  { %9384 = vmatpush3.msra.mxu1 %v10898_v44  ;;  %v460_v44 = vrot.slane %v11128_v56, %v12922_v38 }
 0x4d2   :  { %9385 = vmatprep.subr.mxu1 %v12923_v4 }
 0x4d3   :  { %9386 = vmatpush3.msra.mxu1 %v10903_v45  ;;  %v1760_v45 = vld [vmem:[#allocation3 + $0x1c] sm:$0x3] }
 0x4d4   :  { %9387 = vmatprep.subr.mxu1 %v12923_v4  ;;  %v1762_v22 = vrot.slane %v1760_v45, 6 }
 0x4d5   :  { %9388 = vmatpush3.msra.mxu1 %v10908_v46 }
 0x4d6   :  { %9411 = vmatprep.subr.mxu1 %v12923_v4  ;;  %v1764_v46 = vsel %vm1518_vm2, %v1758_v23, %v1762_v22 }
 0x586   :  { %v1753_v40 = vpop.f32.mrf.mxu1 }
 0x587   :  { %v1754_v41 = vadd.f32 %v1753_v40, %v1683_v37 }
 0x588   :  { %v9353_v43 = vpop.f32.mrf.mxu1 }
 0x589   :  { %1773 = vrot.lane.b32.xlu0 %v1754_v41, %s10558_s5  ;;  %v1765_v18 = vadd.f32 %v1764_v46, %v1754_v41  ;;  %v11210_v41 = vrot.slane %v1253_v16, %v10942_v14 }
 0x58b   :  { %v8456_v39 = vmul.f32 -1.442695, %v1765_v18  ;;  %v1269_v22 = vcombine.high %v11210_v41, %v11210_v41 }
 0x58d   :  { %462 = vbcast.lane.b32.xlu0 %v460_v44, 256  ;;  %10081 = vpow2.f32 %v8456_v39 }
 0x59a   :  { %v10082_v20 = vpop.eup %10081 }
 0x59b   :  { %v1769_v24 = vadd.f32 1.0, %v10082_v20 }
 0x59d   :  { %10083 = vrcp.f32 %v1769_v24 }
 0x5aa   :  { %v10084_v7 = vpop.eup %10083 }
 0x5ab   :  { %v1783_v63 = vsub.f32 1.0, %v10084_v7  ;;  %v1789_v18 = vmul.f32 %v10084_v7, %v11162_v27 }
 0x5fb   :  { %v1774_v19 = vpop.permute.xlu0 %1773 }
 0x5fc   :  { %v1776_v57 = vmul.f32 %v10084_v7, %v1774_v19 }
 0x5fe   :  { %1778 = vrot.lane.b32.xlu1 %v1776_v57, %s10558_s5 }
 0x5ff   :  { %v463_v13 = vpop.permute.xlu0 %462 }
 0x600   :  { %486 = vst.msk [vmem:[#allocation6 + $0x1c] sm:$0x3] %vm471_vm10, %v463_v13 }
 0x602   :  { %371 = vbcast.lane.b32.xlu1 %v369_v28, 256 }
 0x607   :  { %v1662_v37 = vld [vmem:[#allocation6 + $0x1c] sm:$0x3] }
 0x608   :  { %v1792_v40 = vrot.slane %v1662_v37, 6 }
 0x670   :  { %v1779_v30 = vpop.permute.xlu1 %1778 }
 0x671   :  { %v1781_v51 = vadd.f32 %v1779_v30, %v1764_v46  ;;  %v1381_v46 = vrot.slane %v1269_v22, %v10942_v14  ;;  %v10238_v22 = vld [vmem:[%s12954_s9 + $0x20] sm:$0xff] }
 0x673   :  { %10085 = vtanh.f32 %v1781_v51  ;;  %v1382_v57 = vcombine.high %v1381_v46, %v1381_v46 }
 0x674   :  { %v372_v21 = vpop.permute.xlu1 %371 }
 0x675   :  { %473 = vst.msk [vmem:[#allocation6 + $0x2] sm:$0x3] %vm471_vm10, %v372_v21 }
 0x67c   :  { %v1660_v43 = vld [vmem:[#allocation6 + $0x2] sm:$0x3] }
 0x67d   :  { %v1794_v44 = vsel %vm1518_vm2, %v1660_v43, %v1792_v40  ;;  %v10235_v40 = vld [vmem:[%s12954_s9 + $0x38] sm:$0xff] }
 0x67e   :  { %vm1795_vm13 = vcmp.gt.f32.partialorder %v1794_v44, 0.5  ;;  %v10236_v44 = vld [vmem:[%s12954_s9 + $0x30] sm:$0xff] }
 0x67f   :  { %v1796_v45 = vsel %vm1795_vm13, 1, %v10571_v5 }
 0x680   :  { %v10086_v23 = vpop.eup %10085  ;;  %1798 = vperm.xlu0 %9799, %v1796_v45   ;;  %v10237_v45 = vld [vmem:[%s12954_s9 + $0x28] sm:$0xff] }
 0x681   :  { %1785 = vrot.lane.b32.xlu1 %v10086_v23, %s10574_s6  ;;  %v10239_v23 = vld [vmem:[%s12954_s9 + $0x18] sm:$0xff] }
 0x685   :  { %1451 = vrot.lane.b32.xlu1 %v1381_v46, %s10573_s28  ;;  %v10240_v46 = vld [vmem:[%s12954_s9 + $0x10] sm:$0xff] }
 0x6f3   :  { %v1786_v47 = vpop.permute.xlu1 %1785 }
 0x6f4   :  { %v1788_v16 = vmul.f32 %v1786_v47, %v1783_v63  ;;  %v10241_v47 = vld [vmem:[%s12954_s9 + $0x8] sm:$0xff]  ;;  %v10242_v63 = vld [vmem:[%s12954_s9] sm:$0xff] }
 0x6f6   :  { %v1790_v39 = vadd.f32 %v1789_v18, %v1788_v16  ;;  %v1835_v16 = vld [vmem:[%s12960_s26] sm:$0xf]  ;;  %v396_v18 = vsub.s32 5, %v10938_v0 }
 0x6fb   :  { %v1799_v20 = vpop.permute.xlu0 %1798 }
 0x6fc   :  { %vm1800_vm14 = vcmp.eq.s32.totalorder %v1799_v20, 1 }
 0x6fd   :  { %v11220_v24 = vsel %vm1800_vm14, %v1790_v39, 0.0  ;;  %v11223_v19 = vsel %vm1800_vm14, %v1790_v39, %v11162_v27  ;;  %v1452_v27 = vpop.permute.xlu1 %1451 }
 0x6fe   :  { %1816 = vrot.lane.b32.xlu0 %v11223_v19, %s10574_s6  ;;  %v1820_v28 = vrot.slane %v11223_v19, 2 }
 0x700   :  { %v1822_v7 = vsel %vm1463_vm7, 0.0, %v1820_v28  ;;  %v453_v28 = vrot.slane %v11128_v56, %v396_v18 }
 0x701   :  { %v1824_v30 = vrot.slane %v1822_v7, 6 }
 0x702   :  { %1453 = vrot.lane.b32.xlu0 %v1382_v57, %s10573_s28 }
 0x770   :  { %v1817_v13 = vpop.permute.xlu0 %1816 }
 0x771   :  { %v1819_v51 = vsel %vm1463_vm7, %v1817_v13, 0.0 }
 0x772   :  { %v1826_v21 = vsel %vm1518_vm2, %v1819_v51, %v1824_v30  ;;  %v1910_v30 = vld [vmem:[#allocation2 + $0x4] sm:$0x3] }
 0x773   :  { %9371 = vmatmul.mubr.msk.f32.vlgmr.msra.gmra.mxu0 %vm580_vm1, %v1826_v21 }
 0x774   :  { %v1454_v37 = vpop.permute.xlu0 %1453  ;;  %9393 = vmatpush3.msra.mxu0 %v10235_v40  ;;  %9408 = vmatprep.mubr.msk.f32.mxu0 %vm10570_vm0, %v12923_v4 }
 0x775   :  { %v1477_v43 = vsel %vm1463_vm7, %v1452_v27, %v1454_v37  ;;  %9394 = vmatprep.subr.mxu0 %v12923_v4 }
 0x776   :  { %1509 = vst.msk [vmem:[#allocation3 + $0x1a] sm:$0x3] %vm1178_vm3, %v1477_v43  ;;  %9395 = vmatpush3.msra.mxu0 %v10236_v44  ;;  %v375_v43 = vsub.s32 2, %v10938_v0 }
 0x777   :  { %9396 = vmatprep.subr.mxu0 %v12923_v4 }
 0x778   :  { %9397 = vmatpush3.msra.mxu0 %v10237_v45 }
 0x779   :  { %9398 = vmatprep.subr.mxu0 %v12923_v4 }
 0x77a   :  { %9399 = vmatpush3.msra.mxu0 %v10238_v22 }
 0x77b   :  { %9400 = vmatprep.subr.mxu0 %v12923_v4 }
 0x77c   :  { %9401 = vmatpush3.msra.mxu0 %v10239_v23  ;;  %v376_v23 = vrot.slane %v11148_v1, %v375_v43 }
 0x77d   :  { %9402 = vmatprep.subr.mxu0 %v12923_v4  ;;  %v1912_v7 = vld [vmem:[#allocation3 + $0x1a] sm:$0x3] }
 0x77e   :  { %9403 = vmatpush3.msra.mxu0 %v10240_v46  ;;  %v1914_v13 = vrot.slane %v1912_v7, 6 }
 0x77f   :  { %9404 = vmatprep.subr.mxu0 %v12923_v4 }
 0x780   :  { %9405 = vmatpush3.msra.mxu0 %v10241_v47  ;;  %v1916_v51 = vsel %vm1518_vm2, %v1910_v30, %v1914_v13  ;;  %v1373_v30 = vrot.slane %v11210_v41, %v10942_v14 }
 0x781   :  { %9406 = vmatprep.subr.mxu0 %v12923_v4 }
 0x782   :  { %9407 = vmatpush3.msra.mxu0 %v10242_v63  ;;  %v1374_v41 = vcombine.high %v1373_v30, %v1373_v30 }
 0x783   :  { %9430 = vmatprep.subr.mxu0 %v12923_v4 }
 0x833   :  { %v1905_v39 = vpop.f32.mrf.mxu0 }
 0x834   :  { %v1906_v20 = vadd.f32 %v1905_v39, %v1835_v16 }
 0x835   :  { %v9372_v57 = vpop.f32.mrf.mxu0 }
 0x836   :  { %1925 = vrot.lane.b32.xlu1 %v1906_v20, %s10558_s5  ;;  %v1917_v21 = vadd.f32 %v1916_v51, %v1906_v20 }
 0x838   :  { %v8458_v27 = vmul.f32 -1.442695, %v1917_v21 }
 0x83a   :  { %455 = vbcast.lane.b32.xlu1 %v453_v28, 256  ;;  %10087 = vpow2.f32 %v8458_v27 }
 0x847   :  { %v10088_v37 = vpop.eup %10087 }
 0x848   :  { %v1921_v40 = vadd.f32 1.0, %v10088_v37 }
 0x84a   :  { %10089 = vrcp.f32 %v1921_v40 }
 0x857   :  { %v10090_v44 = vpop.eup %10089 }
 0x858   :  { %v1935_v21 = vsub.f32 1.0, %v10090_v44  ;;  %v1941_v37 = vmul.f32 %v10090_v44, %v11223_v19 }
 0x8a8   :  { %v1926_v45 = vpop.permute.xlu1 %1925 }
 0x8a9   :  { %v1928_v22 = vmul.f32 %v10090_v44, %v1926_v45 }
 0x8ab   :  { %1930 = vrot.lane.b32.xlu0 %v1928_v22, %s10558_s5 }
 0x8ac   :  { %v456_v46 = vpop.permute.xlu1 %455 }
 0x8ad   :  { %485 = vst.msk [vmem:[#allocation6 + $0x1a] sm:$0x3] %vm471_vm10, %v456_v46 }
 0x8af   :  { %378 = vbcast.lane.b32.xlu0 %v376_v23, 256 }
 0x8b4   :  { %v1814_v39 = vld [vmem:[#allocation6 + $0x1a] sm:$0x3] }
 0x8b5   :  { %v1944_v20 = vrot.slane %v1814_v39, 6 }
 0x91d   :  { %v1931_v47 = vpop.permute.xlu0 %1930 }
 0x91e   :  { %v1933_v63 = vadd.f32 %v1931_v47, %v1916_v51 }
 0x920   :  { %10091 = vtanh.f32 %v1933_v63 }
 0x921   :  { %v379_v16 = vpop.permute.xlu0 %378 }
 0x922   :  { %474 = vst.msk [vmem:[#allocation6 + $0x4] sm:$0x3] %vm471_vm10, %v379_v16 }
 0x929   :  { %v1812_v57 = vld [vmem:[#allocation6 + $0x4] sm:$0x3] }
 0x92a   :  { %v1946_v28 = vsel %vm1518_vm2, %v1812_v57, %v1944_v20 }
 0x92b   :  { %vm1947_vm15 = vcmp.gt.f32.partialorder %v1946_v28, 0.5  ;;  %v1987_v28 = vld [vmem:[%s12960_s26] sm:$0xf] }
 0x92c   :  { %v1948_v7 = vsel %vm1947_vm15, 1, %v10571_v5 }
 0x92d   :  { %v10092_v13 = vpop.eup %10091  ;;  %1950 = vperm.xlu1 %9800, %v1948_v7   ;;  %v389_v7 = vsub.s32 4, %v10938_v0 }
 0x92e   :  { %1937 = vrot.lane.b32.xlu0 %v10092_v13, %s10574_s6 }
 0x932   :  { %1447 = vrot.lane.b32.xlu0 %v1373_v30, %s10573_s28 }
 0x9a0   :  { %v1938_v51 = vpop.permute.xlu0 %1937 }
 0x9a1   :  { %v1940_v27 = vmul.f32 %v1938_v51, %v1935_v21  ;;  %v446_v21 = vrot.slane %v11128_v56, %v389_v7 }
 0x9a3   :  { %v1942_v40 = vadd.f32 %v1941_v37, %v1940_v27 }
 0x9a8   :  { %v1951_v45 = vpop.permute.xlu1 %1950 }
 0x9a9   :  { %vm1952_vm4 = vcmp.eq.s32.totalorder %v1951_v45, 1 }
 0x9aa   :  { %v11274_v22 = vsel %vm1952_vm4, %v1942_v40, 0.0  ;;  %v11277_v23 = vsel %vm1952_vm4, %v1942_v40, %v11223_v19  ;;  %v1448_v19 = vpop.permute.xlu0 %1447  ;;  %v2062_v40 = vld [vmem:[#allocation2 + $0x6] sm:$0x3] }
 0x9ab   :  { %1968 = vrot.lane.b32.xlu1 %v11277_v23, %s10574_s6  ;;  %v1972_v46 = vrot.slane %v11277_v23, 2 }
 0x9ad   :  { %v1974_v47 = vsel %vm1463_vm7, 0.0, %v1972_v46 }
 0x9ae   :  { %v1976_v63 = vrot.slane %v1974_v47, 6 }
 0x9af   :  { %1449 = vrot.lane.b32.xlu1 %v1374_v41, %s10573_s28 }
 0xa1d   :  { %v1969_v44 = vpop.permute.xlu1 %1968 }
 0xa1e   :  { %v1971_v16 = vsel %vm1463_vm7, %v1969_v44, 0.0 }
 0xa1f   :  { %v1978_v39 = vsel %vm1518_vm2, %v1971_v16, %v1976_v63  ;;  %v382_v63 = vsub.s32 3, %v10938_v0 }
 0xa20   :  { %9390 = vmatmul.mubr.msk.f32.vlgmr.msra.gmra.mxu1 %vm580_vm1, %v1978_v39 }
 0xa21   :  { %v1450_v20 = vpop.permute.xlu1 %1449  ;;  %9427 = vmatprep.mubr.msk.f32.mxu1 %vm10570_vm0, %v12923_v4 }
 0xa22   :  { %v1476_v57 = vsel %vm1463_vm7, %v1448_v19, %v1450_v20  ;;  %v383_v20 = vrot.slane %v11148_v1, %v382_v63 }
 0xa23   :  { %1508 = vst.msk [vmem:[#allocation3 + $0x18] sm:$0x3] %vm1178_vm3, %v1476_v57 }
 0xa2a   :  { %v2064_v27 = vld [vmem:[#allocation3 + $0x18] sm:$0x3] }
 0xa2b   :  { %v2066_v37 = vrot.slane %v2064_v27, 6  ;;  %v11307_v27 = vrot.slane %v1236_v34, %v10942_v14 }
 0xa2d   :  { %v2068_v45 = vsel %vm1518_vm2, %v2062_v40, %v2066_v37 }
 0xae0   :  { %v2057_v13 = vpop.f32.mrf.mxu1 }
 0xae1   :  { %v2058_v30 = vadd.f32 %v2057_v13, %v1987_v28 }
 0xae2   :  { %v9391_v51 = vpop.f32.mrf.mxu1 }
 0xae3   :  { %2077 = vrot.lane.b32.xlu0 %v2058_v30, %s10558_s5  ;;  %v2069_v41 = vadd.f32 %v2068_v45, %v2058_v30 }
 0xae5   :  { %v8460_v46 = vmul.f32 -1.442695, %v2069_v41 }
 0xae7   :  { %448 = vbcast.lane.b32.xlu0 %v446_v21, 256  ;;  %10093 = vpow2.f32 %v8460_v46 }
 0xaf4   :  { %v10094_v47 = vpop.eup %10093 }
 0xaf5   :  { %v2073_v44 = vadd.f32 1.0, %v10094_v47 }
 0xaf7   :  { %10095 = vrcp.f32 %v2073_v44 }
 0xb04   :  { %v10096_v16 = vpop.eup %10095 }
 0xb05   :  { %v2087_v34 = vsub.f32 1.0, %v10096_v16 }
 0xb55   :  { %v2078_v39 = vpop.permute.xlu0 %2077 }
 0xb56   :  { %v2080_v19 = vmul.f32 %v10096_v16, %v2078_v39 }
 0xb58   :  { %2082 = vrot.lane.b32.xlu1 %v2080_v19, %s10558_s5  ;;  %v2093_v19 = vmul.f32 %v10096_v16, %v11277_v23 }
 0xb59   :  { %v449_v57 = vpop.permute.xlu0 %448 }
 0xb5a   :  { %484 = vst.msk [vmem:[#allocation6 + $0x18] sm:$0x3] %vm471_vm10, %v449_v57 }
 0xb5c   :  { %385 = vbcast.lane.b32.xlu1 %v383_v20, 256 }
 0xb61   :  { %v1966_v51 = vld [vmem:[#allocation6 + $0x18] sm:$0x3] }
 0xb62   :  { %v2096_v21 = vrot.slane %v1966_v51, 6 }
 0xbca   :  { %v2083_v28 = vpop.permute.xlu1 %2082 }
 0xbcb   :  { %v2085_v13 = vadd.f32 %v2083_v28, %v2068_v45  ;;  %v1252_v45 = vcombine.high %v11307_v27, %v11307_v27 }
 0xbcd   :  { %10097 = vtanh.f32 %v2085_v13  ;;  %v1365_v47 = vrot.slane %v1252_v45, %v10942_v14 }
 0xbce   :  { %v386_v30 = vpop.permute.xlu1 %385 }
 0xbcf   :  { %475 = vst.msk [vmem:[#allocation6 + $0x6] sm:$0x3] %vm471_vm10, %v386_v30  ;;  %v1366_v30 = vcombine.high %v1365_v47, %v1365_v47 }
 0xbd6   :  { %v1964_v37 = vld [vmem:[#allocation6 + $0x6] sm:$0x3] }
 0xbd7   :  { %v2098_v40 = vsel %vm1518_vm2, %v1964_v37, %v2096_v21 }
 0xbd8   :  { %vm2099_vm6 = vcmp.gt.f32.partialorder %v2098_v40, 0.5 }
 0xbd9   :  { %v2100_v41 = vsel %vm2099_vm6, 1, %v10571_v5 }
 0xbda   :  { %v10098_v46 = vpop.eup %10097  ;;  %2102 = vperm.xlu0 %9799, %v2100_v41  }
 0xbdb   :  { %2089 = vrot.lane.b32.xlu1 %v10098_v46, %s10574_s6 }
 0xbdf   :  { %1443 = vrot.lane.b32.xlu1 %v1365_v47, %s10573_s28  ;;  %v2139_v47 = vld [vmem:[%s12960_s26] sm:$0xf] }
 0xc4d   :  { %v2090_v44 = vpop.permute.xlu1 %2089 }
 0xc4e   :  { %v2092_v39 = vmul.f32 %v2090_v44, %v2087_v34 }
 0xc50   :  { %v2094_v20 = vadd.f32 %v2093_v19, %v2092_v39  ;;  %v439_v19 = vrot.slane %v11128_v56, %v382_v63  ;;  %v390_v63 = vrot.slane %v11148_v1, %v389_v7 }
 0xc55   :  { %v2103_v57 = vpop.permute.xlu0 %2102 }
 0xc56   :  { %vm2104_vm8 = vcmp.eq.s32.totalorder %v2103_v57, 1 }
 0xc57   :  { %v11317_v28 = vsel %vm2104_vm8, %v2094_v20, 0.0  ;;  %v11320_v13 = vsel %vm2104_vm8, %v2094_v20, %v11277_v23  ;;  %v1444_v23 = vpop.permute.xlu1 %1443 }
 0xc58   :  { %2120 = vrot.lane.b32.xlu0 %v11320_v13, %s10574_s6  ;;  %v2124_v51 = vrot.slane %v11320_v13, 2 }
 0xc5a   :  { %v2126_v21 = vsel %vm1463_vm7, 0.0, %v2124_v51 }
 0xc5b   :  { %v2128_v37 = vrot.slane %v2126_v21, 6 }
 0xc5c   :  { %1445 = vrot.lane.b32.xlu0 %v1366_v30, %s10573_s28  ;;  %v2214_v30 = vld [vmem:[#allocation2 + $0x8] sm:$0x3] }
 0xcca   :  { %v2121_v16 = vpop.permute.xlu0 %2120 }
 0xccb   :  { %v2123_v40 = vsel %vm1463_vm7, %v2121_v16, 0.0 }
 0xccc   :  { %v2130_v41 = vsel %vm1518_vm2, %v2123_v40, %v2128_v37 }
 0xccd   :  { %9409 = vmatmul.mubr.msk.f32.vlgmr.msra.gmra.mxu0 %vm580_vm1, %v2130_v41 }
 0xcce   :  { %v1446_v45 = vpop.permute.xlu0 %1445  ;;  %9446 = vmatprep.mubr.msk.f32.mxu0 %vm10570_vm0, %v12923_v4 }
 0xccf   :  { %v1475_v46 = vsel %vm1463_vm7, %v1444_v23, %v1446_v45 }
 0xcd0   :  { %1507 = vst.msk [vmem:[#allocation3 + $0x16] sm:$0x3] %vm1178_vm3, %v1475_v46 }
 0xcd7   :  { %v2216_v20 = vld [vmem:[#allocation3 + $0x16] sm:$0x3] }
 0xcd8   :  { %v2218_v57 = vrot.slane %v2216_v20, 6 }
 0xcda   :  { %v2220_v51 = vsel %vm1518_vm2, %v2214_v30, %v2218_v57 }
 0xd8d   :  { %v2209_v44 = vpop.f32.mrf.mxu0 }
 0xd8e   :  { %v2210_v34 = vadd.f32 %v2209_v44, %v2139_v47 }
 0xd8f   :  { %v9410_v39 = vpop.f32.mrf.mxu0 }
 0xd90   :  { %2229 = vrot.lane.b32.xlu1 %v2210_v34, %s10558_s5  ;;  %v2221_v21 = vadd.f32 %v2220_v51, %v2210_v34 }
 0xd92   :  { %v8462_v16 = vmul.f32 -1.442695, %v2221_v21  ;;  %v11351_v21 = vld [vmem:[%s12954_s9 + $0x38] sm:$0xff] }
 0xd93   :  { %9412 = vmatpush3.msra.mxu1 %v11351_v21  ;;  %9431 = vmatpush3.msra.mxu0 %v11351_v21 }
 0xd94   :  { %441 = vbcast.lane.b32.xlu1 %v439_v19, 256  ;;  %10099 = vpow2.f32 %v8462_v16  ;;  %v1357_v16 = vrot.slane %v11307_v27, %v10942_v14  ;;  %9413 = vmatprep.subr.mxu1 %v12923_v4  ;;  %v11376_v27 = vld [vmem:[%s12954_s9 + $0x18] sm:$0xff] }
 0xd95   :  { %9432 = vmatprep.subr.mxu0 %v12923_v4 }
 0xda1   :  { %v10100_v37 = vpop.eup %10099 }
 0xda2   :  { %v2225_v40 = vadd.f32 1.0, %v10100_v37  ;;  %v11362_v37 = vld [vmem:[%s12954_s9 + $0x28] sm:$0xff] }
 0xda4   :  { %10101 = vrcp.f32 %v2225_v40  ;;  %v11369_v40 = vld [vmem:[%s12954_s9 + $0x20] sm:$0xff] }
 0xdb1   :  { %v11338_v41 = vpop.eup %10101 }
 0xe02   :  { %v2230_v23 = vpop.permute.xlu1 %2229 }
 0xe03   :  { %v2232_v45 = vmul.f32 %v11338_v41, %v2230_v23  ;;  %v11383_v23 = vld [vmem:[%s12954_s9 + $0x10] sm:$0xff] }
 0xe05   :  { %2234 = vrot.lane.b32.xlu0 %v2232_v45, %s10558_s5  ;;  %v11390_v45 = vld [vmem:[%s12954_s9 + $0x8] sm:$0xff] }
 0xe06   :  { %v442_v46 = vpop.permute.xlu1 %441 }
 0xe07   :  { %483 = vst.msk [vmem:[#allocation6 + $0x16] sm:$0x3] %vm471_vm10, %v442_v46 }
 0xe09   :  { %392 = vbcast.lane.b32.xlu0 %v390_v63, 256  ;;  %v11403_v63 = vld [vmem:[%s12954_s9] sm:$0xff] }
 0xe0e   :  { %v2118_v39 = vld [vmem:[#allocation6 + $0x16] sm:$0x3] }
 0xe0f   :  { %v2248_v19 = vrot.slane %v2118_v39, 6 }
 0xe77   :  { %v2235_v47 = vpop.permute.xlu0 %2234 }
 0xe78   :  { %v2237_v44 = vadd.f32 %v2235_v47, %v2220_v51  ;;  %v11354_v51 = vld [vmem:[%s12954_s9 + $0x30] sm:$0xff]  ;;  %v2239_v47 = vsub.f32 1.0, %v11338_v41 }
 0xe79   :  { %9414 = vmatpush3.msra.mxu1 %v11354_v51  ;;  %9433 = vmatpush3.msra.mxu0 %v11354_v51 }
 0xe7a   :  { %10103 = vtanh.f32 %v2237_v44  ;;  %9415 = vmatprep.subr.mxu1 %v12923_v4  ;;  %9434 = vmatprep.subr.mxu0 %v12923_v4 }
 0xe7b   :  { %v393_v34 = vpop.permute.xlu0 %392  ;;  %9416 = vmatpush3.msra.mxu1 %v11362_v37  ;;  %9435 = vmatpush3.msra.mxu0 %v11362_v37 }
 0xe7c   :  { %476 = vst.msk [vmem:[#allocation6 + $0x8] sm:$0x3] %vm471_vm10, %v393_v34  ;;  %9417 = vmatprep.subr.mxu1 %v12923_v4  ;;  %9436 = vmatprep.subr.mxu0 %v12923_v4  ;;  %v2245_v34 = vmul.f32 %v11338_v41, %v11320_v13 }
 0xe7d   :  { %9418 = vmatpush3.msra.mxu1 %v11369_v40  ;;  %9437 = vmatpush3.msra.mxu0 %v11369_v40 }
 0xe7e   :  { %9419 = vmatprep.subr.mxu1 %v12923_v4  ;;  %9438 = vmatprep.subr.mxu0 %v12923_v4 }
 0xe7f   :  { %9420 = vmatpush3.msra.mxu1 %v11376_v27  ;;  %9439 = vmatpush3.msra.mxu0 %v11376_v27 }
 0xe80   :  { %9421 = vmatprep.subr.mxu1 %v12923_v4  ;;  %9440 = vmatprep.subr.mxu0 %v12923_v4 }
 0xe81   :  { %9422 = vmatpush3.msra.mxu1 %v11383_v23  ;;  %9441 = vmatpush3.msra.mxu0 %v11383_v23 }
 0xe82   :  { %9423 = vmatprep.subr.mxu1 %v12923_v4  ;;  %9442 = vmatprep.subr.mxu0 %v12923_v4 }
 0xe83   :  { %v2116_v20 = vld [vmem:[#allocation6 + $0x8] sm:$0x3]  ;;  %9424 = vmatpush3.msra.mxu1 %v11390_v45  ;;  %9443 = vmatpush3.msra.mxu0 %v11390_v45 }
 0xe84   :  { %v2250_v57 = vsel %vm1518_vm2, %v2116_v20, %v2248_v19  ;;  %9425 = vmatprep.subr.mxu1 %v12923_v4  ;;  %9444 = vmatprep.subr.mxu0 %v12923_v4 }
 0xe85   :  { %vm2251_vm9 = vcmp.gt.f32.partialorder %v2250_v57, 0.5  ;;  %9426 = vmatpush3.msra.mxu1 %v11403_v63  ;;  %9445 = vmatpush3.msra.mxu0 %v11403_v63 }
 0xe86   :  { %v2252_v7 = vsel %vm2251_vm9, 1, %v10571_v5  ;;  %9449 = vmatprep.subr.mxu1 %v12923_v4  ;;  %9468 = vmatprep.subr.mxu0 %v12923_v4 }
 0xe87   :  { %v10104_v30 = vpop.eup %10103  ;;  %2254 = vperm.xlu1 %9800, %v2252_v7   ;;  %v1358_v7 = vcombine.high %v1357_v16, %v1357_v16 }
 0xe88   :  { %2241 = vrot.lane.b32.xlu0 %v10104_v30, %s10574_s6 }
 0xe8c   :  { %1439 = vrot.lane.b32.xlu0 %v1357_v16, %s10573_s28 }
 0xefa   :  { %v2242_v46 = vpop.permute.xlu0 %2241 }
 0xefb   :  { %v2244_v44 = vmul.f32 %v2242_v46, %v2239_v47 }
 0xefd   :  { %v2246_v39 = vadd.f32 %v2245_v34, %v2244_v44 }
 0xf02   :  { %v2255_v19 = vpop.permute.xlu1 %2254 }
 0xf03   :  { %vm2256_vm11 = vcmp.eq.s32.totalorder %v2255_v19, 1  ;;  %v2291_v19 = vld [vmem:[%s12960_s26] sm:$0xf] }
 0xf04   :  { %v11412_v20 = vsel %vm2256_vm11, %v2246_v39, 0.0  ;;  %v11415_v57 = vsel %vm2256_vm11, %v2246_v39, %v11320_v13  ;;  %v1440_v13 = vpop.permute.xlu0 %1439 }
 0xf05   :  { %2272 = vrot.lane.b32.xlu1 %v11415_v57, %s10574_s6  ;;  %v2276_v30 = vrot.slane %v11415_v57, 2 }
 0xf07   :  { %v2278_v46 = vsel %vm1463_vm7, 0.0, %v2276_v30 }
 0xf08   :  { %v2280_v41 = vrot.slane %v2278_v46, 6 }
 0xf09   :  { %1441 = vrot.lane.b32.xlu1 %v1358_v7, %s10573_s28 }
 0xf77   :  { %v2273_v47 = vpop.permute.xlu1 %2272 }
 0xf78   :  { %v2275_v44 = vsel %vm1463_vm7, %v2273_v47, 0.0  ;;  %v432_v47 = vrot.slane %v11128_v56, %v375_v43  ;;  %v397_v43 = vrot.slane %v11148_v1, %v396_v18 }
 0xf79   :  { %v2282_v34 = vsel %vm1518_vm2, %v2275_v44, %v2280_v41 }
 0xf7a   :  { %9428 = vmatmul.mubr.msk.f32.vlgmr.msra.gmra.mxu1 %vm580_vm1, %v2282_v34  ;;  %v2366_v34 = vld [vmem:[#allocation2 + $0xa] sm:$0x3] }
 0xf7b   :  { %v1442_v39 = vpop.permute.xlu1 %1441  ;;  %9450 = vmatpush3.msra.mxu1 %v11351_v21  ;;  %9465 = vmatprep.mubr.msk.f32.mxu1 %vm10570_vm0, %v12923_v4 }
 0xf7c   :  { %v1474_v16 = vsel %vm1463_vm7, %v1440_v13, %v1442_v39  ;;  %9451 = vmatprep.subr.mxu1 %v12923_v4 }
 0xf7d   :  { %1506 = vst.msk [vmem:[#allocation3 + $0x14] sm:$0x3] %vm1178_vm3, %v1474_v16  ;;  %9452 = vmatpush3.msra.mxu1 %v11354_v51 }
 0xf7e   :  { %9453 = vmatprep.subr.mxu1 %v12923_v4 }
 0xf7f   :  { %9454 = vmatpush3.msra.mxu1 %v11362_v37 }
 0xf80   :  { %9455 = vmatprep.subr.mxu1 %v12923_v4 }
 0xf81   :  { %9456 = vmatpush3.msra.mxu1 %v11369_v40 }
 0xf82   :  { %9457 = vmatprep.subr.mxu1 %v12923_v4 }
 0xf83   :  { %9458 = vmatpush3.msra.mxu1 %v11376_v27 }
 0xf84   :  { %9459 = vmatprep.subr.mxu1 %v12923_v4  ;;  %v2368_v41 = vld [vmem:[#allocation3 + $0x14] sm:$0x3] }
 0xf85   :  { %9460 = vmatpush3.msra.mxu1 %v11383_v23  ;;  %v2370_v44 = vrot.slane %v2368_v41, 6 }
 0xf86   :  { %9461 = vmatprep.subr.mxu1 %v12923_v4 }
 0xf87   :  { %9462 = vmatpush3.msra.mxu1 %v11390_v45  ;;  %v2372_v13 = vsel %vm1518_vm2, %v2366_v34, %v2370_v44  ;;  %v11461_v34 = vrot.slane %v1235_v32, %v10942_v14 }
 0xf88   :  { %9463 = vmatprep.subr.mxu1 %v12923_v4 }
 0xf89   :  { %9464 = vmatpush3.msra.mxu1 %v11403_v63 }
 0xf8a   :  { %9487 = vmatprep.subr.mxu1 %v12923_v4 }
0x103a   :  { %v2361_v7 = vpop.f32.mrf.mxu1 }
0x103b   :  { %v2362_v30 = vadd.f32 %v2361_v7, %v2291_v19 }
0x103c   :  { %v9429_v46 = vpop.f32.mrf.mxu1 }
0x103d   :  { %2381 = vrot.lane.b32.xlu0 %v2362_v30, %s10558_s5  ;;  %v2373_v39 = vadd.f32 %v2372_v13, %v2362_v30 }
0x103f   :  { %v8464_v16 = vmul.f32 -1.442695, %v2373_v39 }
0x1041   :  { %434 = vbcast.lane.b32.xlu0 %v432_v47, 256  ;;  %10105 = vpow2.f32 %v8464_v16 }
0x104e   :  { %v10106_v52 = vpop.eup %10105 }
0x104f   :  { %v2377_v38 = vadd.f32 1.0, %v10106_v52 }
0x1051   :  { %10107 = vrcp.f32 %v2377_v38 }
0x105e   :  { %v10108_v19 = vpop.eup %10107 }
0x105f   :  { %v2391_v26 = vsub.f32 1.0, %v10108_v19 }
0x10af   :  { %v2382_v7 = vpop.permute.xlu0 %2381 }
0x10b0   :  { %v2384_v46 = vmul.f32 %v10108_v19, %v2382_v7 }
0x10b2   :  { %2386 = vrot.lane.b32.xlu1 %v2384_v46, %s10558_s5 }
0x10b3   :  { %v435_v47 = vpop.permute.xlu0 %434 }
0x10b4   :  { %482 = vst.msk [vmem:[#allocation6 + $0x14] sm:$0x3] %vm471_vm10, %v435_v47 }
0x10b6   :  { %399 = vbcast.lane.b32.xlu1 %v397_v43, 256  ;;  %v2397_v43 = vmul.f32 %v10108_v19, %v11415_v57 }
0x10bb   :  { %v2270_v52 = vld [vmem:[#allocation6 + $0x14] sm:$0x3] }
0x10bc   :  { %v2400_v38 = vrot.slane %v2270_v52, 6 }
0x1124   :  { %v2387_v41 = vpop.permute.xlu1 %2386 }
0x1125   :  { %v2389_v30 = vadd.f32 %v2387_v41, %v2372_v13  ;;  %v1251_v13 = vcombine.high %v11461_v34, %v11461_v34 }
0x1127   :  { %10109 = vtanh.f32 %v2389_v30  ;;  %v1349_v46 = vrot.slane %v1251_v13, %v10942_v14 }
0x1128   :  { %v400_v44 = vpop.permute.xlu1 %399 }
0x1129   :  { %477 = vst.msk [vmem:[#allocation6 + $0xa] sm:$0x3] %vm471_vm10, %v400_v44  ;;  %v1350_v52 = vcombine.high %v1349_v46, %v1349_v46 }
0x1130   :  { %v2268_v39 = vld [vmem:[#allocation6 + $0xa] sm:$0x3] }
0x1131   :  { %v2402_v18 = vsel %vm1518_vm2, %v2268_v39, %v2400_v38 }
0x1132   :  { %vm2403_vm12 = vcmp.gt.f32.partialorder %v2402_v18, 0.5 }
0x1133   :  { %v2404_v16 = vsel %vm2403_vm12, 1, %v10571_v5 }
0x1134   :  { %v10110_v7 = vpop.eup %10109  ;;  %2406 = vperm.xlu0 %9799, %v2404_v16  }
0x1135   :  { %2393 = vrot.lane.b32.xlu1 %v10110_v7, %s10574_s6 }
0x1139   :  { %1435 = vrot.lane.b32.xlu1 %v1349_v46, %s10573_s28 }
0x11a7   :  { %v2394_v25 = vpop.permute.xlu1 %2393 }
0x11a8   :  { %v2396_v32 = vmul.f32 %v2394_v25, %v2391_v26  ;;  %v2443_v25 = vld [vmem:[%s12960_s26] sm:$0xf] }
0x11aa   :  { %v2398_v47 = vadd.f32 %v2397_v43, %v2396_v32 }
0x11af   :  { %v2407_v41 = vpop.permute.xlu0 %2406 }
0x11b0   :  { %vm2408_vm13 = vcmp.eq.s32.totalorder %v2407_v41, 1 }
0x11b1   :  { %v11471_v30 = vsel %vm2408_vm13, %v2398_v47, 0.0  ;;  %v11474_v44 = vsel %vm2408_vm13, %v2398_v47, %v11415_v57  ;;  %v1436_v57 = vpop.permute.xlu1 %1435  ;;  %v425_v47 = vrot.slane %v11128_v56, %v11034_v35 }
0x11b2   :  { %2424 = vrot.lane.b32.xlu0 %v11474_v44, %s10574_s6  ;;  %v2428_v38 = vrot.slane %v11474_v44, 2 }
0x11b4   :  { %v2430_v39 = vsel %vm1463_vm7, 0.0, %v2428_v38  ;;  %v2518_v38 = vld [vmem:[#allocation2 + $0xc] sm:$0x3] }
0x11b5   :  { %v2432_v19 = vrot.slane %v2430_v39, 6 }
0x11b6   :  { %1437 = vrot.lane.b32.xlu0 %v1350_v52, %s10573_s28 }
0x1224   :  { %v2425_v18 = vpop.permute.xlu0 %2424 }
0x1225   :  { %v2427_v16 = vsel %vm1463_vm7, %v2425_v18, 0.0 }
0x1226   :  { %v2434_v13 = vsel %vm1518_vm2, %v2427_v16, %v2432_v19 }
0x1227   :  { %9447 = vmatmul.mubr.msk.f32.vlgmr.msra.gmra.mxu0 %vm580_vm1, %v2434_v13 }
0x1228   :  { %v1438_v7 = vpop.permute.xlu0 %1437  ;;  %9469 = vmatpush3.msra.mxu0 %v11351_v21  ;;  %9484 = vmatprep.mubr.msk.f32.mxu0 %vm10570_vm0, %v12923_v4 }
0x1229   :  { %v1473_v46 = vsel %vm1463_vm7, %v1436_v57, %v1438_v7  ;;  %9470 = vmatprep.subr.mxu0 %v12923_v4 }
0x122a   :  { %1505 = vst.msk [vmem:[#allocation3 + $0x12] sm:$0x3] %vm1178_vm3, %v1473_v46  ;;  %9471 = vmatpush3.msra.mxu0 %v11354_v51 }
0x122b   :  { %9472 = vmatprep.subr.mxu0 %v12923_v4 }
0x122c   :  { %9473 = vmatpush3.msra.mxu0 %v11362_v37 }
0x122d   :  { %9474 = vmatprep.subr.mxu0 %v12923_v4 }
0x122e   :  { %9475 = vmatpush3.msra.mxu0 %v11369_v40 }
0x122f   :  { %9476 = vmatprep.subr.mxu0 %v12923_v4 }
0x1230   :  { %9477 = vmatpush3.msra.mxu0 %v11376_v27 }
0x1231   :  { %9478 = vmatprep.subr.mxu0 %v12923_v4  ;;  %v2520_v41 = vld [vmem:[#allocation3 + $0x12] sm:$0x3] }
0x1232   :  { %9479 = vmatpush3.msra.mxu0 %v11383_v23  ;;  %v2522_v52 = vrot.slane %v2520_v41, 6 }
0x1233   :  { %9480 = vmatprep.subr.mxu0 %v12923_v4 }
0x1234   :  { %9481 = vmatpush3.msra.mxu0 %v11390_v45  ;;  %v2524_v39 = vsel %vm1518_vm2, %v2518_v38, %v2522_v52 }
0x1235   :  { %9482 = vmatprep.subr.mxu0 %v12923_v4 }
0x1236   :  { %9483 = vmatpush3.msra.mxu0 %v11403_v63 }
0x1237   :  { %9506 = vmatprep.subr.mxu0 %v12923_v4 }
0x12e7   :  { %v2513_v26 = vpop.f32.mrf.mxu0 }
0x12e8   :  { %v2514_v32 = vadd.f32 %v2513_v26, %v2443_v25  ;;  %v12961_v25 = vsub.s32 6, %v10938_v0 }
0x12e9   :  { %v9448_v43 = vpop.f32.mrf.mxu0 }
0x12ea   :  { %2533 = vrot.lane.b32.xlu1 %v2514_v32, %s10558_s5  ;;  %v2525_v18 = vadd.f32 %v2524_v39, %v2514_v32  ;;  %v404_v26 = vrot.slane %v11148_v1, %v12961_v25 }
0x12ec   :  { %v8466_v19 = vmul.f32 -1.442695, %v2525_v18 }
0x12ee   :  { %427 = vbcast.lane.b32.xlu1 %v425_v47, 256  ;;  %10111 = vpow2.f32 %v8466_v19 }
0x12fb   :  { %v10112_v16 = vpop.eup %10111 }
0x12fc   :  { %v2529_v13 = vadd.f32 1.0, %v10112_v16 }
0x12fe   :  { %10113 = vrcp.f32 %v2529_v13 }
0x130b   :  { %v10114_v57 = vpop.eup %10113 }
0x135c   :  { %v2534_v7 = vpop.permute.xlu1 %2533 }
0x135d   :  { %v2536_v46 = vmul.f32 %v10114_v57, %v2534_v7  ;;  %v1341_v7 = vrot.slane %v11461_v34, %v10942_v14 }
0x135f   :  { %2538 = vrot.lane.b32.xlu0 %v2536_v46, %s10558_s5  ;;  %v2543_v46 = vsub.f32 1.0, %v10114_v57 }
0x1360   :  { %v428_v43 = vpop.permute.xlu1 %427 }
0x1361   :  { %481 = vst.msk [vmem:[#allocation6 + $0x12] sm:$0x3] %vm471_vm10, %v428_v43 }
0x1363   :  { %406 = vbcast.lane.b32.xlu0 %v404_v26, 256  ;;  %v2549_v26 = vmul.f32 %v10114_v57, %v11474_v44 }
0x1368   :  { %v2422_v52 = vld [vmem:[#allocation6 + $0x12] sm:$0x3] }
0x1369   :  { %v2552_v38 = vrot.slane %v2422_v52, 6  ;;  %v1342_v52 = vcombine.high %v1341_v7, %v1341_v7 }
0x13d1   :  { %v2539_v47 = vpop.permute.xlu0 %2538 }
0x13d2   :  { %v2541_v32 = vadd.f32 %v2539_v47, %v2524_v39 }
0x13d4   :  { %10115 = vtanh.f32 %v2541_v32 }
0x13d5   :  { %v407_v41 = vpop.permute.xlu0 %406 }
0x13d6   :  { %478 = vst.msk [vmem:[#allocation6 + $0xc] sm:$0x3] %vm471_vm10, %v407_v41 }
0x13dd   :  { %v2420_v18 = vld [vmem:[#allocation6 + $0xc] sm:$0x3] }
0x13de   :  { %v2554_v19 = vsel %vm1518_vm2, %v2420_v18, %v2552_v38 }
0x13df   :  { %vm2555_vm14 = vcmp.gt.f32.partialorder %v2554_v19, 0.5 }
0x13e0   :  { %v2556_v16 = vsel %vm2555_vm14, 1, %v10571_v5 }
0x13e1   :  { %v10116_v13 = vpop.eup %10115  ;;  %2558 = vperm.xlu1 %9800, %v2556_v16  }
0x13e2   :  { %2545 = vrot.lane.b32.xlu0 %v10116_v13, %s10574_s6 }
0x13e6   :  { %1431 = vrot.lane.b32.xlu0 %v1341_v7, %s10573_s28 }
0x1454   :  { %v2546_v39 = vpop.permute.xlu0 %2545 }
0x1455   :  { %v2548_v25 = vmul.f32 %v2546_v39, %v2543_v46  ;;  %v2595_v39 = vld [vmem:[%s12960_s26] sm:$0xf] }
0x1457   :  { %v2550_v43 = vadd.f32 %v2549_v26, %v2548_v25 }
0x145c   :  { %v2559_v47 = vpop.permute.xlu1 %2558 }
0x145d   :  { %vm2560_vm15 = vcmp.eq.s32.totalorder %v2559_v47, 1 }
0x145e   :  { %v11522_v32 = vsel %vm2560_vm15, %v2550_v43, 0.0  ;;  %v11525_v41 = vsel %vm2560_vm15, %v2550_v43, %v11474_v44  ;;  %v1432_v44 = vpop.permute.xlu0 %1431  ;;  %v418_v43 = vrot.slane %v11128_v56, %v11030_v33 }
0x145f   :  { %2576 = vrot.lane.b32.xlu1 %v11525_v41, %s10574_s6  ;;  %v2580_v34 = vrot.slane %v11525_v41, 2 }
0x1461   :  { %v2582_v38 = vsel %vm1463_vm7, 0.0, %v2580_v34  ;;  %v2670_v34 = vld [vmem:[#allocation2 + $0xe] sm:$0x3] }
0x1462   :  { %v2584_v57 = vrot.slane %v2582_v38, 6 }
0x1463   :  { %1433 = vrot.lane.b32.xlu1 %v1342_v52, %s10573_s28 }
0x14d1   :  { %v2577_v18 = vpop.permute.xlu1 %2576 }
0x14d2   :  { %v2579_v19 = vsel %vm1463_vm7, %v2577_v18, 0.0 }
0x14d3   :  { %v2586_v16 = vsel %vm1518_vm2, %v2579_v19, %v2584_v57 }
0x14d4   :  { %9466 = vmatmul.mubr.msk.f32.vlgmr.msra.gmra.mxu1 %vm580_vm1, %v2586_v16 }
0x14d5   :  { %v1434_v13 = vpop.permute.xlu1 %1433  ;;  %9488 = vmatpush3.msra.mxu1 %v11351_v21  ;;  %9503 = vmatprep.mubr.msk.f32.mxu1 %vm10570_vm0, %v12923_v4 }
0x14d6   :  { %v1472_v7 = vsel %vm1463_vm7, %v1432_v44, %v1434_v13  ;;  %9489 = vmatprep.subr.mxu1 %v12923_v4 }
0x14d7   :  { %1504 = vst.msk [vmem:[#allocation3 + $0x10] sm:$0x3] %vm1178_vm3, %v1472_v7  ;;  %9490 = vmatpush3.msra.mxu1 %v11354_v51 }
0x14d8   :  { %9491 = vmatprep.subr.mxu1 %v12923_v4 }
0x14d9   :  { %9492 = vmatpush3.msra.mxu1 %v11362_v37 }
0x14da   :  { %9493 = vmatprep.subr.mxu1 %v12923_v4 }
0x14db   :  { %9494 = vmatpush3.msra.mxu1 %v11369_v40 }
0x14dc   :  { %9495 = vmatprep.subr.mxu1 %v12923_v4 }
0x14dd   :  { %9496 = vmatpush3.msra.mxu1 %v11376_v27 }
0x14de   :  { %9497 = vmatprep.subr.mxu1 %v12923_v4  ;;  %v2672_v47 = vld [vmem:[#allocation3 + $0x10] sm:$0x3] }
0x14df   :  { %9498 = vmatpush3.msra.mxu1 %v11383_v23  ;;  %v2674_v52 = vrot.slane %v2672_v47, 6 }
0x14e0   :  { %9499 = vmatprep.subr.mxu1 %v12923_v4 }
0x14e1   :  { %9500 = vmatpush3.msra.mxu1 %v11390_v45  ;;  %v2676_v38 = vsel %vm1518_vm2, %v2670_v34, %v2674_v52  ;;  %v12963_v34 = vcombine.high %v11052_v8, %v11056_v15 }
0x14e2   :  { %9501 = vmatprep.subr.mxu1 %v12923_v4 }
0x14e3   :  { %9502 = vmatpush3.msra.mxu1 %v11403_v63 }
0x14e4   :  { %9525 = vmatprep.subr.mxu1 %v12923_v4 }
0x1594   :  { %v2665_v46 = vpop.f32.mrf.mxu1 }
0x1595   :  { %v2666_v25 = vadd.f32 %v2665_v46, %v2595_v39  ;;  %v12962_v39 = vsub.s32 7, %v10938_v0 }
0x1596   :  { %v9467_v26 = vpop.f32.mrf.mxu1 }
0x1597   :  { %2685 = vrot.lane.b32.xlu0 %v2666_v25, %s10558_s5  ;;  %v2677_v18 = vadd.f32 %v2676_v38, %v2666_v25  ;;  %v411_v56 = vrot.slane %v11148_v1, %v12962_v39 }
0x1599   :  { %v8468_v57 = vmul.f32 -1.442695, %v2677_v18  ;;  %v11570_v18 = vrot.slane %v12963_v34, %v10942_v14 }
0x159b   :  { %420 = vbcast.lane.b32.xlu0 %v418_v43, 256  ;;  %10117 = vpow2.f32 %v8468_v57 }
0x15a8   :  { %v10118_v19 = vpop.eup %10117 }
0x15a9   :  { %v2681_v16 = vadd.f32 1.0, %v10118_v19 }
0x15ab   :  { %10119 = vrcp.f32 %v2681_v16 }
0x15b8   :  { %v10120_v44 = vpop.eup %10119 }
0x1609   :  { %v2686_v13 = vpop.permute.xlu0 %2685 }
0x160a   :  { %v2688_v7 = vmul.f32 %v10120_v44, %v2686_v13 }
0x160c   :  { %2690 = vrot.lane.b32.xlu1 %v2688_v7, %s10558_s5  ;;  %v2695_v7 = vsub.f32 1.0, %v10120_v44 }
0x160d   :  { %v421_v46 = vpop.permute.xlu0 %420 }
0x160e   :  { %480 = vst.msk [vmem:[#allocation6 + $0x10] sm:$0x3] %vm471_vm10, %v421_v46 }
0x1610   :  { %413 = vbcast.lane.b32.xlu1 %v411_v56, 256  ;;  %v2701_v56 = vmul.f32 %v10120_v44, %v11525_v41 }
0x1615   :  { %v2574_v47 = vld [vmem:[#allocation6 + $0x10] sm:$0x3] }
0x1616   :  { %v2704_v52 = vrot.slane %v2574_v47, 6 }
0x167e   :  { %v2691_v26 = vpop.permute.xlu1 %2690 }
0x167f   :  { %v2693_v25 = vadd.f32 %v2691_v26, %v2676_v38  ;;  %v1234_v38 = vcombine.high %v11570_v18, %v11570_v18 }
0x1681   :  { %10121 = vtanh.f32 %v2693_v25  ;;  %v1333_v16 = vrot.slane %v1234_v38, %v10942_v14 }
0x1682   :  { %v414_v43 = vpop.permute.xlu1 %413 }
0x1683   :  { %479 = vst.msk [vmem:[#allocation6 + $0xe] sm:$0x3] %vm471_vm10, %v414_v43  ;;  %v1334_v47 = vcombine.high %v1333_v16, %v1333_v16 }
0x168a   :  { %v2572_v0 = vld [vmem:[#allocation6 + $0xe] sm:$0x3] }
0x168b   :  { %v2706_v1 = vsel %vm1518_vm2, %v2572_v0, %v2704_v52 }
0x168c   :  { %vm2707_vm4 = vcmp.gt.f32.partialorder %v2706_v1, 0.5 }
0x168d   :  { %v2708_v57 = vsel %vm2707_vm4, 1, %v10571_v5 }
0x168e   :  { %v10122_v19 = vpop.eup %10121  ;;  %2710 = vperm.xlu0 %9799, %v2708_v57  }
0x168f   :  { %2697 = vrot.lane.b32.xlu1 %v10122_v19, %s10574_s6 }
0x1693   :  { %1427 = vrot.lane.b32.xlu1 %v1333_v16, %s10573_s28  ;;  %v2724_v16 = vld [vmem:[#allocation6 + $0xe] sm:$0x3] }
0x1701   :  { %v2698_v13 = vpop.permute.xlu1 %2697 }
0x1702   :  { %v2700_v39 = vmul.f32 %v2698_v13, %v2695_v7  ;;  %v2854_v13 = vrot.slane %v2724_v16, 6  ;;  %v2745_v7 = vld [vmem:[%s12960_s26] sm:$0xf] }
0x1704   :  { %v2702_v46 = vadd.f32 %v2701_v56, %v2700_v39  ;;  %v2723_v39 = vld [vmem:[#allocation6 + $0x10] sm:$0x3] }
0x1709   :  { %v2711_v26 = vpop.permute.xlu0 %2710 }
0x170a   :  { %vm2712_vm10 = vcmp.eq.s32.totalorder %v2711_v26, 1 }
0x170b   :  { %v11580_v25 = vsel %vm2712_vm10, %v2702_v46, 0.0  ;;  %v11583_v43 = vsel %vm2712_vm10, %v2702_v46, %v11525_v41  ;;  %v1428_v41 = vpop.permute.xlu1 %1427  ;;  %v2856_v46 = vsel %vm1518_vm2, %v2723_v39, %v2854_v13 }
0x170c   :  { %2726 = vrot.lane.b32.xlu0 %v11583_v43, %s10574_s6  ;;  %v2730_v52 = vrot.slane %v11583_v43, 2  ;;  %vm2857_vm6 = vcmp.gt.f32.partialorder %v2856_v46, 0.5 }
0x170e   :  { %v2732_v34 = vsel %vm1463_vm7, 0.0, %v2730_v52  ;;  %v2858_v52 = vsel %vm2857_vm6, 1, %v10571_v5 }
0x170f   :  { %v2734_v44 = vrot.slane %v2732_v34, 6 }
0x1710   :  { %1429 = vrot.lane.b32.xlu0 %v1334_v47, %s10573_s28 }
0x177e   :  { %v2727_v0 = vpop.permute.xlu0 %2726 }
0x177f   :  { %v2729_v1 = vsel %vm1463_vm7, %v2727_v0, 0.0 }
0x1780   :  { %v2736_v57 = vsel %vm1518_vm2, %v2729_v1, %v2734_v44  ;;  %v2820_v44 = vld [vmem:[#allocation2 + $0x10] sm:$0x3] }
0x1781   :  { %9485 = vmatmul.mubr.msk.f32.vlgmr.msra.gmra.mxu0 %vm580_vm1, %v2736_v57 }
0x1782   :  { %v1430_v38 = vpop.permute.xlu0 %1429  ;;  %9507 = vmatpush3.msra.mxu0 %v11351_v21  ;;  %9522 = vmatprep.mubr.msk.f32.mxu0 %vm10570_vm0, %v12923_v4 }
0x1783   :  { %v1471_v19 = vsel %vm1463_vm7, %v1428_v41, %v1430_v38  ;;  %9508 = vmatprep.subr.mxu0 %v12923_v4 }
0x1784   :  { %1503 = vst.msk [vmem:[#allocation3 + $0xe] sm:$0x3] %vm1178_vm3, %v1471_v19  ;;  %9509 = vmatpush3.msra.mxu0 %v11354_v51 }
0x1785   :  { %9510 = vmatprep.subr.mxu0 %v12923_v4 }
0x1786   :  { %9511 = vmatpush3.msra.mxu0 %v11362_v37 }
0x1787   :  { %9512 = vmatprep.subr.mxu0 %v12923_v4 }
0x1788   :  { %9513 = vmatpush3.msra.mxu0 %v11369_v40 }
0x1789   :  { %9514 = vmatprep.subr.mxu0 %v12923_v4 }
0x178a   :  { %9515 = vmatpush3.msra.mxu0 %v11376_v27 }
0x178b   :  { %9516 = vmatprep.subr.mxu0 %v12923_v4  ;;  %v2822_v34 = vld [vmem:[#allocation3 + $0xe] sm:$0x3] }
0x178c   :  { %9517 = vmatpush3.msra.mxu0 %v11383_v23  ;;  %v2824_v0 = vrot.slane %v2822_v34, 6 }
0x178d   :  { %9518 = vmatprep.subr.mxu0 %v12923_v4 }
0x178e   :  { %9519 = vmatpush3.msra.mxu0 %v11390_v45  ;;  %v2826_v1 = vsel %vm1518_vm2, %v2820_v44, %v2824_v0 }
0x178f   :  { %9520 = vmatprep.subr.mxu0 %v12923_v4 }
0x1790   :  { %9521 = vmatpush3.msra.mxu0 %v11403_v63 }
0x1791   :  { %9544 = vmatprep.subr.mxu0 %v12923_v4 }
0x1841   :  { %v2815_v56 = vpop.f32.mrf.mxu0 }
0x1842   :  { %v2816_v26 = vadd.f32 %v2815_v56, %v2745_v7 }
0x1843   :  { %v9486_v47 = vpop.f32.mrf.mxu0 }
0x1844   :  { %2835 = vrot.lane.b32.xlu1 %v2816_v26, %s10558_s5  ;;  %v2827_v57 = vadd.f32 %v2826_v1, %v2816_v26  ;;  %v1325_v47 = vrot.slane %v11570_v18, %v10942_v14 }
0x1846   :  { %v8470_v41 = vmul.f32 -1.442695, %v2827_v57 }
0x1848   :  { %2860 = vperm.xlu1 %9800, %v2858_v52   ;;  %10123 = vpow2.f32 %v8470_v41 }
0x1855   :  { %v10124_v38 = vpop.eup %10123 }
0x1856   :  { %v2831_v19 = vadd.f32 1.0, %v10124_v38  ;;  %v1326_v38 = vcombine.high %v1325_v47, %v1325_v47 }
0x1858   :  { %10125 = vrcp.f32 %v2831_v19 }
0x1865   :  { %v10126_v16 = vpop.eup %10125 }
0x1866   :  { %v2845_v26 = vsub.f32 1.0, %v10126_v16  ;;  %v2851_v0 = vmul.f32 %v10126_v16, %v11583_v43 }
0x18b6   :  { %v2836_v13 = vpop.permute.xlu1 %2835 }
0x18b7   :  { %v2838_v7 = vmul.f32 %v10126_v16, %v2836_v13 }
0x18b9   :  { %2840 = vrot.lane.b32.xlu0 %v2838_v7, %s10558_s5 }
0x18c3   :  { %v2861_v34 = vpop.permute.xlu1 %2860 }
0x18c4   :  { %vm2862_vm8 = vcmp.eq.s32.totalorder %v2861_v34, 1 }
0x192b   :  { %v2841_v39 = vpop.permute.xlu0 %2840 }
0x192c   :  { %v2843_v56 = vadd.f32 %v2841_v39, %v2826_v1 }
0x192e   :  { %10127 = vtanh.f32 %v2843_v56 }
0x193b   :  { %v10128_v46 = vpop.eup %10127 }
0x193c   :  { %2847 = vrot.lane.b32.xlu0 %v10128_v46, %s10574_s6 }
0x1940   :  { %1423 = vrot.lane.b32.xlu0 %v1325_v47, %s10573_s28 }
0x19ae   :  { %v2848_v52 = vpop.permute.xlu0 %2847 }
0x19af   :  { %v2850_v44 = vmul.f32 %v2848_v52, %v2845_v26 }
0x19b1   :  { %v2852_v57 = vadd.f32 %v2851_v0, %v2850_v44 }
0x19b3   :  { %v11625_v41 = vsel %vm2862_vm8, %v2852_v57, %v11583_v43  ;;  %v11627_v1 = vsel %vm2862_vm8, %v2852_v57, 0.0  ;;  %v1424_v43 = vpop.permute.xlu0 %1423 }
0x19b4   :  { %2876 = vrot.lane.b32.xlu1 %v11625_v41, %s10574_s6  ;;  %v2880_v18 = vrot.slane %v11625_v41, 2 }
0x19b6   :  { %v2882_v19 = vsel %vm1463_vm7, 0.0, %v2880_v18 }
0x19b7   :  { %v2884_v16 = vrot.slane %v2882_v19, 6 }
0x19b8   :  { %1425 = vrot.lane.b32.xlu1 %v1326_v38, %s10573_s28 }
0x1a26   :  { %v2877_v13 = vpop.permute.xlu1 %2876 }
0x1a27   :  { %v2879_v7 = vsel %vm1463_vm7, %v2877_v13, 0.0 }
0x1a28   :  { %v2886_v39 = vsel %vm1518_vm2, %v2879_v7, %v2884_v16 }
0x1a29   :  { %9504 = vmatmul.mubr.msk.f32.vlgmr.msra.gmra.mxu1 %vm580_vm1, %v2886_v39 }
0x1a2a   :  { %v1426_v56 = vpop.permute.xlu1 %1425  ;;  %9526 = vmatpush3.msra.mxu1 %v11351_v21  ;;  %9541 = vmatprep.mubr.msk.f32.mxu1 %vm10570_vm0, %v12923_v4  ;;  %v2874_v21 = vld [vmem:[#allocation6 + $0xc] sm:$0x3] }
0x1a2b   :  { %v1470_v46 = vsel %vm1463_vm7, %v1424_v43, %v1426_v56  ;;  %9527 = vmatprep.subr.mxu1 %v12923_v4  ;;  %v12964_v43 = vcombine.low %v11052_v8, %v11056_v15 }
0x1a2c   :  { %1502 = vst.msk [vmem:[#allocation3 + $0xc] sm:$0x3] %vm1178_vm3, %v1470_v46  ;;  %9528 = vmatpush3.msra.mxu1 %v11354_v51  ;;  %v3004_v51 = vrot.slane %v2874_v21, 6 }
0x1a2d   :  { %9529 = vmatprep.subr.mxu1 %v12923_v4  ;;  %v1225_v56 = vrot.slane %v12964_v43, %v10942_v14 }
0x1a2e   :  { %9530 = vmatpush3.msra.mxu1 %v11362_v37  ;;  %v2895_v37 = vld [vmem:[%s12960_s26] sm:$0xf] }
0x1a2f   :  { %9531 = vmatprep.subr.mxu1 %v12923_v4  ;;  %v1233_v46 = vcombine.high %v1225_v56, %v1225_v56 }
0x1a30   :  { %9532 = vmatpush3.msra.mxu1 %v11369_v40  ;;  %v2873_v40 = vld [vmem:[#allocation6 + $0x12] sm:$0x3] }
0x1a31   :  { %9533 = vmatprep.subr.mxu1 %v12923_v4 }
0x1a32   :  { %9534 = vmatpush3.msra.mxu1 %v11376_v27  ;;  %v3006_v27 = vsel %vm1518_vm2, %v2873_v40, %v3004_v51  ;;  %v1317_v51 = vrot.slane %v1233_v46, %v10942_v14 }
0x1a33   :  { %9535 = vmatprep.subr.mxu1 %v12923_v4  ;;  %vm3007_vm9 = vcmp.gt.f32.partialorder %v3006_v27, 0.5 }
0x1a34   :  { %9536 = vmatpush3.msra.mxu1 %v11383_v23  ;;  %v3008_v23 = vsel %vm3007_vm9, 1, %v10571_v5  ;;  %v1318_v15 = vcombine.high %v1317_v51, %v1317_v51 }
0x1a35   :  { %9537 = vmatprep.subr.mxu1 %v12923_v4 }
0x1a36   :  { %9538 = vmatpush3.msra.mxu1 %v11390_v45  ;;  %v2972_v45 = vld [vmem:[#allocation3 + $0xc] sm:$0x3] }
0x1a37   :  { %9539 = vmatprep.subr.mxu1 %v12923_v4  ;;  %v2974_v34 = vrot.slane %v2972_v45, 6 }
0x1a38   :  { %9540 = vmatpush3.msra.mxu1 %v11403_v63  ;;  %v2970_v63 = vld [vmem:[#allocation2 + $0x12] sm:$0x3] }
0x1a39   :  { %9563 = vmatprep.subr.mxu1 %v12923_v4  ;;  %v2976_v0 = vsel %vm1518_vm2, %v2970_v63, %v2974_v34 }
0x1ae9   :  { %v2965_v47 = vpop.f32.mrf.mxu1 }
0x1aea   :  { %v2966_v26 = vadd.f32 %v2965_v47, %v2895_v37 }
0x1aeb   :  { %v9505_v52 = vpop.f32.mrf.mxu1 }
0x1aec   :  { %2985 = vrot.lane.b32.xlu0 %v2966_v26, %s10558_s5  ;;  %v2977_v44 = vadd.f32 %v2976_v0, %v2966_v26 }
0x1aee   :  { %v8472_v57 = vmul.f32 -1.442695, %v2977_v44 }
0x1af0   :  { %3010 = vperm.xlu0 %9799, %v3008_v23   ;;  %10129 = vpow2.f32 %v8472_v57 }
0x1afd   :  { %v10130_v38 = vpop.eup %10129 }
0x1afe   :  { %v2981_v18 = vadd.f32 1.0, %v10130_v38 }
0x1b00   :  { %10131 = vrcp.f32 %v2981_v18 }
0x1b0d   :  { %v10132_v19 = vpop.eup %10131 }
0x1b0e   :  { %v2995_v37 = vsub.f32 1.0, %v10132_v19  ;;  %v3001_v27 = vmul.f32 %v10132_v19, %v11625_v41 }
0x1b5e   :  { %v2986_v13 = vpop.permute.xlu0 %2985 }
0x1b5f   :  { %v2988_v16 = vmul.f32 %v10132_v19, %v2986_v13  ;;  %v3024_v19 = vld [vmem:[#allocation6 + $0xa] sm:$0x3] }
0x1b60   :  { %v3154_v13 = vrot.slane %v3024_v19, 6 }
0x1b61   :  { %2990 = vrot.lane.b32.xlu1 %v2988_v16, %s10558_s5  ;;  %v3045_v16 = vld [vmem:[%s12960_s26] sm:$0xf] }
0x1b6b   :  { %v3011_v47 = vpop.permute.xlu0 %3010 }
0x1b6c   :  { %vm3012_vm11 = vcmp.eq.s32.totalorder %v3011_v47, 1  ;;  %v3120_v47 = vld [vmem:[#allocation2 + $0x14] sm:$0x3] }
0x1bd3   :  { %v2991_v7 = vpop.permute.xlu1 %2990 }
0x1bd4   :  { %v2993_v39 = vadd.f32 %v2991_v7, %v2976_v0  ;;  %v3023_v7 = vld [vmem:[#allocation6 + $0x14] sm:$0x3] }
0x1bd5   :  { %v3156_v43 = vsel %vm1518_vm2, %v3023_v7, %v3154_v13 }
0x1bd6   :  { %10133 = vtanh.f32 %v2993_v39  ;;  %vm3157_vm12 = vcmp.gt.f32.partialorder %v3156_v43, 0.5 }
0x1be3   :  { %v10134_v21 = vpop.eup %10133 }
0x1be4   :  { %2997 = vrot.lane.b32.xlu1 %v10134_v21, %s10574_s6 }
0x1be8   :  { %1419 = vrot.lane.b32.xlu1 %v1317_v51, %s10573_s28  ;;  %v3158_v51 = vsel %vm3157_vm12, 1, %v10571_v5  ;;  %vm1656_vm12 = vcmask 257026  }
0x1c56   :  { %v2998_v40 = vpop.permute.xlu1 %2997 }
0x1c57   :  { %v3000_v26 = vmul.f32 %v2998_v40, %v2995_v37 }
0x1c59   :  { %v3002_v52 = vadd.f32 %v3001_v27, %v3000_v26 }
0x1c5b   :  { %v3022_v23 = vsel %vm3012_vm11, %v3002_v52, %v11625_v41  ;;  %v11672_v8 = vsel %vm3012_vm11, %v3002_v52, 0.0  ;;  %v1420_v41 = vpop.permute.xlu1 %1419 }
0x1c5c   :  { %3026 = vrot.lane.b32.xlu0 %v3022_v23, %s10574_s6  ;;  %v3030_v45 = vrot.slane %v3022_v23, 2 }
0x1c5e   :  { %v3032_v34 = vsel %vm1463_vm7, 0.0, %v3030_v45 }
0x1c5f   :  { %v3034_v0 = vrot.slane %v3032_v34, 6 }
0x1c60   :  { %1421 = vrot.lane.b32.xlu0 %v1318_v15, %s10573_s28 }
0x1cce   :  { %v3027_v63 = vpop.permute.xlu0 %3026 }
0x1ccf   :  { %v3029_v44 = vsel %vm1463_vm7, %v3027_v63, 0.0 }
0x1cd0   :  { %v3036_v57 = vsel %vm1518_vm2, %v3029_v44, %v3034_v0 }
0x1cd1   :  { %9523 = vmatmul.mubr.msk.f32.vlgmr.msra.gmra.mxu0 %vm580_vm1, %v3036_v57 }
0x1cd2   :  { %v1422_v38 = vpop.permute.xlu0 %1421  ;;  %9560 = vmatprep.mubr.msk.f32.mxu0 %vm10570_vm0, %v12923_v4 }
0x1cd3   :  { %v1469_v18 = vsel %vm1463_vm7, %v1420_v41, %v1422_v38  ;;  %v1309_v38 = vrot.slane %v1225_v56, %v10942_v14 }
0x1cd4   :  { %1501 = vst.msk [vmem:[#allocation3 + $0xa] sm:$0x3] %vm1178_vm3, %v1469_v18 }
0x1cdb   :  { %v3122_v37 = vld [vmem:[#allocation3 + $0xa] sm:$0x3] }
0x1cdc   :  { %v3124_v40 = vrot.slane %v3122_v37, 6 }
0x1cde   :  { %v3126_v27 = vsel %vm1518_vm2, %v3120_v47, %v3124_v40 }
0x1d91   :  { %v3115_v39 = vpop.f32.mrf.mxu0 }
0x1d92   :  { %v3116_v46 = vadd.f32 %v3115_v39, %v3045_v16 }
0x1d93   :  { %v9524_v21 = vpop.f32.mrf.mxu0 }
0x1d94   :  { %3135 = vrot.lane.b32.xlu1 %v3116_v46, %s10558_s5  ;;  %v3127_v26 = vadd.f32 %v3126_v27, %v3116_v46  ;;  %v1310_v21 = vcombine.high %v1309_v38, %v1309_v38 }
0x1d96   :  { %v8474_v52 = vmul.f32 -1.442695, %v3127_v26 }
0x1d98   :  { %3160 = vperm.xlu1 %9800, %v3158_v51   ;;  %10135 = vpow2.f32 %v8474_v52 }
0x1da5   :  { %v10136_v15 = vpop.eup %10135 }
0x1da6   :  { %v3131_v45 = vadd.f32 1.0, %v10136_v15  ;;  %v3174_v15 = vld [vmem:[#allocation6 + $0x8] sm:$0x3] }
0x1da8   :  { %10137 = vrcp.f32 %v3131_v45  ;;  %v3304_v45 = vrot.slane %v3174_v15, 6  ;;  %v11725_v15 = vld [vmem:[%s12954_s9 + $0x30] sm:$0xff] }
0x1db5   :  { %v10138_v34 = vpop.eup %10137 }
0x1db6   :  { %v3145_v18 = vsub.f32 1.0, %v10138_v34  ;;  %v3151_v16 = vmul.f32 %v10138_v34, %v3022_v23 }
0x1e06   :  { %v3136_v63 = vpop.permute.xlu1 %3135 }
0x1e07   :  { %v3138_v0 = vmul.f32 %v10138_v34, %v3136_v63  ;;  %v3195_v34 = vld [vmem:[%s12960_s26] sm:$0xf]  ;;  %v3173_v63 = vld [vmem:[#allocation6 + $0x16] sm:$0x3] }
0x1e09   :  { %3140 = vrot.lane.b32.xlu0 %v3138_v0, %s10558_s5 }
0x1e13   :  { %v3161_v13 = vpop.permute.xlu1 %3160 }
0x1e14   :  { %vm3162_vm13 = vcmp.eq.s32.totalorder %v3161_v13, 1  ;;  %v3270_v13 = vld [vmem:[#allocation2 + $0x16] sm:$0x3] }
0x1e7b   :  { %v3141_v44 = vpop.permute.xlu0 %3140 }
0x1e7c   :  { %v3143_v57 = vadd.f32 %v3141_v44, %v3126_v27  ;;  %v3306_v44 = vsel %vm1518_vm2, %v3173_v63, %v3304_v45 }
0x1e7d   :  { %vm3307_vm14 = vcmp.gt.f32.partialorder %v3306_v44, 0.5 }
0x1e7e   :  { %10139 = vtanh.f32 %v3143_v57 }
0x1e8b   :  { %v10140_v41 = vpop.eup %10139 }
0x1e8c   :  { %3147 = vrot.lane.b32.xlu0 %v10140_v41, %s10574_s6 }
0x1e90   :  { %1415 = vrot.lane.b32.xlu0 %v1309_v38, %s10573_s28  ;;  %v3308_v38 = vsel %vm3307_vm14, 1, %v10571_v5  ;;  %vm4424_vm14 = vcmask 1043459  }
0x1efe   :  { %v3148_v19 = vpop.permute.xlu0 %3147 }
0x1eff   :  { %v3150_v7 = vmul.f32 %v3148_v19, %v3145_v18 }
0x1f01   :  { %v3152_v39 = vadd.f32 %v3151_v16, %v3150_v7 }
0x1f02   :  { %v1416_v27 = vpop.permute.xlu0 %1415 }
0x1f03   :  { %v11693_v43 = vsel %vm3162_vm13, %v3152_v39, %v3022_v23  ;;  %v11695_v46 = vsel %vm3162_vm13, %v3152_v39, 0.0 }
0x1f04   :  { %3176 = vrot.lane.b32.xlu1 %v11693_v43, %s10574_s6  ;;  %v3180_v56 = vrot.slane %v11693_v43, 2 }
0x1f06   :  { %v3182_v51 = vsel %vm1463_vm7, 0.0, %v3180_v56 }
0x1f07   :  { %v3184_v40 = vrot.slane %v3182_v51, 6 }
0x1f08   :  { %1417 = vrot.lane.b32.xlu1 %v1310_v21, %s10573_s28 }
0x1f76   :  { %v3177_v37 = vpop.permute.xlu1 %3176 }
0x1f77   :  { %v3179_v47 = vsel %vm1463_vm7, %v3177_v37, 0.0 }
0x1f78   :  { %v3186_v23 = vsel %vm1518_vm2, %v3179_v47, %v3184_v40 }
0x1f79   :  { %9542 = vmatmul.mubr.msk.f32.vlgmr.msra.gmra.mxu1 %vm580_vm1, %v3186_v23 }
0x1f7a   :  { %v1418_v26 = vpop.permute.xlu1 %1417  ;;  %9579 = vmatprep.mubr.msk.f32.mxu1 %vm10570_vm0, %v12923_v4 }
0x1f7b   :  { %v1468_v52 = vsel %vm1463_vm7, %v1416_v27, %v1418_v26  ;;  %v12965_v27 = vcombine.high %v11038_v48, %v11044_v54 }
0x1f7c   :  { %1500 = vst.msk [vmem:[#allocation3 + $0x8] sm:$0x3] %vm1178_vm3, %v1468_v52  ;;  %v11722_v52 = vld [vmem:[%s12954_s9 + $0x38] sm:$0xff] }
0x1f7d   :  { %v11719_v26 = vrot.slane %v12965_v27, %v10942_v14  ;;  %9545 = vmatpush3.msra.mxu0 %v11722_v52  ;;  %9564 = vmatpush3.msra.mxu1 %v11722_v52 }
0x1f7e   :  { %9546 = vmatprep.subr.mxu0 %v12923_v4  ;;  %9565 = vmatprep.subr.mxu1 %v12923_v4 }
0x1f7f   :  { %v1216_v45 = vcombine.high %v11719_v26, %v11719_v26  ;;  %9547 = vmatpush3.msra.mxu0 %v11725_v15  ;;  %9566 = vmatpush3.msra.mxu1 %v11725_v15 }
0x1f80   :  { %9548 = vmatprep.subr.mxu0 %v12923_v4  ;;  %9567 = vmatprep.subr.mxu1 %v12923_v4 }
0x1f81   :  { %v1301_v44 = vrot.slane %v1216_v45, %v10942_v14 }
0x1f83   :  { %v3272_v18 = vld [vmem:[#allocation3 + $0x8] sm:$0x3] }
0x1f84   :  { %v3274_v19 = vrot.slane %v3272_v18, 6  ;;  %v11776_v18 = vld [vmem:[%s12954_s9] sm:$0xff] }
0x1f86   :  { %v3276_v16 = vsel %vm1518_vm2, %v3270_v13, %v3274_v19 }
0x2039   :  { %v3265_v0 = vpop.f32.mrf.mxu1 }
0x203a   :  { %v3266_v57 = vadd.f32 %v3265_v0, %v3195_v34  ;;  %v11733_v34 = vld [vmem:[%s12954_s9 + $0x28] sm:$0xff]  ;;  %v11741_v0 = vld [vmem:[%s12954_s9 + $0x20] sm:$0xff] }
0x203b   :  { %v9543_v41 = vpop.f32.mrf.mxu1  ;;  %9549 = vmatpush3.msra.mxu0 %v11733_v34  ;;  %9568 = vmatpush3.msra.mxu1 %v11733_v34 }
0x203c   :  { %3285 = vrot.lane.b32.xlu0 %v3266_v57, %s10558_s5  ;;  %v3277_v7 = vadd.f32 %v3276_v16, %v3266_v57  ;;  %9550 = vmatprep.subr.mxu0 %v12923_v4  ;;  %v11748_v57 = vld [vmem:[%s12954_s9 + $0x18] sm:$0xff]  ;;  %v11756_v41 = vld [vmem:[%s12954_s9 + $0x10] sm:$0xff] }
0x203d   :  { %9551 = vmatpush3.msra.mxu0 %v11741_v0  ;;  %9569 = vmatprep.subr.mxu1 %v12923_v4 }
0x203e   :  { %v8476_v39 = vmul.f32 -1.442695, %v3277_v7  ;;  %9552 = vmatprep.subr.mxu0 %v12923_v4  ;;  %9570 = vmatpush3.msra.mxu1 %v11741_v0 }
0x203f   :  { %9553 = vmatpush3.msra.mxu0 %v11748_v57  ;;  %9571 = vmatprep.subr.mxu1 %v12923_v4 }
0x2040   :  { %3310 = vperm.xlu0 %9799, %v3308_v38   ;;  %10141 = vpow2.f32 %v8476_v39  ;;  %9554 = vmatprep.subr.mxu0 %v12923_v4  ;;  %v11762_v38 = vld [vmem:[%s12954_s9 + $0x8] sm:$0xff]  ;;  %s10475_s9 = scalar_lea.vmem %s8358_s20, 32 }
0x2041   :  { %9555 = vmatpush3.msra.mxu0 %v11756_v41  ;;  %9572 = vmatpush3.msra.mxu1 %v11748_v57  ;;  %p10476_p4 = scmp.ne.s32.totalorder %s8358_s20, %s10475_s9  ;;  %p10481_p6 = scmp.lt.s32.totalorder %s10475_s9, %s10475_s9 }
0x2042   :  { %9556 = vmatprep.subr.mxu0 %v12923_v4  ;;  %9573 = vmatprep.subr.mxu1 %v12923_v4 }
0x2043   :  { %9557 = vmatpush3.msra.mxu0 %v11762_v38  ;;  %9574 = vmatpush3.msra.mxu1 %v11756_v41  ;;  %p10482_p7 = por %p10481_p6, %p10480_p5 }
0x2044   :  { %9558 = vmatprep.subr.mxu0 %v12923_v4  ;;  %9575 = vmatprep.subr.mxu1 %v12923_v4 }
0x2045   :  { %9576 = vmatpush3.msra.mxu1 %v11762_v38  ;;  %9559 = vmatpush3.msra.mxu0 %v11776_v18  ;;  %p10483_p8 = pnand %p10482_p7, %p10476_p4 }
0x2046   :  { %9577 = vmatprep.subr.mxu1 %v12923_v4  ;;  %9582 = vmatprep.subr.mxu0 %v12923_v4 }
0x2047   :  { %9578 = vmatpush3.msra.mxu1 %v11776_v18 }
0x2048   :  { %9601 = vmatprep.subr.mxu1 %v12923_v4 }
0x204d   :  { %v10142_v21 = vpop.eup %10141 }
0x204e   :  { %v3281_v56 = vadd.f32 1.0, %v10142_v21 }
0x2050   :  { %10143 = vrcp.f32 %v3281_v56 }
0x205d   :  { %v10144_v51 = vpop.eup %10143 }
0x205e   :  { %v3295_v19 = vsub.f32 1.0, %v10144_v51  ;;  %v3301_v7 = vmul.f32 %v10144_v51, %v11693_v43 }
0x20ae   :  { %v3286_v37 = vpop.permute.xlu0 %3285 }
0x20af   :  { %v3288_v40 = vmul.f32 %v10144_v51, %v3286_v37 }
0x20b1   :  { %3290 = vrot.lane.b32.xlu1 %v3288_v40, %s10558_s5  ;;  %v1302_v40 = vcombine.high %v1301_v44, %v1301_v44 }
0x2123   :  { %v3291_v47 = vpop.permute.xlu1 %3290 }
0x2124   :  { %v3293_v23 = vadd.f32 %v3291_v47, %v3276_v16  ;;  %v3311_v16 = vpop.permute.xlu0 %3310 }
0x2125   :  { %vm3312_vm15 = vcmp.eq.s32.totalorder %v3311_v16, 1 }
0x2126   :  { %10145 = vtanh.f32 %v3293_v23 }
0x2133   :  { %v10146_v63 = vpop.eup %10145 }
0x2134   :  { %3297 = vrot.lane.b32.xlu1 %v10146_v63, %s10574_s6 }
0x2138   :  { %1411 = vrot.lane.b32.xlu1 %v1301_v44, %s10573_s28 }
0x21a6   :  { %v3298_v13 = vpop.permute.xlu1 %3297 }
0x21a7   :  { %v3300_v39 = vmul.f32 %v3298_v13, %v3295_v19  ;;  %v3324_v13 = vld [vmem:[#allocation6 + $0x6] sm:$0x3] }
0x21a8   :  { %v3454_v16 = vrot.slane %v3324_v13, 6 }
0x21a9   :  { %v3302_v21 = vadd.f32 %v3301_v7, %v3300_v39  ;;  %v3345_v7 = vld [vmem:[%s12960_s26] sm:$0xf]  ;;  %v3323_v39 = vld [vmem:[#allocation6 + $0x18] sm:$0x3] }
0x21ab   :  { %v11784_v56 = vsel %vm3312_vm15, %v3302_v21, %v11693_v43  ;;  %v11786_v37 = vsel %vm3312_vm15, %v3302_v21, 0.0  ;;  %v1412_v43 = vpop.permute.xlu1 %1411  ;;  %vm4426_vm15 = vcmask 1044484  }
0x21ac   :  { %3326 = vrot.lane.b32.xlu0 %v11784_v56, %s10574_s6  ;;  %v3330_v47 = vrot.slane %v11784_v56, 2 }
0x21ae   :  { %v3332_v23 = vsel %vm1463_vm7, 0.0, %v3330_v47 }
0x21af   :  { %v3334_v51 = vrot.slane %v3332_v23, 6 }
0x21b0   :  { %1413 = vrot.lane.b32.xlu0 %v1302_v40, %s10573_s28  ;;  %v3456_v40 = vsel %vm1518_vm2, %v3323_v39, %v3454_v16 }
0x21b1   :  { %vm3457_vm4 = vcmp.gt.f32.partialorder %v3456_v40, 0.5 }
0x221e   :  { %v3327_v27 = vpop.permute.xlu0 %3326 }
0x221f   :  { %v3329_v45 = vsel %vm1463_vm7, %v3327_v27, 0.0  ;;  %v3458_v27 = vsel %vm3457_vm4, 1, %v10571_v5  ;;  %vm4428_vm4 = vcmask 1045509  }
0x2220   :  { %v3336_v63 = vsel %vm1518_vm2, %v3329_v45, %v3334_v51 }
0x2221   :  { %9561 = vmatmul.mubr.msk.f32.vlgmr.msra.gmra.mxu0 %vm580_vm1, %v3336_v63  ;;  %v3420_v63 = vld [vmem:[#allocation2 + $0x18] sm:$0x3] }
0x2222   :  { %v1414_v19 = vpop.permute.xlu0 %1413  ;;  %9583 = vmatpush3.msra.mxu0 %v11722_v52  ;;  %9598 = vmatprep.mubr.msk.f32.mxu0 %vm10570_vm0, %v12923_v4 }
0x2223   :  { %v1467_v44 = vsel %vm1463_vm7, %v1412_v43, %v1414_v19  ;;  %9584 = vmatprep.subr.mxu0 %v12923_v4 }
0x2224   :  { %1499 = vst.msk [vmem:[#allocation3 + $0x6] sm:$0x3] %vm1178_vm3, %v1467_v44  ;;  %9585 = vmatpush3.msra.mxu0 %v11725_v15 }
0x2225   :  { %9586 = vmatprep.subr.mxu0 %v12923_v4 }
0x2226   :  { %9587 = vmatpush3.msra.mxu0 %v11733_v34 }
0x2227   :  { %9588 = vmatprep.subr.mxu0 %v12923_v4 }
0x2228   :  { %9589 = vmatpush3.msra.mxu0 %v11741_v0 }
0x2229   :  { %9590 = vmatprep.subr.mxu0 %v12923_v4 }
0x222a   :  { %9591 = vmatpush3.msra.mxu0 %v11748_v57 }
0x222b   :  { %9592 = vmatprep.subr.mxu0 %v12923_v4  ;;  %v3422_v51 = vld [vmem:[#allocation3 + $0x6] sm:$0x3] }
0x222c   :  { %9593 = vmatpush3.msra.mxu0 %v11756_v41  ;;  %v3424_v45 = vrot.slane %v3422_v51, 6 }
0x222d   :  { %9594 = vmatprep.subr.mxu0 %v12923_v4 }
0x222e   :  { %9595 = vmatpush3.msra.mxu0 %v11762_v38  ;;  %v3426_v43 = vsel %vm1518_vm2, %v3420_v63, %v3424_v45 }
0x222f   :  { %9596 = vmatprep.subr.mxu0 %v12923_v4 }
0x2230   :  { %9597 = vmatpush3.msra.mxu0 %v11776_v18 }
0x22e1   :  { %v3415_v21 = vpop.f32.mrf.mxu0 }
0x22e2   :  { %v3416_v47 = vadd.f32 %v3415_v21, %v3345_v7 }
0x22e3   :  { %v9562_v23 = vpop.f32.mrf.mxu0 }
0x22e4   :  { %3435 = vrot.lane.b32.xlu1 %v3416_v47, %s10558_s5  ;;  %v3427_v19 = vadd.f32 %v3426_v43, %v3416_v47 }
0x22e6   :  { %v8478_v44 = vmul.f32 -1.442695, %v3427_v19 }
0x22e8   :  { %3460 = vperm.xlu1 %9800, %v3458_v27   ;;  %10147 = vpow2.f32 %v8478_v44  ;;  %v1293_v27 = vrot.slane %v11719_v26, %v10942_v14 }
0x22f5   :  { %v10148_v13 = vpop.eup %10147 }
0x22f6   :  { %v3431_v4 = vadd.f32 1.0, %v10148_v13  ;;  %v1294_v13 = vcombine.high %v1293_v27, %v1293_v27 }
0x22f8   :  { %10149 = vrcp.f32 %v3431_v4 }
0x2305   :  { %v10150_v16 = vpop.eup %10149 }
0x2306   :  { %v3445_v47 = vsub.f32 1.0, %v10150_v16  ;;  %v3451_v4 = vmul.f32 %v10150_v16, %v11784_v56 }
0x2356   :  { %v3436_v7 = vpop.permute.xlu1 %3435 }
0x2357   :  { %v3438_v39 = vmul.f32 %v10150_v16, %v3436_v7 }
0x2359   :  { %3440 = vrot.lane.b32.xlu0 %v3438_v39, %s10558_s5 }
0x2363   :  { %v3461_v45 = vpop.permute.xlu1 %3460 }
0x2364   :  { %vm3462_vm10 = vcmp.eq.s32.totalorder %v3461_v45, 1 }
0x23cb   :  { %v3441_v21 = vpop.permute.xlu0 %3440 }
0x23cc   :  { %v3443_v40 = vadd.f32 %v3441_v21, %v3426_v43 }
0x23ce   :  { %10151 = vtanh.f32 %v3443_v40 }
0x23db   :  { %v10152_v23 = vpop.eup %10151 }
0x23dc   :  { %3447 = vrot.lane.b32.xlu0 %v10152_v23, %s10574_s6 }
0x23e0   :  { %1407 = vrot.lane.b32.xlu0 %v1293_v27, %s10573_s28 }
0x244e   :  { %v3448_v51 = vpop.permute.xlu0 %3447 }
0x244f   :  { %v3450_v63 = vmul.f32 %v3448_v51, %v3445_v47  ;;  %v12966_v47 = vmov 0.0  }
0x2451   :  { %v3452_v19 = vadd.f32 %v3451_v4, %v3450_v63 }
0x2453   :  { %v11827_v44 = vsel %vm3462_vm10, %v3452_v19, %v11784_v56  ;;  %v11829_v43 = vsel %vm3462_vm10, %v3452_v19, 0.0  ;;  %v1408_v56 = vpop.permute.xlu0 %1407  ;;  %v3570_v19 = vld [vmem:[#allocation2 + $0x1a] sm:$0x3]  ;;  %vm4430_vm10 = vcmask 1046534  }
0x2454   :  { %3476 = vrot.lane.b32.xlu1 %v11827_v44, %s10574_s6  ;;  %v3480_v26 = vrot.slane %v11827_v44, 2 }
0x2456   :  { %v3482_v7 = vsel %vm1463_vm7, 0.0, %v3480_v26 }
0x2457   :  { %v3484_v16 = vrot.slane %v3482_v7, 6 }
0x2458   :  { %1409 = vrot.lane.b32.xlu1 %v1294_v13, %s10573_s28 }
0x24c6   :  { %v3477_v39 = vpop.permute.xlu1 %3476 }
0x24c7   :  { %v3479_v21 = vsel %vm1463_vm7, %v3477_v39, 0.0 }
0x24c8   :  { %v3486_v40 = vsel %vm1518_vm2, %v3479_v21, %v3484_v16 }
0x24c9   :  { %9580 = vmatmul.mubr.msk.f32.vlgmr.msra.gmra.mxu1 %vm580_vm1, %v3486_v40 }
0x24ca   :  { %v1410_v23 = vpop.permute.xlu1 %1409  ;;  %9602 = vmatpush3.msra.mxu1 %v11722_v52  ;;  %9617 = vmatprep.mubr.msk.f32.mxu1 %vm10570_vm0, %v12966_v47  ;;  %v3474_v52 = vld [vmem:[#allocation6 + $0x4] sm:$0x3] }
0x24cb   :  { %v1466_v27 = vsel %vm1463_vm7, %v1408_v56, %v1410_v23  ;;  %9603 = vmatprep.subr.mxu1 %v12966_v47 }
0x24cc   :  { %1498 = vst.msk [vmem:[#allocation3 + $0x4] sm:$0x3] %vm1178_vm3, %v1466_v27  ;;  %9604 = vmatpush3.msra.mxu1 %v11725_v15  ;;  %v3604_v15 = vrot.slane %v3474_v52, 6 }
0x24cd   :  { %9605 = vmatprep.subr.mxu1 %v12966_v47 }
0x24ce   :  { %9606 = vmatpush3.msra.mxu1 %v11733_v34  ;;  %v3495_v34 = vld [vmem:[%s12960_s26] sm:$0xf] }
0x24cf   :  { %9607 = vmatprep.subr.mxu1 %v12966_v47 }
0x24d0   :  { %9608 = vmatpush3.msra.mxu1 %v11741_v0  ;;  %v3473_v0 = vld [vmem:[#allocation6 + $0x1a] sm:$0x3] }
0x24d1   :  { %9609 = vmatprep.subr.mxu1 %v12966_v47  ;;  %v3606_v45 = vsel %vm1518_vm2, %v3473_v0, %v3604_v15 }
0x24d2   :  { %9610 = vmatpush3.msra.mxu1 %v11748_v57  ;;  %vm3607_vm0 = vcmp.gt.f32.partialorder %v3606_v45, 0.5 }
0x24d3   :  { %9611 = vmatprep.subr.mxu1 %v12966_v47 }
0x24d4   :  { %9612 = vmatpush3.msra.mxu1 %v11756_v41  ;;  %v3608_v41 = vsel %vm3607_vm0, 1, %v10571_v5  ;;  %vm4432_vm0 = vcmask 1047559  }
0x24d5   :  { %9613 = vmatprep.subr.mxu1 %v12966_v47 }
0x24d6   :  { %9614 = vmatpush3.msra.mxu1 %v11762_v38  ;;  %v3572_v38 = vld [vmem:[#allocation3 + $0x4] sm:$0x3] }
0x24d7   :  { %9615 = vmatprep.subr.mxu1 %v12966_v47  ;;  %v3574_v63 = vrot.slane %v3572_v38, 6  ;;  %v12967_v47 = vcombine.low %v11038_v48, %v11044_v54 }
0x24d8   :  { %9616 = vmatpush3.msra.mxu1 %v11776_v18 }
0x24d9   :  { %v3576_v18 = vsel %vm1518_vm2, %v3570_v19, %v3574_v63  ;;  %v1207_v27 = vrot.slane %v12967_v47, %v10942_v14 }
0x24db   :  { %v1215_v52 = vcombine.high %v1207_v27, %v1207_v27 }
0x2589   :  { %v3565_v51 = vpop.f32.mrf.mxu1 }
0x258a   :  { %v3566_v57 = vadd.f32 %v3565_v51, %v3495_v34  ;;  %v1285_v34 = vrot.slane %v1215_v52, %v10942_v14 }
0x258b   :  { %v9581_v4 = vpop.f32.mrf.mxu1 }
0x258c   :  { %3585 = vrot.lane.b32.xlu0 %v3566_v57, %s10558_s5  ;;  %v3577_v13 = vadd.f32 %v3576_v18, %v3566_v57  ;;  %v1286_v54 = vcombine.high %v1285_v34, %v1285_v34 }
0x258e   :  { %v8480_v26 = vmul.f32 -1.442695, %v3577_v13 }
0x2590   :  { %3610 = vperm.xlu0 %9799, %v3608_v41   ;;  %10153 = vpow2.f32 %v8480_v26 }
0x259d   :  { %v10154_v7 = vpop.eup %10153 }
0x259e   :  { %v3581_v39 = vadd.f32 1.0, %v10154_v7 }
0x25a0   :  { %10155 = vrcp.f32 %v3581_v39 }
0x25ad   :  { %v10156_v16 = vpop.eup %10155 }
0x25ae   :  { %v3595_v0 = vsub.f32 1.0, %v10156_v16  ;;  %v3601_v57 = vmul.f32 %v10156_v16, %v11827_v44 }
0x25fe   :  { %v3586_v21 = vpop.permute.xlu0 %3585 }
0x25ff   :  { %v3588_v40 = vmul.f32 %v10156_v16, %v3586_v21  ;;  %v3624_v21 = vld [vmem:[#allocation6 + $0x2] sm:$0x3] }
0x2601   :  { %3590 = vrot.lane.b32.xlu1 %v3588_v40, %s10558_s5  ;;  %v3754_v40 = vrot.slane %v3624_v21, 6 }
0x260b   :  { %v3611_v45 = vpop.permute.xlu0 %3610 }
0x260c   :  { %vm3612_vm6 = vcmp.eq.s32.totalorder %v3611_v45, 1 }
0x2673   :  { %v3591_v56 = vpop.permute.xlu1 %3590 }
0x2674   :  { %v3593_v23 = vadd.f32 %v3591_v56, %v3576_v18  ;;  %v3645_v56 = vld [vmem:[%s12960_s26] sm:$0xf] }
0x2676   :  { %10157 = vtanh.f32 %v3593_v23  ;;  %v3623_v23 = vld [vmem:[#allocation6 + $0x1c] sm:$0x3] }
0x2677   :  { %v3756_v52 = vsel %vm1518_vm2, %v3623_v23, %v3754_v40 }
0x2678   :  { %vm3757_vm8 = vcmp.gt.f32.partialorder %v3756_v52, 0.5 }
0x2683   :  { %v10158_v15 = vpop.eup %10157 }
0x2684   :  { %3597 = vrot.lane.b32.xlu1 %v10158_v15, %s10574_s6 }
0x2688   :  { %1403 = vrot.lane.b32.xlu1 %v1285_v34, %s10573_s28 }
0x26f6   :  { %v3598_v51 = vpop.permute.xlu1 %3597 }
0x26f7   :  { %v3600_v4 = vmul.f32 %v3598_v51, %v3595_v0  ;;  %v3758_v0 = vsel %vm3757_vm8, 1, %v10571_v5  ;;  %vm4573_vm8 = vcmask 1044480  }
0x26f9   :  { %v3602_v41 = vadd.f32 %v3601_v57, %v3600_v4  ;;  %v3720_v57 = vld [vmem:[#allocation2 + $0x1c] sm:$0x3] }
0x26fb   :  { %v3622_v38 = vsel %vm3612_vm6, %v3602_v41, %v11827_v44  ;;  %v11873_v48 = vsel %vm3612_vm6, %v3602_v41, 0.0  ;;  %v1404_v44 = vpop.permute.xlu1 %1403  ;;  %vm4543_vm6 = vcmask 1046528  }
0x26fc   :  { %3626 = vrot.lane.b32.xlu0 %v3622_v38, %s10574_s6  ;;  %v3630_v63 = vrot.slane %v3622_v38, 2 }
0x26fe   :  { %v3632_v19 = vsel %vm1463_vm7, 0.0, %v3630_v63 }
0x26ff   :  { %v3634_v13 = vrot.slane %v3632_v19, 6 }
0x2700   :  { %1405 = vrot.lane.b32.xlu0 %v1286_v54, %s10573_s28 }
0x276e   :  { %v3627_v18 = vpop.permute.xlu0 %3626 }
0x276f   :  { %v3629_v26 = vsel %vm1463_vm7, %v3627_v18, 0.0 }
0x2770   :  { %v3636_v7 = vsel %vm1518_vm2, %v3629_v26, %v3634_v13 }
0x2771   :  { %9599 = vmatmul.mubr.msk.f32.vlgmr.msra.gmra.mxu0 %vm580_vm1, %v3636_v7 }
0x2772   :  { %v1406_v39 = vpop.permute.xlu0 %1405 }
0x2773   :  { %v1465_v16 = vsel %vm1463_vm7, %v1404_v44, %v1406_v39 }
0x2774   :  { %1497 = vst.msk [vmem:[#allocation3 + $0x2] sm:$0x3] %vm1178_vm3, %v1465_v16  ;;  %v1277_v16 = vrot.slane %v1207_v27, %v10942_v14 }
0x277b   :  { %v3722_v51 = vld [vmem:[#allocation3 + $0x2] sm:$0x3] }
0x277c   :  { %v3724_v45 = vrot.slane %v3722_v51, 6 }
0x277e   :  { %v3726_v4 = vsel %vm1518_vm2, %v3720_v57, %v3724_v45 }
0x2831   :  { %v3715_v47 = vpop.f32.mrf.mxu0 }
0x2832   :  { %v3716_v15 = vadd.f32 %v3715_v47, %v3645_v56 }
0x2833   :  { %v9600_v34 = vpop.f32.mrf.mxu0 }
0x2834   :  { %3735 = vrot.lane.b32.xlu1 %v3716_v15, %s10558_s5  ;;  %v3727_v41 = vadd.f32 %v3726_v4, %v3716_v15 }
0x2836   :  { %v8482_v54 = vmul.f32 -1.442695, %v3727_v41 }
0x2838   :  { %3760 = vperm.xlu1 %9800, %v3758_v0   ;;  %10159 = vpow2.f32 %v8482_v54  ;;  %v1278_v0 = vcombine.high %v1277_v16, %v1277_v16 }
0x2845   :  { %v10160_v63 = vpop.eup %10159 }
0x2846   :  { %v3731_v19 = vadd.f32 1.0, %v10160_v63 }
0x2848   :  { %10161 = vrcp.f32 %v3731_v19  ;;  %v3774_v19 = vld [vmem:[#allocation6] sm:$0x3] }
0x2855   :  { %v10162_v18 = vpop.eup %10161 }
0x2856   :  { %v3745_v21 = vsub.f32 1.0, %v10162_v18  ;;  %v3751_v23 = vmul.f32 %v10162_v18, %v3622_v38 }
0x28a6   :  { %v3736_v13 = vpop.permute.xlu1 %3735 }
0x28a7   :  { %v3738_v26 = vmul.f32 %v10162_v18, %v3736_v13  ;;  %v3903_v18 = vrot.slane %v3774_v19, 6  ;;  %v3795_v13 = vld [vmem:[%s12960_s26] sm:$0xf] }
0x28a9   :  { %3740 = vrot.lane.b32.xlu0 %v3738_v26, %s10558_s5  ;;  %v3773_v26 = vld [vmem:[#allocation6 + $0x1e] sm:$0x3] }
0x28b3   :  { %v3761_v56 = vpop.permute.xlu1 %3760 }
0x28b4   :  { %vm3762_vm9 = vcmp.eq.s32.totalorder %v3761_v56, 1 }
0x291b   :  { %v3741_v7 = vpop.permute.xlu0 %3740 }
0x291c   :  { %v3743_v44 = vadd.f32 %v3741_v7, %v3726_v4 }
0x291e   :  { %10163 = vtanh.f32 %v3743_v44  ;;  %v3905_v44 = vsel %vm1518_vm2, %v3773_v26, %v3903_v18  ;;  %v9856_v26 = vld [vmem:[#allocation18 + $0x10] sm:$0xff]  }
0x291f   :  { %vm3906_vm11 = vcmp.gt.f32.partialorder %v3905_v44, 0.5 }
0x292b   :  { %v10164_v39 = vpop.eup %10163 }
0x292c   :  { %3747 = vrot.lane.b32.xlu0 %v10164_v39, %s10574_s6 }
0x2930   :  { %1399 = vrot.lane.b32.xlu0 %v1277_v16, %s10573_s28 }
0x299e   :  { %v3748_v40 = vpop.permute.xlu0 %3747 }
0x299f   :  { %v3750_v47 = vmul.f32 %v3748_v40, %v3745_v21  ;;  %v3907_v21 = vsel %vm3906_vm11, 1, %v10571_v5  ;;  %vm8533_vm11 = vmneg %vm1518_vm2 }
0x29a1   :  { %v3752_v52 = vadd.f32 %v3751_v23, %v3750_v47 }
0x29a3   :  { %v11892_v15 = vsel %vm3762_vm9, %v3752_v52, %v3622_v38  ;;  %v3763_v34 = vsel %vm3762_vm9, %v3752_v52, 0.0  ;;  %v1400_v38 = vpop.permute.xlu0 %1399  ;;  %vm4558_vm9 = vcmask 1045504  }
0x29a4   :  { %3776 = vrot.lane.b32.xlu1 %v11892_v15, %s10574_s6  ;;  %v3780_v27 = vrot.slane %v11892_v15, 2 }
0x29a6   :  { %v3782_v51 = vsel %vm1463_vm7, 0.0, %v3780_v27 }
0x29a7   :  { %v3784_v57 = vrot.slane %v3782_v51, 6 }
0x29a8   :  { %1401 = vrot.lane.b32.xlu1 %v1278_v0, %s10573_s28 }
0x2a16   :  { %v3777_v45 = vpop.permute.xlu1 %3776 }
0x2a17   :  { %v3779_v4 = vsel %vm1463_vm7, %v3777_v45, 0.0 }
0x2a18   :  { %v3786_v41 = vsel %vm1518_vm2, %v3779_v4, %v3784_v57 }
0x2a19   :  { %9618 = vmatmul.mubr.msk.f32.vlgmr.msra.gmra.mxu1 %vm580_vm1, %v3786_v41 }
0x2a1a   :  { %v1402_v54 = vpop.permute.xlu1 %1401 }
0x2a1b   :  { %v1464_v63 = vsel %vm1463_vm7, %v1400_v38, %v1402_v54 }
0x2a1c   :  { %1496 = vst.msk [vmem:[#allocation3] sm:$0x3] %vm1178_vm3, %v1464_v63  ;;  %vm1653_vm3 = vcmask 254976  }
0x2a23   :  { %v3871_v5 = vld [vmem:[#allocation3] sm:$0x3] }
0x2ad9   :  { %v3865_v7 = vpop.f32.mrf.mxu1 }
0x2ada   :  { %v3866_v39 = vadd.f32 %v3865_v7, %v3795_v13 }
0x2adb   :  { %v9619_v16 = vpop.f32.mrf.mxu1 }
0x2adc   :  { %3884 = vrot.lane.b32.xlu0 %v3866_v39, %s10558_s5 }
0x2ae0   :  { %3909 = vperm.xlu0 %9799, %v3907_v21  }
0x2ae4   :  { %2865 = vrot.lane.b32.xlu0 %v11627_v1, %s10574_s6  ;;  %v3873_v1 = vrot.slane %v3871_v5, 6 }
0x2ae8   :  { %3165 = vrot.lane.b32.xlu0 %v11695_v46, %s10574_s6  ;;  %v3870_v46 = vld [vmem:[#allocation2 + $0x1e] sm:$0x3] }
0x2ae9   :  { %v3875_v40 = vsel %vm1518_vm2, %v3870_v46, %v3873_v1 }
0x2aec   :  { %3465 = vrot.lane.b32.xlu0 %v11829_v43, %s10574_s6  ;;  %v3876_v43 = vadd.f32 %v3875_v40, %v3866_v39 }
0x2aee   :  { %v8484_v56 = vmul.f32 -1.442695, %v3876_v43 }
0x2af0   :  { %3765 = vrot.lane.b32.xlu0 %v3763_v34, %s10574_s6  ;;  %10165 = vpow2.f32 %v8484_v56 }
0x2af4   :  { %1650 = vrot.lane.b32.xlu0 %v11164_v29, %s10574_s6 }
0x2af8   :  { %1955 = vrot.lane.b32.xlu0 %v11274_v22, %s10574_s6 }
0x2afc   :  { %2259 = vrot.lane.b32.xlu0 %v11412_v20, %s10574_s6 }
0x2afd   :  { %v10166_v23 = vpop.eup %10165 }
0x2afe   :  { %v3880_v47 = vadd.f32 1.0, %v10166_v23 }
0x2b00   :  { %2563 = vrot.lane.b32.xlu0 %v11522_v32, %s10574_s6  ;;  %10167 = vrcp.f32 %v3880_v47 }
0x2b0d   :  { %v10168_v29 = vpop.eup %10167 }
0x2b0e   :  { %v3894_v63 = vsub.f32 1.0, %v10168_v29  ;;  %v3900_v18 = vmul.f32 %v10168_v29, %v11892_v15  ;;  %v9855_v15 = vld [vmem:[#allocation18 + $0x18] sm:$0xff]  }
0x2b0f   :  { %9620 = vmatprep.subr.bf16.mxu0 %v9855_v15 }
0x2b10   :  { %9621 = vmatpush3.bf16.msra.mxu0 %v9855_v15 }
0x2b11   :  { %9622 = vmatprep.subr.bf16.mxu0 %v9856_v26 }
0x2b14   :  { %9623 = vmatpush3.bf16.msra.mxu0 %v9856_v26 }
0x2b4e   :  { %v3885_v52 = vpop.permute.xlu0 %3884 }
0x2b4f   :  { %v3887_v22 = vmul.f32 %v10168_v29, %v3885_v52 }
0x2b51   :  { %3889 = vrot.lane.b32.xlu1 %v3887_v22, %s10558_s5  ;;  %v9857_v22 = vld [vmem:[#allocation18 + $0x8] sm:$0xff]   ;;  %s12968_s5 = sld [smem:[#allocation49_spill]] }
0x2b52   :  { %9624 = vmatprep.subr.bf16.mxu0 %v9857_v22 }
0x2b53   :  { %9625 = vmatpush3.bf16.msra.mxu0 %v9857_v22 }
0x2b5b   :  { %v3910_v20 = vpop.permute.xlu0 %3909 }
0x2b5c   :  { %vm3911_vm13 = vcmp.eq.s32.totalorder %v3910_v20, 1 }
0x2b5f   :  { %v2866_v32 = vpop.permute.xlu0 %2865 }
0x2b60   :  { %2869 = vst.msk [vmem:[#allocation4 + $0x10] sm:$0x3] %vm1653_vm3, %v2866_v32 }
0x2b61   :  { %2871 = vst.msk [vmem:[#allocation5 + $0xc] sm:$0xc] %vm1656_vm12, %v2866_v32 }
0x2b63   :  { %v3166_v34 = vpop.permute.xlu0 %3165 }
0x2b64   :  { %3169 = vst.msk [vmem:[#allocation4 + $0x14] sm:$0x3] %vm1653_vm3, %v3166_v34 }
0x2b65   :  { %3171 = vst.msk [vmem:[#allocation5 + $0x8] sm:$0xc] %vm1656_vm12, %v3166_v34 }
0x2b67   :  { %v3466_v0 = vpop.permute.xlu0 %3465 }
0x2b68   :  { %3469 = vst.msk [vmem:[#allocation4 + $0x18] sm:$0x3] %vm1653_vm3, %v3466_v0  ;;  %v3943_v46 = vld [vmem:[#allocation5 + $0xe] sm:$0x3] }
0x2b69   :  { %3471 = vst.msk [vmem:[#allocation5 + $0x4] sm:$0xc] %vm1656_vm12, %v3466_v0 }
0x2b6b   :  { %v3766_v27 = vpop.permute.xlu0 %3765 }
0x2b6c   :  { %3769 = vst.msk [vmem:[#allocation4 + $0x1c] sm:$0x3] %vm1653_vm3, %v3766_v27  ;;  %v3941_v1 = vld [vmem:[#allocation5 + $0xa] sm:$0x3] }
0x2b6d   :  { %3771 = vst.msk [vmem:[#allocation5] sm:$0xc] %vm1656_vm12, %v3766_v27 }
0x2b6f   :  { %v1651_v51 = vpop.permute.xlu0 %1650 }
0x2b70   :  { %1654 = vst.msk [vmem:[#allocation4] sm:$0x3] %vm1653_vm3, %v1651_v51  ;;  %v3939_v43 = vld [vmem:[#allocation5 + $0x6] sm:$0x3] }
0x2b71   :  { %1657 = vst.msk [vmem:[#allocation5 + $0x1c] sm:$0xc] %vm1656_vm12, %v1651_v51 }
0x2b73   :  { %v1956_v45 = vpop.permute.xlu0 %1955 }
0x2b74   :  { %1959 = vst.msk [vmem:[#allocation4 + $0x4] sm:$0x3] %vm1653_vm3, %v1956_v45  ;;  %v3937_v47 = vld [vmem:[#allocation5 + $0x2] sm:$0x3] }
0x2b75   :  { %1961 = vst.msk [vmem:[#allocation5 + $0x18] sm:$0xc] %vm1656_vm12, %v1956_v45 }
0x2b77   :  { %v2260_v57 = vpop.permute.xlu0 %2259 }
0x2b78   :  { %2263 = vst.msk [vmem:[#allocation4 + $0x8] sm:$0x3] %vm1653_vm3, %v2260_v57 }
0x2b79   :  { %2265 = vst.msk [vmem:[#allocation5 + $0x14] sm:$0xc] %vm1656_vm12, %v2260_v57 }
0x2b7b   :  { %v2564_v4 = vpop.permute.xlu0 %2563 }
0x2b7c   :  { %2567 = vst.msk [vmem:[#allocation4 + $0xc] sm:$0x3] %vm1653_vm3, %v2564_v4  ;;  %v3949_v52 = vld [vmem:[#allocation5 + $0x1a] sm:$0x3] }
0x2b7d   :  { %2569 = vst.msk [vmem:[#allocation5 + $0x10] sm:$0xc] %vm1656_vm12, %v2564_v4  ;;  %v3951_v4 = vld [vmem:[#allocation5 + $0x1e] sm:$0x3] }
0x2b80   :  { %v3947_v57 = vld [vmem:[#allocation5 + $0x16] sm:$0x3] }
0x2bc3   :  { %v3890_v41 = vpop.permute.xlu1 %3889 }
0x2bc4   :  { %v3892_v38 = vadd.f32 %v3890_v41, %v3875_v40 }
0x2bc6   :  { %10169 = vtanh.f32 %v3892_v38 }
0x2bd3   :  { %v10170_v54 = vpop.eup %10169 }
0x2bd4   :  { %3896 = vrot.lane.b32.xlu1 %v10170_v54, %s10574_s6 }
0x2bd8   :  { %3015 = vrot.lane.b32.xlu1 %v11672_v8, %s10574_s6 }
0x2bdc   :  { %3315 = vrot.lane.b32.xlu1 %v11786_v37, %s10574_s6 }
0x2be0   :  { %3615 = vrot.lane.b32.xlu1 %v11873_v48, %s10574_s6 }
0x2be4   :  { %1803 = vrot.lane.b32.xlu1 %v11220_v24, %s10574_s6 }
0x2be8   :  { %2107 = vrot.lane.b32.xlu1 %v11317_v28, %s10574_s6 }
0x2bec   :  { %2411 = vrot.lane.b32.xlu1 %v11471_v30, %s10574_s6 }
0x2c46   :  { %v3897_v19 = vpop.permute.xlu1 %3896 }
0x2c47   :  { %v3899_v8 = vmul.f32 %v3897_v19, %v3894_v63  ;;  %v9858_v19 = vld [vmem:[#allocation18] sm:$0xff]  }
0x2c48   :  { %9626 = vmatprep.subr.bf16.mxu0 %v9858_v19 }
0x2c49   :  { %v3901_v13 = vadd.f32 %v3900_v18, %v3899_v8  ;;  %v3945_v8 = vld [vmem:[#allocation5 + $0x12] sm:$0x3]  ;;  %9627 = vmatpush3.bf16.msra.mxu0 %v9858_v19 }
0x2c4a   :  { %v3016_v37 = vpop.permute.xlu1 %3015 }
0x2c4b   :  { %3019 = vst.msk [vmem:[#allocation4 + $0x12] sm:$0x3] %vm1653_vm3, %v3016_v37  ;;  %v3912_v48 = vsel %vm3911_vm13, %v3901_v13, 0.0  ;;  %vm4588_vm13 = vcmask 1043456  }
0x2c4c   :  { %3021 = vst.msk [vmem:[#allocation5 + $0xa] sm:$0xc] %vm1656_vm12, %v3016_v37  ;;  %3914 = vrot.lane.b32.xlu1 %v3912_v48, %s10574_s6 }
0x2c4e   :  { %v3316_v24 = vpop.permute.xlu1 %3315 }
0x2c4f   :  { %3319 = vst.msk [vmem:[#allocation4 + $0x16] sm:$0x3] %vm1653_vm3, %v3316_v24 }
0x2c50   :  { %3321 = vst.msk [vmem:[#allocation5 + $0x6] sm:$0xc] %vm1656_vm12, %v3316_v24  ;;  %2715 = vrot.lane.b32.xlu1 %v11580_v25, %s10574_s6 }
0x2c52   :  { %v3616_v28 = vpop.permute.xlu1 %3615 }
0x2c53   :  { %3619 = vst.msk [vmem:[#allocation4 + $0x1a] sm:$0x3] %vm1653_vm3, %v3616_v28  ;;  %v3942_v16 = vld [vmem:[#allocation5 + $0xc] sm:$0x3] }
0x2c54   :  { %3621 = vst.msk [vmem:[#allocation5 + $0x2] sm:$0xc] %vm1656_vm12, %v3616_v28  ;;  %v4074_v56 = vcombine.low %v3942_v16, %v3943_v46  ;;  %v9816_v16 = vpack.i.bf16 %v11123_v31, %v11142_v36 }
0x2c56   :  { %v1804_v30 = vpop.permute.xlu1 %1803  ;;  %v4088_v45 = vrot.slane %v4074_v56, %v10942_v14  ;;  %v3922_v56 = vld [vmem:[#allocation4 + $0x4] sm:$0x3] }
0x2c57   :  { %1807 = vst.msk [vmem:[#allocation4 + $0x2] sm:$0x3] %vm1653_vm3, %v1804_v30  ;;  %v3940_v39 = vld [vmem:[#allocation5 + $0x8] sm:$0x3] }
0x2c58   :  { %1809 = vst.msk [vmem:[#allocation5 + $0x1a] sm:$0xc] %vm1656_vm12, %v1804_v30  ;;  %v4073_v40 = vcombine.low %v3940_v39, %v3941_v1  ;;  %v9861_v1 = vld [vmem:[#allocation19 + $0xf8] sm:$0xff]  }
0x2c59   :  { %8962 = vmatprep.subr.bf16.mxu0 %v9861_v1 }
0x2c5a   :  { %v2108_v7 = vpop.permute.xlu1 %2107  ;;  %v4081_v27 = vrot.slane %v4073_v40, %v10942_v14 }
0x2c5b   :  { %2111 = vst.msk [vmem:[#allocation4 + $0x6] sm:$0x3] %vm1653_vm3, %v2108_v7  ;;  %v3938_v5 = vld [vmem:[#allocation5 + $0x4] sm:$0x3] }
0x2c5c   :  { %2113 = vst.msk [vmem:[#allocation5 + $0x16] sm:$0xc] %vm1656_vm12, %v2108_v7  ;;  %v4057_v29 = vcombine.low %v3938_v5, %v3939_v43  ;;  %v4089_v37 = vcombine.low %v4081_v27, %v4088_v45  ;;  %v9811_v7 = vpack.i.bf16 %v11120_v53, %v11139_v12  ;;  %v9860_v5 = vld [vmem:[#allocation19 + $0x38] sm:$0xff]  }
0x2c5e   :  { %v2412_v25 = vpop.permute.xlu1 %2411  ;;  %v4071_v38 = vrot.slane %v4057_v29, %v10942_v14  ;;  %v3921_v43 = vld [vmem:[#allocation4 + $0x2] sm:$0x3] }
0x2c5f   :  { %2415 = vst.msk [vmem:[#allocation4 + $0xa] sm:$0x3] %vm1653_vm3, %v2412_v25  ;;  %v3950_v34 = vld [vmem:[#allocation5 + $0x1c] sm:$0x3] }
0x2c60   :  { %2417 = vst.msk [vmem:[#allocation5 + $0x12] sm:$0xc] %vm1656_vm12, %v2412_v25  ;;  %v4108_v63 = vcombine.low %v3950_v34, %v3951_v4  ;;  %v3933_v4 = vld [vmem:[#allocation4 + $0x1a] sm:$0x3] }
0x2c62   :  { %v4122_v26 = vrot.slane %v4108_v63, %v10942_v14  ;;  %v3923_v46 = vld [vmem:[#allocation4 + $0x6] sm:$0x3] }
0x2c63   :  { %v3948_v23 = vld [vmem:[#allocation5 + $0x18] sm:$0x3]  ;;  %v3969_v29 = vcombine.low %v3922_v56, %v3923_v46 }
0x2c64   :  { %v4107_v51 = vcombine.low %v3948_v23, %v3949_v52  ;;  %v3920_v52 = vld [vmem:[#allocation4] sm:$0x3] }
0x2c65   :  { %v3968_v34 = vcombine.low %v3920_v52, %v3921_v43  ;;  %v3983_v45 = vrot.slane %v3969_v29, %v10942_v14  ;;  %v9862_v29 = vld [vmem:[#allocation19 + $0xb8] sm:$0xff]  }
0x2c66   :  { %v4115_v24 = vrot.slane %v4107_v51, %v10942_v14  ;;  %v3925_v23 = vld [vmem:[#allocation4 + $0xa] sm:$0x3]  ;;  %v3930_v51 = vld [vmem:[#allocation4 + $0x14] sm:$0x3] }
0x2c67   :  { %v3946_v32 = vld [vmem:[#allocation5 + $0x14] sm:$0x3]  ;;  %v3976_v19 = vrot.slane %v3968_v34, %v10942_v14  ;;  %v9866_v34 = vld [vmem:[#allocation19 + $0xb0] sm:$0xff]  }
0x2c68   :  { %v4091_v54 = vcombine.low %v3946_v32, %v3947_v57  ;;  %v3924_v32 = vld [vmem:[#allocation4 + $0x8] sm:$0x3]  ;;  %v3929_v57 = vld [vmem:[#allocation4 + $0x12] sm:$0x3] }
0x2c69   :  { %v3985_v27 = vcombine.low %v3924_v32, %v3925_v23  ;;  %v9865_v32 = vld [vmem:[#allocation19 + $0xf0] sm:$0xff]  }
0x2c6a   :  { %v4105_v15 = vrot.slane %v4091_v54, %v10942_v14 }
0x2cbe   :  { %v3915_v44 = vpop.permute.xlu1 %3914 }
0x2cbf   :  { %3918 = vst.msk [vmem:[#allocation4 + $0x1e] sm:$0x3] %vm1653_vm3, %v3915_v44 }
0x2cc0   :  { %3919 = vst.msk [vmem:[#allocation5 - $0x2] sm:$0xc] %vm1656_vm12, %v3915_v44  ;;  %v4123_v44 = vcombine.low %v4115_v24, %v4122_v26  ;;  %v3984_v24 = vcombine.low %v3976_v19, %v3983_v45  ;;  %v9870_v45 = vld [vmem:[#allocation19 + $0xa8] sm:$0xff]   ;;  %v9877_v19 = vld [vmem:[#allocation19 + $0xd8] sm:$0xff]  }
0x2cc2   :  { %v2716_v21 = vpop.permute.xlu1 %2715 }
0x2cc3   :  { %2719 = vst.msk [vmem:[#allocation4 + $0xe] sm:$0x3] %vm1653_vm3, %v2716_v21  ;;  %vm10575_vm3 = vmmov 1  }
0x2cc4   :  { %2721 = vst.msk [vmem:[#allocation5 + $0xe] sm:$0xc] %vm1656_vm12, %v2716_v21  ;;  %v9859_v21 = vld [vmem:[#allocation19 + $0x78] sm:$0xff]   ;;  %vm12133_vm12 = vmpackc.low %vm10575_vm3, %vm8533_vm11 }
0x2cc5   :  { %8934 = vmatprep.subr.bf16.mxu1 %v9859_v21 }
0x2cc6   :  { %8935 = vmatpush3.bf16.msra.mxu1 %v9860_v5 }
0x2cc7   :  { %v3936_v20 = vld [vmem:[#allocation5] sm:$0x3] }
0x2cc8   :  { %v4056_v0 = vcombine.low %v3936_v20, %v3937_v47  ;;  %v3926_v47 = vld [vmem:[#allocation4 + $0xc] sm:$0x3]  ;;  %v3931_v20 = vld [vmem:[#allocation4 + $0x16] sm:$0x3] }
0x2cca   :  { %v4064_v41 = vrot.slane %v4056_v0, %v10942_v14  ;;  %v3927_v40 = vld [vmem:[#allocation4 + $0xe] sm:$0x3]  ;;  %v3935_v0 = vld [vmem:[#allocation4 + $0x1e] sm:$0x3] }
0x2ccb   :  { %v3944_v18 = vld [vmem:[#allocation5 + $0x10] sm:$0x3]  ;;  %v3986_v22 = vcombine.low %v3926_v47, %v3927_v40 }
0x2ccc   :  { %v4072_v13 = vcombine.low %v4064_v41, %v4071_v38  ;;  %v4090_v48 = vcombine.low %v3944_v18, %v3945_v8  ;;  %v3934_v41 = vld [vmem:[#allocation4 + $0x1c] sm:$0x3]  ;;  %v4003_v38 = vcombine.low %v3930_v51, %v3931_v20  ;;  %v3928_v18 = vld [vmem:[#allocation4 + $0x10] sm:$0x3]  ;;  %v3932_v8 = vld [vmem:[#allocation4 + $0x18] sm:$0x3] }
0x2ccd   :  { %v4000_v54 = vrot.slane %v3986_v22, %v10942_v14  ;;  %v4020_v63 = vcombine.low %v3934_v41, %v3935_v0  ;;  %v9863_v22 = vld [vmem:[#allocation19 + $0x70] sm:$0xff]   ;;  %v9867_v0 = vld [vmem:[#allocation19 + $0x68] sm:$0xff]   ;;  %v9873_v41 = vld [vmem:[#allocation19 + $0xe0] sm:$0xff]  }
0x2cce   :  { %v9801_v28 = vpack.i.bf16 %v4089_v37, %v4072_v13  ;;  %v4098_v30 = vrot.slane %v4090_v48, %v10942_v14  ;;  %v3993_v13 = vrot.slane %v3985_v27, %v10942_v14  ;;  %v4002_v37 = vcombine.low %v3928_v18, %v3929_v57  ;;  %v9864_v20 = vld [vmem:[#allocation19 + $0x30] sm:$0xff]   ;;  %8936 = vmatprep.subr.bf16.mxu1 %v9863_v22  ;;  %v9868_v27 = vld [vmem:[#allocation19 + $0x28] sm:$0xff]   ;;  %v9871_v57 = vld [vmem:[#allocation19 + $0x60] sm:$0xff]  }
0x2ccf   :  { %v4019_v48 = vcombine.low %v3932_v8, %v3933_v4  ;;  %8937 = vmatpush3.bf16.msra.mxu1 %v9864_v20  ;;  %v9869_v51 = vld [vmem:[#allocation19 + $0xe8] sm:$0xff]   ;;  %v9872_v4 = vld [vmem:[#allocation19 + $0x20] sm:$0xff]   ;;  %v9878_v18 = vld [vmem:[#allocation19 + $0x98] sm:$0xff]  }
0x2cd0   :  { %9802 = vrot.lane.b32.xlu0 %v9801_v28, %s10573_s28  ;;  %v4106_v25 = vcombine.low %v4098_v30, %v4105_v15  ;;  %v4017_v30 = vrot.slane %v4003_v38, %v10942_v14  ;;  %v4001_v15 = vcombine.low %v3993_v13, %v4000_v54  ;;  %8938 = vmatprep.subr.bf16.mxu1 %v9867_v0  ;;  %v9874_v38 = vld [vmem:[#allocation19 + $0xa0] sm:$0xff]   ;;  %v9875_v54 = vld [vmem:[#allocation19 + $0x58] sm:$0xff]   ;;  %v9879_v8 = vld [vmem:[#allocation19 + $0x50] sm:$0xff]  }
0x2cd1   :  { %v4027_v21 = vrot.slane %v4019_v48, %v10942_v14  ;;  %v9880_v13 = vld [vmem:[#allocation19 + $0x10] sm:$0xff]  }
0x2cd2   :  { %v9806_v39 = vpack.i.bf16 %v4123_v44, %v4106_v25  ;;  %v4034_v25 = vrot.slane %v4020_v63, %v10942_v14  ;;  %v9876_v63 = vld [vmem:[#allocation19 + $0x18] sm:$0xff]   ;;  %v9882_v48 = vld [vmem:[#allocation19 + $0x90] sm:$0xff]  }
0x2cd3   :  { %8939 = vmatpush3.bf16.msra.mxu1 %v9868_v27 }
0x2cd4   :  { %9812 = vperm.xlu0 %9799, %v9811_v7   ;;  %9807 = vrot.lane.b32.xlu1 %v9806_v39, %s10573_s28  ;;  %v4035_v40 = vcombine.low %v4027_v21, %v4034_v25  ;;  %v9888_v25 = vld [vmem:[#allocation19] sm:$0xff]  }
0x2cd5   :  { %8940 = vmatprep.subr.bf16.mxu1 %v9871_v57 }
0x2cd7   :  { %8941 = vmatpush3.bf16.msra.mxu1 %v9872_v4 }
0x2cd8   :  { %9817 = vperm.xlu1 %9800, %v9816_v16   ;;  %v4010_v16 = vrot.slane %v4002_v37, %v10942_v14  ;;  %8942 = vmatprep.subr.bf16.mxu1 %v9875_v54  ;;  %v9881_v37 = vld [vmem:[#allocation19 + $0xd0] sm:$0xff]  }
0x2cda   :  { %v4018_v46 = vcombine.low %v4010_v16, %v4017_v30  ;;  %v9885_v30 = vld [vmem:[#allocation19 + $0xc8] sm:$0xff]  }
0x2cdb   :  { %8943 = vmatpush3.bf16.msra.mxu1 %v9876_v63  ;;  %v12006_v16 = vld [vmem:[%s12968_s5] ss:$0 sm:$0xff] }
0x2cdc   :  { %8944 = vmatprep.subr.bf16.mxu1 %v9879_v8 }
0x2cdf   :  { %8945 = vmatpush3.bf16.msra.mxu1 %v9880_v13 }
0x2d42   :  { %v9803_v28 = vpop.permute.xlu0 %9802 }
0x2d43   :  { %v9805_v26 = vunpack.i.h.bf16 %v9803_v28  ;;  %v9804_v7 = vunpack.i.l.bf16 %v9803_v28  ;;  %v9884_v28 = vld [vmem:[#allocation19 + $0x8] sm:$0xff]  }
0x2d45   :  { %v4137_v44 = vsel %vm1463_vm7, %v4001_v15, %v9805_v26  ;;  %v4136_v39 = vsel %vm1463_vm7, %v3984_v24, %v9804_v7  ;;  %v9883_v24 = vld [vmem:[#allocation19 + $0x48] sm:$0xff]   ;;  %v9887_v26 = vld [vmem:[#allocation19 + $0x40] sm:$0xff]  }
0x2d46   :  { %v4140_v5 = vpack.c.bf16 %v4137_v44, %v4136_v39  ;;  %v9808_v1 = vpop.permute.xlu1 %9807  ;;  %v9886_v15 = vld [vmem:[#allocation19 + $0x88] sm:$0xff]   ;;  %8946 = vmatprep.subr.bf16.mxu1 %v9883_v24  ;;  %v9889_v7 = vld [vmem:[#allocation19 + $0xc0] sm:$0xff]   ;;  %v12002_v39 = vld [vmem:[#allocation19 + $0x138] sm:$0xff]  }
0x2d47   :  { %v9810_v43 = vunpack.i.h.bf16 %v9808_v1  ;;  %v9809_v56 = vunpack.i.l.bf16 %v9808_v1  ;;  %8947 = vmatpush3.bf16.msra.mxu1 %v9884_v28  ;;  %v9890_v44 = vld [vmem:[#allocation19 + $0x80] sm:$0xff]  }
0x2d48   :  { %9628 = vmatprep.mubr.msk.bf16.mxu0 %vm580_vm1, %v4140_v5  ;;  %8948 = vmatprep.subr.bf16.mxu1 %v9887_v26 }
0x2d49   :  { %v4139_v23 = vsel %vm1463_vm7, %v4035_v40, %v9810_v43  ;;  %v4138_v47 = vsel %vm1463_vm7, %v4018_v46, %v9809_v56  ;;  %vm4422_vm7 = vcmask 1042434  }
0x2d4a   :  { %v4141_v52 = vpack.c.bf16 %v4139_v23, %v4138_v47 }
0x2d4b   :  { %8949 = vmatpush3.bf16.msra.mxu1 %v9888_v25 }
0x2d4c   :  { %9629 = vmatmul.mubr.msk.bf16.vlgmr.msra.gmra.mxu0 %vm580_vm1, %v4141_v52  ;;  %9632 = vmatprep.subr.bf16.mxu1 %v12002_v39  ;;  %vm4420_vm1 = vcmask 1041409  }
0x2d4d   :  { %8963 = vmatpush3.bf16.msra.mxu0 %v9862_v29 }
0x2d4e   :  { %8964 = vmatprep.subr.bf16.mxu0 %v9865_v32 }
0x2d51   :  { %8965 = vmatpush3.bf16.msra.mxu0 %v9866_v34 }
0x2d52   :  { %8966 = vmatprep.subr.bf16.mxu0 %v9869_v51 }
0x2d55   :  { %8967 = vmatpush3.bf16.msra.mxu0 %v9870_v45 }
0x2d56   :  { %8968 = vmatprep.subr.bf16.mxu0 %v9873_v41 }
0x2d59   :  { %8969 = vmatpush3.bf16.msra.mxu0 %v9874_v38 }
0x2d5a   :  { %8970 = vmatprep.subr.bf16.mxu0 %v9877_v19 }
0x2d5d   :  { %8971 = vmatpush3.bf16.msra.mxu0 %v9878_v18 }
0x2d5e   :  { %8972 = vmatprep.subr.bf16.mxu0 %v9881_v37 }
0x2d61   :  { %8973 = vmatpush3.bf16.msra.mxu0 %v9882_v48 }
0x2d62   :  { %8974 = vmatprep.subr.bf16.mxu0 %v9885_v30 }
0x2d65   :  { %8975 = vmatpush3.bf16.msra.mxu0 %v9886_v15 }
0x2d66   :  { %8976 = vmatprep.subr.bf16.mxu0 %v9889_v7 }
0x2d69   :  { %8977 = vmatpush3.bf16.msra.mxu0 %v9890_v44 }
0x2e0c   :  { %v9630_v21 = vpop.f32.mrf.mxu0 }
0x2e0d   :  { %v4230_v5 = vadd.f32 %v9630_v21, %v12006_v16 }
0x2e0e   :  { %v4221_v1 = vpop.f32.mrf.mxu0 }
0x2e0f   :  { %v4274_v46 = vcombine.high %v4230_v5, %v4230_v5  ;;  %v4281_v40 = vrot.slane %v4230_v5, %v10942_v14  ;;  %v4222_v43 = vadd.f32 %v12006_v16, %v4221_v1 }
0x2e10   :  { %v9631_v56 = vpop.f32.mrf.mxu0 }
0x2e11   :  { %v4288_v23 = vrot.slane %v4274_v46, %v10942_v14  ;;  %v4289_v47 = vcombine.high %v4281_v40, %v4281_v40  ;;  %v4332_v29 = vadd.f32 %v4281_v40, %v10996_v17  ;;  %v4240_v52 = vcombine.high %v4222_v43, %v4222_v43 }
0x2e12   :  { %v4247_v22 = vrot.slane %v4222_v43, %v10942_v14  ;;  %v4233_v0 = vadd.f32 %v9631_v56, %v12006_v16 }
0x2e13   :  { %v4290_v20 = vcombine.high %v4288_v23, %v4288_v23  ;;  %v4333_v32 = vadd.f32 %v4289_v47, %v10987_v10  ;;  %v4334_v34 = vadd.f32 %v4288_v23, %v10989_v11  ;;  %v4391_v27 = vrot.slane %v4332_v29, %v11030_v33 }
0x2e14   :  { %v4254_v51 = vrot.slane %v4240_v52, %v10942_v14  ;;  %v4255_v45 = vcombine.high %v4247_v22, %v4247_v22  ;;  %v4324_v17 = vadd.f32 %v4247_v22, %v10958_v55  ;;  %v4478_v10 = vrot.slane %v4332_v29, %v11034_v35 }
0x2e15   :  { %v4335_v57 = vadd.f32 %v4290_v20, %v10976_v2  ;;  %v4395_v4 = vrot.slane %v4333_v32, %v11030_v33  ;;  %v4399_v41 = vrot.slane %v4334_v34, %v11030_v33  ;;  %v4482_v38 = vrot.slane %v4333_v32, %v11034_v35 }
0x2e16   :  { %v4256_v11 = vcombine.high %v4254_v51, %v4254_v51  ;;  %v4325_v54 = vadd.f32 %v4255_v45, %v10954_v49  ;;  %v4326_v63 = vadd.f32 %v4254_v51, %v10956_v50  ;;  %v4486_v55 = vrot.slane %v4334_v34, %v11034_v35 }
0x2e17   :  { %v4403_v19 = vrot.slane %v4335_v57, %v11030_v33  ;;  %v4434_v18 = vsel %vm4420_vm1, %v4395_v4, %v4391_v27  ;;  %v4514_v8 = vsel %vm4420_vm1, %v4482_v38, %v4478_v10  ;;  %v4359_v37 = vrot.slane %v4324_v17, %v11030_v33 }
0x2e18   :  { %v4435_v2 = vsel %vm4422_vm7, %v4399_v41, %v4434_v18  ;;  %v4327_v13 = vadd.f32 %v4256_v11, %v10951_v42  ;;  %v4363_v49 = vrot.slane %v4325_v54, %v11030_v33  ;;  %v4367_v50 = vrot.slane %v4326_v63, %v11030_v33  ;;  %v4224_v42 = vpop.f32.mrf.mxu0 }
0x2e19   :  { %v4446_v48 = vrot.slane %v4324_v17, %v11034_v35  ;;  %v4450_v24 = vrot.slane %v4325_v54, %v11034_v35  ;;  %v4490_v28 = vrot.slane %v4335_v57, %v11034_v35  ;;  %v4454_v15 = vrot.slane %v4326_v63, %v11034_v35 }
0x2e1a   :  { %v4371_v30 = vrot.slane %v4327_v13, %v11030_v33  ;;  %v4291_v26 = vcombine.high %v4233_v0, %v4233_v0  ;;  %v4515_v7 = vsel %vm4422_vm7, %v4486_v55, %v4514_v8  ;;  %v4421_v25 = vsel %vm4420_vm1, %v4363_v49, %v4359_v37 }
0x2e1b   :  { %v4507_v44 = vsel %vm4420_vm1, %v4450_v24, %v4446_v48  ;;  %v4298_v21 = vrot.slane %v4233_v0, %v10942_v14  ;;  %v4423_v5 = vsel %vm4422_vm7, %v4367_v50, %v4421_v25  ;;  %v4458_v1 = vrot.slane %v4327_v13, %v11034_v35 }
0x2e1c   :  { %v4305_v46 = vrot.slane %v4291_v26, %v10942_v14  ;;  %v4436_v40 = vsel %vm4424_vm14, %v4403_v19, %v4435_v2  ;;  %v4508_v43 = vsel %vm4422_vm7, %v4454_v15, %v4507_v44  ;;  %v4225_v47 = vadd.f32 %v12006_v16, %v4224_v42 }
0x2e1d   :  { %v4306_v56 = vcombine.high %v4298_v21, %v4298_v21  ;;  %v4336_v23 = vadd.f32 %v4298_v21, %v10985_v9  ;;  %v4516_v22 = vsel %vm4424_vm14, %v4490_v28, %v4515_v7  ;;  %v4425_v20 = vsel %vm4424_vm14, %v4371_v30, %v4423_v5 }
0x2e1e   :  { %v4307_v29 = vcombine.high %v4305_v46, %v4305_v46  ;;  %v4338_v52 = vadd.f32 %v4305_v46, %v10980_v6  ;;  %v4257_v27 = vcombine.high %v4225_v47, %v4225_v47  ;;  %v4264_v45 = vrot.slane %v4225_v47, %v10942_v14 }
0x2e1f   :  { %v4337_v32 = vadd.f32 %v4306_v56, %v10978_v3  ;;  %v4407_v34 = vrot.slane %v4336_v23, %v11030_v33  ;;  %v4494_v0 = vrot.slane %v4336_v23, %v11034_v35  ;;  %v4509_v63 = vsel %vm4424_vm14, %v4458_v1, %v4508_v43 }
0x2e20   :  { %v4339_v51 = vadd.f32 %v4307_v29, %v10966_v60  ;;  %v4415_v9 = vrot.slane %v4338_v52, %v11030_v33  ;;  %v4502_v16 = vrot.slane %v4338_v52, %v11034_v35  ;;  %v4271_v60 = vrot.slane %v4257_v27, %v10942_v14 }
0x2e21   :  { %v4411_v6 = vrot.slane %v4337_v32, %v11030_v33  ;;  %v4437_v17 = vsel %vm4426_vm15, %v4407_v34, %v4436_v40  ;;  %v4498_v57 = vrot.slane %v4337_v32, %v11034_v35  ;;  %v4517_v3 = vsel %vm4426_vm15, %v4494_v0, %v4516_v22 }
0x2e22   :  { %v4419_v4 = vrot.slane %v4339_v51, %v11030_v33  ;;  %v4506_v41 = vrot.slane %v4339_v51, %v11034_v35  ;;  %v4272_v38 = vcombine.high %v4264_v45, %v4264_v45  ;;  %v4328_v54 = vadd.f32 %v4264_v45, %v10962_v58 }
0x2e23   :  { %v4438_v10 = vsel %vm4428_vm4, %v4411_v6, %v4437_v17  ;;  %v4518_v11 = vsel %vm4428_vm4, %v4498_v57, %v4517_v3  ;;  %v4273_v55 = vcombine.high %v4271_v60, %v4271_v60  ;;  %v4330_v13 = vadd.f32 %v4271_v60, %v10968_v61 }
0x2e24   :  { %v4439_v19 = vsel %vm4430_vm10, %v4415_v9, %v4438_v10  ;;  %v4519_v18 = vsel %vm4430_vm10, %v4502_v16, %v4518_v11  ;;  %v4329_v2 = vadd.f32 %v4272_v38, %v10964_v59  ;;  %v4375_v37 = vrot.slane %v4328_v54, %v11030_v33 }
0x2e25   :  { %v12077_v8 = vsel %vm4432_vm0, %v4419_v4, %v4439_v19  ;;  %v12080_v14 = vsel %vm4432_vm0, %v4506_v41, %v4519_v18  ;;  %v4331_v58 = vadd.f32 %v4273_v55, %v10970_v62  ;;  %v4462_v50 = vrot.slane %v4328_v54, %v11034_v35 }
0x2e26   :  { %v4379_v49 = vrot.slane %v4329_v2, %v11030_v33  ;;  %v4466_v48 = vrot.slane %v4329_v2, %v11034_v35  ;;  %v4383_v59 = vrot.slane %v4330_v13, %v11030_v33  ;;  %v4427_v24 = vsel %vm4426_vm15, %v4375_v37, %v4425_v20 }
0x2e27   :  { %v4470_v28 = vrot.slane %v4330_v13, %v11034_v35  ;;  %v4524_v30 = vrot.slane %v12077_v8, 6  ;;  %v4387_v61 = vrot.slane %v4331_v58, %v11030_v33  ;;  %v4474_v62 = vrot.slane %v4331_v58, %v11034_v35 }
0x2e28   :  { %v4429_v15 = vsel %vm4428_vm4, %v4379_v49, %v4427_v24  ;;  %v4510_v26 = vsel %vm4426_vm15, %v4462_v50, %v4509_v63  ;;  %v4527_v44 = vrot.slane %v12080_v14, 6  ;;  %v9892_v63 = vld [vmem:[#allocation19 + $0x130] sm:$0xff]   ;;  %vm5214_vm1 = vcmask 1040384  }
0x2e29   :  { %v4431_v42 = vsel %vm4430_vm10, %v4383_v59, %v4429_v15  ;;  %v4511_v7 = vsel %vm4428_vm4, %v4466_v48, %v4510_v26  ;;  %v12099_v25 = vsel %vm1518_vm2, %v4524_v30, 0.0  ;;  %vm6261_vm7 = vcmask 1042432   ;;  %vm8568_vm14 = vmneg %vm5214_vm1 }
0x2e2a   :  { %v12103_v21 = vsel %vm4432_vm0, %v4387_v61, %v4431_v42  ;;  %v4512_v33 = vsel %vm4430_vm10, %v4470_v28, %v4511_v7  ;;  %v12111_v1 = vsel %vm1518_vm2, %v4527_v44, 0.0  ;;  %v4547_v40 = vrot.slane %v12099_v25, 1  ;;  %vm12268_vm15 = vmpackc.low %vm10575_vm3, %vm8568_vm14 }
0x2e2b   :  { %v12107_v35 = vsel %vm4432_vm0, %v4474_v62, %v4512_v33  ;;  %v4523_v5 = vrot.slane %v12103_v21, 6  ;;  %v4577_v43 = vrot.slane %v12099_v25, 3  ;;  %v4562_v56 = vrot.slane %v12099_v25, 2  ;;  %vm8672_vm4 = vmneg %vm6261_vm7 }
0x2e2c   :  { %v12114_v46 = vrot.slane %v12107_v35, 6  ;;  %v4552_v29 = vrot.slane %v12111_v1, 1  ;;  %v4582_v52 = vrot.slane %v12111_v1, 3  ;;  %v4567_v48 = vrot.slane %v12111_v1, 2  ;;  %vm12485_vm10 = vmpackc.low %vm10575_vm3, %vm8672_vm4 }
0x2e2d   :  { %v4525_v23 = vsel %vm1518_vm2, %v4523_v5, %v4524_v30  ;;  %v4535_v47 = vsel %vm1518_vm2, 0.0, %v4523_v5  ;;  %v9893_v30 = vld [vmem:[#allocation19 + $0x128] sm:$0xff]   ;;  %v4592_v61 = vrot.slane %v12099_v25, 4  ;;  %v9895_v25 = vld [vmem:[#allocation19 + $0x118] sm:$0xff]   ;;  %vm8755_vm0 = vmneg %vm4588_vm13 }
0x2e2e   :  { %v4544_v22 = vrot.slane %v4535_v47, 1  ;;  %v4545_v20 = vrot.slane %v4525_v23, 1  ;;  %v4574_v32 = vrot.slane %v4535_v47, 3  ;;  %v4575_v34 = vrot.slane %v4525_v23, 3  ;;  %vm12609_vm11 = vmpackc.low %vm10575_vm3, %vm8755_vm0 }
0x2e2f   :  { %v8535_v0 = vpack.c.bf16 %v4525_v23, %v4523_v5  ;;  %v4559_v27 = vrot.slane %v4535_v47, 2  ;;  %v4560_v51 = vrot.slane %v4525_v23, 2  ;;  %v12126_v9 = vsel %vm1518_vm2, %v12114_v46, %v4527_v44  ;;  %v9894_v44 = vld [vmem:[#allocation19 + $0x120] sm:$0xff]   ;;  %v9896_v5 = vld [vmem:[#allocation19 + $0x110] sm:$0xff]  }
0x2e30   :  { %v4546_v16 = vsel %vm4543_vm6, %v4544_v22, %v4545_v20  ;;  %v4548_v45 = vsel %vm4543_vm6, %v4545_v20, %v4547_v40  ;;  %v4576_v6 = vsel %vm4573_vm8, %v4574_v32, %v4575_v34  ;;  %v4578_v17 = vsel %vm4573_vm8, %v4575_v34, %v4577_v43  ;;  %v9897_v40 = vld [vmem:[#allocation19 + $0x108] sm:$0xff]  }
0x2e31   :  { %v4604_v57 = vpack.c.bf16 %v4548_v45, %v4546_v16  ;;  %v4606_v3 = vpack.c.bf16 %v4578_v17, %v4576_v6  ;;  %v4561_v41 = vsel %vm4558_vm9, %v4559_v27, %v4560_v51  ;;  %v4563_v60 = vsel %vm4558_vm9, %v4560_v51, %v4562_v56 }
0x2e32   :  { %v4605_v38 = vpack.c.bf16 %v4563_v60, %v4561_v41  ;;  %v4536_v10 = vsel %vm1518_vm2, 0.0, %v12114_v46  ;;  %v4550_v11 = vrot.slane %v12126_v9, 1  ;;  %v4580_v54 = vrot.slane %v12126_v9, 3 }
0x2e33   :  { %4972 = vmatprep.mubr.bf16.mxu1 %v4604_v57  ;;  %5021 = vmatprep.mubr.bf16.mxu0 %v4606_v3  ;;  %v4549_v19 = vrot.slane %v4536_v10, 1  ;;  %v4579_v18 = vrot.slane %v4536_v10, 3  ;;  %v4564_v55 = vrot.slane %v4536_v10, 2  ;;  %v4565_v37 = vrot.slane %v12126_v9, 2 }
0x2e34   :  { %8536 = vmatmul.mubr.msk.bf16.vlgmr.msra.gmra.mxu1 %vm12133_vm12, %v8535_v0  ;;  %5022 = vmatmul.mubr.bf16.vlgmr.msra.gmra.mxu0 %v4605_v38  ;;  %v4553_v2 = vsel %vm4543_vm6, %v4550_v11, %v4552_v29  ;;  %v4583_v13 = vsel %vm4573_vm8, %v4580_v54, %v4582_v52  ;;  %v4589_v58 = vrot.slane %v4535_v47, 4  ;;  %v4590_v59 = vrot.slane %v4525_v23, 4  ;;  %v9813_v38 = vpop.permute.xlu0 %9812 }
0x2e35   :  { %9633 = vmatpush3.bf16.msra.mxu1 %v12002_v39  ;;  %v4551_v49 = vsel %vm4543_vm6, %v4549_v19, %v4550_v11  ;;  %v4581_v50 = vsel %vm4573_vm8, %v4579_v18, %v4580_v54  ;;  %v4566_v15 = vsel %vm4558_vm9, %v4564_v55, %v4565_v37  ;;  %v4568_v62 = vsel %vm4558_vm9, %v4565_v37, %v4567_v48 }
0x2e36   :  { %v4609_v24 = vpack.c.bf16 %v4553_v2, %v4551_v49  ;;  %v4611_v28 = vpack.c.bf16 %v4583_v13, %v4581_v50  ;;  %9634 = vmatprep.subr.bf16.mxu1 %v9892_v63  ;;  %v4591_v39 = vsel %vm4588_vm13, %v4589_v58, %v4590_v59  ;;  %v4593_v26 = vsel %vm4588_vm13, %v4590_v59, %v4592_v61 }
0x2e37   :  { %v8539_v42 = vpack.c.bf16 %v12126_v9, %v12114_v46  ;;  %v4610_v7 = vpack.c.bf16 %v4568_v62, %v4566_v15  ;;  %v4607_v33 = vpack.c.bf16 %v4593_v26, %v4591_v39  ;;  %v9898_v46 = vld [vmem:[#allocation19 + $0x100] sm:$0xff]   ;;  %v4594_v43 = vrot.slane %v4536_v10, 4  ;;  %v9818_v26 = vpop.permute.xlu1 %9817 }
0x2e38   :  { %4980 = vmatprep.mubr.bf16.mxu1 %v4609_v24  ;;  %5029 = vmatprep.mubr.bf16.mxu0 %v4611_v28  ;;  %v4595_v56 = vrot.slane %v12126_v9, 4  ;;  %v4597_v23 = vrot.slane %v12111_v1, 4  ;;  %v8492_v1 = vld [vmem:[#allocation21] ss:$0 sm:$0xff]  ;;  %v12165_v18 = vunpack.i.l.bf16 %v9813_v38  ;;  %v12170_v61 = vunpack.i.h.bf16 %v9813_v38 }
0x2e39   :  { %9635 = vmatpush3.bf16.msra.mxu1 %v9892_v63  ;;  %v9918_v38 = vld [vmem:[%s12971_s14 + $0x90] sm:$0xff]  }
0x2e3a   :  { %9636 = vmatprep.subr.bf16.mxu1 %v9893_v30  ;;  %v4596_v47 = vsel %vm4588_vm13, %v4594_v43, %v4595_v56  ;;  %v4598_v29 = vsel %vm4588_vm13, %v4595_v56, %v4597_v23  ;;  %v12186_v56 = vunpack.i.h.bf16 %v9818_v26 }
0x2e3b   :  { %v4612_v52 = vpack.c.bf16 %v4598_v29, %v4596_v47 }
0x2e3c   :  { %8540 = vmatmul.mubr.msk.bf16.gmra.mxu1 %vm12133_vm12, %v8539_v42  ;;  %5030 = vmatmul.mubr.bf16.gmra.mxu0 %v4610_v7  ;;  %vm8349_vm12 = vcmask 9216  }
0x2e3d   :  { %9637 = vmatpush3.bf16.msra.mxu1 %v9893_v30  ;;  %9648 = vmatprep.mubr.bf16.mxu1 %v4607_v33 }
0x2e3e   :  { %9638 = vmatprep.subr.bf16.mxu1 %v9894_v44 }
0x2e41   :  { %9639 = vmatpush3.bf16.msra.mxu1 %v9894_v44 }
0x2e42   :  { %9640 = vmatprep.subr.bf16.mxu1 %v9895_v25 }
0x2e45   :  { %9641 = vmatpush3.bf16.msra.mxu1 %v9895_v25  ;;  %v12178_v25 = vunpack.i.l.bf16 %v9818_v26 }
0x2e46   :  { %9642 = vmatprep.subr.bf16.mxu1 %v9896_v5 }
0x2e49   :  { %9643 = vmatpush3.bf16.msra.mxu1 %v9896_v5 }
0x2e4a   :  { %9644 = vmatprep.subr.bf16.mxu1 %v9897_v40 }
0x2e4d   :  { %9645 = vmatpush3.bf16.msra.mxu1 %v9897_v40 }
0x2e4e   :  { %9646 = vmatprep.subr.bf16.mxu1 %v9898_v46 }
0x2e51   :  { %9647 = vmatpush3.bf16.msra.mxu1 %v9898_v46 }
0x2e54   :  { %9649 = vmatmul.mubr.bf16.vlgmr.msra.gmra.mxu1 %v4612_v52  ;;  %v9899_v52 = vld [vmem:[%s12971_s14 + $0x78] sm:$0xff]  }
0x2e55   :  { %9000 = vmatprep.subr.bf16.mxu0 %v9899_v52 }
0x2ef4   :  { %v8950_v22 = vpop.f32.mrf.mxu1  ;;  %v8978_v32 = vpop.f32.mrf.mxu0 }
0x2ef6   :  { %v8951_v20 = vpop.f32.mrf.mxu1  ;;  %v8979_v0 = vpop.f32.mrf.mxu0 }
0x2ef7   :  { %v8952_v6 = vadd.f32 %v8951_v20, %v8950_v22  ;;  %v8980_v10 = vadd.f32 %v8979_v0, %v8978_v32  ;;  %v9900_v22 = vld [vmem:[%s12971_s14 + $0x38] sm:$0xff]   ;;  %v9901_v20 = vld [vmem:[%s12971_s14 + $0x70] sm:$0xff]   ;;  %v9904_v0 = vld [vmem:[%s12971_s14 + $0x68] sm:$0xff]  }
0x2ef8   :  { %v8953_v34 = vpop.f32.mrf.mxu1  ;;  %v8981_v51 = vpop.f32.mrf.mxu0  ;;  %9001 = vmatpush3.bf16.msra.mxu0 %v9900_v22  ;;  %v9902_v32 = vld [vmem:[%s12971_s14 + $0x30] sm:$0xff]  }
0x2ef9   :  { %v4975_v3 = vadd.f32 %v8952_v6, %v8492_v1  ;;  %9002 = vmatprep.subr.bf16.mxu0 %v9901_v20  ;;  %v9910_v6 = vld [vmem:[%s12971_s14 + $0x58] sm:$0xff]  }
0x2efa   :  { %v8954_v27 = vpop.f32.mrf.mxu1  ;;  %v8982_v9 = vpop.f32.mrf.mxu0 }
0x2efb   :  { %v8955_v4 = vadd.f32 %v8954_v27, %v8953_v34  ;;  %v5024_v19 = vadd.f32 %v8980_v10, %v4975_v3  ;;  %v8983_v13 = vadd.f32 %v8982_v9, %v8981_v51  ;;  %v9903_v34 = vld [vmem:[%s12971_s14 + $0xb8] sm:$0xff]   ;;  %v9905_v27 = vld [vmem:[%s12971_s14 + $0x28] sm:$0xff]   ;;  %v9906_v51 = vld [vmem:[%s12971_s14 + $0xb0] sm:$0xff]  }
0x2efc   :  { %v8956_v16 = vpop.f32.mrf.mxu1  ;;  %v8984_v17 = vpop.f32.mrf.mxu0  ;;  %9003 = vmatpush3.bf16.msra.mxu0 %v9902_v32  ;;  %9652 = vmatprep.subr.bf16.mxu1 %v9903_v34  ;;  %v9908_v9 = vld [vmem:[%s12971_s14 + $0x20] sm:$0xff]   ;;  %v9914_v3 = vld [vmem:[%s12971_s14 + $0x10] sm:$0xff]  }
0x2efd   :  { %v4978_v63 = vadd.f32 %v8955_v4, %v8492_v1  ;;  %9004 = vmatprep.subr.bf16.mxu0 %v9904_v0  ;;  %9653 = vmatpush3.bf16.msra.mxu1 %v9903_v34  ;;  %v9915_v4 = vld [vmem:[%s12971_s14 + $0x98] sm:$0xff]   ;;  %v9919_v10 = vld [vmem:[%s12971_s14 + $0x40] sm:$0xff]  }
0x2efe   :  { %v8957_v45 = vpop.f32.mrf.mxu1  ;;  %v8985_v41 = vpop.f32.mrf.mxu0  ;;  %9654 = vmatprep.subr.bf16.mxu1 %v9906_v51 }
0x2eff   :  { %v8958_v11 = vadd.f32 %v8957_v45, %v8956_v16  ;;  %v8986_v48 = vadd.f32 %v8985_v41, %v8984_v17  ;;  %v5027_v24 = vadd.f32 %v8983_v13, %v4978_v63  ;;  %v9907_v16 = vld [vmem:[%s12971_s14 + $0x60] sm:$0xff]   ;;  %v9909_v45 = vld [vmem:[%s12971_s14 + $0xa8] sm:$0xff]  }
0x2f00   :  { %v8959_v57 = vpop.f32.mrf.mxu1  ;;  %v8987_v55 = vpop.f32.mrf.mxu0  ;;  %9005 = vmatpush3.bf16.msra.mxu0 %v9905_v27  ;;  %v9912_v17 = vld [vmem:[%s12971_s14 + $0xa0] sm:$0xff]   ;;  %v9916_v41 = vld [vmem:[%s12971_s14 + $0x48] sm:$0xff]  }
0x2f01   :  { %v4983_v37 = vadd.f32 %v8958_v11, %v8492_v1  ;;  %9006 = vmatprep.subr.bf16.mxu0 %v9907_v16  ;;  %9655 = vmatpush3.bf16.msra.mxu1 %v9906_v51  ;;  %v9920_v11 = vld [vmem:[%s12971_s14] sm:$0xff]   ;;  %v8541_v16 = vld [vmem:[#allocation22] ss:$0 sm:$0xff] }
0x2f02   :  { %v8960_v60 = vpop.f32.mrf.mxu1  ;;  %v8988_v28 = vpop.f32.mrf.mxu0  ;;  %9656 = vmatprep.subr.bf16.mxu1 %v9909_v45  ;;  %v9922_v63 = vld [vmem:[%s12971_s14 + $0x80] sm:$0xff]  }
0x2f03   :  { %v8961_v58 = vadd.f32 %v8960_v60, %v8959_v57  ;;  %v5032_v62 = vadd.f32 %v8986_v48, %v4983_v37  ;;  %v8989_v42 = vadd.f32 %v8988_v28, %v8987_v55  ;;  %v9913_v57 = vld [vmem:[%s12971_s14 + $0x50] sm:$0xff]   ;;  %v9917_v60 = vld [vmem:[%s12971_s14 + $0x8] sm:$0xff]  }
0x2f04   :  { %9007 = vmatpush3.bf16.msra.mxu0 %v9908_v9 }
0x2f05   :  { %v4986_v15 = vadd.f32 %v8961_v58, %v8492_v1  ;;  %v9911_v1 = vld [vmem:[%s12971_s14 + $0x18] sm:$0xff]   ;;  %9008 = vmatprep.subr.bf16.mxu0 %v9910_v6  ;;  %9657 = vmatpush3.bf16.msra.mxu1 %v9909_v45 }
0x2f06   :  { %9658 = vmatprep.subr.bf16.mxu1 %v9912_v17 }
0x2f07   :  { %v5035_v5 = vadd.f32 %v8989_v42, %v4986_v15 }
0x2f08   :  { %9009 = vmatpush3.bf16.msra.mxu0 %v9911_v1  ;;  %v8542_v1 = vld [vmem:[#allocation24] ss:$0 sm:$0xff] }
0x2f09   :  { %9010 = vmatprep.subr.bf16.mxu0 %v9913_v57  ;;  %9659 = vmatpush3.bf16.msra.mxu1 %v9912_v17 }
0x2f0a   :  { %9660 = vmatprep.subr.bf16.mxu1 %v9915_v4 }
0x2f0c   :  { %9011 = vmatpush3.bf16.msra.mxu0 %v9914_v3 }
0x2f0d   :  { %9012 = vmatprep.subr.bf16.mxu0 %v9916_v41  ;;  %9661 = vmatpush3.bf16.msra.mxu1 %v9915_v4 }
0x2f0e   :  { %9662 = vmatprep.subr.bf16.mxu1 %v9918_v38 }
0x2f10   :  { %9013 = vmatpush3.bf16.msra.mxu0 %v9917_v60 }
0x2f11   :  { %9014 = vmatprep.subr.bf16.mxu0 %v9919_v10  ;;  %9663 = vmatpush3.bf16.msra.mxu1 %v9918_v38 }
0x2f14   :  { %v9650_v54 = vpop.f32.mrf.mxu1  ;;  %9015 = vmatpush3.bf16.msra.mxu0 %v9920_v11 }
0x2f15   :  { %v5081_v7 = vadd.f32 %v9650_v54, %v5032_v62  ;;  %v9921_v54 = vld [vmem:[%s12971_s14 + $0x88] sm:$0xff]  }
0x2f16   :  { %v5072_v2 = vpop.f32.mrf.mxu1  ;;  %9664 = vmatprep.subr.bf16.mxu1 %v9921_v54 }
0x2f17   :  { %v5073_v49 = vadd.f32 %v5072_v2, %v5024_v19  ;;  %v12182_v40 = vmul.f32 %v12178_v25, %v5081_v7  ;;  %9665 = vmatpush3.bf16.msra.mxu1 %v9921_v54 }
0x2f18   :  { %v9651_v50 = vpop.f32.mrf.mxu1  ;;  %9666 = vmatprep.subr.bf16.mxu1 %v9922_v63 }
0x2f19   :  { %v12168_v59 = vmul.f32 %v12165_v18, %v5073_v49  ;;  %v5084_v46 = vadd.f32 %v9651_v50, %v5035_v5  ;;  %v5126_v47 = vmul.f32 %v12182_v40, %v12182_v40 }
0x2f1a   :  { %v5075_v30 = vpop.f32.mrf.mxu1 }
0x2f1b   :  { %v5076_v39 = vadd.f32 %v5075_v30, %v5027_v24  ;;  %5111 = vadd.xlane.f32.xlu0 %v12168_v59  ;;  %v5124_v33 = vmul.f32 %v12168_v59, %v12168_v59  ;;  %v12190_v23 = vmul.f32 %v12186_v56, %v5084_v46  ;;  %9667 = vmatpush3.bf16.msra.mxu1 %v9922_v63 }
0x2f1d   :  { %v12174_v44 = vmul.f32 %v12170_v61, %v5076_v39  ;;  %v5127_v29 = vmul.f32 %v12190_v23, %v12190_v23 }
0x2f1f   :  { %5113 = vadd.xlane.f32.xlu1 %v12174_v44  ;;  %5128 = vadd.xlane.f32.xlu0 %v5124_v33  ;;  %v5125_v43 = vmul.f32 %v12174_v44, %v12174_v44 }
0x2f23   :  { %5115 = vadd.xlane.f32.xlu1 %v12182_v40  ;;  %5130 = vadd.xlane.f32.xlu0 %v5125_v43 }
0x2f27   :  { %5132 = vadd.xlane.f32.xlu1 %v5126_v47  ;;  %5117 = vadd.xlane.f32.xlu0 %v12190_v23 }
0x2f2b   :  { %5134 = vadd.xlane.f32.xlu0 %v5127_v29 }
0x2fa4   :  { %v5112_v19 = vpop.xlane.xlu0 %5111 }
0x2fa5   :  { %v5120_v55 = vmul.f32 0.0078125, %v5112_v19 }
0x2fa7   :  { %v5140_v37 = vmul.f32 %v5120_v55, %v5120_v55  ;;  %v5171_v45 = vsub.f32 %v12168_v59, %v5120_v55 }
0x2fa8   :  { %v5114_v2 = vpop.xlane.xlu1 %5113  ;;  %v5129_v13 = vpop.xlane.xlu0 %5128 }
0x2fa9   :  { %v5121_v58 = vmul.f32 0.0078125, %v5114_v2  ;;  %v5136_v49 = vmul.f32 0.0078125, %v5129_v13 }
0x2fab   :  { %v5144_v50 = vsub.f32 %v5136_v49, %v5140_v37  ;;  %v5141_v28 = vmul.f32 %v5121_v58, %v5121_v58  ;;  %v5172_v3 = vsub.f32 %v12174_v44, %v5121_v58 }
0x2fac   :  { %v5116_v48 = vpop.xlane.xlu1 %5115  ;;  %v5131_v24 = vpop.xlane.xlu0 %5130 }
0x2fad   :  { %v5148_v30 = vmax.f32 %v5144_v50, 0.0  ;;  %v5122_v15 = vmul.f32 0.0078125, %v5116_v48  ;;  %v5137_v62 = vmul.f32 0.0078125, %v5131_v24 }
0x2faf   :  { %v5153_v39 = vadd.f32 1e-05, %v5148_v30  ;;  %v5145_v26 = vsub.f32 %v5137_v62, %v5141_v28  ;;  %v5142_v42 = vmul.f32 %v5122_v15, %v5122_v15  ;;  %v5173_v11 = vsub.f32 %v12182_v40, %v5122_v15 }
0x2fb0   :  { %v5133_v7 = vpop.xlane.xlu1 %5132  ;;  %v5118_v33 = vpop.xlane.xlu0 %5117 }
0x2fb1   :  { %10171 = vrsqrt.f32 %v5153_v39  ;;  %v5149_v5 = vmax.f32 %v5145_v26, 0.0  ;;  %v5138_v46 = vmul.f32 0.0078125, %v5133_v7  ;;  %v5123_v43 = vmul.f32 0.0078125, %v5118_v33 }
0x2fb3   :  { %v5154_v47 = vadd.f32 1e-05, %v5149_v5  ;;  %v5146_v29 = vsub.f32 %v5138_v46, %v5142_v42  ;;  %v5143_v20 = vmul.f32 %v5123_v43, %v5123_v43  ;;  %v5174_v37 = vsub.f32 %v12190_v23, %v5123_v43 }
0x2fb4   :  { %v5135_v52 = vpop.xlane.xlu0 %5134 }
0x2fb5   :  { %10173 = vrsqrt.f32 %v5154_v47  ;;  %v5150_v22 = vmax.f32 %v5146_v29, 0.0  ;;  %v5139_v32 = vmul.f32 0.0078125, %v5135_v52 }
0x2fb7   :  { %v5155_v34 = vadd.f32 1e-05, %v5150_v22  ;;  %v5147_v0 = vsub.f32 %v5139_v32, %v5143_v20 }
0x2fb9   :  { %10175 = vrsqrt.f32 %v5155_v34  ;;  %v5151_v27 = vmax.f32 %v5147_v0, 0.0 }
0x2fbb   :  { %v5156_v51 = vadd.f32 1e-05, %v5151_v27 }
0x2fbd   :  { %10177 = vrsqrt.f32 %v5156_v51 }
0x2fbe   :  { %v10172_v9 = vpop.eup %10171 }
0x2fbf   :  { %v5167_v6 = vmul.f32 %v10172_v9, %v8541_v16 }
0x2fc1   :  { %v5175_v17 = vmul.f32 %v5171_v45, %v5167_v6 }
0x2fc2   :  { %v10174_v57 = vpop.eup %10173 }
0x2fc3   :  { %v5186_v4 = vadd.f32 %v8542_v1, %v5175_v17  ;;  %v5168_v41 = vmul.f32 %v10174_v57, %v8541_v16 }
0x2fc5   :  { %v5176_v60 = vmul.f32 %v5172_v3, %v5168_v41  ;;  %v5190_v38 = vmul.f32 %v12165_v18, %v5186_v4 }
0x2fc6   :  { %v10176_v10 = vpop.eup %10175 }
0x2fc7   :  { %v5187_v54 = vadd.f32 %v8542_v1, %v5176_v60  ;;  %v5169_v63 = vmul.f32 %v10176_v10, %v8541_v16  ;;  %v5194_v19 = vmax.f32 %v5190_v38, 0.0 }
0x2fc9   :  { %v5177_v2 = vmul.f32 %v5173_v11, %v5169_v63  ;;  %v5191_v59 = vmul.f32 %v12170_v61, %v5187_v54  ;;  %v5198_v55 = vmul.f32 %v12165_v18, %v5194_v19  ;;  %v9962_v54 = vld [vmem:[#allocation28 + $0x18] sm:$0xff]  }
0x2fca   :  { %v10178_v13 = vpop.eup %10177 }
0x2fcb   :  { %v5188_v44 = vadd.f32 %v8542_v1, %v5177_v2  ;;  %v5170_v58 = vmul.f32 %v10178_v13, %v8541_v16  ;;  %v5195_v49 = vmax.f32 %v5191_v59, 0.0  ;;  %v5202_v50 = vadd.f32 %v5198_v55, %v12103_v21 }
0x2fcd   :  { %v5178_v48 = vmul.f32 %v5174_v37, %v5170_v58  ;;  %v5199_v24 = vmul.f32 %v12170_v61, %v5195_v49  ;;  %v5206_v40 = vmul.f32 %v12165_v18, %v5202_v50  ;;  %v5192_v28 = vmul.f32 %v12178_v25, %v5188_v44 }
0x2fcf   :  { %v5189_v30 = vadd.f32 %v8542_v1, %v5178_v48  ;;  %v5203_v15 = vadd.f32 %v5199_v24, %v12077_v8  ;;  %v5215_v62 = vrot.slane %v5206_v40, 7  ;;  %v12233_v39 = vrot.slane %v5206_v40, 5 }
0x2fd0   :  { %v5196_v23 = vmax.f32 %v5192_v28, 0.0 }
0x2fd1   :  { %v5207_v26 = vmul.f32 %v12170_v61, %v5203_v15  ;;  %v5227_v21 = vsel %vm5214_vm1, 0.0, %v5215_v62  ;;  %v5193_v42 = vmul.f32 %v12186_v56, %v5189_v30  ;;  %v12240_v7 = vsel %vm6261_vm7, 0.0, %v12233_v39 }
0x2fd2   :  { %v5235_v33 = vrot.slane %v5227_v21, 1  ;;  %v5249_v5 = vrot.slane %v5227_v21, 2  ;;  %v5200_v46 = vmul.f32 %v12178_v25, %v5196_v23  ;;  %v6310_v8 = vrot.slane %v12240_v7, 3 }
0x2fd3   :  { %v5216_v43 = vrot.slane %v5207_v26, 7  ;;  %v6263_v47 = vrot.slane %v5207_v26, 5  ;;  %v5197_v29 = vmax.f32 %v5193_v42, 0.0  ;;  %v6282_v52 = vrot.slane %v12240_v7, 1 }
0x2fd4   :  { %v5204_v22 = vadd.f32 %v5200_v46, %v12107_v35  ;;  %v6296_v20 = vrot.slane %v12240_v7, 2  ;;  %v6338_v32 = vrot.slane %v12240_v7, 5  ;;  %v6352_v34 = vrot.slane %v12240_v7, 6 }
0x2fd5   :  { %v5217_v0 = vsel %vm5214_vm1, %v5215_v62, %v5216_v43  ;;  %v5229_v27 = vsel %vm5214_vm1, %v5216_v43, 0.0  ;;  %v12253_v51 = vsel %vm6261_vm7, %v12233_v39, %v6263_v47  ;;  %v5201_v16 = vmul.f32 %v12186_v56, %v5197_v29 }
0x2fd6   :  { %v5236_v9 = vrot.slane %v5217_v0, 1  ;;  %v5238_v45 = vrot.slane %v5229_v27, 1  ;;  %v8570_v6 = vpack.c.bf16 %v5217_v0, %v5215_v62  ;;  %v5250_v35 = vrot.slane %v5217_v0, 2 }
0x2fd7   :  { %v5252_v1 = vrot.slane %v5229_v27, 2  ;;  %v5205_v17 = vadd.f32 %v5201_v16, %v12080_v14  ;;  %v5208_v57 = vmul.f32 %v12178_v25, %v5204_v22  ;;  %v12260_v3 = vsel %vm6261_vm7, %v6263_v47, 0.0 }
0x2fd8   :  { %v5237_v4 = vsel %vm4543_vm6, %v5235_v33, %v5236_v9  ;;  %v5239_v41 = vsel %vm4543_vm6, %v5236_v9, %v5238_v45  ;;  %v5251_v60 = vsel %vm4558_vm9, %v5249_v5, %v5250_v35  ;;  %v6311_v38 = vrot.slane %v12253_v51, 3 }
0x2fd9   :  { %v5264_v10 = vpack.c.bf16 %v5239_v41, %v5237_v4  ;;  %v5253_v11 = vsel %vm4558_vm9, %v5250_v35, %v5252_v1  ;;  %v5209_v14 = vmul.f32 %v12186_v56, %v5205_v17  ;;  %v5218_v63 = vrot.slane %v5208_v57, 7 }
0x2fda   :  { %v5265_v19 = vpack.c.bf16 %v5253_v11, %v5251_v60  ;;  %v12273_v2 = vrot.slane %v5208_v57, 5  ;;  %v12276_v59 = vsel %vm4573_vm8, %v6310_v8, %v6311_v38  ;;  %v6313_v55 = vrot.slane %v12260_v3, 3 }
0x2fdb   :  { %5500 = vmatprep.mubr.bf16.mxu0 %v5264_v10  ;;  %v5219_v13 = vrot.slane %v5209_v14, 7  ;;  %v5228_v37 = vsel %vm5214_vm1, 0.0, %v5218_v63  ;;  %v6266_v44 = vrot.slane %v5209_v14, 5  ;;  %v6283_v58 = vrot.slane %v12253_v51, 1 }
0x2fdc   :  { %9668 = vmatprep.mubr.bf16.mxu1 %v5265_v19  ;;  %8571 = vmatmul.mubr.msk.bf16.vlgmr.msra.gmra.mxu0 %vm12268_vm15, %v8570_v6  ;;  %v5240_v49 = vrot.slane %v5228_v37, 1  ;;  %v5254_v50 = vrot.slane %v5228_v37, 2  ;;  %v12284_v48 = vsel %vm4573_vm8, %v6311_v38, %v6313_v55  ;;  %v6285_v24 = vrot.slane %v12260_v3, 1 }
0x2fdd   :  { %v5220_v40 = vsel %vm5214_vm1, %v5218_v63, %v5219_v13  ;;  %v5230_v28 = vsel %vm5214_vm1, %v5219_v13, 0.0  ;;  %v12291_v30 = vsel %vm6261_vm7, %v12273_v2, %v6266_v44  ;;  %v12296_v33 = vsel %vm4543_vm6, %v6282_v52, %v6283_v58 }
0x2fde   :  { %v5241_v62 = vrot.slane %v5220_v40, 1  ;;  %v5243_v23 = vrot.slane %v5230_v28, 1  ;;  %v5257_v26 = vrot.slane %v5230_v28, 2  ;;  %v5255_v21 = vrot.slane %v5220_v40, 2 }
0x2fdf   :  { %v8574_v42 = vpack.c.bf16 %v5220_v40, %v5218_v63  ;;  %v12299_v5 = vsel %vm4543_vm6, %v6283_v58, %v6285_v24  ;;  %v6275_v27 = vsel %vm6261_vm7, 0.0, %v12273_v2  ;;  %v6277_v16 = vsel %vm6261_vm7, %v6266_v44, 0.0 }
0x2fe0   :  { %v5242_v8 = vsel %vm4543_vm6, %v5240_v49, %v5241_v62  ;;  %v5244_v43 = vsel %vm4543_vm6, %v5241_v62, %v5243_v23  ;;  %v5256_v47 = vsel %vm4558_vm9, %v5254_v50, %v5255_v21  ;;  %v5258_v29 = vsel %vm4558_vm9, %v5255_v21, %v5257_v26 }
0x2fe1   :  { %v5267_v22 = vpack.c.bf16 %v5244_v43, %v5242_v8  ;;  %v5268_v0 = vpack.c.bf16 %v5258_v29, %v5256_v47  ;;  %v6287_v9 = vrot.slane %v6275_v27, 1  ;;  %v6288_v45 = vrot.slane %v12291_v30, 1 }
0x2fe2   :  { %v6297_v6 = vrot.slane %v12253_v51, 2  ;;  %v6290_v35 = vrot.slane %v6277_v16, 1  ;;  %v6299_v1 = vrot.slane %v12260_v3, 2  ;;  %v6315_v57 = vrot.slane %v6275_v27, 3 }
0x2fe3   :  { %5508 = vmatprep.mubr.bf16.mxu0 %v5267_v22  ;;  %9669 = vmatmul.mubr.bf16.vlgmr.msra.gmra.mxu1 %v5268_v0  ;;  %v12320_v4 = vsel %vm4543_vm6, %v6287_v9, %v6288_v45  ;;  %v6316_v60 = vrot.slane %v12291_v30, 3  ;;  %v6318_v38 = vrot.slane %v6277_v16, 3  ;;  %v6339_v14 = vrot.slane %v12253_v51, 5 }
0x2fe4   :  { %8575 = vmatmul.mubr.msk.bf16.gmra.mxu0 %vm12268_vm15, %v8574_v42  ;;  %v12325_v41 = vsel %vm4558_vm9, %v6296_v20, %v6297_v6  ;;  %v12329_v10 = vsel %vm4543_vm6, %v6288_v45, %v6290_v35  ;;  %v12332_v11 = vsel %vm4558_vm9, %v6297_v6, %v6299_v1  ;;  %v6341_v63 = vrot.slane %v12260_v3, 5 }
0x2fe5   :  { %v12341_v55 = vsel %vm4573_vm8, %v6315_v57, %v6316_v60  ;;  %v12344_v13 = vsel %vm4573_vm8, %v6316_v60, %v6318_v38  ;;  %v12351_v44 = vsel %vm6261_vm7, %v6338_v32, %v6339_v14  ;;  %v6301_v49 = vrot.slane %v6275_v27, 2 }
0x2fe6   :  { %v12354_v58 = vsel %vm6261_vm7, %v6339_v14, %v6341_v63  ;;  %v6302_v24 = vrot.slane %v12291_v30, 2  ;;  %v6304_v40 = vrot.slane %v6277_v16, 2  ;;  %v6353_v28 = vrot.slane %v12253_v51, 6 }
0x2fe7   :  { %v6355_v62 = vrot.slane %v12260_v3, 6  ;;  %v6324_v23 = vrot.slane %v12240_v7, 4  ;;  %v6325_v26 = vrot.slane %v12253_v51, 4  ;;  %v6327_v32 = vrot.slane %v12260_v3, 4 }
0x2fe8   :  { %v12365_v21 = vsel %vm4558_vm9, %v6301_v49, %v6302_v24  ;;  %v12368_v42 = vsel %vm4558_vm9, %v6302_v24, %v6304_v40  ;;  %v12373_v8 = vsel %vm1518_vm2, %v6352_v34, %v6353_v28  ;;  %v6343_v43 = vrot.slane %v6275_v27, 5 }
0x2fe9   :  { %v12378_v29 = vsel %vm1518_vm2, %v6353_v28, %v6355_v62  ;;  %v12381_v3 = vsel %vm4588_vm13, %v6324_v23, %v6325_v26  ;;  %v12384_v22 = vsel %vm4588_vm13, %v6325_v26, %v6327_v32  ;;  %v6344_v34 = vrot.slane %v12291_v30, 5 }
0x2fea   :  { %v6346_v9 = vrot.slane %v6277_v16, 5  ;;  %v6357_v45 = vrot.slane %v6275_v27, 6  ;;  %v6358_v6 = vrot.slane %v12291_v30, 6  ;;  %v6360_v35 = vrot.slane %v6277_v16, 6 }
0x2feb   :  { %v6329_v1 = vrot.slane %v6275_v27, 4  ;;  %v12393_v57 = vsel %vm6261_vm7, %v6343_v43, %v6344_v34  ;;  %v6330_v38 = vrot.slane %v12291_v30, 4  ;;  %v6332_v14 = vrot.slane %v6277_v16, 4  ;;  %v8543_v43 = vld [vmem:[#allocation25] ss:$0 sm:$0xff] }
0x2fec   :  { %v12396_v60 = vsel %vm6261_vm7, %v6344_v34, %v6346_v9  ;;  %v12402_v49 = vsel %vm1518_vm2, %v6357_v45, %v6358_v6  ;;  %v12405_v24 = vsel %vm1518_vm2, %v6358_v6, %v6360_v35 }
0x2fed   :  { %v12410_v40 = vsel %vm4588_vm13, %v6329_v1, %v6330_v38  ;;  %v12413_v28 = vsel %vm4588_vm13, %v6330_v38, %v6332_v14 }
0x309c   :  { %v9016_v62 = vpop.f32.mrf.mxu0 }
0x309e   :  { %v9017_v23 = vpop.f32.mrf.mxu0 }
0x309f   :  { %v9018_v26 = vadd.f32 %v9017_v23, %v9016_v62 }
0x30a0   :  { %v9019_v32 = vpop.f32.mrf.mxu0 }
0x30a1   :  { %v5503_v35 = vadd.f32 %v9018_v26, %v8543_v43 }
0x30a2   :  { %v9020_v34 = vpop.f32.mrf.mxu0 }
0x30a3   :  { %v9670_v9 = vpop.f32.mrf.mxu1  ;;  %v9021_v45 = vadd.f32 %v9020_v34, %v9019_v32 }
0x30a4   :  { %v9022_v6 = vpop.f32.mrf.mxu0 }
0x30a5   :  { %v5551_v27 = vpop.f32.mrf.mxu1  ;;  %v5506_v16 = vadd.f32 %v9021_v45, %v8543_v43  ;;  %v9926_v45 = vld [vmem:[#allocation27 + $0x30] sm:$0xff]  }
0x30a6   :  { %v5552_v63 = vadd.f32 %v5551_v27, %v5503_v35  ;;  %v9023_v1 = vpop.f32.mrf.mxu0  ;;  %v9928_v35 = vld [vmem:[#allocation27 + $0x68] sm:$0xff]  }
0x30a7   :  { %v9024_v7 = vadd.f32 %v9023_v1, %v9022_v6  ;;  %v9671_v0 = vpop.f32.mrf.mxu1  ;;  %v9927_v6 = vld [vmem:[#allocation27 + $0xb8] sm:$0xff]   ;;  %v9929_v1 = vld [vmem:[#allocation27 + $0x28] sm:$0xff]  }
0x30a8   :  { %v12418_v38 = vmul.f32 %v12165_v18, %v5552_v63  ;;  %v9025_v14 = vpop.f32.mrf.mxu0  ;;  %9672 = vmatprep.subr.bf16.mxu1 %v9927_v6 }
0x30a9   :  { %v5511_v47 = vadd.f32 %v9024_v7, %v8543_v43  ;;  %v5554_v50 = vpop.f32.mrf.mxu1  ;;  %9673 = vmatpush3.bf16.msra.mxu1 %v9927_v6  ;;  %v9944_v6 = vld [vmem:[#allocation27] sm:$0xff]  }
0x30aa   :  { %v5555_v62 = vadd.f32 %v5554_v50, %v5506_v16  ;;  %5570 = vadd.xlane.f32.xlu1 %v12418_v38  ;;  %v9026_v23 = vpop.f32.mrf.mxu0  ;;  %v5582_v27 = vmul.f32 %v12418_v38, %v12418_v38 }
0x30ab   :  { %v9027_v37 = vadd.f32 %v9026_v23, %v9025_v14  ;;  %v5560_v32 = vadd.f32 %v9670_v9, %v5511_v47  ;;  %v9925_v9 = vld [vmem:[#allocation27 + $0x70] sm:$0xff]   ;;  %v9932_v23 = vld [vmem:[#allocation27 + $0x20] sm:$0xff]  }
0x30ac   :  { %v12422_v26 = vmul.f32 %v12170_v61, %v5555_v62  ;;  %v9930_v14 = vld [vmem:[#allocation27 + $0xb0] sm:$0xff]   ;;  %v9931_v62 = vld [vmem:[#allocation27 + $0x60] sm:$0xff]  }
0x30ad   :  { %v5514_v34 = vadd.f32 %v9027_v37, %v8543_v43  ;;  %v12430_v50 = vmul.f32 %v12178_v25, %v5560_v32  ;;  %v9924_v43 = vld [vmem:[#allocation27 + $0x38] sm:$0xff]   ;;  %9674 = vmatprep.subr.bf16.mxu1 %v9930_v14  ;;  %v9933_v32 = vld [vmem:[#allocation27 + $0xa8] sm:$0xff]  }
0x30ae   :  { %5572 = vadd.xlane.f32.xlu0 %v12422_v26  ;;  %5586 = vadd.xlane.f32.xlu1 %v5582_v27  ;;  %v5583_v7 = vmul.f32 %v12422_v26, %v12422_v26  ;;  %v9934_v27 = vld [vmem:[#allocation27 + $0x58] sm:$0xff]  }
0x30af   :  { %v5563_v63 = vadd.f32 %v9671_v0, %v5514_v34  ;;  %v5584_v16 = vmul.f32 %v12430_v50, %v12430_v50  ;;  %v9923_v0 = vld [vmem:[#allocation27 + $0x78] sm:$0xff]   ;;  %9675 = vmatpush3.bf16.msra.mxu1 %v9930_v14  ;;  %v9948_v14 = vld [vmem:[#allocation27 + $0x80] sm:$0xff]  }
0x30b0   :  { %9038 = vmatprep.subr.bf16.mxu0 %v9923_v0  ;;  %v9935_v34 = vld [vmem:[#allocation27 + $0x18] sm:$0xff]   ;;  %9676 = vmatprep.subr.bf16.mxu1 %v9933_v32  ;;  %v9940_v0 = vld [vmem:[#allocation27 + $0x48] sm:$0xff]  }
0x30b1   :  { %v12434_v47 = vmul.f32 %v12186_v56, %v5563_v63  ;;  %9039 = vmatpush3.bf16.msra.mxu0 %v9924_v43  ;;  %v9936_v63 = vld [vmem:[#allocation27 + $0xa0] sm:$0xff]   ;;  %v9941_v43 = vld [vmem:[#allocation27 + $0x8] sm:$0xff]  }
0x30b2   :  { %5588 = vadd.xlane.f32.xlu0 %v5583_v7  ;;  %5574 = vadd.xlane.f32.xlu1 %v12430_v50  ;;  %v9937_v7 = vld [vmem:[#allocation27 + $0x50] sm:$0xff]  }
0x30b3   :  { %v5585_v37 = vmul.f32 %v12434_v47, %v12434_v47  ;;  %9040 = vmatprep.subr.bf16.mxu0 %v9925_v9  ;;  %9677 = vmatpush3.bf16.msra.mxu1 %v9933_v32  ;;  %v9942_v9 = vld [vmem:[#allocation27 + $0x90] sm:$0xff]  }
0x30b4   :  { %9678 = vmatprep.subr.bf16.mxu1 %v9936_v63 }
0x30b5   :  { %9041 = vmatpush3.bf16.msra.mxu0 %v9926_v45  ;;  %v9943_v45 = vld [vmem:[#allocation27 + $0x40] sm:$0xff]  }
0x30b6   :  { %5576 = vadd.xlane.f32.xlu0 %v12434_v47  ;;  %5590 = vadd.xlane.f32.xlu1 %v5584_v16  ;;  %v9938_v16 = vld [vmem:[#allocation27 + $0x10] sm:$0xff]  }
0x30b7   :  { %9042 = vmatprep.subr.bf16.mxu0 %v9928_v35  ;;  %9679 = vmatpush3.bf16.msra.mxu1 %v9936_v63  ;;  %v9945_v35 = vld [vmem:[#allocation27 + $0x88] sm:$0xff]  }
0x30b9   :  { %9043 = vmatpush3.bf16.msra.mxu0 %v9929_v1  ;;  %v9946_v1 = vld [vmem:[#allocation28 + $0x78] sm:$0xff]  }
0x30ba   :  { %5592 = vadd.xlane.f32.xlu0 %v5585_v37  ;;  %9044 = vmatprep.subr.bf16.mxu0 %v9931_v62  ;;  %v9939_v37 = vld [vmem:[#allocation27 + $0x98] sm:$0xff]  }
0x30bb   :  { %9680 = vmatprep.subr.bf16.mxu1 %v9939_v37  ;;  %v9951_v62 = vld [vmem:[#allocation28 + $0xf8] sm:$0xff]  }
0x30bc   :  { %9681 = vmatpush3.bf16.msra.mxu1 %v9939_v37 }
0x30bd   :  { %9045 = vmatpush3.bf16.msra.mxu0 %v9932_v23  ;;  %9682 = vmatprep.subr.bf16.mxu1 %v9942_v9 }
0x30be   :  { %9046 = vmatprep.subr.bf16.mxu0 %v9934_v27 }
0x30c0   :  { %9683 = vmatpush3.bf16.msra.mxu1 %v9942_v9 }
0x30c1   :  { %9047 = vmatpush3.bf16.msra.mxu0 %v9935_v34  ;;  %9684 = vmatprep.subr.bf16.mxu1 %v9945_v35 }
0x30c2   :  { %9048 = vmatprep.subr.bf16.mxu0 %v9937_v7 }
0x30c4   :  { %9685 = vmatpush3.bf16.msra.mxu1 %v9945_v35 }
0x30c5   :  { %9049 = vmatpush3.bf16.msra.mxu0 %v9938_v16  ;;  %9686 = vmatprep.subr.bf16.mxu1 %v9948_v14 }
0x30c6   :  { %9050 = vmatprep.subr.bf16.mxu0 %v9940_v0 }
0x30c8   :  { %9687 = vmatpush3.bf16.msra.mxu1 %v9948_v14 }
0x30c9   :  { %9051 = vmatpush3.bf16.msra.mxu0 %v9941_v43  ;;  %9104 = vmatprep.subr.bf16.mxu1 %v9951_v62 }
0x30ca   :  { %9052 = vmatprep.subr.bf16.mxu0 %v9943_v45 }
0x30cd   :  { %9053 = vmatpush3.bf16.msra.mxu0 %v9944_v6 }
0x30ce   :  { %9076 = vmatprep.subr.bf16.mxu0 %v9946_v1 }
0x3133   :  { %v5571_v23 = vpop.xlane.xlu1 %5570 }
0x3134   :  { %v5578_v32 = vmul.f32 0.0078125, %v5571_v23 }
0x3136   :  { %v5598_v63 = vmul.f32 %v5578_v32, %v5578_v32 }
0x3137   :  { %v5573_v27 = vpop.xlane.xlu0 %5572  ;;  %v5587_v34 = vpop.xlane.xlu1 %5586 }
0x3138   :  { %v5579_v7 = vmul.f32 0.0078125, %v5573_v27  ;;  %v5594_v16 = vmul.f32 0.0078125, %v5587_v34 }
0x313a   :  { %v5602_v37 = vsub.f32 %v5594_v16, %v5598_v63  ;;  %v5599_v9 = vmul.f32 %v5579_v7, %v5579_v7 }
0x313b   :  { %v5589_v0 = vpop.xlane.xlu0 %5588  ;;  %v5575_v43 = vpop.xlane.xlu1 %5574 }
0x313c   :  { %v5606_v45 = vmax.f32 %v5602_v37, 0.0  ;;  %v5595_v6 = vmul.f32 0.0078125, %v5589_v0  ;;  %v5580_v17 = vmul.f32 0.0078125, %v5575_v43 }
0x313e   :  { %v5611_v1 = vadd.f32 1e-05, %v5606_v45  ;;  %v5603_v35 = vsub.f32 %v5595_v6, %v5599_v9  ;;  %v5600_v20 = vmul.f32 %v5580_v17, %v5580_v17  ;;  %v8576_v6 = vld [vmem:[%s12974_s0] ss:$0 sm:$0xff] }
0x313f   :  { %v5577_v19 = vpop.xlane.xlu0 %5576  ;;  %v5591_v14 = vpop.xlane.xlu1 %5590 }
0x3140   :  { %10179 = vrsqrt.f32 %v5611_v1  ;;  %v5607_v62 = vmax.f32 %v5603_v35, 0.0  ;;  %v5581_v23 = vmul.f32 0.0078125, %v5577_v19  ;;  %v5596_v46 = vmul.f32 0.0078125, %v5591_v14  ;;  %v8577_v14 = vld [vmem:[%s12975_s10] ss:$0 sm:$0xff] }
0x3141   :  { %v5629_v35 = vsub.f32 %v12418_v38, %v5578_v32 }
0x3142   :  { %v5612_v52 = vadd.f32 1e-05, %v5607_v62  ;;  %v5604_v27 = vsub.f32 %v5596_v46, %v5600_v20  ;;  %v5601_v63 = vmul.f32 %v5581_v23, %v5581_v23  ;;  %v5630_v20 = vsub.f32 %v12422_v26, %v5579_v7 }
0x3143   :  { %v5593_v34 = vpop.xlane.xlu0 %5592 }
0x3144   :  { %10181 = vrsqrt.f32 %v5612_v52  ;;  %v5608_v16 = vmax.f32 %v5604_v27, 0.0  ;;  %v5597_v37 = vmul.f32 0.0078125, %v5593_v34 }
0x3146   :  { %v5613_v0 = vadd.f32 1e-05, %v5608_v16  ;;  %v5605_v43 = vsub.f32 %v5597_v37, %v5601_v63  ;;  %v5631_v16 = vsub.f32 %v12430_v50, %v5580_v17 }
0x3148   :  { %10183 = vrsqrt.f32 %v5613_v0  ;;  %v5609_v9 = vmax.f32 %v5605_v43, 0.0 }
0x314a   :  { %v5614_v45 = vadd.f32 1e-05, %v5609_v9 }
0x314c   :  { %10185 = vrsqrt.f32 %v5614_v45 }
0x314d   :  { %v10180_v1 = vpop.eup %10179 }
0x314e   :  { %v5625_v19 = vmul.f32 %v10180_v1, %v8576_v6  ;;  %v5632_v1 = vsub.f32 %v12434_v47, %v5581_v23 }
0x3150   :  { %v5633_v62 = vmul.f32 %v5629_v35, %v5625_v19 }
0x3151   :  { %v10182_v46 = vpop.eup %10181 }
0x3152   :  { %v5626_v52 = vmul.f32 %v10182_v46, %v8576_v6  ;;  %v5644_v15 = vadd.f32 %v8577_v14, %v5633_v62 }
0x3154   :  { %v5634_v27 = vmul.f32 %v5630_v20, %v5626_v52  ;;  %v5648_v34 = vmul.f32 %v12165_v18, %v5644_v15 }
0x3155   :  { %v10184_v63 = vpop.eup %10183 }
0x3156   :  { %v5627_v37 = vmul.f32 %v10184_v63, %v8576_v6  ;;  %v5645_v0 = vadd.f32 %v8577_v14, %v5634_v27  ;;  %v5652_v43 = vmax.f32 %v5648_v34, 0.0 }
0x3158   :  { %v5635_v9 = vmul.f32 %v5631_v16, %v5627_v37  ;;  %v5649_v38 = vmul.f32 %v12170_v61, %v5645_v0  ;;  %v5656_v32 = vmul.f32 %v12165_v18, %v5652_v43 }
0x3159   :  { %v10186_v45 = vpop.eup %10185 }
0x315a   :  { %v5628_v26 = vmul.f32 %v10186_v45, %v8576_v6  ;;  %v5653_v7 = vmax.f32 %v5649_v38, 0.0  ;;  %v5660_v35 = vmul.f32 %v12165_v18, %v5656_v32  ;;  %v5646_v19 = vadd.f32 %v8577_v14, %v5635_v9 }
0x315c   :  { %v5636_v15 = vmul.f32 %v5632_v1, %v5628_v26  ;;  %v5657_v62 = vmul.f32 %v12170_v61, %v5653_v7  ;;  %v5668_v17 = vrot.slane %v5660_v35, 7  ;;  %v5650_v50 = vmul.f32 %v12178_v25, %v5646_v19 }
0x315e   :  { %v5661_v46 = vmul.f32 %v12170_v61, %v5657_v62  ;;  %v5680_v20 = vsel %vm5214_vm1, 0.0, %v5668_v17  ;;  %v5647_v52 = vadd.f32 %v8577_v14, %v5636_v15  ;;  %v5654_v27 = vmax.f32 %v5650_v50, 0.0  ;;  %v9947_v62 = vld [vmem:[#allocation28 + $0x38] sm:$0xff]  }
0x315f   :  { %v5688_v6 = vrot.slane %v5680_v20, 1  ;;  %v5702_v38 = vrot.slane %v5680_v20, 2  ;;  %v9949_v20 = vld [vmem:[#allocation28 + $0x70] sm:$0xff]  }
0x3160   :  { %v5669_v34 = vrot.slane %v5661_v46, 7  ;;  %v5651_v47 = vmul.f32 %v12186_v56, %v5647_v52  ;;  %v5658_v23 = vmul.f32 %v12178_v25, %v5654_v27 }
0x3162   :  { %v5670_v63 = vsel %vm5214_vm1, %v5668_v17, %v5669_v34  ;;  %v5682_v16 = vsel %vm5214_vm1, %v5669_v34, 0.0  ;;  %v5655_v37 = vmax.f32 %v5651_v47, 0.0  ;;  %v5662_v0 = vmul.f32 %v12178_v25, %v5658_v23  ;;  %v9950_v47 = vld [vmem:[#allocation28 + $0x30] sm:$0xff]  }
0x3163   :  { %v5689_v43 = vrot.slane %v5670_v63, 1  ;;  %v5691_v9 = vrot.slane %v5682_v16, 1  ;;  %v5703_v32 = vrot.slane %v5670_v63, 2  ;;  %v5705_v45 = vrot.slane %v5682_v16, 2 }
0x3164   :  { %v5659_v14 = vmul.f32 %v12186_v56, %v5655_v37  ;;  %v5671_v1 = vrot.slane %v5662_v0, 7  ;;  %v8605_v46 = vpack.c.bf16 %v5670_v63, %v5668_v17 }
0x3165   :  { %v5690_v26 = vsel %vm4543_vm6, %v5688_v6, %v5689_v43  ;;  %v5692_v7 = vsel %vm4543_vm6, %v5689_v43, %v5691_v9  ;;  %v5704_v35 = vsel %vm4558_vm9, %v5702_v38, %v5703_v32  ;;  %v5706_v15 = vsel %vm4558_vm9, %v5703_v32, %v5705_v45  ;;  %v9952_v9 = vld [vmem:[#allocation28 + $0x68] sm:$0xff]  }
0x3166   :  { %v5717_v19 = vpack.c.bf16 %v5692_v7, %v5690_v26  ;;  %v5663_v50 = vmul.f32 %v12186_v56, %v5659_v14  ;;  %v5718_v52 = vpack.c.bf16 %v5706_v15, %v5704_v35  ;;  %v5681_v27 = vsel %vm5214_vm1, 0.0, %v5671_v1  ;;  %v9953_v26 = vld [vmem:[#allocation28 + $0xb8] sm:$0xff]  }
0x3167   :  { %v5693_v16 = vrot.slane %v5681_v27, 1  ;;  %v5707_v37 = vrot.slane %v5681_v27, 2  ;;  %v9959_v27 = vld [vmem:[#allocation28 + $0xe8] sm:$0xff]  }
0x3168   :  { %5953 = vmatprep.mubr.bf16.mxu0 %v5717_v19  ;;  %v5672_v34 = vrot.slane %v5663_v50, 7  ;;  %9688 = vmatprep.mubr.bf16.mxu1 %v5718_v52  ;;  %v9954_v19 = vld [vmem:[#allocation28 + $0x28] sm:$0xff]   ;;  %v9956_v50 = vld [vmem:[#allocation28 + $0x60] sm:$0xff]   ;;  %v12976_v52 = vpack.c.bf16 %v12284_v48, %v12276_v59  ;;  %v9966_v48 = vld [vmem:[#allocation28 + $0x10] sm:$0xff]  }
0x3169   :  { %8606 = vmatmul.mubr.msk.bf16.vlgmr.msra.gmra.mxu0 %vm12268_vm15, %v8605_v46  ;;  %v9957_v46 = vld [vmem:[#allocation28 + $0xb0] sm:$0xff]   ;;  %v9965_v59 = vld [vmem:[#allocation28 + $0xa0] sm:$0xff]  }
0x316a   :  { %9077 = vmatpush3.bf16.msra.mxu0 %v9947_v62  ;;  %v5673_v23 = vsel %vm5214_vm1, %v5671_v1, %v5672_v34  ;;  %v5683_v6 = vsel %vm5214_vm1, %v5672_v34, 0.0  ;;  %v9955_v62 = vld [vmem:[#allocation28 + $0xf0] sm:$0xff]   ;;  %v12977_v34 = vpack.c.bf16 %v12299_v5, %v12296_v33  ;;  %v9968_v33 = vld [vmem:[#allocation28 + $0x48] sm:$0xff]   ;;  %v9969_v5 = vld [vmem:[#allocation28 + $0x98] sm:$0xff]  }
0x316b   :  { %9078 = vmatprep.subr.bf16.mxu0 %v9949_v20  ;;  %v5694_v17 = vrot.slane %v5673_v23, 1  ;;  %v5696_v63 = vrot.slane %v5683_v6, 1  ;;  %v5710_v0 = vrot.slane %v5683_v6, 2  ;;  %v5708_v43 = vrot.slane %v5673_v23, 2  ;;  %v9958_v20 = vld [vmem:[#allocation28 + $0x20] sm:$0xff]   ;;  %v9964_v6 = vld [vmem:[#allocation28 + $0x50] sm:$0xff]  }
0x316c   :  { %v8609_v15 = vpack.c.bf16 %v5673_v23, %v5671_v1  ;;  %v9960_v1 = vld [vmem:[#allocation28 + $0x58] sm:$0xff]   ;;  %v9963_v23 = vld [vmem:[#allocation28 + $0xe0] sm:$0xff]  }
0x316d   :  { %v5695_v38 = vsel %vm4543_vm6, %v5693_v16, %v5694_v17  ;;  %v5697_v32 = vsel %vm4543_vm6, %v5694_v17, %v5696_v63  ;;  %v5709_v45 = vsel %vm4558_vm9, %v5707_v37, %v5708_v43  ;;  %v5711_v14 = vsel %vm4558_vm9, %v5708_v43, %v5710_v0  ;;  %v9967_v16 = vld [vmem:[#allocation28 + $0xd8] sm:$0xff]   ;;  %v9970_v37 = vld [vmem:[#allocation28 + $0x8] sm:$0xff]   ;;  %v9971_v17 = vld [vmem:[#allocation28 + $0xd0] sm:$0xff]  }
0x316e   :  { %9079 = vmatpush3.bf16.msra.mxu0 %v9950_v47  ;;  %v5720_v7 = vpack.c.bf16 %v5697_v32, %v5695_v38  ;;  %v5721_v35 = vpack.c.bf16 %v5711_v14, %v5709_v45  ;;  %v9961_v47 = vld [vmem:[#allocation28 + $0xa8] sm:$0xff]   ;;  %v9972_v63 = vld [vmem:[#allocation28 + $0x40] sm:$0xff]   ;;  %v9973_v0 = vld [vmem:[#allocation28 + $0x90] sm:$0xff]  }
0x316f   :  { %9080 = vmatprep.subr.bf16.mxu0 %v9952_v9  ;;  %v9974_v43 = vld [vmem:[#allocation28] sm:$0xff]   ;;  %v9975_v9 = vld [vmem:[#allocation28 + $0xc8] sm:$0xff]   ;;  %v9977_v38 = vld [vmem:[#allocation28 + $0x178] sm:$0xff]  }
0x3170   :  { %5961 = vmatprep.mubr.bf16.mxu0 %v5720_v7  ;;  %9689 = vmatmul.mubr.bf16.vlgmr.msra.gmra.mxu1 %v5721_v35  ;;  %v9976_v32 = vld [vmem:[#allocation28 + $0x88] sm:$0xff]   ;;  %v9978_v14 = vld [vmem:[#allocation28 + $0x138] sm:$0xff]   ;;  %v9981_v7 = vld [vmem:[#allocation28 + $0x170] sm:$0xff]   ;;  %v12980_v35 = vpack.c.bf16 %v12253_v51, %v12233_v39  ;;  %v12982_v51 = vpack.c.bf16 %v12332_v11, %v12325_v41 }
0x3171   :  { %9105 = vmatpush3.bf16.msra.mxu1 %v9953_v26  ;;  %8610 = vmatmul.mubr.msk.bf16.gmra.mxu0 %vm12268_vm15, %v8609_v15  ;;  %v9979_v26 = vld [vmem:[#allocation28 + $0xc0] sm:$0xff]   ;;  %v12981_v15 = vpack.c.bf16 %v12329_v10, %v12320_v4  ;;  %v9986_v39 = vld [vmem:[#allocation28 + $0x1b0] sm:$0xff]   ;;  %v12983_v4 = vpack.c.bf16 %v12291_v30, %v12273_v2  ;;  %v12984_v10 = vpack.c.bf16 %v12344_v13, %v12341_v55  ;;  %v9989_v41 = vld [vmem:[#allocation28 + $0x1a8] sm:$0xff]  }
0x3172   :  { %9081 = vmatpush3.bf16.msra.mxu0 %v9954_v19  ;;  %6916 = vmatprep.mubr.bf16.mxu1 %v12976_v52  ;;  %v9980_v19 = vld [vmem:[#allocation28 + $0x80] sm:$0xff]   ;;  %v9985_v52 = vld [vmem:[#allocation28 + $0x128] sm:$0xff]   ;;  %v9990_v11 = vld [vmem:[#allocation28 + $0x158] sm:$0xff]   ;;  %v12986_v55 = vpack.c.bf16 %v12368_v42, %v12365_v21  ;;  %v12987_v13 = vpack.c.bf16 %v12378_v29, %v12373_v8  ;;  %v12989_v29 = vpack.c.bf16 %v12384_v22, %v12381_v3 }
0x3173   :  { %6867 = vmatprep.mubr.bf16.mxu0 %v12977_v34  ;;  %9106 = vmatprep.subr.bf16.mxu1 %v9955_v62  ;;  %v9982_v62 = vld [vmem:[#allocation28 + $0x130] sm:$0xff]   ;;  %v12985_v34 = vpack.c.bf16 %v12354_v58, %v12351_v44  ;;  %v9991_v2 = vld [vmem:[#allocation28 + $0x118] sm:$0xff]   ;;  %v9992_v30 = vld [vmem:[#allocation28 + $0x1a0] sm:$0xff]  }
0x3174   :  { %9082 = vmatprep.subr.bf16.mxu0 %v9956_v50  ;;  %v9983_v50 = vld [vmem:[#allocation28 + $0x1b8] sm:$0xff]   ;;  %v9994_v44 = vld [vmem:[#allocation28 + $0x110] sm:$0xff]   ;;  %v10000_v21 = vld [vmem:[#allocation28 + $0x100] sm:$0xff]  }
0x3175   :  { %9107 = vmatpush3.bf16.msra.mxu1 %v9957_v46  ;;  %v9984_v46 = vld [vmem:[#allocation28 + $0x168] sm:$0xff]   ;;  %v9995_v58 = vld [vmem:[#allocation28 + $0x198] sm:$0xff]   ;;  %v10002_v8 = vld [vmem:[#allocation28 + $0x180] sm:$0xff]  }
0x3176   :  { %9083 = vmatpush3.bf16.msra.mxu0 %v9958_v20  ;;  %9108 = vmatprep.subr.bf16.mxu1 %v9959_v27  ;;  %v9987_v20 = vld [vmem:[#allocation28 + $0x160] sm:$0xff]   ;;  %v10001_v42 = vld [vmem:[#allocation28 + $0x188] sm:$0xff]  }
0x3177   :  { %9084 = vmatprep.subr.bf16.mxu0 %v9960_v1  ;;  %v9988_v27 = vld [vmem:[#allocation28 + $0x120] sm:$0xff]   ;;  %v9993_v1 = vld [vmem:[#allocation28 + $0x150] sm:$0xff]  }
0x3178   :  { %v8578_v22 = vld [vmem:[%s12988_s22] ss:$0 sm:$0xff] }
0x3179   :  { %9109 = vmatpush3.bf16.msra.mxu1 %v9961_v47  ;;  %v9996_v47 = vld [vmem:[#allocation28 + $0x148] sm:$0xff]  }
0x317a   :  { %9085 = vmatpush3.bf16.msra.mxu0 %v9962_v54  ;;  %9110 = vmatprep.subr.bf16.mxu1 %v9963_v23  ;;  %v9997_v54 = vld [vmem:[#allocation28 + $0x108] sm:$0xff]   ;;  %v9998_v23 = vld [vmem:[#allocation28 + $0x190] sm:$0xff]  }
0x317b   :  { %9086 = vmatprep.subr.bf16.mxu0 %v9964_v6  ;;  %v9999_v6 = vld [vmem:[#allocation28 + $0x140] sm:$0xff]  }
0x317d   :  { %9111 = vmatpush3.bf16.msra.mxu1 %v9965_v59  ;;  %v12990_v59 = vpack.c.bf16 %v12396_v60, %v12393_v57 }
0x317e   :  { %9087 = vmatpush3.bf16.msra.mxu0 %v9966_v48  ;;  %9112 = vmatprep.subr.bf16.mxu1 %v9967_v16  ;;  %v12991_v48 = vpack.c.bf16 %v12405_v24, %v12402_v49  ;;  %v12992_v16 = vpack.c.bf16 %v12413_v28, %v12410_v40 }
0x317f   :  { %9088 = vmatprep.subr.bf16.mxu0 %v9968_v33 }
0x3181   :  { %9113 = vmatpush3.bf16.msra.mxu1 %v9969_v5 }
0x3182   :  { %9089 = vmatpush3.bf16.msra.mxu0 %v9970_v37  ;;  %9114 = vmatprep.subr.bf16.mxu1 %v9971_v17 }
0x3183   :  { %9090 = vmatprep.subr.bf16.mxu0 %v9972_v63 }
0x3185   :  { %9115 = vmatpush3.bf16.msra.mxu1 %v9973_v0 }
0x3186   :  { %9091 = vmatpush3.bf16.msra.mxu0 %v9974_v43  ;;  %9116 = vmatprep.subr.bf16.mxu1 %v9975_v9 }
0x3187   :  { %9132 = vmatprep.subr.bf16.mxu0 %v9977_v38 }
0x3189   :  { %8675 = vmatmul.mubr.msk.bf16.vlgmr.msra.gmra.mxu0 %vm12485_vm10, %v12980_v35  ;;  %9117 = vmatpush3.bf16.msra.mxu1 %v9976_v32 }
0x318a   :  { %6875 = vmatprep.mubr.bf16.mxu0 %v12981_v15  ;;  %9133 = vmatpush3.bf16.msra.mxu0 %v9978_v14 }
0x318b   :  { %9118 = vmatprep.subr.bf16.mxu1 %v9979_v26  ;;  %9134 = vmatprep.subr.bf16.mxu0 %v9981_v7 }
0x318d   :  { %9119 = vmatpush3.bf16.msra.mxu1 %v9980_v19 }
0x318e   :  { %9135 = vmatpush3.bf16.msra.mxu0 %v9982_v62  ;;  %9692 = vmatprep.subr.bf16.mxu1 %v9983_v50 }
0x318f   :  { %9136 = vmatprep.subr.bf16.mxu0 %v9984_v46 }
0x3190   :  { %6917 = vmatmul.mubr.bf16.vlgmr.msra.gmra.mxu1 %v12982_v51 }
0x3191   :  { %8679 = vmatmul.mubr.msk.bf16.gmra.mxu0 %vm12485_vm10, %v12983_v4  ;;  %6924 = vmatprep.mubr.bf16.mxu1 %v12984_v10 }
0x3192   :  { %9693 = vmatpush3.bf16.msra.mxu1 %v9983_v50  ;;  %9137 = vmatpush3.bf16.msra.mxu0 %v9985_v52 }
0x3193   :  { %6965 = vmatprep.mubr.bf16.mxu0 %v12985_v34  ;;  %9694 = vmatprep.subr.bf16.mxu1 %v9986_v39 }
0x3194   :  { %9138 = vmatprep.subr.bf16.mxu0 %v9987_v20 }
0x3196   :  { %9695 = vmatpush3.bf16.msra.mxu1 %v9986_v39  ;;  %9139 = vmatpush3.bf16.msra.mxu0 %v9988_v27 }
0x3197   :  { %9696 = vmatprep.subr.bf16.mxu1 %v9989_v41  ;;  %9140 = vmatprep.subr.bf16.mxu0 %v9990_v11 }
0x3198   :  { %6925 = vmatmul.mubr.bf16.gmra.mxu1 %v12986_v55  ;;  %v8615_v55 = vld [vmem:[%s12993_s21] ss:$0 sm:$0xff] }
0x3199   :  { %9708 = vmatprep.mubr.bf16.mxu1 %v12987_v13 }
0x319a   :  { %9697 = vmatpush3.bf16.msra.mxu1 %v9989_v41  ;;  %9141 = vmatpush3.bf16.msra.mxu0 %v9991_v2 }
0x319b   :  { %9698 = vmatprep.subr.bf16.mxu1 %v9992_v30  ;;  %9142 = vmatprep.subr.bf16.mxu0 %v9993_v1 }
0x319e   :  { %9699 = vmatpush3.bf16.msra.mxu1 %v9992_v30  ;;  %9143 = vmatpush3.bf16.msra.mxu0 %v9994_v44 }
0x319f   :  { %9700 = vmatprep.subr.bf16.mxu1 %v9995_v58  ;;  %9144 = vmatprep.subr.bf16.mxu0 %v9996_v47 }
0x31a2   :  { %9701 = vmatpush3.bf16.msra.mxu1 %v9995_v58  ;;  %9145 = vmatpush3.bf16.msra.mxu0 %v9997_v54 }
0x31a3   :  { %9702 = vmatprep.subr.bf16.mxu1 %v9998_v23  ;;  %9146 = vmatprep.subr.bf16.mxu0 %v9999_v6 }
0x31a6   :  { %9703 = vmatpush3.bf16.msra.mxu1 %v9998_v23  ;;  %9147 = vmatpush3.bf16.msra.mxu0 %v10000_v21 }
0x31a7   :  { %9704 = vmatprep.subr.bf16.mxu1 %v10001_v42 }
0x31a9   :  { %6966 = vmatmul.mubr.bf16.vlgmr.msra.gmra.mxu0 %v12989_v29 }
0x31aa   :  { %9705 = vmatpush3.bf16.msra.mxu1 %v10001_v42  ;;  %6973 = vmatprep.mubr.bf16.mxu0 %v12990_v59 }
0x31ab   :  { %9706 = vmatprep.subr.bf16.mxu1 %v10002_v8 }
0x31ae   :  { %9707 = vmatpush3.bf16.msra.mxu1 %v10002_v8 }
0x31b1   :  { %9709 = vmatmul.mubr.bf16.vlgmr.msra.gmra.mxu1 %v12991_v48  ;;  %6974 = vmatmul.mubr.bf16.gmra.mxu0 %v12992_v16 }
0x3229   :  { %v9054_v33 = vpop.f32.mrf.mxu0 }
0x322b   :  { %v9055_v5 = vpop.f32.mrf.mxu0 }
0x322c   :  { %v9056_v37 = vadd.f32 %v9055_v5, %v9054_v33 }
0x322d   :  { %v9057_v3 = vpop.f32.mrf.mxu0 }
0x322e   :  { %v5956_v60 = vadd.f32 %v9056_v37, %v8578_v22 }
0x322f   :  { %v9058_v17 = vpop.f32.mrf.mxu0 }
0x3230   :  { %v9059_v63 = vadd.f32 %v9058_v17, %v9057_v3  ;;  %v9690_v0 = vpop.f32.mrf.mxu1 }
0x3231   :  { %v9060_v57 = vpop.f32.mrf.mxu0 }
0x3232   :  { %v6004_v43 = vpop.f32.mrf.mxu1  ;;  %v5959_v45 = vadd.f32 %v9059_v63, %v8578_v22 }
0x3233   :  { %v12530_v9 = vadd.f32 %v6004_v43, %v5956_v60  ;;  %v9061_v38 = vpop.f32.mrf.mxu0 }
0x3234   :  { %v9062_v49 = vadd.f32 %v9061_v38, %v9060_v57  ;;  %v9691_v24 = vpop.f32.mrf.mxu1 }
0x3235   :  { %v9063_v32 = vpop.f32.mrf.mxu0 }
0x3236   :  { %v5964_v40 = vadd.f32 %v9062_v49, %v8578_v22  ;;  %v6007_v28 = vpop.f32.mrf.mxu1 }
0x3237   :  { %v12532_v14 = vadd.f32 %v6007_v28, %v5959_v45  ;;  %v9064_v26 = vpop.f32.mrf.mxu0 }
0x3238   :  { %v12534_v7 = vadd.f32 %v9690_v0, %v5964_v40  ;;  %v9065_v35 = vadd.f32 %v9064_v26, %v9063_v32 }
0x323a   :  { %v5967_v19 = vadd.f32 %v9065_v35, %v8578_v22 }
0x323c   :  { %v12536_v15 = vadd.f32 %v9691_v24, %v5967_v19 }
0x3249   :  { %v9092_v62 = vpop.f32.mrf.mxu0 }
0x324b   :  { %v9093_v50 = vpop.f32.mrf.mxu0 }
0x324c   :  { %v9094_v1 = vadd.f32 %v9093_v50, %v9092_v62 }
0x324d   :  { %v9095_v46 = vpop.f32.mrf.mxu0 }
0x324e   :  { %v6870_v23 = vadd.f32 %v9094_v1, %v8615_v55  ;;  %v10005_v1 = vld [vmem:[#allocation30 + $0x38] sm:$0xff]  }
0x324f   :  { %v9096_v39 = vpop.f32.mrf.mxu0 }
0x3250   :  { %v9120_v52 = vpop.f32.mrf.mxu1  ;;  %v9097_v47 = vadd.f32 %v9096_v39, %v9095_v46 }
0x3251   :  { %v9098_v20 = vpop.f32.mrf.mxu0 }
0x3252   :  { %v9121_v51 = vpop.f32.mrf.mxu1  ;;  %v6873_v16 = vadd.f32 %v9097_v47, %v8615_v55  ;;  %v10010_v47 = vld [vmem:[#allocation30 + $0xb0] sm:$0xff]  }
0x3253   :  { %v9099_v10 = vpop.f32.mrf.mxu0  ;;  %v9122_v58 = vadd.f32 %v9121_v51, %v9120_v52 }
0x3254   :  { %v9123_v4 = vpop.f32.mrf.mxu1  ;;  %v9100_v6 = vadd.f32 %v9099_v10, %v9098_v20 }
0x3255   :  { %v9101_v34 = vpop.f32.mrf.mxu0  ;;  %v6919_v59 = vadd.f32 %v9122_v58, %v6870_v23  ;;  %v10009_v58 = vld [vmem:[#allocation30 + $0x30] sm:$0xff]   ;;  %v10012_v23 = vld [vmem:[#allocation30 + $0xe8] sm:$0xff]  }
0x3256   :  { %v9124_v27 = vpop.f32.mrf.mxu1  ;;  %v6878_v37 = vadd.f32 %v9100_v6, %v8615_v55  ;;  %v10013_v6 = vld [vmem:[#allocation30 + $0x28] sm:$0xff]  }
0x3257   :  { %v9102_v11 = vpop.f32.mrf.mxu0  ;;  %v9125_v42 = vadd.f32 %v9124_v27, %v9123_v4 }
0x3258   :  { %v9126_v41 = vpop.f32.mrf.mxu1  ;;  %v9103_v3 = vadd.f32 %v9102_v11, %v9101_v34 }
0x3259   :  { %v6922_v63 = vadd.f32 %v9125_v42, %v6873_v16  ;;  %v10015_v42 = vld [vmem:[#allocation30 + $0x60] sm:$0xff]   ;;  %v10020_v16 = vld [vmem:[#allocation30 + $0xd8] sm:$0xff]  }
0x325a   :  { %v9127_v2 = vpop.f32.mrf.mxu1  ;;  %v6881_v45 = vadd.f32 %v9103_v3, %v8615_v55  ;;  %v10006_v55 = vld [vmem:[#allocation30 + $0xb8] sm:$0xff]   ;;  %v10024_v3 = vld [vmem:[#allocation30 + $0xd0] sm:$0xff]  }
0x325b   :  { %v9128_v48 = vadd.f32 %v9127_v2, %v9126_v41  ;;  %v10003_v2 = vld [vmem:[#allocation30 + $0x78] sm:$0xff]  }
0x325c   :  { %v9129_v13 = vpop.f32.mrf.mxu1  ;;  %9170 = vmatprep.subr.bf16.mxu0 %v10003_v2 }
0x325d   :  { %v6927_v60 = vadd.f32 %v9128_v48, %v6878_v37  ;;  %9171 = vmatpush3.bf16.msra.mxu0 %v10005_v1  ;;  %v10019_v48 = vld [vmem:[#allocation30 + $0x58] sm:$0xff]   ;;  %v10023_v37 = vld [vmem:[#allocation30 + $0x50] sm:$0xff]  }
0x325e   :  { %v9130_v8 = vpop.f32.mrf.mxu1 }
0x325f   :  { %v9131_v43 = vadd.f32 %v9130_v8, %v9129_v13  ;;  %v10007_v13 = vld [vmem:[#allocation30 + $0x70] sm:$0xff]   ;;  %v10016_v8 = vld [vmem:[#allocation30 + $0xe0] sm:$0xff]  }
0x3260   :  { %9172 = vmatprep.subr.bf16.mxu0 %v10007_v13 }
0x3261   :  { %v6930_v62 = vadd.f32 %v9131_v43, %v6881_v45  ;;  %9173 = vmatpush3.bf16.msra.mxu0 %v10009_v58  ;;  %v10031_v43 = vld [vmem:[#allocation30 + $0x40] sm:$0xff]   ;;  %v10036_v45 = vld [vmem:[#allocation30 + $0x1f8] sm:$0xff]  }
0x3269   :  { %v9148_v30 = vpop.f32.mrf.mxu0 }
0x326b   :  { %v9149_v44 = vpop.f32.mrf.mxu0 }
0x326c   :  { %v9150_v21 = vadd.f32 %v9149_v44, %v9148_v30  ;;  %v10004_v30 = vld [vmem:[#allocation30 + $0xf8] sm:$0xff]   ;;  %v10008_v44 = vld [vmem:[#allocation30 + $0xf0] sm:$0xff]  }
0x326d   :  { %v9151_v54 = vpop.f32.mrf.mxu0  ;;  %9198 = vmatprep.subr.bf16.mxu1 %v10004_v30 }
0x326e   :  { %v6968_v17 = vadd.f32 %v9150_v21, %v6919_v59  ;;  %9199 = vmatpush3.bf16.msra.mxu1 %v10006_v55  ;;  %v10014_v21 = vld [vmem:[#allocation30 + $0xa8] sm:$0xff]   ;;  %v10018_v59 = vld [vmem:[#allocation30 + $0xa0] sm:$0xff]  }
0x326f   :  { %v9152_v29 = vpop.f32.mrf.mxu0  ;;  %9200 = vmatprep.subr.bf16.mxu1 %v10008_v44 }
0x3270   :  { %v9153_v22 = vadd.f32 %v9152_v29, %v9151_v54  ;;  %v10011_v54 = vld [vmem:[#allocation30 + $0x68] sm:$0xff]   ;;  %v10017_v29 = vld [vmem:[#allocation30 + $0x20] sm:$0xff]  }
0x3271   :  { %v9710_v33 = vpop.f32.mrf.mxu1  ;;  %v9154_v5 = vpop.f32.mrf.mxu0  ;;  %9174 = vmatprep.subr.bf16.mxu0 %v10011_v54 }
0x3272   :  { %v6971_v26 = vadd.f32 %v9153_v22, %v6922_v63  ;;  %9201 = vmatpush3.bf16.msra.mxu1 %v10010_v47  ;;  %9175 = vmatpush3.bf16.msra.mxu0 %v10013_v6  ;;  %v10025_v22 = vld [vmem:[#allocation30 + $0x10] sm:$0xff]   ;;  %v10027_v63 = vld [vmem:[#allocation30 + $0x48] sm:$0xff]  }
0x3273   :  { %v7016_v0 = vpop.f32.mrf.mxu1  ;;  %v9155_v57 = vpop.f32.mrf.mxu0  ;;  %9202 = vmatprep.subr.bf16.mxu1 %v10012_v23  ;;  %9176 = vmatprep.subr.bf16.mxu0 %v10015_v42 }
0x3274   :  { %v7017_v38 = vadd.f32 %v7016_v0, %v6968_v17  ;;  %v9156_v49 = vadd.f32 %v9155_v57, %v9154_v5  ;;  %v10022_v5 = vld [vmem:[#allocation30 + $0x98] sm:$0xff]   ;;  %v10026_v17 = vld [vmem:[#allocation30 + $0x90] sm:$0xff]   ;;  %v10028_v0 = vld [vmem:[#allocation30 + $0xc8] sm:$0xff]  }
0x3275   :  { %v9711_v24 = vpop.f32.mrf.mxu1  ;;  %v9157_v32 = vpop.f32.mrf.mxu0  ;;  %v10029_v57 = vld [vmem:[#allocation30 + $0x8] sm:$0xff]  }
0x3276   :  { %v12540_v40 = vmul.f32 %v12165_v18, %v7017_v38  ;;  %v6976_v28 = vadd.f32 %v9156_v49, %v6927_v60  ;;  %9203 = vmatpush3.bf16.msra.mxu1 %v10014_v21  ;;  %9177 = vmatpush3.bf16.msra.mxu0 %v10017_v29  ;;  %v10030_v60 = vld [vmem:[#allocation30 + $0x88] sm:$0xff]   ;;  %v10032_v38 = vld [vmem:[#allocation30 + $0xc0] sm:$0xff]  }
0x3277   :  { %v7019_v35 = vpop.f32.mrf.mxu1  ;;  %v9158_v19 = vpop.f32.mrf.mxu0  ;;  %9204 = vmatprep.subr.bf16.mxu1 %v10016_v8  ;;  %9178 = vmatprep.subr.bf16.mxu0 %v10019_v48  ;;  %v10033_v49 = vld [vmem:[#allocation30] sm:$0xff]  }
0x3278   :  { %v7020_v50 = vadd.f32 %v7019_v35, %v6971_v26  ;;  %v9159_v46 = vadd.f32 %v9158_v19, %v9157_v32  ;;  %7035 = vadd.xlane.f32.xlu1 %v12540_v40  ;;  %v7025_v52 = vadd.f32 %v9710_v33, %v6976_v28  ;;  %v7047_v20 = vmul.f32 %v12540_v40, %v12540_v40  ;;  %v10021_v33 = vld [vmem:[#allocation30 + $0x18] sm:$0xff]  }
0x3279   :  { %v10035_v32 = vld [vmem:[#allocation30 + $0x178] sm:$0xff]  }
0x327a   :  { %v12544_v39 = vmul.f32 %v12170_v61, %v7020_v50  ;;  %v6979_v51 = vadd.f32 %v9159_v46, %v6930_v62  ;;  %v12552_v27 = vmul.f32 %v12178_v25, %v7025_v52  ;;  %9205 = vmatpush3.bf16.msra.mxu1 %v10018_v59  ;;  %9179 = vmatpush3.bf16.msra.mxu0 %v10021_v33  ;;  %v8680_v33 = vld [vmem:[%s12994_s3] ss:$0 sm:$0xff] }
0x327b   :  { %9206 = vmatprep.subr.bf16.mxu1 %v10020_v16  ;;  %9180 = vmatprep.subr.bf16.mxu0 %v10023_v37 }
0x327c   :  { %7037 = vadd.xlane.f32.xlu0 %v12544_v39  ;;  %7051 = vadd.xlane.f32.xlu1 %v7047_v20  ;;  %v7028_v4 = vadd.f32 %v9711_v24, %v6979_v51  ;;  %v7048_v10 = vmul.f32 %v12544_v39, %v12544_v39  ;;  %v7049_v41 = vmul.f32 %v12552_v27, %v12552_v27  ;;  %v10034_v24 = vld [vmem:[#allocation30 + $0x80] sm:$0xff]  }
0x327e   :  { %v12556_v34 = vmul.f32 %v12186_v56, %v7028_v4  ;;  %9207 = vmatpush3.bf16.msra.mxu1 %v10022_v5  ;;  %9181 = vmatpush3.bf16.msra.mxu0 %v10025_v22  ;;  %v8681_v22 = vld [vmem:[%s12995_s13] ss:$0 sm:$0xff] }
0x327f   :  { %9208 = vmatprep.subr.bf16.mxu1 %v10024_v3  ;;  %9182 = vmatprep.subr.bf16.mxu0 %v10027_v63 }
0x3280   :  { %7053 = vadd.xlane.f32.xlu0 %v7048_v10  ;;  %7039 = vadd.xlane.f32.xlu1 %v12552_v27  ;;  %v7050_v11 = vmul.f32 %v12556_v34, %v12556_v34 }
0x3282   :  { %9209 = vmatpush3.bf16.msra.mxu1 %v10026_v17  ;;  %9183 = vmatpush3.bf16.msra.mxu0 %v10029_v57 }
0x3283   :  { %9210 = vmatprep.subr.bf16.mxu1 %v10028_v0  ;;  %9184 = vmatprep.subr.bf16.mxu0 %v10031_v43 }
0x3284   :  { %7041 = vadd.xlane.f32.xlu0 %v12556_v34  ;;  %7055 = vadd.xlane.f32.xlu1 %v7049_v41 }
0x3286   :  { %9211 = vmatpush3.bf16.msra.mxu1 %v10030_v60  ;;  %9185 = vmatpush3.bf16.msra.mxu0 %v10033_v49 }
0x3287   :  { %9212 = vmatprep.subr.bf16.mxu1 %v10032_v38  ;;  %9226 = vmatprep.subr.bf16.mxu0 %v10035_v32 }
0x3288   :  { %7057 = vadd.xlane.f32.xlu0 %v7050_v11 }
0x328a   :  { %9213 = vmatpush3.bf16.msra.mxu1 %v10034_v24 }
0x328b   :  { %9254 = vmatprep.subr.bf16.mxu1 %v10036_v45 }
0x3301   :  { %v7036_v28 = vpop.xlane.xlu1 %7035 }
0x3302   :  { %v7043_v26 = vmul.f32 0.0078125, %v7036_v28 }
0x3304   :  { %v7063_v62 = vmul.f32 %v7043_v26, %v7043_v26  ;;  %v7094_v37 = vsub.f32 %v12540_v40, %v7043_v26 }
0x3305   :  { %v7038_v35 = vpop.xlane.xlu0 %7037  ;;  %v7052_v19 = vpop.xlane.xlu1 %7051 }
0x3306   :  { %v7044_v50 = vmul.f32 0.0078125, %v7038_v35  ;;  %v7059_v46 = vmul.f32 0.0078125, %v7052_v19 }
0x3308   :  { %v7067_v52 = vsub.f32 %v7059_v46, %v7063_v62  ;;  %v7064_v4 = vmul.f32 %v7044_v50, %v7044_v50  ;;  %v7095_v0 = vsub.f32 %v12544_v39, %v7044_v50 }
0x3309   :  { %v7054_v51 = vpop.xlane.xlu0 %7053  ;;  %v7040_v20 = vpop.xlane.xlu1 %7039 }
0x330a   :  { %v7071_v10 = vmax.f32 %v7067_v52, 0.0  ;;  %v7060_v41 = vmul.f32 0.0078125, %v7054_v51  ;;  %v7045_v11 = vmul.f32 0.0078125, %v7040_v20 }
0x330c   :  { %v7076_v2 = vadd.f32 1e-05, %v7071_v10  ;;  %v7068_v30 = vsub.f32 %v7060_v41, %v7064_v4  ;;  %v7065_v1 = vmul.f32 %v7045_v11, %v7045_v11  ;;  %v7096_v45 = vsub.f32 %v12552_v27, %v7045_v11 }
0x330d   :  { %v7042_v55 = vpop.xlane.xlu0 %7041  ;;  %v7056_v13 = vpop.xlane.xlu1 %7055 }
0x330e   :  { %10187 = vrsqrt.f32 %v7076_v2  ;;  %v7072_v44 = vmax.f32 %v7068_v30, 0.0  ;;  %v7046_v58 = vmul.f32 0.0078125, %v7042_v55  ;;  %v7061_v47 = vmul.f32 0.0078125, %v7056_v13 }
0x3310   :  { %v7077_v54 = vadd.f32 1e-05, %v7072_v44  ;;  %v7069_v23 = vsub.f32 %v7061_v47, %v7065_v1  ;;  %v7066_v21 = vmul.f32 %v7046_v58, %v7046_v58  ;;  %v7097_v62 = vsub.f32 %v12556_v34, %v7046_v58 }
0x3311   :  { %v7058_v6 = vpop.xlane.xlu0 %7057 }
0x3312   :  { %10189 = vrsqrt.f32 %v7077_v54  ;;  %v7073_v42 = vmax.f32 %v7069_v23, 0.0  ;;  %v7062_v8 = vmul.f32 0.0078125, %v7058_v6 }
0x3314   :  { %v7078_v29 = vadd.f32 1e-05, %v7073_v42  ;;  %v7070_v59 = vsub.f32 %v7062_v8, %v7066_v21 }
0x3316   :  { %10191 = vrsqrt.f32 %v7078_v29  ;;  %v7074_v48 = vmax.f32 %v7070_v59, 0.0 }
0x3318   :  { %v7079_v16 = vadd.f32 1e-05, %v7074_v48 }
0x331a   :  { %10193 = vrsqrt.f32 %v7079_v16 }
0x331b   :  { %v10188_v5 = vpop.eup %10187 }
0x331c   :  { %v7090_v3 = vmul.f32 %v10188_v5, %v8680_v33 }
0x331e   :  { %v7098_v17 = vmul.f32 %v7094_v37, %v7090_v3 }
0x331f   :  { %v10190_v63 = vpop.eup %10189 }
0x3320   :  { %v7109_v57 = vadd.f32 %v8681_v22, %v7098_v17  ;;  %v7091_v60 = vmul.f32 %v10190_v63, %v8680_v33  ;;  %v10054_v63 = vld [vmem:[#allocation30 + $0x198] sm:$0xff]  }
0x3322   :  { %v7113_v43 = vmul.f32 %v12165_v18, %v7109_v57  ;;  %v7099_v38 = vmul.f32 %v7095_v0, %v7091_v60  ;;  %v10037_v60 = vld [vmem:[#allocation30 + $0x138] sm:$0xff]  }
0x3323   :  { %v10192_v49 = vpop.eup %10191 }
0x3324   :  { %v7117_v24 = vmax.f32 %v7113_v43, 0.0  ;;  %v7110_v32 = vadd.f32 %v8681_v22, %v7099_v38  ;;  %v7092_v28 = vmul.f32 %v10192_v49, %v8680_v33  ;;  %v10038_v43 = vld [vmem:[#allocation30 + $0x1b8] sm:$0xff]   ;;  %v10039_v49 = vld [vmem:[#allocation30 + $0x170] sm:$0xff]  }
0x3326   :  { %v7121_v35 = vmul.f32 %v12165_v18, %v7117_v24  ;;  %v7114_v40 = vmul.f32 %v12170_v61, %v7110_v32  ;;  %v7100_v26 = vmul.f32 %v7096_v45, %v7092_v28  ;;  %v10040_v24 = vld [vmem:[#allocation30 + $0x1f0] sm:$0xff]  }
0x3327   :  { %v10194_v19 = vpop.eup %10193 }
0x3328   :  { %v7118_v39 = vmax.f32 %v7114_v40, 0.0  ;;  %v7111_v50 = vadd.f32 %v8681_v22, %v7100_v26  ;;  %v7093_v46 = vmul.f32 %v10194_v19, %v8680_v33  ;;  %v7125_v52 = vmul.f32 %v12165_v18, %v7121_v35 }
0x332a   :  { %v7122_v51 = vmul.f32 %v12170_v61, %v7118_v39  ;;  %v7115_v20 = vmul.f32 %v12178_v25, %v7111_v50  ;;  %v7101_v4 = vmul.f32 %v7097_v62, %v7093_v46  ;;  %v7133_v27 = vrot.slane %v7125_v52, 4  ;;  %v10041_v39 = vld [vmem:[#allocation30 + $0x130] sm:$0xff]  }
0x332b   :  { %v10042_v50 = vld [vmem:[#allocation30 + $0x1b0] sm:$0xff]  }
0x332c   :  { %v7119_v10 = vmax.f32 %v7115_v20, 0.0  ;;  %v7112_v41 = vadd.f32 %v8681_v22, %v7101_v4  ;;  %v7126_v11 = vmul.f32 %v12170_v61, %v7122_v51  ;;  %v12577_v2 = vsel %vm4588_vm13, 0.0, %v7133_v27 }
0x332d   :  { %v7153_v55 = vrot.slane %v12577_v2, 1  ;;  %v7181_v13 = vrot.slane %v12577_v2, 3  ;;  %v7167_v44 = vrot.slane %v12577_v2, 2  ;;  %v7209_v35 = vrot.slane %v12577_v2, 5 }
0x332e   :  { %v7123_v34 = vmul.f32 %v12178_v25, %v7119_v10  ;;  %v7116_v30 = vmul.f32 %v12186_v56, %v7112_v41  ;;  %v12581_v1 = vrot.slane %v7126_v11, 4  ;;  %v7237_v51 = vrot.slane %v12577_v2, 7  ;;  %v10043_v41 = vld [vmem:[#allocation30 + $0x168] sm:$0xff]  }
0x332f   :  { %v10044_v11 = vld [vmem:[#allocation30 + $0x1e8] sm:$0xff]  }
0x3330   :  { %v7120_v58 = vmax.f32 %v7116_v30, 0.0  ;;  %v12588_v47 = vsel %vm4588_vm13, %v7133_v27, %v12581_v1  ;;  %v12592_v54 = vsel %vm4588_vm13, %v12581_v1, 0.0  ;;  %v7127_v23 = vmul.f32 %v12178_v25, %v7123_v34 }
0x3331   :  { %v7154_v6 = vrot.slane %v12588_v47, 1  ;;  %v7156_v21 = vrot.slane %v12592_v54, 1  ;;  %v7182_v42 = vrot.slane %v12588_v47, 3  ;;  %v7184_v8 = vrot.slane %v12592_v54, 3 }
0x3332   :  { %v7124_v29 = vmul.f32 %v12186_v56, %v7120_v58  ;;  %v8757_v59 = vpack.c.bf16 %v12588_v47, %v7133_v27  ;;  %v7168_v48 = vrot.slane %v12588_v47, 2  ;;  %v7170_v16 = vrot.slane %v12592_v54, 2 }
0x3333   :  { %v7155_v33 = vsel %vm4543_vm6, %v7153_v55, %v7154_v6  ;;  %v7157_v5 = vsel %vm4543_vm6, %v7154_v6, %v7156_v21  ;;  %v7183_v37 = vsel %vm4573_vm8, %v7181_v13, %v7182_v42  ;;  %v7185_v3 = vsel %vm4573_vm8, %v7182_v42, %v7184_v8 }
0x3334   :  { %v7252_v22 = vpack.c.bf16 %v7157_v5, %v7155_v33  ;;  %v7254_v17 = vpack.c.bf16 %v7185_v3, %v7183_v37  ;;  %v7169_v0 = vsel %vm4558_vm9, %v7167_v44, %v7168_v48  ;;  %v7171_v57 = vsel %vm4558_vm9, %v7168_v48, %v7170_v16  ;;  %v10045_v33 = vld [vmem:[#allocation30 + $0x128] sm:$0xff]  }
0x3335   :  { %v7253_v38 = vpack.c.bf16 %v7171_v57, %v7169_v0  ;;  %v7128_v32 = vmul.f32 %v12186_v56, %v7124_v29  ;;  %v7136_v45 = vrot.slane %v7127_v23, 4  ;;  %v7210_v28 = vrot.slane %v12588_v47, 5  ;;  %v10047_v57 = vld [vmem:[#allocation30 + $0x160] sm:$0xff]  }
0x3336   :  { %7884 = vmatprep.mubr.bf16.mxu0 %v7252_v22  ;;  %7933 = vmatprep.mubr.bf16.mxu1 %v7254_v17  ;;  %v7212_v19 = vrot.slane %v12592_v54, 5  ;;  %v7238_v62 = vrot.slane %v12588_v47, 7  ;;  %v7240_v20 = vrot.slane %v12592_v54, 7  ;;  %v10046_v22 = vld [vmem:[#allocation30 + $0x1a8] sm:$0xff]  }
0x3337   :  { %8758 = vmatmul.mubr.msk.bf16.vlgmr.msra.gmra.mxu0 %vm12609_vm11, %v8757_v59  ;;  %7934 = vmatmul.mubr.bf16.vlgmr.msra.gmra.mxu1 %v7253_v38  ;;  %v12620_v40 = vrot.slane %v7128_v32, 4  ;;  %v12623_v26 = vsel %vm4588_vm13, 0.0, %v7136_v45  ;;  %v7211_v52 = vsel %vm6261_vm7, %v7209_v35, %v7210_v28  ;;  %v10051_v32 = vld [vmem:[#allocation30 + $0x158] sm:$0xff]   ;;  %v10055_v35 = vld [vmem:[#allocation30 + $0x150] sm:$0xff]  }
0x3338   :  { %9227 = vmatpush3.bf16.msra.mxu0 %v10037_v60  ;;  %9255 = vmatpush3.bf16.msra.mxu1 %v10038_v43  ;;  %v7158_v46 = vrot.slane %v12623_v26, 1  ;;  %v7186_v10 = vrot.slane %v12623_v26, 3  ;;  %v7172_v34 = vrot.slane %v12623_v26, 2  ;;  %v7213_v6 = vsel %vm6261_vm7, %v7210_v28, %v7212_v19  ;;  %v10048_v43 = vld [vmem:[#allocation30 + $0x1e0] sm:$0xff]   ;;  %v10053_v28 = vld [vmem:[#allocation30 + $0x118] sm:$0xff]   ;;  %v10056_v19 = vld [vmem:[#allocation30 + $0x1d0] sm:$0xff]  }
0x3339   :  { %9228 = vmatprep.subr.bf16.mxu0 %v10039_v49  ;;  %9256 = vmatprep.subr.bf16.mxu1 %v10040_v24  ;;  %v12633_v4 = vsel %vm4588_vm13, %v7136_v45, %v12620_v40  ;;  %v12637_v27 = vsel %vm4588_vm13, %v12620_v40, 0.0  ;;  %v7239_v21 = vsel %vm5214_vm1, %v7237_v51, %v7238_v62  ;;  %v7241_v17 = vsel %vm5214_vm1, %v7238_v62, %v7240_v20  ;;  %v10049_v49 = vld [vmem:[#allocation30 + $0x120] sm:$0xff]   ;;  %v10057_v62 = vld [vmem:[#allocation30 + $0x110] sm:$0xff]   ;;  %v10062_v51 = vld [vmem:[#allocation30 + $0x188] sm:$0xff]  }
0x333a   :  { %v7159_v30 = vrot.slane %v12633_v4, 1  ;;  %v7161_v55 = vrot.slane %v12637_v27, 1  ;;  %v7187_v13 = vrot.slane %v12633_v4, 3  ;;  %v7189_v44 = vrot.slane %v12637_v27, 3  ;;  %v10050_v24 = vld [vmem:[#allocation30 + $0x1a0] sm:$0xff]  }
0x333b   :  { %v7173_v58 = vrot.slane %v12633_v4, 2  ;;  %v7175_v23 = vrot.slane %v12637_v27, 2  ;;  %v8761_v37 = vpack.c.bf16 %v12633_v4, %v7136_v45  ;;  %v7256_v60 = vpack.c.bf16 %v7213_v6, %v7211_v52  ;;  %v10052_v45 = vld [vmem:[#allocation30 + $0x1d8] sm:$0xff]   ;;  %v10061_v52 = vld [vmem:[#allocation30 + $0x108] sm:$0xff]   ;;  %v10063_v20 = vld [vmem:[#allocation30 + $0x140] sm:$0xff]  }
0x333c   :  { %9229 = vmatpush3.bf16.msra.mxu0 %v10041_v39  ;;  %9257 = vmatpush3.bf16.msra.mxu1 %v10042_v50  ;;  %v7160_v42 = vsel %vm4543_vm6, %v7158_v46, %v7159_v30  ;;  %v7162_v8 = vsel %vm4543_vm6, %v7159_v30, %v7161_v55  ;;  %v7188_v29 = vsel %vm4573_vm8, %v7186_v10, %v7187_v13  ;;  %v10058_v39 = vld [vmem:[#allocation30 + $0x190] sm:$0xff]   ;;  %v10059_v50 = vld [vmem:[#allocation30 + $0x148] sm:$0xff]   ;;  %v10064_v10 = vld [vmem:[#allocation30 + $0x1c0] sm:$0xff]   ;;  %v7226_v30 = vrot.slane %v12592_v54, 6 }
0x333d   :  { %v7261_v59 = vpack.c.bf16 %v7162_v8, %v7160_v42  ;;  %v7190_v48 = vsel %vm4573_vm8, %v7187_v13, %v7189_v44  ;;  %9230 = vmatprep.subr.bf16.mxu0 %v10043_v41  ;;  %9258 = vmatprep.subr.bf16.mxu1 %v10044_v11  ;;  %v7174_v16 = vsel %vm4558_vm9, %v7172_v34, %v7173_v58  ;;  %v10060_v46 = vld [vmem:[#allocation30 + $0x1c8] sm:$0xff]   ;;  %v7196_v41 = vrot.slane %v12588_v47, 4  ;;  %v10065_v44 = vld [vmem:[#allocation30 + $0x100] sm:$0xff]   ;;  %v10067_v8 = vld [vmem:[#allocation30 + $0x238] sm:$0xff]  }
0x333e   :  { %v7263_v5 = vpack.c.bf16 %v7190_v48, %v7188_v29  ;;  %v7176_v3 = vsel %vm4558_vm9, %v7173_v58, %v7175_v23  ;;  %v7258_v38 = vpack.c.bf16 %v7241_v17, %v7239_v21  ;;  %v7198_v11 = vrot.slane %v12592_v54, 4  ;;  %v10066_v21 = vld [vmem:[#allocation30 + $0x180] sm:$0xff]   ;;  %vm12691_vm6 = vmpackc.low %vm4588_vm13, %vm10575_vm3 }
0x333f   :  { %7892 = vmatprep.mubr.bf16.mxu0 %v7261_v59  ;;  %v7262_v0 = vpack.c.bf16 %v7176_v3, %v7174_v16  ;;  %v7224_v34 = vrot.slane %v12588_v47, 6  ;;  %v7215_v55 = vrot.slane %v12633_v4, 5  ;;  %v7217_v13 = vrot.slane %v12637_v27, 5 }
0x3340   :  { %7941 = vmatprep.mubr.bf16.mxu1 %v7263_v5  ;;  %8762 = vmatmul.mubr.msk.bf16.gmra.mxu0 %vm12609_vm11, %v8761_v37  ;;  %v7195_v58 = vrot.slane %v12577_v2, 4  ;;  %v7243_v23 = vrot.slane %v12633_v4, 7  ;;  %v7245_v6 = vrot.slane %v12637_v27, 7  ;;  %v7223_v42 = vrot.slane %v12577_v2, 6 }
0x3341   :  { %7942 = vmatmul.mubr.bf16.gmra.mxu1 %v7262_v0  ;;  %9231 = vmatpush3.bf16.msra.mxu0 %v10045_v33  ;;  %v7214_v54 = vrot.slane %v12623_v26, 5  ;;  %v7199_v59 = vsel %vm4588_vm13, %v7196_v41, %v7198_v11  ;;  %v7242_v48 = vrot.slane %v12623_v26, 7  ;;  %v7227_v33 = vsel %vm1518_vm2, %v7224_v34, %v7226_v30 }
0x3342   :  { %9259 = vmatpush3.bf16.msra.mxu1 %v10046_v22  ;;  %7982 = vmatprep.mubr.bf16.mxu0 %v7256_v60  ;;  %v7197_v29 = vsel %vm4588_vm13, %v7195_v58, %v7196_v41  ;;  %v7225_v16 = vsel %vm1518_vm2, %v7223_v42, %v7224_v34  ;;  %v7218_v37 = vsel %vm6261_vm7, %v7215_v55, %v7217_v13  ;;  %v7201_v60 = vrot.slane %v12633_v4, 4 }
0x3343   :  { %8031 = vmatprep.mubr.bf16.mxu1 %v7258_v38  ;;  %9232 = vmatprep.subr.bf16.mxu0 %v10047_v57  ;;  %v7216_v5 = vsel %vm6261_vm7, %v7214_v54, %v7215_v55  ;;  %v7244_v2 = vsel %vm5214_vm1, %v7242_v48, %v7243_v23  ;;  %v7246_v3 = vsel %vm5214_vm1, %v7243_v23, %v7245_v6  ;;  %v10068_v57 = vld [vmem:[#allocation30 + $0x230] sm:$0xff]   ;;  %vm6204_vm8 = vcmp.gt.f32.partialorder %v11123_v31, 0.5 }
0x3344   :  { %9260 = vmatprep.subr.bf16.mxu1 %v10048_v43  ;;  %v7255_v22 = vpack.c.bf16 %v7199_v59, %v7197_v29  ;;  %v7257_v17 = vpack.c.bf16 %v7227_v33, %v7225_v16  ;;  %v7265_v0 = vpack.c.bf16 %v7218_v37, %v7216_v5  ;;  %v7203_v43 = vrot.slane %v12637_v27, 4 }
0x3345   :  { %9233 = vmatpush3.bf16.msra.mxu0 %v10049_v49  ;;  %v7267_v38 = vpack.c.bf16 %v7246_v3, %v7244_v2  ;;  %v7229_v49 = vrot.slane %v12633_v4, 6  ;;  %vm6135_vm9 = vcmp.gt.f32.partialorder %v11139_v12, 0.5  ;;  %vm6136_vm3 = vcmp.gt.f32.partialorder %v11120_v53, 0.5 }
0x3346   :  { %9261 = vmatpush3.bf16.msra.mxu1 %v10050_v24  ;;  %9234 = vmatprep.subr.bf16.mxu0 %v10051_v32  ;;  %v7231_v24 = vrot.slane %v12637_v27, 6  ;;  %v7200_v32 = vrot.slane %v12623_v26, 4 }
0x3347   :  { %9262 = vmatprep.subr.bf16.mxu1 %v10052_v45  ;;  %v7228_v45 = vrot.slane %v12623_v26, 6  ;;  %v8764_v26 = vpack.c.bf16 %v12581_v1, %v12588_v47  ;;  %v8767_v1 = vpack.c.bf16 %v12620_v40, %v12633_v4 }
0x3349   :  { %9235 = vmatpush3.bf16.msra.mxu0 %v10053_v28  ;;  %v7202_v28 = vsel %vm4588_vm13, %v7200_v32, %v7201_v60 }
0x334a   :  { %9263 = vmatpush3.bf16.msra.mxu1 %v10054_v63  ;;  %9236 = vmatprep.subr.bf16.mxu0 %v10055_v35  ;;  %v7204_v63 = vsel %vm4588_vm13, %v7201_v60, %v7203_v43  ;;  %v10069_v35 = vld [vmem:[#allocation30 + $0x228] sm:$0xff]  }
0x334b   :  { %9264 = vmatprep.subr.bf16.mxu1 %v10056_v19  ;;  %v7230_v19 = vsel %vm1518_vm2, %v7228_v45, %v7229_v49  ;;  %v7264_v27 = vpack.c.bf16 %v7204_v63, %v7202_v28 }
0x334d   :  { %9237 = vmatpush3.bf16.msra.mxu0 %v10057_v62  ;;  %v7232_v62 = vsel %vm1518_vm2, %v7229_v49, %v7231_v24  ;;  %vm6203_vm2 = vcmp.gt.f32.partialorder %v11142_v36, 0.5 }
0x334e   :  { %9265 = vmatpush3.bf16.msra.mxu1 %v10058_v39  ;;  %9238 = vmatprep.subr.bf16.mxu0 %v10059_v50  ;;  %v7266_v50 = vpack.c.bf16 %v7232_v62, %v7230_v19 }
0x334f   :  { %9266 = vmatprep.subr.bf16.mxu1 %v10060_v46  ;;  %v10070_v46 = vld [vmem:[#allocation30 + $0x220] sm:$0xff]  }
0x3351   :  { %9239 = vmatpush3.bf16.msra.mxu0 %v10061_v52  ;;  %v10071_v52 = vld [vmem:[#allocation30 + $0x218] sm:$0xff]  }
0x3352   :  { %9267 = vmatpush3.bf16.msra.mxu1 %v10062_v51  ;;  %9240 = vmatprep.subr.bf16.mxu0 %v10063_v20  ;;  %v10072_v51 = vld [vmem:[#allocation30 + $0x210] sm:$0xff]   ;;  %v10073_v20 = vld [vmem:[#allocation30 + $0x208] sm:$0xff]  }
0x3353   :  { %9268 = vmatprep.subr.bf16.mxu1 %v10064_v10  ;;  %v10074_v10 = vld [vmem:[#allocation30 + $0x200] sm:$0xff]  }
0x3355   :  { %9241 = vmatpush3.bf16.msra.mxu0 %v10065_v44 }
0x3356   :  { %9269 = vmatpush3.bf16.msra.mxu1 %v10066_v21  ;;  %9712 = vmatprep.subr.bf16.mxu0 %v10067_v8 }
0x3358   :  { %7983 = vmatmul.mubr.bf16.vlgmr.msra.gmra.mxu0 %v7255_v22 }
0x3359   :  { %8032 = vmatmul.mubr.bf16.vlgmr.msra.gmra.mxu1 %v7257_v17  ;;  %7990 = vmatprep.mubr.bf16.mxu0 %v7265_v0 }
0x335a   :  { %8039 = vmatprep.mubr.bf16.mxu1 %v7267_v38  ;;  %9713 = vmatpush3.bf16.msra.mxu0 %v10067_v8 }
0x335b   :  { %9714 = vmatprep.subr.bf16.mxu0 %v10068_v57 }
0x335e   :  { %9715 = vmatpush3.bf16.msra.mxu0 %v10068_v57  ;;  %v8682_v57 = vld [vmem:[%s13000_s19] ss:$0 sm:$0xff] }
0x335f   :  { %9716 = vmatprep.subr.bf16.mxu0 %v10069_v35 }
0x3360   :  { %7991 = vmatmul.mubr.bf16.gmra.mxu0 %v7264_v27 }
0x3361   :  { %8040 = vmatmul.mubr.bf16.gmra.mxu1 %v7266_v50  ;;  %9728 = vmatprep.mubr.msk.bf16.mxu0 %vm12691_vm6, %v8764_v26 }
0x3362   :  { %9717 = vmatpush3.bf16.msra.mxu0 %v10069_v35 }
0x3363   :  { %9718 = vmatprep.subr.bf16.mxu0 %v10070_v46 }
0x3366   :  { %9719 = vmatpush3.bf16.msra.mxu0 %v10070_v46 }
0x3367   :  { %9720 = vmatprep.subr.bf16.mxu0 %v10071_v52 }
0x336a   :  { %9721 = vmatpush3.bf16.msra.mxu0 %v10071_v52 }
0x336b   :  { %9722 = vmatprep.subr.bf16.mxu0 %v10072_v51 }
0x336e   :  { %9723 = vmatpush3.bf16.msra.mxu0 %v10072_v51 }
0x336f   :  { %9724 = vmatprep.subr.bf16.mxu0 %v10073_v20 }
0x3372   :  { %9725 = vmatpush3.bf16.msra.mxu0 %v10073_v20 }
0x3373   :  { %9726 = vmatprep.subr.bf16.mxu0 %v10074_v10 }
0x3376   :  { %9727 = vmatpush3.bf16.msra.mxu0 %v10074_v10 }
0x3379   :  { %9729 = vmatmul.mubr.msk.bf16.vlgmr.msra.gmra.mxu0 %vm12691_vm6, %v8767_v1 }
0x33f7   :  { %v9186_v47 = vpop.f32.mrf.mxu0  ;;  %v9214_v41 = vpop.f32.mrf.mxu1 }
0x33f9   :  { %v9187_v11 = vpop.f32.mrf.mxu0  ;;  %v9215_v34 = vpop.f32.mrf.mxu1 }
0x33fa   :  { %v9188_v17 = vadd.f32 %v9187_v11, %v9186_v47  ;;  %v9216_v63 = vadd.f32 %v9215_v34, %v9214_v41 }
0x33fb   :  { %v9189_v30 = vpop.f32.mrf.mxu0  ;;  %v9217_v55 = vpop.f32.mrf.mxu1 }
0x33fc   :  { %v7887_v49 = vadd.f32 %v9188_v17, %v8682_v57 }
0x33fd   :  { %v9190_v13 = vpop.f32.mrf.mxu0  ;;  %v9218_v44 = vpop.f32.mrf.mxu1 }
0x33fe   :  { %v9191_v32 = vadd.f32 %v9190_v13, %v9189_v30  ;;  %v7936_v39 = vadd.f32 %v9216_v63, %v7887_v49  ;;  %v9219_v20 = vadd.f32 %v9218_v44, %v9217_v55 }
0x3400   :  { %v9192_v58 = vpop.f32.mrf.mxu0  ;;  %v7890_v26 = vadd.f32 %v9191_v32, %v8682_v57 }
0x3401   :  { %v9220_v23 = vpop.f32.mrf.mxu1 }
0x3402   :  { %v9193_v6 = vpop.f32.mrf.mxu0  ;;  %v7939_v30 = vadd.f32 %v9219_v20, %v7890_v26 }
0x3403   :  { %v9221_v21 = vpop.f32.mrf.mxu1  ;;  %v9194_v22 = vadd.f32 %v9193_v6, %v9192_v58 }
0x3404   :  { %v9195_v42 = vpop.f32.mrf.mxu0  ;;  %v9222_v45 = vadd.f32 %v9221_v21, %v9220_v23 }
0x3405   :  { %v9223_v8 = vpop.f32.mrf.mxu1  ;;  %v7895_v43 = vadd.f32 %v9194_v22, %v8682_v57 }
0x3406   :  { %v9196_v54 = vpop.f32.mrf.mxu0 }
0x3407   :  { %v9224_v4 = vpop.f32.mrf.mxu1  ;;  %v9197_v38 = vadd.f32 %v9196_v54, %v9195_v42  ;;  %v7944_v19 = vadd.f32 %v9222_v45, %v7895_v43  ;;  %v12739_v43 = vmul.f32 %v12186_v56, %v12536_v15 }
0x3408   :  { %v9225_v46 = vadd.f32 %v9224_v4, %v9223_v8 }
0x3409   :  { %v7898_v62 = vadd.f32 %v9197_v38, %v8682_v57  ;;  %v12730_v57 = vmul.f32 %v12178_v25, %v12534_v7  ;;  %v12745_v38 = vmul.f32 %v12170_v61, %v12532_v14 }
0x340b   :  { %v7947_v10 = vadd.f32 %v9225_v46, %v7898_v62  ;;  %v6037_v7 = vmul.f32 %v12730_v57, %v12730_v57  ;;  %v6036_v49 = vmul.f32 %v12745_v38, %v12745_v38 }
0x3418   :  { %v9242_v40 = vpop.f32.mrf.mxu0 }
0x3419   :  { %v9270_v59 = vpop.f32.mrf.mxu1 }
0x341a   :  { %v9243_v29 = vpop.f32.mrf.mxu0 }
0x341b   :  { %v9271_v16 = vpop.f32.mrf.mxu1  ;;  %v9244_v27 = vadd.f32 %v9243_v29, %v9242_v40 }
0x341c   :  { %v9245_v48 = vpop.f32.mrf.mxu0  ;;  %v9272_v13 = vadd.f32 %v9271_v16, %v9270_v59 }
0x341d   :  { %v9273_v5 = vpop.f32.mrf.mxu1  ;;  %v7985_v1 = vadd.f32 %v9244_v27, %v7936_v39 }
0x341e   :  { %v9246_v33 = vpop.f32.mrf.mxu0 }
0x341f   :  { %v9274_v2 = vpop.f32.mrf.mxu1  ;;  %v9247_v47 = vadd.f32 %v9246_v33, %v9245_v48  ;;  %v8034_v54 = vadd.f32 %v9272_v13, %v7985_v1 }
0x3420   :  { %v9248_v37 = vpop.f32.mrf.mxu0  ;;  %v9275_v29 = vadd.f32 %v9274_v2, %v9273_v5 }
0x3421   :  { %v9276_v0 = vpop.f32.mrf.mxu1  ;;  %v7988_v6 = vadd.f32 %v9247_v47, %v7939_v30 }
0x3422   :  { %v9249_v3 = vpop.f32.mrf.mxu0 }
0x3423   :  { %v9277_v24 = vpop.f32.mrf.mxu1  ;;  %v9250_v28 = vadd.f32 %v9249_v3, %v9248_v37  ;;  %v8037_v33 = vadd.f32 %v9275_v29, %v7988_v6 }
0x3424   :  { %v9251_v60 = vpop.f32.mrf.mxu0  ;;  %v9278_v11 = vadd.f32 %v9277_v24, %v9276_v0 }
0x3425   :  { %v9279_v50 = vpop.f32.mrf.mxu1  ;;  %v7993_v52 = vadd.f32 %v9250_v28, %v7944_v19 }
0x3426   :  { %v9252_v35 = vpop.f32.mrf.mxu0 }
0x3427   :  { %v9253_v51 = vadd.f32 %v9252_v35, %v9251_v60  ;;  %v9280_v58 = vpop.f32.mrf.mxu1  ;;  %v8042_v41 = vadd.f32 %v9278_v11, %v7993_v52  ;;  %v12735_v60 = vmul.f32 %v12165_v18, %v12530_v9  ;;  %v6038_v9 = vmul.f32 %v12739_v43, %v12739_v43 }
0x3428   :  { %v9281_v21 = vadd.f32 %v9280_v58, %v9279_v50 }
0x3429   :  { %v7996_v23 = vadd.f32 %v9253_v51, %v7947_v10  ;;  %v6035_v15 = vmul.f32 %v12735_v60, %v12735_v60 }
0x342b   :  { %v8045_v44 = vadd.f32 %v9281_v21, %v7996_v23 }
0x3439   :  { %v9730_v34 = vpop.f32.mrf.mxu0 }
0x343a   :  { %v8091_v42 = vadd.f32 %v9730_v34, %v8042_v41 }
0x343b   :  { %v8082_v40 = vpop.f32.mrf.mxu0 }
0x343c   :  { %v12705_v8 = vmul.f32 %v12178_v25, %v8091_v42  ;;  %v8083_v55 = vadd.f32 %v8082_v40, %v8034_v54 }
0x343d   :  { %v9731_v4 = vpop.f32.mrf.mxu0 }
0x343e   :  { %v8094_v48 = vadd.f32 %v9731_v4, %v8045_v44  ;;  %8105 = vadd.xlane.f32.xlu1 %v12705_v8  ;;  %v12709_v16 = vmul.f32 %v12165_v18, %v8083_v55  ;;  %v8115_v2 = vmul.f32 %v12705_v8, %v12705_v8 }
0x343f   :  { %v8085_v59 = vpop.f32.mrf.mxu0 }
0x3440   :  { %v12712_v37 = vmul.f32 %v12186_v56, %v8094_v48  ;;  %v8086_v3 = vadd.f32 %v8085_v59, %v8037_v33  ;;  %v8113_v17 = vmul.f32 %v12709_v16, %v12709_v16 }
0x3442   :  { %8107 = vadd.xlane.f32.xlu0 %v12712_v37  ;;  %8101 = vadd.xlane.f32.xlu1 %v12709_v16  ;;  %v12717_v5 = vmul.f32 %v12170_v61, %v8086_v3  ;;  %v8116_v22 = vmul.f32 %v12712_v37, %v12712_v37 }
0x3444   :  { %v8114_v0 = vmul.f32 %v12717_v5, %v12717_v5 }
0x3446   :  { %8103 = vadd.xlane.f32.xlu0 %v12717_v5  ;;  %8121 = vadd.xlane.f32.xlu1 %v8115_v2 }
0x344a   :  { %8123 = vadd.xlane.f32.xlu0 %v8116_v22  ;;  %8117 = vadd.xlane.f32.xlu1 %v8113_v17 }
0x344e   :  { %8119 = vadd.xlane.f32.xlu0 %v8114_v0  ;;  %6027 = vadd.xlane.f32.xlu1 %v12730_v57 }
0x3452   :  { %6029 = vadd.xlane.f32.xlu0 %v12739_v43  ;;  %6023 = vadd.xlane.f32.xlu1 %v12735_v60 }
0x3456   :  { %6025 = vadd.xlane.f32.xlu0 %v12745_v38  ;;  %6043 = vadd.xlane.f32.xlu1 %v6037_v7 }
0x345a   :  { %6045 = vadd.xlane.f32.xlu0 %v6038_v9  ;;  %6039 = vadd.xlane.f32.xlu1 %v6035_v15 }
0x345e   :  { %6041 = vadd.xlane.f32.xlu0 %v6036_v49  ;;  %v8769_v49 = vld [vmem:[%s13001_s25] ss:$0 sm:$0xff] }
0x34c7   :  { %v8106_v14 = vpop.xlane.xlu1 %8105 }
0x34c8   :  { %v12756_v45 = vmul.f32 0.0078125, %v8106_v14 }
0x34ca   :  { %v8131_v19 = vmul.f32 %v12756_v45, %v12756_v45 }
0x34cb   :  { %v8108_v24 = vpop.xlane.xlu0 %8107  ;;  %v8102_v32 = vpop.xlane.xlu1 %8101 }
0x34cc   :  { %v12758_v28 = vmul.f32 0.0078125, %v8108_v24  ;;  %v12762_v62 = vmul.f32 0.0078125, %v8102_v32 }
0x34ce   :  { %v8132_v50 = vmul.f32 %v12758_v28, %v12758_v28  ;;  %v8129_v51 = vmul.f32 %v12762_v62, %v12762_v62 }
0x34cf   :  { %v8104_v63 = vpop.xlane.xlu0 %8103  ;;  %v8122_v35 = vpop.xlane.xlu1 %8121 }
0x34d0   :  { %v8127_v27 = vmul.f32 0.0078125, %v8122_v35  ;;  %v12766_v26 = vmul.f32 0.0078125, %v8104_v63 }
0x34d2   :  { %v8135_v39 = vsub.f32 %v8127_v27, %v8131_v19  ;;  %v8130_v30 = vmul.f32 %v12766_v26, %v12766_v26 }
0x34d3   :  { %v8124_v46 = vpop.xlane.xlu0 %8123  ;;  %v8118_v52 = vpop.xlane.xlu1 %8117 }
0x34d4   :  { %v8139_v20 = vmax.f32 %v8135_v39, 0.0  ;;  %v8128_v10 = vmul.f32 0.0078125, %v8124_v46  ;;  %v8125_v1 = vmul.f32 0.0078125, %v8118_v52  ;;  %v8162_v46 = vsub.f32 %v12705_v8, %v12756_v45 }
0x34d5   :  { %v8160_v8 = vsub.f32 %v12709_v16, %v12762_v62  ;;  %v8771_v62 = vld [vmem:[%s13003_s11] ss:$0 sm:$0xff] }
0x34d6   :  { %v8144_v47 = vadd.f32 1e-05, %v8139_v20  ;;  %v8136_v11 = vsub.f32 %v8128_v10, %v8132_v50  ;;  %v8133_v58 = vsub.f32 %v8125_v1, %v8129_v51 }
0x34d7   :  { %v8120_v13 = vpop.xlane.xlu0 %8119  ;;  %v6028_v23 = vpop.xlane.xlu1 %6027 }
0x34d8   :  { %10195 = vrsqrt.f32 %v8144_v47  ;;  %v8140_v41 = vmax.f32 %v8136_v11, 0.0  ;;  %v8137_v34 = vmax.f32 %v8133_v58, 0.0  ;;  %v8126_v6 = vmul.f32 0.0078125, %v8120_v13  ;;  %v8770_v47 = vld [vmem:[%s13002_s7] ss:$0 sm:$0xff] }
0x34d9   :  { %v12772_v44 = vmul.f32 0.0078125, %v6028_v23  ;;  %v8163_v58 = vsub.f32 %v12712_v37, %v12758_v28  ;;  %v8161_v28 = vsub.f32 %v12717_v5, %v12766_v26 }
0x34da   :  { %v8145_v21 = vadd.f32 1e-05, %v8140_v41  ;;  %v8142_v42 = vadd.f32 1e-05, %v8137_v34  ;;  %v8134_v54 = vsub.f32 %v8126_v6, %v8130_v30 }
0x34db   :  { %v6030_v40 = vpop.xlane.xlu0 %6029  ;;  %v6024_v29 = vpop.xlane.xlu1 %6023  ;;  %v6053_v3 = vmul.f32 %v12772_v44, %v12772_v44 }
0x34dc   :  { %10197 = vrsqrt.f32 %v8145_v21  ;;  %v8138_v55 = vmax.f32 %v8134_v54, 0.0  ;;  %v12774_v48 = vmul.f32 0.0078125, %v6030_v40  ;;  %v12778_v2 = vmul.f32 0.0078125, %v6024_v29 }
0x34dd   :  { %10199 = vrsqrt.f32 %v8142_v42 }
0x34de   :  { %v8143_v4 = vadd.f32 1e-05, %v8138_v55  ;;  %v6054_v0 = vmul.f32 %v12774_v48, %v12774_v48  ;;  %v6051_v14 = vmul.f32 %v12778_v2, %v12778_v2 }
0x34df   :  { %v6026_v33 = vpop.xlane.xlu0 %6025  ;;  %v6044_v59 = vpop.xlane.xlu1 %6043 }
0x34e0   :  { %10201 = vrsqrt.f32 %v8143_v4  ;;  %v6049_v22 = vmul.f32 0.0078125, %v6044_v59  ;;  %v12782_v7 = vmul.f32 0.0078125, %v6026_v33 }
0x34e2   :  { %v6057_v17 = vsub.f32 %v6049_v22, %v6053_v3  ;;  %v6052_v52 = vmul.f32 %v12782_v7, %v12782_v7 }
0x34e3   :  { %v6046_v9 = vpop.xlane.xlu0 %6045  ;;  %v6040_v15 = vpop.xlane.xlu1 %6039 }
0x34e4   :  { %v6061_v24 = vmax.f32 %v6057_v17, 0.0  ;;  %v6050_v32 = vmul.f32 0.0078125, %v6046_v9  ;;  %v6047_v63 = vmul.f32 0.0078125, %v6040_v15 }
0x34e5   :  { %v10196_v35 = vpop.eup %10195 }
0x34e6   :  { %v6066_v19 = vadd.f32 1e-05, %v6061_v24  ;;  %v6058_v27 = vsub.f32 %v6050_v32, %v6054_v0  ;;  %v6055_v39 = vsub.f32 %v6047_v63, %v6051_v14  ;;  %v8158_v50 = vmul.f32 %v10196_v35, %v8769_v49  ;;  %v8611_v14 = vld [vmem:[%s13004_s15] ss:$0 sm:$0xff] }
0x34e7   :  { %v6042_v51 = vpop.xlane.xlu0 %6041  ;;  %v6084_v35 = vsub.f32 %v12730_v57, %v12772_v44 }
0x34e8   :  { %10203 = vrsqrt.f32 %v6066_v19  ;;  %v6062_v20 = vmax.f32 %v6058_v27, 0.0  ;;  %v6059_v10 = vmax.f32 %v6055_v39, 0.0  ;;  %v6048_v1 = vmul.f32 0.0078125, %v6042_v51 }
0x34e9   :  { %v10198_v11 = vpop.eup %10197  ;;  %v8166_v30 = vmul.f32 %v8162_v46, %v8158_v50  ;;  %v8612_v46 = vld [vmem:[%s13005_s18] ss:$0 sm:$0xff] }
0x34ea   :  { %v10200_v13 = vpop.eup %10199  ;;  %v6067_v23 = vadd.f32 1e-05, %v6062_v20  ;;  %v6064_v41 = vadd.f32 1e-05, %v6059_v10  ;;  %v6056_v34 = vsub.f32 %v6048_v1, %v6052_v52  ;;  %v8159_v6 = vmul.f32 %v10198_v11, %v8769_v49 }
0x34eb   :  { %v8177_v45 = vadd.f32 %v8770_v47, %v8166_v30  ;;  %v8156_v21 = vmul.f32 %v10200_v13, %v8769_v49  ;;  %v6085_v1 = vsub.f32 %v12739_v43, %v12774_v48  ;;  %v6082_v11 = vsub.f32 %v12735_v60, %v12778_v2  ;;  %v8613_v48 = vld [vmem:[%s13006_s12] ss:$0 sm:$0xff] }
0x34ec   :  { %10205 = vrsqrt.f32 %v6067_v23  ;;  %v6060_v42 = vmax.f32 %v6056_v34, 0.0  ;;  %v8167_v54 = vmul.f32 %v8163_v58, %v8159_v6  ;;  %v6083_v34 = vsub.f32 %v12745_v38, %v12782_v7 }
0x34ed   :  { %v10202_v40 = vpop.eup %10201  ;;  %10207 = vrsqrt.f32 %v6064_v41  ;;  %v8181_v29 = vmul.f32 %v12178_v25, %v8177_v45  ;;  %v8164_v37 = vmul.f32 %v8160_v8, %v8156_v21 }
0x34ee   :  { %v6065_v55 = vadd.f32 1e-05, %v6060_v42  ;;  %v8178_v4 = vadd.f32 %v8770_v47, %v8167_v54  ;;  %v8157_v33 = vmul.f32 %v10202_v40, %v8769_v49 }
0x34ef   :  { %v8185_v59 = vmax.f32 %v8181_v29, 0.0  ;;  %v8175_v16 = vadd.f32 %v8770_v47, %v8164_v37 }
0x34f0   :  { %10209 = vrsqrt.f32 %v6065_v55  ;;  %v8182_v3 = vmul.f32 %v12186_v56, %v8178_v4  ;;  %v8165_v22 = vmul.f32 %v8161_v28, %v8157_v33 }
0x34f1   :  { %v12802_v17 = vmul.f32 %v12178_v25, %v8185_v59  ;;  %v8179_v0 = vmul.f32 %v12165_v18, %v8175_v16 }
0x34f2   :  { %v8186_v9 = vmax.f32 %v8182_v3, 0.0  ;;  %v8176_v15 = vadd.f32 %v8770_v47, %v8165_v22 }
0x34f3   :  { %v8271_v5 = vmul.f32 %v8771_v62, %v12802_v17  ;;  %v8183_v26 = vmax.f32 %v8179_v0, 0.0 }
0x34f4   :  { %v12808_v49 = vmul.f32 %v12186_v56, %v8186_v9  ;;  %v8180_v24 = vmul.f32 %v12170_v61, %v8176_v15 }
0x34f5   :  { %v10204_v32 = vpop.eup %10203  ;;  %8273 = vadd.xlane.f32.xlu1 %v8271_v5  ;;  %v12812_v63 = vmul.f32 %v12165_v18, %v8183_v26 }
0x34f6   :  { %v8272_v19 = vmul.f32 %v8771_v62, %v12808_v49  ;;  %v8184_v27 = vmax.f32 %v8180_v24, 0.0  ;;  %v6080_v39 = vmul.f32 %v10204_v32, %v8611_v14 }
0x34f7   :  { %v8198_v50 = vmul.f32 %v8771_v62, %v12812_v63 }
0x34f8   :  { %8275 = vadd.xlane.f32.xlu0 %v8272_v19  ;;  %v12820_v52 = vmul.f32 %v12170_v61, %v8184_v27  ;;  %v6088_v51 = vmul.f32 %v6084_v35, %v6080_v39 }
0x34f9   :  { %v10206_v20 = vpop.eup %10205  ;;  %8200 = vadd.xlane.f32.xlu1 %v8198_v50 }
0x34fa   :  { %v10208_v10 = vpop.eup %10207  ;;  %v8199_v57 = vmul.f32 %v8771_v62, %v12820_v52  ;;  %v6099_v44 = vadd.f32 %v8612_v46, %v6088_v51  ;;  %v6081_v47 = vmul.f32 %v10206_v20, %v8611_v14  ;;  %v8614_v51 = vld [vmem:[#allocation9] ss:$0 sm:$0xff] }
0x34fb   :  { %v6078_v58 = vmul.f32 %v10208_v10, %v8611_v14 }
0x34fc   :  { %8202 = vadd.xlane.f32.xlu0 %v8199_v57  ;;  %v6103_v30 = vmul.f32 %v12178_v25, %v6099_v44  ;;  %v6089_v13 = vmul.f32 %v6085_v1, %v6081_v47 }
0x34fd   :  { %v10210_v23 = vpop.eup %10209  ;;  %v6086_v41 = vmul.f32 %v6082_v11, %v6078_v58 }
0x34fe   :  { %v6107_v6 = vmax.f32 %v6103_v30, 0.0  ;;  %v6100_v8 = vadd.f32 %v8612_v46, %v6089_v13  ;;  %v6079_v43 = vmul.f32 %v10210_v23, %v8611_v14 }
0x34ff   :  { %v6097_v45 = vadd.f32 %v8612_v46, %v6086_v41 }
0x3500   :  { %v12832_v21 = vmul.f32 %v12178_v25, %v6107_v6  ;;  %v6104_v60 = vmul.f32 %v12186_v56, %v6100_v8  ;;  %v6087_v2 = vmul.f32 %v6083_v34, %v6079_v43 }
0x3501   :  { %v6101_v42 = vmul.f32 %v12165_v18, %v6097_v45 }
0x3502   :  { %v6195_v54 = vmul.f32 %v8613_v48, %v12832_v21  ;;  %v6108_v40 = vmax.f32 %v6104_v60, 0.0  ;;  %v6098_v29 = vadd.f32 %v8612_v46, %v6087_v2 }
0x3503   :  { %v6105_v37 = vmax.f32 %v6101_v42, 0.0 }
0x3504   :  { %6197 = vadd.xlane.f32.xlu1 %v6195_v54  ;;  %v12838_v38 = vmul.f32 %v12186_v56, %v6108_v40  ;;  %v6102_v7 = vmul.f32 %v12170_v61, %v6098_v29  ;;  %v8772_v56 = vld [vmem:[#allocation11] ss:$0 sm:$0xff] }
0x3505   :  { %v12842_v28 = vmul.f32 %v12165_v18, %v6105_v37 }
0x3506   :  { %v6196_v25 = vmul.f32 %v8613_v48, %v12838_v38  ;;  %v6106_v55 = vmax.f32 %v6102_v7, 0.0 }
0x3507   :  { %v6120_v4 = vmul.f32 %v8613_v48, %v12842_v28 }
0x3508   :  { %6199 = vadd.xlane.f32.xlu0 %v6196_v25  ;;  %v12847_v33 = vmul.f32 %v12170_v61, %v6106_v55 }
0x3509   :  { %6122 = vadd.xlane.f32.xlu1 %v6120_v4 }
0x350a   :  { %v6121_v59 = vmul.f32 %v8613_v48, %v12847_v33 }
0x350c   :  { %6124 = vadd.xlane.f32.xlu0 %v6121_v59 }
0x357e   :  { %v8274_v16 = vpop.xlane.xlu1 %8273 }
0x357f   :  { %v8277_v62 = vadd.f32 %v8772_v56, %v8274_v16 }
0x3581   :  { %v8276_v18 = vpop.xlane.xlu0 %8275  ;;  %v8279_v3 = vsel %vm6203_vm2, %v8277_v62, -1e+30 }
0x3582   :  { %v8278_v22 = vadd.f32 %v8772_v56, %v8276_v18  ;;  %v8201_v0 = vpop.xlane.xlu1 %8200  ;;  %v8281_v15 = vsel %vm356_vm5, %v8279_v3, -inf }
0x3583   :  { %v8211_v61 = vadd.f32 %v8772_v56, %v8201_v0 }
0x3584   :  { %v8280_v9 = vsel %vm6204_vm8, %v8278_v22, -1e+30 }
0x3585   :  { %v8282_v5 = vsel %vm356_vm5, %v8280_v9, -inf  ;;  %v8203_v26 = vpop.xlane.xlu0 %8202  ;;  %v8213_v24 = vsel %vm6135_vm9, %v8211_v61, -1e+30 }
0x3586   :  { %v8283_v14 = vmax.f32 %v8281_v15, %v8282_v5  ;;  %v8212_v32 = vadd.f32 %v8772_v56, %v8203_v26  ;;  %v8215_v27 = vsel %vm356_vm5, %v8213_v24, -inf }
0x3588   :  { %v8284_v35 = vrot.slane %v8283_v14, 4  ;;  %v8214_v19 = vsel %vm6136_vm3, %v8212_v32, -1e+30 }
0x3589   :  { %v8216_v39 = vsel %vm356_vm5, %v8214_v19, -inf }
0x358a   :  { %v8285_v50 = vmax.f32 %v8283_v14, %v8284_v35  ;;  %v8217_v46 = vmax.f32 %v8215_v27, %v8216_v39 }
0x358c   :  { %v8286_v20 = vrot.slane %v8285_v50, 2  ;;  %v8218_v10 = vrot.slane %v8217_v46, 4 }
0x358d   :  { %v6198_v1 = vpop.xlane.xlu1 %6197 }
0x358e   :  { %v8287_v57 = vmax.f32 %v8285_v50, %v8286_v20  ;;  %v8219_v44 = vmax.f32 %v8217_v46, %v8218_v10  ;;  %v6201_v47 = vadd.f32 %v8614_v51, %v6198_v1 }
0x3590   :  { %v8288_v11 = vrot.slane %v8287_v57, 1  ;;  %v8220_v58 = vrot.slane %v8219_v44, 2  ;;  %v6205_v41 = vsel %vm6203_vm2, %v6201_v47, -1e+30 }
0x3591   :  { %v6200_v30 = vpop.xlane.xlu0 %6199  ;;  %v6207_v2 = vsel %vm356_vm5, %v6205_v41, -inf }
0x3592   :  { %v8289_v13 = vmax.f32 %v8287_v57, %v8288_v11  ;;  %v8221_v23 = vmax.f32 %v8219_v44, %v8220_v58  ;;  %v6202_v34 = vadd.f32 %v8614_v51, %v6200_v30  ;;  %v6123_v6 = vpop.xlane.xlu1 %6122 }
0x3593   :  { %v6133_v8 = vadd.f32 %v8614_v51, %v6123_v6 }
0x3594   :  { %v8290_v43 = vsub.f32 %v8279_v3, %v8289_v13  ;;  %v8291_v48 = vsub.f32 %v8280_v9, %v8289_v13  ;;  %v8222_v45 = vrot.slane %v8221_v23, 1  ;;  %v6206_v60 = vsel %vm6204_vm8, %v6202_v34, -1e+30 }
0x3595   :  { %v6208_v42 = vsel %vm356_vm5, %v6206_v60, -inf  ;;  %v6137_v54 = vsel %vm6135_vm9, %v6133_v8, -1e+30  ;;  %v6125_v40 = vpop.xlane.xlu0 %6124 }
0x3596   :  { %v8292_v29 = vmul.f32 1.442695, %v8290_v43  ;;  %v8294_v37 = vmul.f32 1.442695, %v8291_v48  ;;  %v8223_v7 = vmax.f32 %v8221_v23, %v8222_v45  ;;  %v6209_v25 = vmax.f32 %v6207_v2, %v6208_v42 }
0x3597   :  { %v6134_v55 = vadd.f32 %v8614_v51, %v6125_v40  ;;  %v6139_v16 = vsel %vm356_vm5, %v6137_v54, -inf }
0x3598   :  { %10211 = vpow2.f32 %v8292_v29  ;;  %v8224_v4 = vsub.f32 %v8213_v24, %v8223_v7  ;;  %v8225_v59 = vsub.f32 %v8214_v19, %v8223_v7  ;;  %v6210_v56 = vrot.slane %v6209_v25, 4 }
0x3599   :  { %10213 = vpow2.f32 %v8294_v37  ;;  %v6138_v62 = vsel %vm6136_vm3, %v6134_v55, -1e+30 }
0x359a   :  { %v8226_v18 = vmul.f32 1.442695, %v8224_v4  ;;  %v8228_v3 = vmul.f32 1.442695, %v8225_v59  ;;  %v6211_v22 = vmax.f32 %v6209_v25, %v6210_v56  ;;  %v6140_v0 = vsel %vm356_vm5, %v6138_v62, -inf }
0x359b   :  { %v6141_v61 = vmax.f32 %v6139_v16, %v6140_v0 }
0x359c   :  { %10215 = vpow2.f32 %v8226_v18  ;;  %v6212_v9 = vrot.slane %v6211_v22, 2 }
0x359d   :  { %10217 = vpow2.f32 %v8228_v3  ;;  %v6142_v15 = vrot.slane %v6141_v61, 4 }
0x359e   :  { %v6213_v5 = vmax.f32 %v6211_v22, %v6212_v9 }
0x359f   :  { %v6143_v26 = vmax.f32 %v6141_v61, %v6142_v15 }
0x35a0   :  { %v6214_v14 = vrot.slane %v6213_v5, 1 }
0x35a1   :  { %v6144_v24 = vrot.slane %v6143_v26, 2 }
0x35a2   :  { %v6215_v32 = vmax.f32 %v6213_v5, %v6214_v14 }
0x35a3   :  { %v6145_v35 = vmax.f32 %v6143_v26, %v6144_v24 }
0x35a4   :  { %v6216_v19 = vsub.f32 %v6205_v41, %v6215_v32  ;;  %v6217_v27 = vsub.f32 %v6206_v60, %v6215_v32 }
0x35a5   :  { %v10212_v39 = vpop.eup %10211  ;;  %v6146_v50 = vrot.slane %v6145_v35, 1 }
0x35a6   :  { %v10214_v46 = vpop.eup %10213  ;;  %v6218_v51 = vmul.f32 1.442695, %v6216_v19  ;;  %v6220_v20 = vmul.f32 1.442695, %v6217_v27  ;;  %v12879_v10 = vmul.f32 %v10212_v39, %v11142_v36 }
0x35a7   :  { %v6147_v1 = vmax.f32 %v6145_v35, %v6146_v50  ;;  %v8297_v57 = vmul.f32 %v10214_v46, %v11123_v31 }
0x35a8   :  { %10219 = vpow2.f32 %v6218_v51  ;;  %v8298_v44 = vsel %vm356_vm5, %v12879_v10, 0.0 }
0x35a9   :  { %v10216_v47 = vpop.eup %10215  ;;  %10221 = vpow2.f32 %v6220_v20  ;;  %v6148_v11 = vsub.f32 %v6137_v54, %v6147_v1  ;;  %v6149_v58 = vsub.f32 %v6138_v62, %v6147_v1  ;;  %v8299_v30 = vsel %vm356_vm5, %v8297_v57, 0.0 }
0x35aa   :  { %v10218_v13 = vpop.eup %10217  ;;  %v8300_v23 = vadd.f32 %v8299_v30, %v8298_v44  ;;  %v8230_v41 = vmul.f32 %v10216_v47, %v11139_v12 }
0x35ab   :  { %v6150_v34 = vmul.f32 1.442695, %v6148_v11  ;;  %v6152_v6 = vmul.f32 1.442695, %v6149_v58  ;;  %v8231_v8 = vmul.f32 %v10218_v13, %v11120_v53 }
0x35ac   :  { %v8301_v43 = vrot.slane %v8300_v23, 4  ;;  %v8232_v48 = vsel %vm356_vm5, %v8230_v41, 0.0 }
0x35ad   :  { %10223 = vpow2.f32 %v6150_v34  ;;  %v8233_v45 = vsel %vm356_vm5, %v8231_v8, 0.0 }
0x35ae   :  { %10225 = vpow2.f32 %v6152_v6  ;;  %v8302_v60 = vadd.f32 %v8301_v43, %v8300_v23  ;;  %v8234_v2 = vadd.f32 %v8233_v45, %v8232_v48 }
0x35b0   :  { %v8303_v42 = vrot.slane %v8302_v60, 2  ;;  %v8235_v54 = vrot.slane %v8234_v2, 4 }
0x35b2   :  { %v8304_v40 = vadd.f32 %v8303_v42, %v8302_v60  ;;  %v8236_v29 = vadd.f32 %v8235_v54, %v8234_v2 }
0x35b4   :  { %v8305_v37 = vrot.slane %v8304_v40, 1  ;;  %v8237_v7 = vrot.slane %v8236_v29, 2 }
0x35b5   :  { %v10220_v25 = vpop.eup %10219 }
0x35b6   :  { %v10222_v55 = vpop.eup %10221  ;;  %v8306_v4 = vadd.f32 %v8305_v37, %v8304_v40  ;;  %v8238_v59 = vadd.f32 %v8237_v7, %v8236_v29  ;;  %v6222_v56 = vmul.f32 %v10220_v25, %v11142_v36 }
0x35b7   :  { %v6223_v16 = vmul.f32 %v10222_v55, %v11123_v31 }
0x35b8   :  { %v8307_v62 = vmax.f32 %v8306_v4, 1e-20  ;;  %v8239_v18 = vrot.slane %v8238_v59, 1  ;;  %v6224_v3 = vsel %vm356_vm5, %v6222_v56, 0.0 }
0x35b9   :  { %v6225_v22 = vsel %vm356_vm5, %v6223_v16, 0.0 }
0x35ba   :  { %v10224_v0 = vpop.eup %10223  ;;  %10227 = vrcp.f32 %v8307_v62  ;;  %v8240_v61 = vadd.f32 %v8239_v18, %v8238_v59  ;;  %v6226_v9 = vadd.f32 %v6225_v22, %v6224_v3  ;;  %v8264_v62 = vld [vmem:[%s13007_s4] sm:$0x1] }
0x35bb   :  { %v10226_v15 = vpop.eup %10225  ;;  %v6154_v5 = vmul.f32 %v10224_v0, %v11139_v12 }
0x35bc   :  { %v8241_v26 = vmax.f32 %v8240_v61, 1e-20  ;;  %v6227_v14 = vrot.slane %v6226_v9, 4  ;;  %v6155_v24 = vmul.f32 %v10226_v15, %v11120_v53 }
0x35bd   :  { %v6156_v36 = vsel %vm356_vm5, %v6154_v5, 0.0 }
0x35be   :  { %10229 = vrcp.f32 %v8241_v26  ;;  %v6228_v31 = vadd.f32 %v6227_v14, %v6226_v9  ;;  %v6157_v32 = vsel %vm356_vm5, %v6155_v24, 0.0 }
0x35bf   :  { %v6158_v35 = vadd.f32 %v6157_v32, %v6156_v36 }
0x35c0   :  { %v6229_v19 = vrot.slane %v6228_v31, 2 }
0x35c1   :  { %v6159_v27 = vrot.slane %v6158_v35, 4 }
0x35c2   :  { %v6230_v39 = vadd.f32 %v6229_v19, %v6228_v31 }
0x35c3   :  { %v6160_v50 = vadd.f32 %v6159_v27, %v6158_v35 }
0x35c4   :  { %v6231_v46 = vrot.slane %v6230_v39, 1 }
0x35c5   :  { %v6161_v51 = vrot.slane %v6160_v50, 2 }
0x35c6   :  { %v6232_v20 = vadd.f32 %v6231_v46, %v6230_v39 }
0x35c7   :  { %v10228_v1 = vpop.eup %10227  ;;  %v6162_v12 = vadd.f32 %v6161_v51, %v6160_v50 }
0x35c8   :  { %v8310_v44 = vmul.f32 %v10228_v1, %v8297_v57  ;;  %v8309_v47 = vmul.f32 %v10228_v1, %v12879_v10  ;;  %v6233_v53 = vmax.f32 %v6232_v20, 1e-20 }
0x35c9   :  { %v6163_v11 = vrot.slane %v6162_v12, 1 }
0x35ca   :  { %8318 = vperm.xlu0 %9799, %v8310_v44   ;;  %8313 = vperm.xlu1 %9800, %v8309_v47   ;;  %10231 = vrcp.f32 %v6233_v53  ;;  %v6188_v47 = vld [vmem:[%s13008_s8] sm:$0x1] }
0x35cb   :  { %v10230_v58 = vpop.eup %10229  ;;  %v6164_v30 = vadd.f32 %v6163_v11, %v6162_v12 }
0x35cc   :  { %v8243_v13 = vmul.f32 %v10230_v58, %v8230_v41  ;;  %v8244_v34 = vmul.f32 %v10230_v58, %v8231_v8 }
0x35cd   :  { %v6165_v23 = vmax.f32 %v6164_v30, 1e-20  ;;  %v8269_v30 = vld [vmem:[#allocation12] sm:$0x1] }
0x35ce   :  { %8247 = vperm.xlu1 %9800, %v8243_v13  }
0x35cf   :  { %10233 = vrcp.f32 %v6165_v23 }
0x35d2   :  { %8252 = vperm.xlu1 %9800, %v8244_v34  }
0x35d7   :  { %v10232_v6 = vpop.eup %10231 }
0x35d8   :  { %v6236_v43 = vmul.f32 %v10232_v6, %v6223_v16  ;;  %v6235_v48 = vmul.f32 %v10232_v6, %v6222_v56 }
0x35da   :  { %6244 = vperm.xlu1 %9800, %v6236_v43   ;;  %6239 = vperm.xlu0 %9799, %v6235_v48  }
0x35dc   :  { %v10234_v57 = vpop.eup %10233 }
0x35dd   :  { %v6168_v10 = vmul.f32 %v10234_v57, %v6155_v24  ;;  %v6167_v45 = vmul.f32 %v10234_v57, %v6154_v5  ;;  %v6193_v57 = vld [vmem:[#allocation10] sm:$0x1] }
0x35df   :  { %6176 = vperm.xlu1 %9800, %v6168_v10   ;;  %6171 = vperm.xlu0 %9799, %v6167_v45  }
0x3645   :  { %v8319_v60 = vpop.permute.xlu0 %8318  ;;  %v8314_v2 = vpop.permute.xlu1 %8313 }
0x3646   :  { %v8322_v41 = vmul.f32 %v8319_v60, %v12808_v49  ;;  %v8321_v42 = vmul.f32 %v8314_v2, %v12802_v17 }
0x3648   :  { %v8323_v54 = vadd.f32 %v8322_v41, %v8321_v42 }
0x3649   :  { %v8248_v8 = vpop.permute.xlu1 %8247 }
0x364a   :  { %v8324_v40 = vrot.slane %v8323_v54, 4  ;;  %v8255_v25 = vmul.f32 %v8248_v8, %v12812_v63 }
0x364c   :  { %v8325_v29 = vadd.f32 %v8324_v40, %v8323_v54 }
0x364d   :  { %v8253_v37 = vpop.permute.xlu1 %8252 }
0x364e   :  { %v8326_v7 = vrot.slane %v8325_v29, 2  ;;  %v8256_v55 = vmul.f32 %v8253_v37, %v12820_v52 }
0x3650   :  { %v8327_v4 = vadd.f32 %v8326_v7, %v8325_v29  ;;  %v8257_v59 = vadd.f32 %v8256_v55, %v8255_v25 }
0x3652   :  { %v8258_v56 = vrot.slane %v8257_v59, 4  ;;  %v8328_v16 = vrot.slane %v8327_v4, 1 }
0x3654   :  { %v8259_v18 = vadd.f32 %v8258_v56, %v8257_v59  ;;  %v8329_v3 = vadd.f32 %v8328_v16, %v8327_v4 }
0x3655   :  { %v6240_v49 = vpop.permute.xlu0 %6239  ;;  %v6245_v22 = vpop.permute.xlu1 %6244 }
0x3656   :  { %v8260_v17 = vrot.slane %v8259_v18, 2  ;;  %v6247_v0 = vmul.f32 %v6240_v49, %v12832_v21  ;;  %v6248_v61 = vmul.f32 %v6245_v22, %v12838_v38  ;;  %v8330_v9 = vmul.f32 %v8329_v3, %v8264_v62 }
0x3658   :  { %v8261_v15 = vadd.f32 %v8260_v17, %v8259_v18  ;;  %v6249_v5 = vadd.f32 %v6248_v61, %v6247_v0  ;;  %v8331_v63 = vsel %vm5214_vm1, %v8330_v9, 0.0 }
0x3659   :  { %8332 = vadd.xlane.f32.xlu0 %v8331_v63 }
0x365a   :  { %v6250_v52 = vrot.slane %v6249_v5, 4  ;;  %v6172_v26 = vpop.permute.xlu0 %6171  ;;  %v6177_v14 = vpop.permute.xlu1 %6176  ;;  %v8262_v24 = vrot.slane %v8261_v15, 1 }
0x365b   :  { %v6179_v36 = vmul.f32 %v6172_v26, %v12842_v28  ;;  %v6180_v31 = vmul.f32 %v6177_v14, %v12847_v33 }
0x365c   :  { %v6251_v32 = vadd.f32 %v6250_v52, %v6249_v5  ;;  %v8263_v35 = vadd.f32 %v8262_v24, %v8261_v15 }
0x365d   :  { %v6181_v21 = vadd.f32 %v6180_v31, %v6179_v36 }
0x365e   :  { %v6252_v19 = vrot.slane %v6251_v32, 2  ;;  %v8265_v38 = vmul.f32 %v8264_v62, %v8263_v35 }
0x365f   :  { %v6182_v27 = vrot.slane %v6181_v21, 4 }
0x3660   :  { %v8266_v39 = vsel %vm5214_vm1, %v8265_v38, 0.0  ;;  %v6253_v50 = vadd.f32 %v6252_v19, %v6251_v32 }
0x3661   :  { %v6183_v46 = vadd.f32 %v6182_v27, %v6181_v21  ;;  %8267 = vadd.xlane.f32.xlu1 %v8266_v39 }
0x3662   :  { %v6254_v1 = vrot.slane %v6253_v50, 1 }
0x3663   :  { %v6184_v51 = vrot.slane %v6183_v46, 2 }
0x3664   :  { %v6255_v28 = vadd.f32 %v6254_v1, %v6253_v50 }
0x3665   :  { %v6185_v20 = vadd.f32 %v6184_v51, %v6183_v46 }
0x3666   :  { %v6256_v11 = vmul.f32 %v6255_v28, %v6188_v47 }
0x3667   :  { %v6186_v12 = vrot.slane %v6185_v20, 1 }
0x3668   :  { %v6257_v58 = vsel %vm5214_vm1, %v6256_v11, 0.0 }
0x3669   :  { %v6187_v44 = vadd.f32 %v6186_v12, %v6185_v20 }
0x366b   :  { %v6189_v33 = vmul.f32 %v6188_v47, %v6187_v44 }
0x366d   :  { %v6190_v53 = vsel %vm5214_vm1, %v6189_v33, 0.0 }
0x366e   :  { %6191 = vadd.xlane.f32.xlu0 %v6190_v53 }
0x3672   :  { %6258 = vadd.xlane.f32.xlu0 %v6257_v58 }
0x36e2   :  { %v8333_v13 = vpop.xlane.xlu0 %8332 }
0x36e3   :  { %v8334_v23 = vadd.f32 %v8333_v13, %v8269_v30 }
0x36e5   :  { %8341 = vrot.lane.b32.xlu0 %v8334_v23, %s10576_s1 }
0x36ea   :  { %v8268_v34 = vpop.xlane.xlu1 %8267 }
0x36eb   :  { %v8270_v6 = vadd.f32 %v8269_v30, %v8268_v34 }
0x36ed   :  { %8336 = vrot.lane.b32.xlu1 %v8270_v6, %s10576_s1 }
0x36f7   :  { %v6192_v43 = vpop.xlane.xlu0 %6191 }
0x36f8   :  { %v6194_v2 = vadd.f32 %v6193_v57, %v6192_v43 }
0x36fb   :  { %v6259_v48 = vpop.xlane.xlu0 %6258 }
0x36fc   :  { %v6260_v45 = vadd.f32 %v6259_v48, %v6193_v57 }
0x3757   :  { %v8342_v10 = vpop.permute.xlu0 %8341 }
0x3758   :  { %v8344_v60 = vsel %vm356_vm5, %v6260_v45, %v8342_v10 }
0x3759   :  { %v8346_v41 = vrot.slane %v8344_v60, 7 }
0x375f   :  { %v8337_v42 = vpop.permute.xlu1 %8336 }
0x3760   :  { %v8339_v54 = vsel %vm356_vm5, %v6194_v2, %v8337_v42 }
0x3761   :  { %v8348_v8 = vsel %vm5214_vm1, %v8339_v54, %v8346_v41 }
0x3762   :  { %8350 = vst.msk [vmem:[#allocation31] sm:$0x3] %vm8349_vm12, %v8348_v8 }
0x3763   :  { %10486 = shalt.err (!%p10483_p8)
}
0x3764   :  { %s13009_s29 = sld [smem:[#allocation66_spill]] }
0x376a   :  { %8360 = dma.vmem_to_hbm [thread:$0]  %s8358_s20, 32, %s13009_s29, [#allocation15]  }
0x376b   :  { %10509 = dma.done.wait [#allocation15], 32  }
0x376c   :  { %10510 = vsyncadd [#allocation15], 4294967264 }
0x376d   :  { %8364 = vsyncpa [#allocation14], 1 }
0x376e   :  { %8365 = vsyncpa [#allocation17], 1 }
0x376f   :  { %8366 = vsyncpa [#allocation20], 1 }
0x3770   :  { %8367 = vsyncpa [#allocation23], 1 }
0x3771   :  { %8368 = vsyncpa [#allocation26], 1 }
0x3772   :  { %8369 = vsyncpa [#allocation29], 1 }
0x3773   :  { %8370 = vsyncpa [#allocation15], 1 }

</bundles_post_ra>
